<compile_context>
chip_gen: v7x
topology: tpu7x:2x2x1
jax: 0.10.0
libtpu: 0.0.40
codegen_flags: <defaults>
</compile_context>

<pallas_src>
import jax
import jax.numpy as jnp
from jax.experimental import pallas as pl
from jax.experimental.pallas import tpu as pltpu

HEADS = 8
DIM_HEAD = 64   # NeighborEncoder / Attention defaults in the PyTorch module
EPS = 1e-6      # CosineSimilarity eps


def _scorer_kernel(
    field_ref, cand_pos_ref, word_emb_ref, pos_ref,
    wf_ref, bf_ref,                    # field_embedder
    wcp_ref, bcp_ref,                  # cand_pos_embedder
    w1_ref, b1_ref, w2_ref, b2_ref,    # NeighborEmbedder pos MLP
    wq_ref, wk_ref, wv_ref,            # Attention.to_qkv pre-split, scale folded into wq
    wa_ref, ba_ref, wb_ref, bb_ref,    # NeighborEncoder FFN
    wfc_ref, bfc_ref,                  # Scorer.fc
    out_ref,                           # (1, TB) lane-dense scores
):
    f32, bf16 = jnp.float32, jnp.bfloat16
    TB, N, E = word_emb_ref.shape
    D = 2 * E
    H, dh = HEADS, DIM_HEAD

    # ---- field / candidate-position linear embeds (tiny contractions; f32) --
    field_embed = jnp.dot(field_ref[...], wf_ref[...],
                          preferred_element_type=f32) + bf_ref[...]       # (TB, E)
    cand_pos_embed = jnp.dot(cand_pos_ref[...], wcp_ref[...],
                             preferred_element_type=f32) + bcp_ref[...]   # (TB, E)

    # ---- NeighborEmbedder ----------------------------------------------------
    # word embedding was gathered outside the kernel (bf16); pos MLP here.
    pos2 = pos_ref[...].reshape(TB * N, 2)
    h1 = jnp.maximum(jnp.dot(pos2, w1_ref[...],
                             preferred_element_type=f32) + b1_ref[...], 0.0)
    pos_emb = jnp.maximum(jnp.dot(h1, w2_ref[...],
                                  preferred_element_type=f32) + b2_ref[...], 0.0)
    # dropout p=0.0 -> identity
    x = jnp.concatenate([word_emb_ref[...].reshape(TB * N, E),
                         pos_emb.astype(bf16)], axis=-1)                  # (TB*N, D) bf16

    # ---- NeighborEncoder: multi-head self-attention (one batched matmul) ----
    q = jnp.dot(x, wq_ref[...], preferred_element_type=f32)               # (TB*N, D)
    k = jnp.dot(x, wk_ref[...], preferred_element_type=f32)
    v = jnp.dot(x, wv_ref[...], preferred_element_type=f32)

    def split_heads(t):
        # (TB*N, D) -> (H*TB, N, dh).  Static 64-lane slices + a leading-axis
        # stack (Mosaic-safe ops) put the heads on a single batch dim so the
        # QK^T and PV products are ONE batched dot_general each.
        t3 = t.reshape(TB, N, D)
        return jnp.stack([t3[:, :, h * dh:(h + 1) * dh] for h in range(H)],
                         axis=0).reshape(H * TB, N, dh).astype(bf16)

    qh, kh, vh = split_heads(q), split_heads(k), split_heads(v)
    # 1/sqrt(dh) is folded into wq at weight-prep time.
    dots = jnp.einsum('znd,zmd->znm', qh, kh,
                      preferred_element_type=f32)                         # (H*TB, N, N)
    m = jnp.max(dots, axis=-1, keepdims=True)
    e = jnp.exp(dots - m)
    attn = e * pl.reciprocal(jnp.sum(e, axis=-1, keepdims=True), approx=True)
    o = jnp.einsum('znm,zmd->znd', attn.astype(bf16), vh,
                   preferred_element_type=f32)                            # (H*TB, N, dh)
    o = o.reshape(H, TB, N, dh)
    attn_out = jnp.concatenate([o[h] for h in range(H)], axis=-1)         # (TB, N, D)

    # ---- NeighborEncoder: FFN + adaptive max pool over sequence -------------
    y = attn_out.reshape(TB * N, D).astype(bf16)
    hf = jnp.maximum(jnp.dot(y, wa_ref[...],
                             preferred_element_type=f32) + ba_ref[...], 0.0)
    ff = jnp.dot(hf.astype(bf16), wb_ref[...],
                 preferred_element_type=f32) + bb_ref[...]
    neigh = jnp.max(ff.reshape(TB, N, D), axis=1)                         # (TB, D)

    # ---- Scorer head + cosine similarity (f32 epilogue) ---------------------
    cand = jnp.concatenate([cand_pos_embed, neigh], axis=-1).astype(bf16) # (TB, 3E)
    cand_enc = jnp.maximum(
        jnp.dot(cand, wfc_ref[...], preferred_element_type=f32) + bfc_ref[...], 0.0)

    num = jnp.sum(field_embed * cand_enc, axis=-1, keepdims=True)
    n1 = jnp.maximum(jnp.sqrt(jnp.sum(field_embed * field_embed,
                                      axis=-1, keepdims=True)), EPS)
    n2 = jnp.maximum(jnp.sqrt(jnp.sum(cand_enc * cand_enc,
                                      axis=-1, keepdims=True)), EPS)
    score = (num / (n1 * n2) + 1.0) * 0.5                                 # (TB, 1)
    out_ref[...] = score.reshape(1, TB)                                   # lane-dense store


def _vmem_limit_bytes():
    """Scoped-VMEM limit sized to the chip (v7x has only 64 MiB per TC)."""
    try:
        cap = int(pltpu.get_tpu_info().vmem_capacity_bytes)
    except Exception:
        return 48 * 1024 * 1024
    return min(cap * 3 // 4, 96 * 1024 * 1024)


def prep_weights(params):
    """One-time weight transform (zero runtime cost): split to_qkv, fold the
    softmax scale into wq, cast the big-matmul weights + emb table to bf16."""
    bf16 = jnp.bfloat16
    E = params['emb'].shape[1]
    D = 2 * E
    wqkv = params['wqkv']
    return dict(
        wf=params['wf'], bf=params['bf'],
        wcp=params['wcp'], bcp=params['bcp'],
        emb=params['emb'].astype(bf16),
        w1=params['w1'], b1=params['b1'],
        w2=params['w2'], b2=params['b2'],
        wq=(wqkv[:, 0 * D:1 * D] * (DIM_HEAD ** -0.5)).astype(bf16),
        wk=wqkv[:, 1 * D:2 * D].astype(bf16),
        wv=wqkv[:, 2 * D:3 * D].astype(bf16),
        wa=params['wa'].astype(bf16), ba=params['ba'],
        wb=params['wb'].astype(bf16), bb=params['bb'],
        wfc=params['wfc'].astype(bf16), bfc=params['bfc'],
    )


def scorer_forward(p, field, cand_pos, text, pos, *, tb=None):
    B, n_fields = field.shape
    N = text.shape[1]
    E = p['emb'].shape[1]
    D = 2 * E
    assert D == HEADS * DIM_HEAD, "Attention inner_dim (8*64) must equal 2*emb_dim"

    # Batch tile: whole batch when small; 128 rows/step otherwise so the
    # lane-dense (1, tb) output block stays 128-aligned.  Per-step bf16/f32
    # activations stay well under v7x's 64 MiB VMEM at tb=128.
    if tb is None:
        tb = B if B <= 128 else 128
    n_blocks = -(-B // tb)
    b_pad = n_blocks * tb
    if b_pad != B:
        padb = b_pad - B
        field = jnp.pad(field, ((0, padb), (0, 0)))
        cand_pos = jnp.pad(cand_pos, ((0, padb), (0, 0)))
        text = jnp.pad(text, ((0, padb), (0, 0)))
        pos = jnp.pad(pos, ((0, padb), (0, 0), (0, 0)))

    # nn.Embedding lookup as an XLA gather (O(B*N*E)), fed to the kernel in bf16.
    word_emb = jnp.take(p['emb'], text, axis=0)                  # (b_pad, N, E) bf16

    weights = (p['wf'], p['bf'], p['wcp'], p['bcp'],
               p['w1'], p['b1'], p['w2'], p['b2'],
               p['wq'], p['wk'], p['wv'],
               p['wa'], p['ba'], p['wb'], p['bb'],
               p['wfc'], p['bfc'])

    def resident(arr):   # whole array in VMEM, same block every grid step
        return pl.BlockSpec(arr.shape, lambda b: (0,) * arr.ndim)

    in_specs = [
        pl.BlockSpec((tb, n_fields), lambda b: (b, 0)),
        pl.BlockSpec((tb, 2), lambda b: (b, 0)),
        pl.BlockSpec((tb, N, E), lambda b: (b, 0, 0)),
        pl.BlockSpec((tb, N, 2), lambda b: (b, 0, 0)),
    ] + [resident(w) for w in weights]

    out = pl.pallas_call(
        _scorer_kernel,
        out_shape=jax.ShapeDtypeStruct((1, b_pad), jnp.float32),
        grid=(n_blocks,),
        in_specs=in_specs,
        out_specs=pl.BlockSpec((1, tb), lambda b: (0, b)),
        compiler_params=pltpu.CompilerParams(
            dimension_semantics=("parallel",),     # shards across v7x's 2 TCs
            vmem_limit_bytes=_vmem_limit_bytes(),
        ),
    )(field, cand_pos, word_emb, pos, *weights)
    return out[0, :B]


def scorer_reference(p, field, cand_pos, text, pos):
    """Pure-JAX f32 mirror of the PyTorch forward, for correctness checking."""
    H, dh = HEADS, DIM_HEAD
    field_embed = field @ p['wf'] + p['bf']
    cand_pos_embed = cand_pos @ p['wcp'] + p['bcp']
    word_emb = jnp.take(p['emb'], text, axis=0)
    h1 = jax.nn.relu(pos @ p['w1'] + p['b1'])
    pos_emb = jax.nn.relu(h1 @ p['w2'] + p['b2'])
    x = jnp.concatenate([word_emb, pos_emb], axis=-1)
    qkv = x @ p['wqkv']
    q, k, v = jnp.split(qkv, 3, axis=-1)
    B, N, D = q.shape
    to_heads = lambda t: t.reshape(B, N, H, dh).transpose(0, 2, 1, 3)
    q, k, v = map(to_heads, (q, k, v))
    dots = jnp.einsum('bhnd,bhmd->bhnm', q, k) * (dh ** -0.5)
    attn = jax.nn.softmax(dots, axis=-1)
    out = jnp.einsum('bhnm,bhmd->bhnd', attn, v).transpose(0, 2, 1, 3).reshape(B, N, D)
    ff = jax.nn.relu(out @ p['wa'] + p['ba']) @ p['wb'] + p['bb']
    neigh = jnp.max(ff, axis=1)
    cand = jnp.concatenate([cand_pos_embed, neigh], axis=-1)
    cand_enc = jax.nn.relu(cand @ p['wfc'] + p['bfc'])
    num = jnp.sum(field_embed * cand_enc, axis=1)
    n1 = jnp.maximum(jnp.linalg.norm(field_embed, axis=1), EPS)
    n2 = jnp.maximum(jnp.linalg.norm(cand_enc, axis=1), EPS)
    return (num / (n1 * n2) + 1.0) * 0.5


def init_params(key, emb_dim, vocab_size, n_fields):
    D = 2 * emb_dim

    def lin(k, fan_in, fan_out):
        k1, k2 = jax.random.split(k)
        bound = 1.0 / (fan_in ** 0.5)
        w = jax.random.uniform(k1, (fan_in, fan_out), jnp.float32, -bound, bound)
        b = jax.random.uniform(k2, (1, fan_out), jnp.float32, -bound, bound)
        return w, b

    ks = jax.random.split(key, 9)
    wf, bf = lin(ks[0], n_fields, emb_dim)
    wcp, bcp = lin(ks[1], 2, emb_dim)
    emb = jax.random.normal(ks[2], (vocab_size, emb_dim), jnp.float32)
    w1, b1 = lin(ks[3], 2, 128)
    w2, b2 = lin(ks[4], 128, emb_dim)
    wqkv, _ = lin(ks[5], D, 3 * D)          # to_qkv has no bias
    wa, ba = lin(ks[6], D, 2 * D)
    wb, bb = lin(ks[7], 2 * D, D)
    wfc, bfc = lin(ks[8], 3 * emb_dim, emb_dim)
    return dict(wf=wf, bf=bf, wcp=wcp, bcp=bcp, emb=emb,
                w1=w1, b1=b1, w2=w2, b2=b2, wqkv=wqkv,
                wa=wa, ba=ba, wb=wb, bb=bb, wfc=wfc, bfc=bfc)


if __name__ == "__main__":
    B, N = 2, 8
    emb_dim = 256      # forced: Attention inner_dim = 8*64 must equal 2*emb_dim
    vocab_size = 1000  # gather is outside the kernel, so vocab size no longer hits VMEM
    n_fields = 4

    key = jax.random.PRNGKey(0)
    kp, kf, kc, kt, kpos = jax.random.split(key, 5)
    params = init_params(kp, emb_dim, vocab_size, n_fields)
    kernel_params = prep_weights(params)

    field = jax.random.normal(kf, (B, n_fields), jnp.float32)
    cand_pos = jax.random.uniform(kc, (B, 2), jnp.float32)
    text = jax.random.randint(kt, (B, N), 0, vocab_size, jnp.int32)
    pos = jax.random.uniform(kpos, (B, N, 2), jnp.float32)

    score = jax.block_until_ready(
        jax.jit(scorer_forward)(kernel_params, field, cand_pos, text, pos))
    ref = scorer_reference(params, field, cand_pos, text, pos)

    assert score.shape == (B,)
    # bf16 matmul inputs (f32 accumulation) vs. the f32 reference -> relaxed tol.
    assert jnp.allclose(score, ref, atol=2e-2, rtol=2e-2), (score, ref)
    print("KERNEL_OK")
</pallas_src>

<mosaic_0001>
module attributes {stable_mosaic.version = 11 : i64} {
  func.func @_scorer_kernel(%arg0: i32, %arg1: memref<2x4xf32, #tpu.memory_space<vmem>>, %arg2: memref<2x2xf32, #tpu.memory_space<vmem>>, %arg3: memref<2x8x256xbf16, #tpu.memory_space<vmem>>, %arg4: memref<2x8x2xf32, #tpu.memory_space<vmem>>, %arg5: memref<4x256xf32, #tpu.memory_space<vmem>>, %arg6: memref<1x256xf32, #tpu.memory_space<vmem>>, %arg7: memref<2x256xf32, #tpu.memory_space<vmem>>, %arg8: memref<1x256xf32, #tpu.memory_space<vmem>>, %arg9: memref<2x128xf32, #tpu.memory_space<vmem>>, %arg10: memref<1x128xf32, #tpu.memory_space<vmem>>, %arg11: memref<128x256xf32, #tpu.memory_space<vmem>>, %arg12: memref<1x256xf32, #tpu.memory_space<vmem>>, %arg13: memref<512x512xbf16, #tpu.memory_space<vmem>>, %arg14: memref<512x512xbf16, #tpu.memory_space<vmem>>, %arg15: memref<512x512xbf16, #tpu.memory_space<vmem>>, %arg16: memref<512x1024xbf16, #tpu.memory_space<vmem>>, %arg17: memref<1x1024xf32, #tpu.memory_space<vmem>>, %arg18: memref<1024x512xbf16, #tpu.memory_space<vmem>>, %arg19: memref<1x512xf32, #tpu.memory_space<vmem>>, %arg20: memref<768x256xbf16, #tpu.memory_space<vmem>>, %arg21: memref<1x256xf32, #tpu.memory_space<vmem>>, %arg22: memref<1x2xf32, #tpu.memory_space<vmem>>) attributes {dimension_semantics = [#tpu.dimension_semantics<parallel>], iteration_bounds = array<i64: 1>, scalar_prefetch = 0 : i64, scratch_operands = 0 : i64, tpu.core_type = #tpu.core_type<tc>, window_params = [{transform_indices = @transform_0, window_bounds = array<i64: 2, 4>}, {transform_indices = @transform_1, window_bounds = array<i64: 2, 2>}, {transform_indices = @transform_2, window_bounds = array<i64: 2, 8, 256>}, {transform_indices = @transform_3, window_bounds = array<i64: 2, 8, 2>}, {pipeline_mode = #tpu.pipeline_mode<synchronous>, transform_indices = @transform_4, window_bounds = array<i64: 4, 256>}, {pipeline_mode = #tpu.pipeline_mode<synchronous>, transform_indices = @transform_5, window_bounds = array<i64: 1, 256>}, {pipeline_mode = #tpu.pipeline_mode<synchronous>, transform_indices = @transform_6, window_bounds = array<i64: 2, 256>}, {pipeline_mode = #tpu.pipeline_mode<synchronous>, transform_indices = @transform_7, window_bounds = array<i64: 1, 256>}, {pipeline_mode = #tpu.pipeline_mode<synchronous>, transform_indices = @transform_8, window_bounds = array<i64: 2, 128>}, {pipeline_mode = #tpu.pipeline_mode<synchronous>, transform_indices = @transform_9, window_bounds = array<i64: 1, 128>}, {pipeline_mode = #tpu.pipeline_mode<synchronous>, transform_indices = @transform_10, window_bounds = array<i64: 128, 256>}, {pipeline_mode = #tpu.pipeline_mode<synchronous>, transform_indices = @transform_11, window_bounds = array<i64: 1, 256>}, {pipeline_mode = #tpu.pipeline_mode<synchronous>, transform_indices = @transform_12, window_bounds = array<i64: 512, 512>}, {pipeline_mode = #tpu.pipeline_mode<synchronous>, transform_indices = @transform_13, window_bounds = array<i64: 512, 512>}, {pipeline_mode = #tpu.pipeline_mode<synchronous>, transform_indices = @transform_14, window_bounds = array<i64: 512, 512>}, {pipeline_mode = #tpu.pipeline_mode<synchronous>, transform_indices = @transform_15, window_bounds = array<i64: 512, 1024>}, {pipeline_mode = #tpu.pipeline_mode<synchronous>, transform_indices = @transform_16, window_bounds = array<i64: 1, 1024>}, {pipeline_mode = #tpu.pipeline_mode<synchronous>, transform_indices = @transform_17, window_bounds = array<i64: 1024, 512>}, {pipeline_mode = #tpu.pipeline_mode<synchronous>, transform_indices = @transform_18, window_bounds = array<i64: 1, 512>}, {pipeline_mode = #tpu.pipeline_mode<synchronous>, transform_indices = @transform_19, window_bounds = array<i64: 768, 256>}, {pipeline_mode = #tpu.pipeline_mode<synchronous>, transform_indices = @transform_20, window_bounds = array<i64: 1, 256>}, {transform_indices = @transform_21, window_bounds = array<i64: 1, 2>}]} {
    %c0 = arith.constant 0 : index
    %c0_0 = arith.constant 0 : index
    %0 = vector.load %arg1[%c0, %c0_0] : memref<2x4xf32, #tpu.memory_space<vmem>>, vector<2x4xf32>
    %c0_1 = arith.constant 0 : index
    %c0_2 = arith.constant 0 : index
    %1 = vector.load %arg5[%c0_1, %c0_2] : memref<4x256xf32, #tpu.memory_space<vmem>>, vector<4x256xf32>
    %cst = arith.constant dense<0.000000e+00> : vector<2x256xf32>
    %2 = tpu.matmul %0, %1, %cst {dimension_numbers = #tpu.dot_dimension_numbers<[1], [0], [0], [1], [0, 0, 1, 1], [], []>} : vector<2x4xf32>, vector<4x256xf32>, vector<2x256xf32> -> vector<2x256xf32>
    %c0_3 = arith.constant 0 : index
    %c0_4 = arith.constant 0 : index
    %3 = vector.load %arg6[%c0_3, %c0_4] : memref<1x256xf32, #tpu.memory_space<vmem>>, vector<1x256xf32>
    %4 = vector.broadcast %3 : vector<1x256xf32> to vector<2x256xf32>
    %5 = arith.addf %2, %4 : vector<2x256xf32>
    %c0_5 = arith.constant 0 : index
    %c0_6 = arith.constant 0 : index
    %6 = vector.load %arg2[%c0_5, %c0_6] : memref<2x2xf32, #tpu.memory_space<vmem>>, vector<2x2xf32>
    %c0_7 = arith.constant 0 : index
    %c0_8 = arith.constant 0 : index
    %7 = vector.load %arg7[%c0_7, %c0_8] : memref<2x256xf32, #tpu.memory_space<vmem>>, vector<2x256xf32>
    %cst_9 = arith.constant dense<0.000000e+00> : vector<2x256xf32>
    %8 = tpu.matmul %6, %7, %cst_9 {dimension_numbers = #tpu.dot_dimension_numbers<[1], [0], [0], [1], [0, 0, 1, 1], [], []>} : vector<2x2xf32>, vector<2x256xf32>, vector<2x256xf32> -> vector<2x256xf32>
    %c0_10 = arith.constant 0 : index
    %c0_11 = arith.constant 0 : index
    %9 = vector.load %arg8[%c0_10, %c0_11] : memref<1x256xf32, #tpu.memory_space<vmem>>, vector<1x256xf32>
    %10 = vector.broadcast %9 : vector<1x256xf32> to vector<2x256xf32>
    %11 = arith.addf %8, %10 : vector<2x256xf32>
    %c0_12 = arith.constant 0 : index
    %c0_13 = arith.constant 0 : index
    %c0_14 = arith.constant 0 : index
    %12 = vector.load %arg4[%c0_12, %c0_13, %c0_14] : memref<2x8x2xf32, #tpu.memory_space<vmem>>, vector<2x8x2xf32>
    %13 = vector.shape_cast %12 : vector<2x8x2xf32> to vector<16x2xf32>
    %c0_15 = arith.constant 0 : index
    %c0_16 = arith.constant 0 : index
    %14 = vector.load %arg9[%c0_15, %c0_16] : memref<2x128xf32, #tpu.memory_space<vmem>>, vector<2x128xf32>
    %cst_17 = arith.constant dense<0.000000e+00> : vector<16x128xf32>
    %15 = tpu.matmul %13, %14, %cst_17 {dimension_numbers = #tpu.dot_dimension_numbers<[1], [0], [0], [1], [0, 0, 1, 1], [], []>} : vector<16x2xf32>, vector<2x128xf32>, vector<16x128xf32> -> vector<16x128xf32>
    %c0_18 = arith.constant 0 : index
    %c0_19 = arith.constant 0 : index
    %16 = vector.load %arg10[%c0_18, %c0_19] : memref<1x128xf32, #tpu.memory_space<vmem>>, vector<1x128xf32>
    %17 = vector.broadcast %16 : vector<1x128xf32> to vector<16x128xf32>
    %18 = arith.addf %15, %17 : vector<16x128xf32>
    %cst_20 = arith.constant 0.000000e+00 : f32
    %19 = vector.broadcast %cst_20 : f32 to vector<16x128xf32>
    %20 = arith.maximumf %18, %19 : vector<16x128xf32>
    %c0_21 = arith.constant 0 : index
    %c0_22 = arith.constant 0 : index
    %21 = vector.load %arg11[%c0_21, %c0_22] : memref<128x256xf32, #tpu.memory_space<vmem>>, vector<128x256xf32>
    %cst_23 = arith.constant dense<0.000000e+00> : vector<16x256xf32>
    %22 = tpu.matmul %20, %21, %cst_23 {dimension_numbers = #tpu.dot_dimension_numbers<[1], [0], [0], [1], [0, 0, 1, 1], [], []>} : vector<16x128xf32>, vector<128x256xf32>, vector<16x256xf32> -> vector<16x256xf32>
    %c0_24 = arith.constant 0 : index
    %c0_25 = arith.constant 0 : index
    %23 = vector.load %arg12[%c0_24, %c0_25] : memref<1x256xf32, #tpu.memory_space<vmem>>, vector<1x256xf32>
    %24 = vector.broadcast %23 : vector<1x256xf32> to vector<16x256xf32>
    %25 = arith.addf %22, %24 : vector<16x256xf32>
    %cst_26 = arith.constant 0.000000e+00 : f32
    %26 = vector.broadcast %cst_26 : f32 to vector<16x256xf32>
    %27 = arith.maximumf %25, %26 : vector<16x256xf32>
    %c0_27 = arith.constant 0 : index
    %c0_28 = arith.constant 0 : index
    %c0_29 = arith.constant 0 : index
    %28 = vector.load %arg3[%c0_27, %c0_28, %c0_29] : memref<2x8x256xbf16, #tpu.memory_space<vmem>>, vector<2x8x256xbf16>
    %29 = vector.shape_cast %28 : vector<2x8x256xbf16> to vector<16x256xbf16>
    %30 = arith.truncf %27 : vector<16x256xf32> to vector<16x256xbf16>
    %31 = tpu.concatenate %29, %30 in 1 : vector<16x256xbf16>, vector<16x256xbf16> -> vector<16x512xbf16>
    %c0_30 = arith.constant 0 : index
    %c0_31 = arith.constant 0 : index
    %32 = vector.load %arg13[%c0_30, %c0_31] : memref<512x512xbf16, #tpu.memory_space<vmem>>, vector<512x512xbf16>
    %cst_32 = arith.constant dense<0.000000e+00> : vector<16x512xf32>
    %33 = tpu.matmul %31, %32, %cst_32 {dimension_numbers = #tpu.dot_dimension_numbers<[1], [0], [0], [1], [0, 0, 1, 1], [], []>} : vector<16x512xbf16>, vector<512x512xbf16>, vector<16x512xf32> -> vector<16x512xf32>
    %c0_33 = arith.constant 0 : index
    %c0_34 = arith.constant 0 : index
    %34 = vector.load %arg14[%c0_33, %c0_34] : memref<512x512xbf16, #tpu.memory_space<vmem>>, vector<512x512xbf16>
    %cst_35 = arith.constant dense<0.000000e+00> : vector<16x512xf32>
    %35 = tpu.matmul %31, %34, %cst_35 {dimension_numbers = #tpu.dot_dimension_numbers<[1], [0], [0], [1], [0, 0, 1, 1], [], []>} : vector<16x512xbf16>, vector<512x512xbf16>, vector<16x512xf32> -> vector<16x512xf32>
    %c0_36 = arith.constant 0 : index
    %c0_37 = arith.constant 0 : index
    %36 = vector.load %arg15[%c0_36, %c0_37] : memref<512x512xbf16, #tpu.memory_space<vmem>>, vector<512x512xbf16>
    %cst_38 = arith.constant dense<0.000000e+00> : vector<16x512xf32>
    %37 = tpu.matmul %31, %36, %cst_38 {dimension_numbers = #tpu.dot_dimension_numbers<[1], [0], [0], [1], [0, 0, 1, 1], [], []>} : vector<16x512xbf16>, vector<512x512xbf16>, vector<16x512xf32> -> vector<16x512xf32>
    %38 = vector.shape_cast %33 : vector<16x512xf32> to vector<2x8x512xf32>
    %39 = vector.extract_strided_slice %38 {offsets = [0, 0, 0], sizes = [2, 8, 64], strides = [1, 1, 1]} : vector<2x8x512xf32> to vector<2x8x64xf32>
    %40 = vector.extract_strided_slice %38 {offsets = [0, 0, 64], sizes = [2, 8, 64], strides = [1, 1, 1]} : vector<2x8x512xf32> to vector<2x8x64xf32>
    %41 = vector.extract_strided_slice %38 {offsets = [0, 0, 128], sizes = [2, 8, 64], strides = [1, 1, 1]} : vector<2x8x512xf32> to vector<2x8x64xf32>
    %42 = vector.extract_strided_slice %38 {offsets = [0, 0, 192], sizes = [2, 8, 64], strides = [1, 1, 1]} : vector<2x8x512xf32> to vector<2x8x64xf32>
    %43 = vector.extract_strided_slice %38 {offsets = [0, 0, 256], sizes = [2, 8, 64], strides = [1, 1, 1]} : vector<2x8x512xf32> to vector<2x8x64xf32>
    %44 = vector.extract_strided_slice %38 {offsets = [0, 0, 320], sizes = [2, 8, 64], strides = [1, 1, 1]} : vector<2x8x512xf32> to vector<2x8x64xf32>
    %45 = vector.extract_strided_slice %38 {offsets = [0, 0, 384], sizes = [2, 8, 64], strides = [1, 1, 1]} : vector<2x8x512xf32> to vector<2x8x64xf32>
    %46 = vector.extract_strided_slice %38 {offsets = [0, 0, 448], sizes = [2, 8, 64], strides = [1, 1, 1]} : vector<2x8x512xf32> to vector<2x8x64xf32>
    %47 = vector.shape_cast %39 : vector<2x8x64xf32> to vector<1x2x8x64xf32>
    %48 = vector.shape_cast %40 : vector<2x8x64xf32> to vector<1x2x8x64xf32>
    %49 = vector.shape_cast %41 : vector<2x8x64xf32> to vector<1x2x8x64xf32>
    %50 = vector.shape_cast %42 : vector<2x8x64xf32> to vector<1x2x8x64xf32>
    %51 = vector.shape_cast %43 : vector<2x8x64xf32> to vector<1x2x8x64xf32>
    %52 = vector.shape_cast %44 : vector<2x8x64xf32> to vector<1x2x8x64xf32>
    %53 = vector.shape_cast %45 : vector<2x8x64xf32> to vector<1x2x8x64xf32>
    %54 = vector.shape_cast %46 : vector<2x8x64xf32> to vector<1x2x8x64xf32>
    %55 = tpu.concatenate %47, %48, %49, %50, %51, %52, %53, %54 in 0 : vector<1x2x8x64xf32>, vector<1x2x8x64xf32>, vector<1x2x8x64xf32>, vector<1x2x8x64xf32>, vector<1x2x8x64xf32>, vector<1x2x8x64xf32>, vector<1x2x8x64xf32>, vector<1x2x8x64xf32> -> vector<8x2x8x64xf32>
    %56 = vector.shape_cast %55 : vector<8x2x8x64xf32> to vector<16x8x64xf32>
    %57 = arith.truncf %56 : vector<16x8x64xf32> to vector<16x8x64xbf16>
    %58 = vector.shape_cast %35 : vector<16x512xf32> to vector<2x8x512xf32>
    %59 = vector.extract_strided_slice %58 {offsets = [0, 0, 0], sizes = [2, 8, 64], strides = [1, 1, 1]} : vector<2x8x512xf32> to vector<2x8x64xf32>
    %60 = vector.extract_strided_slice %58 {offsets = [0, 0, 64], sizes = [2, 8, 64], strides = [1, 1, 1]} : vector<2x8x512xf32> to vector<2x8x64xf32>
    %61 = vector.extract_strided_slice %58 {offsets = [0, 0, 128], sizes = [2, 8, 64], strides = [1, 1, 1]} : vector<2x8x512xf32> to vector<2x8x64xf32>
    %62 = vector.extract_strided_slice %58 {offsets = [0, 0, 192], sizes = [2, 8, 64], strides = [1, 1, 1]} : vector<2x8x512xf32> to vector<2x8x64xf32>
    %63 = vector.extract_strided_slice %58 {offsets = [0, 0, 256], sizes = [2, 8, 64], strides = [1, 1, 1]} : vector<2x8x512xf32> to vector<2x8x64xf32>
    %64 = vector.extract_strided_slice %58 {offsets = [0, 0, 320], sizes = [2, 8, 64], strides = [1, 1, 1]} : vector<2x8x512xf32> to vector<2x8x64xf32>
    %65 = vector.extract_strided_slice %58 {offsets = [0, 0, 384], sizes = [2, 8, 64], strides = [1, 1, 1]} : vector<2x8x512xf32> to vector<2x8x64xf32>
    %66 = vector.extract_strided_slice %58 {offsets = [0, 0, 448], sizes = [2, 8, 64], strides = [1, 1, 1]} : vector<2x8x512xf32> to vector<2x8x64xf32>
    %67 = vector.shape_cast %59 : vector<2x8x64xf32> to vector<1x2x8x64xf32>
    %68 = vector.shape_cast %60 : vector<2x8x64xf32> to vector<1x2x8x64xf32>
    %69 = vector.shape_cast %61 : vector<2x8x64xf32> to vector<1x2x8x64xf32>
    %70 = vector.shape_cast %62 : vector<2x8x64xf32> to vector<1x2x8x64xf32>
    %71 = vector.shape_cast %63 : vector<2x8x64xf32> to vector<1x2x8x64xf32>
    %72 = vector.shape_cast %64 : vector<2x8x64xf32> to vector<1x2x8x64xf32>
    %73 = vector.shape_cast %65 : vector<2x8x64xf32> to vector<1x2x8x64xf32>
    %74 = vector.shape_cast %66 : vector<2x8x64xf32> to vector<1x2x8x64xf32>
    %75 = tpu.concatenate %67, %68, %69, %70, %71, %72, %73, %74 in 0 : vector<1x2x8x64xf32>, vector<1x2x8x64xf32>, vector<1x2x8x64xf32>, vector<1x2x8x64xf32>, vector<1x2x8x64xf32>, vector<1x2x8x64xf32>, vector<1x2x8x64xf32>, vector<1x2x8x64xf32> -> vector<8x2x8x64xf32>
    %76 = vector.shape_cast %75 : vector<8x2x8x64xf32> to vector<16x8x64xf32>
    %77 = arith.truncf %76 : vector<16x8x64xf32> to vector<16x8x64xbf16>
    %78 = vector.shape_cast %37 : vector<16x512xf32> to vector<2x8x512xf32>
    %79 = vector.extract_strided_slice %78 {offsets = [0, 0, 0], sizes = [2, 8, 64], strides = [1, 1, 1]} : vector<2x8x512xf32> to vector<2x8x64xf32>
    %80 = vector.extract_strided_slice %78 {offsets = [0, 0, 64], sizes = [2, 8, 64], strides = [1, 1, 1]} : vector<2x8x512xf32> to vector<2x8x64xf32>
    %81 = vector.extract_strided_slice %78 {offsets = [0, 0, 128], sizes = [2, 8, 64], strides = [1, 1, 1]} : vector<2x8x512xf32> to vector<2x8x64xf32>
    %82 = vector.extract_strided_slice %78 {offsets = [0, 0, 192], sizes = [2, 8, 64], strides = [1, 1, 1]} : vector<2x8x512xf32> to vector<2x8x64xf32>
    %83 = vector.extract_strided_slice %78 {offsets = [0, 0, 256], sizes = [2, 8, 64], strides = [1, 1, 1]} : vector<2x8x512xf32> to vector<2x8x64xf32>
    %84 = vector.extract_strided_slice %78 {offsets = [0, 0, 320], sizes = [2, 8, 64], strides = [1, 1, 1]} : vector<2x8x512xf32> to vector<2x8x64xf32>
    %85 = vector.extract_strided_slice %78 {offsets = [0, 0, 384], sizes = [2, 8, 64], strides = [1, 1, 1]} : vector<2x8x512xf32> to vector<2x8x64xf32>
    %86 = vector.extract_strided_slice %78 {offsets = [0, 0, 448], sizes = [2, 8, 64], strides = [1, 1, 1]} : vector<2x8x512xf32> to vector<2x8x64xf32>
    %87 = vector.shape_cast %79 : vector<2x8x64xf32> to vector<1x2x8x64xf32>
    %88 = vector.shape_cast %80 : vector<2x8x64xf32> to vector<1x2x8x64xf32>
    %89 = vector.shape_cast %81 : vector<2x8x64xf32> to vector<1x2x8x64xf32>
    %90 = vector.shape_cast %82 : vector<2x8x64xf32> to vector<1x2x8x64xf32>
    %91 = vector.shape_cast %83 : vector<2x8x64xf32> to vector<1x2x8x64xf32>
    %92 = vector.shape_cast %84 : vector<2x8x64xf32> to vector<1x2x8x64xf32>
    %93 = vector.shape_cast %85 : vector<2x8x64xf32> to vector<1x2x8x64xf32>
    %94 = vector.shape_cast %86 : vector<2x8x64xf32> to vector<1x2x8x64xf32>
    %95 = tpu.concatenate %87, %88, %89, %90, %91, %92, %93, %94 in 0 : vector<1x2x8x64xf32>, vector<1x2x8x64xf32>, vector<1x2x8x64xf32>, vector<1x2x8x64xf32>, vector<1x2x8x64xf32>, vector<1x2x8x64xf32>, vector<1x2x8x64xf32>, vector<1x2x8x64xf32> -> vector<8x2x8x64xf32>
    %96 = vector.shape_cast %95 : vector<8x2x8x64xf32> to vector<16x8x64xf32>
    %97 = arith.truncf %96 : vector<16x8x64xf32> to vector<16x8x64xbf16>
    "tpu.trace_start"() <{level = 10 : i32, message = "znd,zmd->znm"}> : () -> ()
    %cst_39 = arith.constant dense<0.000000e+00> : vector<16x8x8xf32>
    %98 = tpu.matmul %57, %77, %cst_39 {dimension_numbers = #tpu.dot_dimension_numbers<[2], [2], [1], [1], [0, 0, 0, 1, 1, 1], [0], [0]>} : vector<16x8x64xbf16>, vector<16x8x64xbf16>, vector<16x8x8xf32> -> vector<16x8x8xf32>
    "tpu.trace_stop"() : () -> ()
    %cst_40 = arith.constant dense<0xFF800000> : vector<16x8xf32>
    %99 = vector.multi_reduction <maximumf>, %98, %cst_40 [2] : vector<16x8x8xf32> to vector<16x8xf32>
    %100 = vector.shape_cast %99 : vector<16x8xf32> to vector<16x8x1xf32>
    %101 = vector.broadcast %100 : vector<16x8x1xf32> to vector<16x8x8xf32>
    %102 = arith.subf %98, %101 : vector<16x8x8xf32>
    %103 = math.exp %102 : vector<16x8x8xf32>
    %cst_41 = arith.constant dense<0.000000e+00> : vector<16x8xf32>
    %104 = vector.multi_reduction <add>, %103, %cst_41 [2] : vector<16x8x8xf32> to vector<16x8xf32>
    %105 = vector.shape_cast %104 : vector<16x8xf32> to vector<16x8x1xf32>
    %106 = tpu.reciprocal %105 {approx = true} : vector<16x8x1xf32> -> vector<16x8x1xf32>
    %107 = vector.broadcast %106 : vector<16x8x1xf32> to vector<16x8x8xf32>
    %108 = arith.mulf %103, %107 : vector<16x8x8xf32>
    %109 = arith.truncf %108 : vector<16x8x8xf32> to vector<16x8x8xbf16>
    "tpu.trace_start"() <{level = 10 : i32, message = "znm,zmd->znd"}> : () -> ()
    %cst_42 = arith.constant dense<0.000000e+00> : vector<16x8x64xf32>
    %110 = tpu.matmul %109, %97, %cst_42 {dimension_numbers = #tpu.dot_dimension_numbers<[2], [1], [1], [2], [0, 0, 0, 1, 1, 2], [0], [0]>} : vector<16x8x8xbf16>, vector<16x8x64xbf16>, vector<16x8x64xf32> -> vector<16x8x64xf32>
    "tpu.trace_stop"() : () -> ()
    %111 = vector.shape_cast %110 : vector<16x8x64xf32> to vector<8x2x8x64xf32>
    %112 = vector.extract_strided_slice %111 {offsets = [0, 0, 0, 0], sizes = [1, 2, 8, 64], strides = [1, 1, 1, 1]} : vector<8x2x8x64xf32> to vector<1x2x8x64xf32>
    %113 = vector.shape_cast %112 : vector<1x2x8x64xf32> to vector<2x8x64xf32>
    %114 = vector.extract_strided_slice %111 {offsets = [1, 0, 0, 0], sizes = [1, 2, 8, 64], strides = [1, 1, 1, 1]} : vector<8x2x8x64xf32> to vector<1x2x8x64xf32>
    %115 = vector.shape_cast %114 : vector<1x2x8x64xf32> to vector<2x8x64xf32>
    %116 = vector.extract_strided_slice %111 {offsets = [2, 0, 0, 0], sizes = [1, 2, 8, 64], strides = [1, 1, 1, 1]} : vector<8x2x8x64xf32> to vector<1x2x8x64xf32>
    %117 = vector.shape_cast %116 : vector<1x2x8x64xf32> to vector<2x8x64xf32>
    %118 = vector.extract_strided_slice %111 {offsets = [3, 0, 0, 0], sizes = [1, 2, 8, 64], strides = [1, 1, 1, 1]} : vector<8x2x8x64xf32> to vector<1x2x8x64xf32>
    %119 = vector.shape_cast %118 : vector<1x2x8x64xf32> to vector<2x8x64xf32>
    %120 = vector.extract_strided_slice %111 {offsets = [4, 0, 0, 0], sizes = [1, 2, 8, 64], strides = [1, 1, 1, 1]} : vector<8x2x8x64xf32> to vector<1x2x8x64xf32>
    %121 = vector.shape_cast %120 : vector<1x2x8x64xf32> to vector<2x8x64xf32>
    %122 = vector.extract_strided_slice %111 {offsets = [5, 0, 0, 0], sizes = [1, 2, 8, 64], strides = [1, 1, 1, 1]} : vector<8x2x8x64xf32> to vector<1x2x8x64xf32>
    %123 = vector.shape_cast %122 : vector<1x2x8x64xf32> to vector<2x8x64xf32>
    %124 = vector.extract_strided_slice %111 {offsets = [6, 0, 0, 0], sizes = [1, 2, 8, 64], strides = [1, 1, 1, 1]} : vector<8x2x8x64xf32> to vector<1x2x8x64xf32>
    %125 = vector.shape_cast %124 : vector<1x2x8x64xf32> to vector<2x8x64xf32>
    %126 = vector.extract_strided_slice %111 {offsets = [7, 0, 0, 0], sizes = [1, 2, 8, 64], strides = [1, 1, 1, 1]} : vector<8x2x8x64xf32> to vector<1x2x8x64xf32>
    %127 = vector.shape_cast %126 : vector<1x2x8x64xf32> to vector<2x8x64xf32>
    %128 = tpu.concatenate %113, %115, %117, %119, %121, %123, %125, %127 in 2 : vector<2x8x64xf32>, vector<2x8x64xf32>, vector<2x8x64xf32>, vector<2x8x64xf32>, vector<2x8x64xf32>, vector<2x8x64xf32>, vector<2x8x64xf32>, vector<2x8x64xf32> -> vector<2x8x512xf32>
    %129 = vector.shape_cast %128 : vector<2x8x512xf32> to vector<16x512xf32>
    %130 = arith.truncf %129 : vector<16x512xf32> to vector<16x512xbf16>
    %c0_43 = arith.constant 0 : index
    %c0_44 = arith.constant 0 : index
    %131 = vector.load %arg16[%c0_43, %c0_44] : memref<512x1024xbf16, #tpu.memory_space<vmem>>, vector<512x1024xbf16>
    %cst_45 = arith.constant dense<0.000000e+00> : vector<16x1024xf32>
    %132 = tpu.matmul %130, %131, %cst_45 {dimension_numbers = #tpu.dot_dimension_numbers<[1], [0], [0], [1], [0, 0, 1, 1], [], []>} : vector<16x512xbf16>, vector<512x1024xbf16>, vector<16x1024xf32> -> vector<16x1024xf32>
    %c0_46 = arith.constant 0 : index
    %c0_47 = arith.constant 0 : index
    %133 = vector.load %arg17[%c0_46, %c0_47] : memref<1x1024xf32, #tpu.memory_space<vmem>>, vector<1x1024xf32>
    %134 = vector.broadcast %133 : vector<1x1024xf32> to vector<16x1024xf32>
    %135 = arith.addf %132, %134 : vector<16x1024xf32>
    %cst_48 = arith.constant 0.000000e+00 : f32
    %136 = vector.broadcast %cst_48 : f32 to vector<16x1024xf32>
    %137 = arith.maximumf %135, %136 : vector<16x1024xf32>
    %138 = arith.truncf %137 : vector<16x1024xf32> to vector<16x1024xbf16>
    %c0_49 = arith.constant 0 : index
    %c0_50 = arith.constant 0 : index
    %139 = vector.load %arg18[%c0_49, %c0_50] : memref<1024x512xbf16, #tpu.memory_space<vmem>>, vector<1024x512xbf16>
    %cst_51 = arith.constant dense<0.000000e+00> : vector<16x512xf32>
    %140 = tpu.matmul %138, %139, %cst_51 {dimension_numbers = #tpu.dot_dimension_numbers<[1], [0], [0], [1], [0, 0, 1, 1], [], []>} : vector<16x1024xbf16>, vector<1024x512xbf16>, vector<16x512xf32> -> vector<16x512xf32>
    %c0_52 = arith.constant 0 : index
    %c0_53 = arith.constant 0 : index
    %141 = vector.load %arg19[%c0_52, %c0_53] : memref<1x512xf32, #tpu.memory_space<vmem>>, vector<1x512xf32>
    %142 = vector.broadcast %141 : vector<1x512xf32> to vector<16x512xf32>
    %143 = arith.addf %140, %142 : vector<16x512xf32>
    %144 = vector.shape_cast %143 : vector<16x512xf32> to vector<2x8x512xf32>
    %cst_54 = arith.constant dense<0xFF800000> : vector<2x512xf32>
    %145 = vector.multi_reduction <maximumf>, %144, %cst_54 [1] : vector<2x8x512xf32> to vector<2x512xf32>
    %146 = tpu.concatenate %11, %145 in 1 : vector<2x256xf32>, vector<2x512xf32> -> vector<2x768xf32>
    %147 = arith.truncf %146 : vector<2x768xf32> to vector<2x768xbf16>
    %c0_55 = arith.constant 0 : index
    %c0_56 = arith.constant 0 : index
    %148 = vector.load %arg20[%c0_55, %c0_56] : memref<768x256xbf16, #tpu.memory_space<vmem>>, vector<768x256xbf16>
    %cst_57 = arith.constant dense<0.000000e+00> : vector<2x256xf32>
    %149 = tpu.matmul %147, %148, %cst_57 {dimension_numbers = #tpu.dot_dimension_numbers<[1], [0], [0], [1], [0, 0, 1, 1], [], []>} : vector<2x768xbf16>, vector<768x256xbf16>, vector<2x256xf32> -> vector<2x256xf32>
    %c0_58 = arith.constant 0 : index
    %c0_59 = arith.constant 0 : index
    %150 = vector.load %arg21[%c0_58, %c0_59] : memref<1x256xf32, #tpu.memory_space<vmem>>, vector<1x256xf32>
    %151 = vector.broadcast %150 : vector<1x256xf32> to vector<2x256xf32>
    %152 = arith.addf %149, %151 : vector<2x256xf32>
    %cst_60 = arith.constant 0.000000e+00 : f32
    %153 = vector.broadcast %cst_60 : f32 to vector<2x256xf32>
    %154 = arith.maximumf %152, %153 : vector<2x256xf32>
    %155 = arith.mulf %5, %154 : vector<2x256xf32>
    %cst_61 = arith.constant dense<0.000000e+00> : vector<2xf32>
    %156 = vector.multi_reduction <add>, %155, %cst_61 [1] : vector<2x256xf32> to vector<2xf32>
    %157 = vector.shape_cast %156 : vector<2xf32> to vector<2x1xf32>
    %158 = arith.mulf %5, %5 : vector<2x256xf32>
    %cst_62 = arith.constant dense<0.000000e+00> : vector<2xf32>
    %159 = vector.multi_reduction <add>, %158, %cst_62 [1] : vector<2x256xf32> to vector<2xf32>
    %160 = vector.shape_cast %159 : vector<2xf32> to vector<2x1xf32>
    %161 = math.sqrt %160 : vector<2x1xf32>
    %cst_63 = arith.constant 9.99999997E-7 : f32
    %162 = vector.broadcast %cst_63 : f32 to vector<2x1xf32>
    %163 = arith.maximumf %161, %162 : vector<2x1xf32>
    %164 = arith.mulf %154, %154 : vector<2x256xf32>
    %cst_64 = arith.constant dense<0.000000e+00> : vector<2xf32>
    %165 = vector.multi_reduction <add>, %164, %cst_64 [1] : vector<2x256xf32> to vector<2xf32>
    %166 = vector.shape_cast %165 : vector<2xf32> to vector<2x1xf32>
    %167 = math.sqrt %166 : vector<2x1xf32>
    %cst_65 = arith.constant 9.99999997E-7 : f32
    %168 = vector.broadcast %cst_65 : f32 to vector<2x1xf32>
    %169 = arith.maximumf %167, %168 : vector<2x1xf32>
    %170 = arith.mulf %163, %169 : vector<2x1xf32>
    %171 = arith.divf %157, %170 : vector<2x1xf32>
    %cst_66 = arith.constant 1.000000e+00 : f32
    %172 = vector.broadcast %cst_66 : f32 to vector<2x1xf32>
    %173 = arith.addf %171, %172 : vector<2x1xf32>
    %cst_67 = arith.constant 5.000000e-01 : f32
    %174 = vector.broadcast %cst_67 : f32 to vector<2x1xf32>
    %175 = arith.mulf %173, %174 : vector<2x1xf32>
    %176 = vector.shape_cast %175 : vector<2x1xf32> to vector<1x2xf32>
    %c0_68 = arith.constant 0 : index
    %c0_69 = arith.constant 0 : index
    %177 = vector.load %arg22[%c0_68, %c0_69] : memref<1x2xf32, #tpu.memory_space<vmem>>, vector<1x2xf32>
    tpu.vector_store %arg22[%c0_68, %c0_69], %176 {strides = array<i32>} : memref<1x2xf32, #tpu.memory_space<vmem>>, vector<1x2xf32>,
    return
  }
  func.func @transform_0(%arg0: i32) -> (i32, i32) {
    %c0_i32 = arith.constant 0 : i32
    %c0_i32_0 = arith.constant 0 : i32
    return %arg0, %c0_i32 : i32, i32
  }
  func.func @transform_1(%arg0: i32) -> (i32, i32) {
    %c0_i32 = arith.constant 0 : i32
    %c0_i32_0 = arith.constant 0 : i32
    return %arg0, %c0_i32 : i32, i32
  }
  func.func @transform_2(%arg0: i32) -> (i32, i32, i32) {
    %c0_i32 = arith.constant 0 : i32
    %c0_i32_0 = arith.constant 0 : i32
    %c0_i32_1 = arith.constant 0 : i32
    return %arg0, %c0_i32, %c0_i32_0 : i32, i32, i32
  }
  func.func @transform_3(%arg0: i32) -> (i32, i32, i32) {
    %c0_i32 = arith.constant 0 : i32
    %c0_i32_0 = arith.constant 0 : i32
    %c0_i32_1 = arith.constant 0 : i32
    return %arg0, %c0_i32, %c0_i32_0 : i32, i32, i32
  }
  func.func @transform_4(%arg0: i32) -> (i32, i32) {
    %c0_i32 = arith.constant 0 : i32
    %c0_i32_0 = arith.constant 0 : i32
    %c0_i32_1 = arith.constant 0 : i32
    return %c0_i32, %c0_i32_0 : i32, i32
  }
  func.func @transform_5(%arg0: i32) -> (i32, i32) {
    %c0_i32 = arith.constant 0 : i32
    %c0_i32_0 = arith.constant 0 : i32
    %c0_i32_1 = arith.constant 0 : i32
    return %c0_i32, %c0_i32_0 : i32, i32
  }
  func.func @transform_6(%arg0: i32) -> (i32, i32) {
    %c0_i32 = arith.constant 0 : i32
    %c0_i32_0 = arith.constant 0 : i32
    %c0_i32_1 = arith.constant 0 : i32
    return %c0_i32, %c0_i32_0 : i32, i32
  }
  func.func @transform_7(%arg0: i32) -> (i32, i32) {
    %c0_i32 = arith.constant 0 : i32
    %c0_i32_0 = arith.constant 0 : i32
    %c0_i32_1 = arith.constant 0 : i32
    return %c0_i32, %c0_i32_0 : i32, i32
  }
  func.func @transform_8(%arg0: i32) -> (i32, i32) {
    %c0_i32 = arith.constant 0 : i32
    %c0_i32_0 = arith.constant 0 : i32
    %c0_i32_1 = arith.constant 0 : i32
    return %c0_i32, %c0_i32_0 : i32, i32
  }
  func.func @transform_9(%arg0: i32) -> (i32, i32) {
    %c0_i32 = arith.constant 0 : i32
    %c0_i32_0 = arith.constant 0 : i32
    %c0_i32_1 = arith.constant 0 : i32
    return %c0_i32, %c0_i32_0 : i32, i32
  }
  func.func @transform_10(%arg0: i32) -> (i32, i32) {
    %c0_i32 = arith.constant 0 : i32
    %c0_i32_0 = arith.constant 0 : i32
    %c0_i32_1 = arith.constant 0 : i32
    return %c0_i32, %c0_i32_0 : i32, i32
  }
  func.func @transform_11(%arg0: i32) -> (i32, i32) {
    %c0_i32 = arith.constant 0 : i32
    %c0_i32_0 = arith.constant 0 : i32
    %c0_i32_1 = arith.constant 0 : i32
    return %c0_i32, %c0_i32_0 : i32, i32
  }
  func.func @transform_12(%arg0: i32) -> (i32, i32) {
    %c0_i32 = arith.constant 0 : i32
    %c0_i32_0 = arith.constant 0 : i32
    %c0_i32_1 = arith.constant 0 : i32
    return %c0_i32, %c0_i32_0 : i32, i32
  }
  func.func @transform_13(%arg0: i32) -> (i32, i32) {
    %c0_i32 = arith.constant 0 : i32
    %c0_i32_0 = arith.constant 0 : i32
    %c0_i32_1 = arith.constant 0 : i32
    return %c0_i32, %c0_i32_0 : i32, i32
  }
  func.func @transform_14(%arg0: i32) -> (i32, i32) {
    %c0_i32 = arith.constant 0 : i32
    %c0_i32_0 = arith.constant 0 : i32
    %c0_i32_1 = arith.constant 0 : i32
    return %c0_i32, %c0_i32_0 : i32, i32
  }
  func.func @transform_15(%arg0: i32) -> (i32, i32) {
    %c0_i32 = arith.constant 0 : i32
    %c0_i32_0 = arith.constant 0 : i32
    %c0_i32_1 = arith.constant 0 : i32
    return %c0_i32, %c0_i32_0 : i32, i32
  }
  func.func @transform_16(%arg0: i32) -> (i32, i32) {
    %c0_i32 = arith.constant 0 : i32
    %c0_i32_0 = arith.constant 0 : i32
    %c0_i32_1 = arith.constant 0 : i32
    return %c0_i32, %c0_i32_0 : i32, i32
  }
  func.func @transform_17(%arg0: i32) -> (i32, i32) {
    %c0_i32 = arith.constant 0 : i32
    %c0_i32_0 = arith.constant 0 : i32
    %c0_i32_1 = arith.constant 0 : i32
    return %c0_i32, %c0_i32_0 : i32, i32
  }
  func.func @transform_18(%arg0: i32) -> (i32, i32) {
    %c0_i32 = arith.constant 0 : i32
    %c0_i32_0 = arith.constant 0 : i32
    %c0_i32_1 = arith.constant 0 : i32
    return %c0_i32, %c0_i32_0 : i32, i32
  }
  func.func @transform_19(%arg0: i32) -> (i32, i32) {
    %c0_i32 = arith.constant 0 : i32
    %c0_i32_0 = arith.constant 0 : i32
    %c0_i32_1 = arith.constant 0 : i32
    return %c0_i32, %c0_i32_0 : i32, i32
  }
  func.func @transform_20(%arg0: i32) -> (i32, i32) {
    %c0_i32 = arith.constant 0 : i32
    %c0_i32_0 = arith.constant 0 : i32
    %c0_i32_1 = arith.constant 0 : i32
    return %c0_i32, %c0_i32_0 : i32, i32
  }
  func.func @transform_21(%arg0: i32) -> (i32, i32) {
    %c0_i32 = arith.constant 0 : i32
    %c0_i32_0 = arith.constant 0 : i32
    return %c0_i32, %arg0 : i32, i32
  }
}

</mosaic_0001>

<bundles_post_ra>
// kernel: scorer_forward.1
= control target key start
LH: loop header
LB: loop body
LE: loop exit
PB: predicated region body
PF: predicated region fallthrough
CT: control target
= control target key end

     0   :  { %s13866_s0 = inlined_call_operand.vmem [shape: f32[2,4], index: 0, kind: input, shape index: {}]   ;;  %s13867_s1 = inlined_call_operand.vmem [shape: f32[2,2], index: 1, kind: input, shape index: {}]   ;;  %s13868_s2 = inlined_call_operand.vmem [shape: bf16[2,8,256], index: 2, kind: input, shape index: {}]   ;;  %s13869_s3 = inlined_call_operand.vmem [shape: f32[2,8,2], index: 3, kind: input, shape index: {}]   ;;  %s13870_s4 = inlined_call_operand.vmem [shape: f32[4,256], index: 4, kind: input, shape index: {}]   ;;  %s13871_s5 = inlined_call_operand.vmem [shape: f32[1,256], index: 5, kind: input, shape index: {}]   ;;  %s13872_s6 = inlined_call_operand.vmem [shape: f32[2,256], index: 6, kind: input, shape index: {}]   ;;  %s13873_s7 = inlined_call_operand.vmem [shape: f32[1,256], index: 7, kind: input, shape index: {}]   ;;  %s13874_s8 = inlined_call_operand.vmem [shape: f32[2,128], index: 8, kind: input, shape index: {}]   ;;  %s13875_s9 = inlined_call_operand.vmem [shape: f32[1,128], index: 9, kind: input, shape index: {}]   ;;  %s13876_s10 = inlined_call_operand.hbm [shape: f32[128,256], index: 10, kind: input, shape index: {}]   ;;  %s13877_s11 = inlined_call_operand.vmem [shape: f32[1,256], index: 11, kind: input, shape index: {}]   ;;  %s13878_s12 = inlined_call_operand.hbm [shape: bf16[512,512], index: 12, kind: input, shape index: {}]   ;;  %s13879_s13 = inlined_call_operand.hbm [shape: bf16[512,512], index: 13, kind: input, shape index: {}]   ;;  %s13880_s14 = inlined_call_operand.hbm [shape: bf16[512,512], index: 14, kind: input, shape index: {}]   ;;  %s13881_s15 = inlined_call_operand.hbm [shape: bf16[512,1024], index: 15, kind: input, shape index: {}]   ;;  %s13882_s16 = inlined_call_operand.vmem [shape: f32[1,1024], index: 16, kind: input, shape index: {}]   ;;  %s13883_s17 = inlined_call_operand.hbm [shape: bf16[1024,512], index: 17, kind: input, shape index: {}]   ;;  %s13884_s18 = inlined_call_operand.vmem [shape: f32[1,512], index: 18, kind: input, shape index: {}]   ;;  %s13885_s19 = inlined_call_operand.hbm [shape: bf16[768,256], index: 19, kind: input, shape index: {}]   ;;  %s13886_s20 = inlined_call_operand.vmem [shape: f32[1,256], index: 20, kind: input, shape index: {}]   ;;  %s13887_s21 = inlined_call_operand.hbm [shape: f32[1,2], index: 21, kind: output, shape index: {}]  }
   0x1   :  { %13890 = sst [smem:[#allocation20_spill]] %s13866_s0 }
   0x2   :  { %13891 = sst [smem:[#allocation21_spill]] %s13867_s1 }
   0x3   :  { %13892 = sst [smem:[#allocation22_spill]] %s13868_s2 }
   0x4   :  { %13893 = sst [smem:[#allocation23_spill]] %s13869_s3 }
   0x5   :  { %13894 = sst [smem:[#allocation24_spill]] %s13870_s4 }
   0x6   :  { %13895 = sst [smem:[#allocation25_spill]] %s13871_s5 }
   0x7   :  { %26 = vsyncpa [#allocation3], 0 }
   0x8   :  { %27 = vsyncpa [#allocation6], 0 }
   0x9   :  { %28 = vsyncpa [#allocation9], 0 }
   0xa   :  { %29 = vsyncpa [#allocation12], 0 }
   0xb   :  { %30 = vsyncpa [#allocation4], 0  ;;  %s12864_s2 = smov [#allocation5]   ;;  %s12865_s26 = smov [#allocation8]  }
   0xc   :  { %s70_s25 = sshll.u32 %s12864_s2, 4  ;;  %s94_s27 = sshll.u32 %s12865_s26, 4  ;;  %s71_s25 = int_to_ptr.vmem [resolvable:$true] %s70_s25  ;;  %s12991_s27 = int_to_ptr.vmem [resolvable:$true] %s94_s27 }
   0xd   :  { %s12678_s29 = scalar_lea.hbm %s13878_s12, 16384 }
   0xe   :  { %p12679_p0 = scmp.ne.s32.totalorder %s13878_s12, %s12678_s29  ;;  %p12682_p1 = scmp.lt.u32.totalorder %s12678_s29, %s13878_s12 }
  0x10   :  { %p12684_p2 = pnand %p12682_p1, %p12679_p0 }
  0x12   :  { %12687 = shalt.err (!%p12684_p2)
}
  0x13   :  { %s12688_s22 = scalar_lea.vmem %s71_s25, 16384  ;;  %p12693_p4 = scmp.lt.s32.totalorder %s71_s25, %s71_s25 }
  0x14   :  { %p12689_p3 = scmp.ne.s32.totalorder %s71_s25, %s12688_s22  ;;  %p12694_p5 = scmp.lt.s32.totalorder %s12688_s22, %s12688_s22 }
  0x16   :  { %p12695_p6 = por %p12694_p5, %p12693_p4 }
  0x18   :  { %p12696_p7 = pnand %p12695_p6, %p12689_p3 }
  0x1a   :  { %12699 = shalt.err (!%p12696_p7)
}
  0x1b   :  { %s12866_s23 = smov 256   ;;  %s12867_s1 = smov 16  }
  0x1c   :  { %76 = dma.hbm_to_vmem [thread:$0]  %s13878_s12, 16384, %s71_s25, [#allocation6], %s12866_s23, %s12866_s23, %s12867_s1  }
  0x1d   :  { %s12700_s28 = scalar_lea.hbm %s13880_s14, 16384 }
  0x1e   :  { %p12701_p8 = scmp.ne.s32.totalorder %s13880_s14, %s12700_s28  ;;  %p12704_p9 = scmp.lt.u32.totalorder %s12700_s28, %s13880_s14 }
  0x20   :  { %p12706_p10 = pnand %p12704_p9, %p12701_p8 }
  0x22   :  { %12709 = shalt.err (!%p12706_p10)
}
  0x23   :  { %s12710_s5 = scalar_lea.vmem %s12991_s27, 16384  ;;  %p12715_p12 = scmp.lt.s32.totalorder %s12991_s27, %s12991_s27 }
  0x24   :  { %p12711_p11 = scmp.ne.s32.totalorder %s12991_s27, %s12710_s5  ;;  %p12716_p13 = scmp.lt.s32.totalorder %s12710_s5, %s12710_s5 }
  0x26   :  { %p12717_p0 = por %p12716_p13, %p12715_p12 }
  0x28   :  { %p12718_p1 = pnand %p12717_p0, %p12711_p11 }
  0x2a   :  { %12721 = shalt.err (!%p12718_p1)
}
  0x2b   :  { %100 = dma.hbm_to_vmem [thread:$0]  %s13880_s14, 16384, %s12991_s27, [#allocation9], %s12866_s23, %s12866_s23, %s12867_s1  }
  0x2c   :  { %s12868_s22 = smov [#allocation11]   ;;  %s12869_s2 = smov [#allocation2]  }
  0x2d   :  { %s120_s24 = sshll.u32 %s12868_s22, 4  ;;  %s56_s26 = sshll.u32 %s12869_s2, 4  ;;  %s121_s24 = int_to_ptr.vmem [resolvable:$true] %s120_s24  ;;  %s13028_s26 = int_to_ptr.vmem [resolvable:$true] %s56_s26 }
  0x2e   :  { %s12722_s29 = scalar_lea.hbm %s13883_s17, 32768 }
  0x2f   :  { %p12723_p2 = scmp.ne.s32.totalorder %s13883_s17, %s12722_s29  ;;  %p12726_p3 = scmp.lt.u32.totalorder %s12722_s29, %s13883_s17 }
  0x31   :  { %p12728_p4 = pnand %p12726_p3, %p12723_p2 }
  0x33   :  { %12731 = shalt.err (!%p12728_p4)
}
  0x34   :  { %s12732_s14 = scalar_lea.vmem %s121_s24, 32768  ;;  %p12737_p6 = scmp.lt.s32.totalorder %s121_s24, %s121_s24 }
  0x35   :  { %p12733_p5 = scmp.ne.s32.totalorder %s121_s24, %s12732_s14  ;;  %p12738_p7 = scmp.lt.s32.totalorder %s12732_s14, %s12732_s14 }
  0x37   :  { %p12739_p8 = por %p12738_p7, %p12737_p6 }
  0x39   :  { %p12740_p9 = pnand %p12739_p8, %p12733_p5 }
  0x3b   :  { %12743 = shalt.err (!%p12740_p9)
}
  0x3c   :  { %126 = dma.hbm_to_vmem [thread:$0]  %s13883_s17, 32768, %s121_s24, [#allocation12], %s12866_s23, %s12866_s23, %s12867_s1  }
  0x3d   :  { %s12744_s2 = scalar_lea.hbm %s13876_s10, 4096 }
  0x3e   :  { %p12745_p10 = scmp.ne.s32.totalorder %s13876_s10, %s12744_s2  ;;  %p12748_p11 = scmp.lt.u32.totalorder %s12744_s2, %s13876_s10 }
  0x40   :  { %p12750_p12 = pnand %p12748_p11, %p12745_p10 }
  0x42   :  { %12753 = shalt.err (!%p12750_p12)
}
  0x43   :  { %s12754_s4 = scalar_lea.vmem %s13028_s26, 4096  ;;  %p12759_p0 = scmp.lt.s32.totalorder %s13028_s26, %s13028_s26 }
  0x44   :  { %p12755_p13 = scmp.ne.s32.totalorder %s13028_s26, %s12754_s4  ;;  %p12760_p1 = scmp.lt.s32.totalorder %s12754_s4, %s12754_s4 }
  0x46   :  { %p12761_p2 = por %p12760_p1, %p12759_p0 }
  0x48   :  { %p12762_p3 = pnand %p12761_p2, %p12755_p13 }
  0x4a   :  { %12765 = shalt.err (!%p12762_p3)
}
  0x4b   :  { %62 = dma.hbm_to_vmem [thread:$0]  %s13876_s10, 4096, %s13028_s26, [#allocation3], %s12866_s23, %s12866_s23, %s12867_s1  }
  0x4c   :  { %s12870_s30 = smov [#allocation7]   ;;  %s12871_s14 = smov [#allocation10]  }
  0x4d   :  { %s82_s5 = sshll.u32 %s12870_s30, 4  ;;  %s106_s27 = sshll.u32 %s12871_s14, 4  ;;  %s83_s5 = int_to_ptr.vmem [resolvable:$true] %s82_s5  ;;  %s13065_s27 = int_to_ptr.vmem [resolvable:$true] %s106_s27 }
  0x4e   :  { %s12766_s22 = scalar_lea.hbm %s13879_s13, 16384 }
  0x4f   :  { %p12767_p4 = scmp.ne.s32.totalorder %s13879_s13, %s12766_s22  ;;  %p12770_p5 = scmp.lt.u32.totalorder %s12766_s22, %s13879_s13 }
  0x51   :  { %p12772_p6 = pnand %p12770_p5, %p12767_p4 }
  0x53   :  { %12775 = shalt.err (!%p12772_p6)
}
  0x54   :  { %s12776_s10 = scalar_lea.vmem %s83_s5, 16384  ;;  %p12781_p8 = scmp.lt.s32.totalorder %s83_s5, %s83_s5 }
  0x55   :  { %p12777_p7 = scmp.ne.s32.totalorder %s83_s5, %s12776_s10  ;;  %p12782_p9 = scmp.lt.s32.totalorder %s12776_s10, %s12776_s10 }
  0x57   :  { %p12783_p10 = por %p12782_p9, %p12781_p8 }
  0x59   :  { %p12784_p11 = pnand %p12783_p10, %p12777_p7 }
  0x5b   :  { %12787 = shalt.err (!%p12784_p11)
}
  0x5c   :  { %88 = dma.hbm_to_vmem [thread:$0]  %s13879_s13, 16384, %s83_s5, [#allocation6], %s12866_s23, %s12866_s23, %s12867_s1  }
  0x5d   :  { %s12788_s24 = scalar_lea.hbm %s13881_s15, 32768 }
  0x5e   :  { %p12789_p12 = scmp.ne.s32.totalorder %s13881_s15, %s12788_s24  ;;  %p12792_p13 = scmp.lt.u32.totalorder %s12788_s24, %s13881_s15 }
  0x60   :  { %p12794_p0 = pnand %p12792_p13, %p12789_p12 }
  0x62   :  { %12797 = shalt.err (!%p12794_p0)
}
  0x63   :  { %s12798_s22 = scalar_lea.vmem %s13065_s27, 32768  ;;  %p12803_p2 = scmp.lt.s32.totalorder %s13065_s27, %s13065_s27 }
  0x64   :  { %p12799_p1 = scmp.ne.s32.totalorder %s13065_s27, %s12798_s22  ;;  %p12804_p3 = scmp.lt.s32.totalorder %s12798_s22, %s12798_s22 }
  0x66   :  { %p12805_p4 = por %p12804_p3, %p12803_p2 }
  0x68   :  { %p12806_p5 = pnand %p12805_p4, %p12799_p1 }
  0x6a   :  { %12809 = shalt.err (!%p12806_p5)
}
  0x6b   :  { %s12872_s13 = smov 512   ;;  %s12873_s23 = smov 32  }
  0x6c   :  { %112 = dma.hbm_to_vmem [thread:$0]  %s13881_s15, 32768, %s13065_s27, [#allocation9], %s12872_s13, %s12872_s13, %s12873_s23  }
  0x6d   :  { %s12874_s2 = smov [#allocation13]   ;;  %s12810_s10 = scalar_lea.hbm %s13885_s19, 12288 }
  0x6e   :  { %s134_s3 = sshll.u32 %s12874_s2, 4  ;;  %p12811_p6 = scmp.ne.s32.totalorder %s13885_s19, %s12810_s10  ;;  %s135_s3 = int_to_ptr.vmem [resolvable:$true] %s134_s3 }
  0x6f   :  { %p12814_p7 = scmp.lt.u32.totalorder %s12810_s10, %s13885_s19 }
  0x71   :  { %p12816_p8 = pnand %p12814_p7, %p12811_p6 }
  0x73   :  { %12819 = shalt.err (!%p12816_p8)
}
  0x74   :  { %s12820_s24 = scalar_lea.vmem %s135_s3, 12288  ;;  %p12825_p10 = scmp.lt.s32.totalorder %s135_s3, %s135_s3 }
  0x75   :  { %p12821_p9 = scmp.ne.s32.totalorder %s135_s3, %s12820_s24  ;;  %p12826_p11 = scmp.lt.s32.totalorder %s12820_s24, %s12820_s24 }
  0x77   :  { %p12827_p12 = por %p12826_p11, %p12825_p10 }
  0x79   :  { %p12828_p13 = pnand %p12827_p12, %p12821_p9 }
  0x7b   :  { %12831 = shalt.err (!%p12828_p13)
}
  0x7c   :  { %s12875_s15 = smov 128   ;;  %s12876_s27 = smov 8  }
  0x7d   :  { %140 = dma.hbm_to_vmem [thread:$0]  %s13885_s19, 12288, %s135_s3, [#allocation12], %s12875_s15, %s12875_s15, %s12876_s27  }
  0x7e   :  { %12854 = dma.done.wait [#allocation3], 4096  }
  0x7f   :  { %12855 = vsyncadd [#allocation3], 4294963200 }
  0x80   :  { %12856 = dma.done.wait [#allocation6], 32768  }
  0x81   :  { %12857 = vsyncadd [#allocation6], 4294934528 }
  0x82   :  { %12858 = dma.done.wait [#allocation9], 49152  }
  0x83   :  { %12859 = vsyncadd [#allocation9], 4294918144 }
  0x84   :  { %12860 = dma.done.wait [#allocation12], 45056  }
  0x85   :  { %12861 = vsyncadd [#allocation12], 4294922240  ;;  %v12877_v0 = vmov 0.0   ;;  %s13896_s22 = sld [smem:[#allocation24_spill]]  ;;  %vm185_vm0 = vcmask 1043456   ;;  %vm181_vm1 = vcmask 31744  }
  0x86   :  { %254 = vmatprep.mubr.f32.mxu0 %v12877_v0  ;;  %357 = vmatprep.mubr.f32.mxu1 %v12877_v0  ;;  %v461_v3 = vld [vmem:[#allocation2 + $0x8] sm:$0xff]  ;;  %s13897_s23 = sld [smem:[#allocation20_spill]]  ;;  %vm288_vm2 = vcmask 1041408   ;;  %v366_v5 = vld [vmem:[%s13874_s8] sm:$0x3]  ;;  %v463_v6 = vld [vmem:[#allocation2 + $0x18] sm:$0xff] }
  0x87   :  { %vm284_vm3 = vcmask 15360   ;;  %s13898_s28 = sld [smem:[#allocation23_spill]]  ;;  %v11276_v8 = vpack.c.bf16 %v463_v6, %v461_v3  ;;  %v460_v9 = vld [vmem:[#allocation2] sm:$0xff]  ;;  %v462_v10 = vld [vmem:[#allocation2 + $0x10] sm:$0xff]  ;;  %v465_v11 = vld [vmem:[#allocation2 + $0x28] sm:$0xff]  ;;  %s13899_s17 = sld [smem:[#allocation21_spill]] }
  0x88   :  { %v467_v12 = vld [vmem:[#allocation2 + $0x38] sm:$0xff]  ;;  %v11278_v14 = vpack.c.bf16 %v462_v10, %v460_v9  ;;  %v464_v16 = vld [vmem:[#allocation2 + $0x20] sm:$0xff]  ;;  %v466_v17 = vld [vmem:[#allocation2 + $0x30] sm:$0xff]  ;;  %s13900_s30 = sld [smem:[#allocation22_spill]]  ;;  %vm12879_vm4 = vmmov 0   ;;  %vm3563_vm5 = vcmask 523264  }
  0x89   :  { %v11280_v15 = vpack.c.bf16 %v467_v12, %v465_v11  ;;  %v469_v18 = vld [vmem:[#allocation2 + $0x48] sm:$0xff]  ;;  %v471_v19 = vld [vmem:[#allocation2 + $0x58] sm:$0xff]  ;;  %v468_v20 = vld [vmem:[#allocation2 + $0x40] sm:$0xff]  ;;  %v11282_v22 = vpack.c.bf16 %v466_v17, %v464_v16  ;;  %vm4300_vm6 = vcmask 64512   ;;  %s13901_s2 = sld [smem:[#allocation25_spill]]  ;;  %vm9177_vm7 = vcmask 1041409  }
  0x8a   :  { %v470_v21 = vld [vmem:[#allocation2 + $0x50] sm:$0xff]  ;;  %v473_v23 = vld [vmem:[#allocation2 + $0x68] sm:$0xff]  ;;  %v475_v24 = vld [vmem:[#allocation2 + $0x78] sm:$0xff]  ;;  %v11284_v25 = vpack.c.bf16 %v471_v19, %v469_v18  ;;  %vm9955_vm12 = vcmask 8192  }
  0x8b   :  { %v166_v1 = vld [vmem:[%s13896_s22] sm:$0xff]  ;;  %v474_v27 = vld [vmem:[#allocation2 + $0x70] sm:$0xff]  ;;  %v11286_v28 = vpack.c.bf16 %v470_v21, %v468_v20  ;;  %v477_v29 = vld [vmem:[#allocation2 + $0x88] sm:$0xff]  ;;  %v11288_v31 = vpack.c.bf16 %v475_v24, %v473_v23 }
  0x8c   :  { %v180_v2 = vcombine.high %v166_v1, %v166_v1  ;;  %v165_v4 = vld [vmem:[%s13897_s23] sm:$0x3]  ;;  %v479_v30 = vld [vmem:[#allocation2 + $0x98] sm:$0xff]  ;;  %v478_v33 = vld [vmem:[#allocation2 + $0x90] sm:$0xff]  ;;  %s12878_s23 = smov 64  }
  0x8d   :  { %v364_v7 = vld [vmem:[%s13898_s28] sm:$0xff]  ;;  %v365_v13 = vld [vmem:[%s13898_s28 + $0x8] sm:$0xff]  ;;  %v483_v36 = vld [vmem:[#allocation2 + $0xb8] sm:$0xff]  ;;  %v11292_v37 = vpack.c.bf16 %v479_v30, %v477_v29 }
  0x8e   :  { %9975 = vmatprep.subr.msk.mxu0 %vm185_vm0, %v180_v2  ;;  %v472_v26 = vld [vmem:[#allocation2 + $0x60] sm:$0xff]  ;;  %v481_v35 = vld [vmem:[#allocation2 + $0xa8] sm:$0xff]  ;;  %v482_v39 = vld [vmem:[#allocation2 + $0xb0] sm:$0xff] }
  0x8f   :  { %9976 = vmatpush1.msk.msra.mxu0 %vm185_vm0, %v166_v1  ;;  %v476_v32 = vld [vmem:[#allocation2 + $0x80] sm:$0xff]  ;;  %v11290_v34 = vpack.c.bf16 %v474_v27, %v472_v26  ;;  %v11296_v41 = vpack.c.bf16 %v483_v36, %v481_v35  ;;  %v485_v43 = vld [vmem:[#allocation2 + $0xc8] sm:$0xff]  ;;  %v487_v44 = vld [vmem:[#allocation2 + $0xd8] sm:$0xff] }
  0x90   :  { %9977 = vmatmul.mubr.msk.f32.vlgmr.msra.gmra.mrb[0].mxu0 %vm181_vm1, %v165_v4  ;;  %11079 = vmatprep.subr.msk.mxu0 %vm288_vm2, %v366_v5  ;;  %v480_v38 = vld [vmem:[#allocation2 + $0xa0] sm:$0xff]  ;;  %v11294_v40 = vpack.c.bf16 %v478_v33, %v476_v32  ;;  %v11300_v45 = vpack.c.bf16 %v487_v44, %v485_v43  ;;  %v486_v47 = vld [vmem:[#allocation2 + $0xd0] sm:$0xff]  ;;  %v489_v49 = vld [vmem:[#allocation2 + $0xe8] sm:$0xff] }
  0x91   :  { %11080 = vmatpush3.msk.msra.mxu0 %vm288_vm2, %v366_v5  ;;  %11081 = vmatprep.mubr.msk.f32.mxu0 %vm284_vm3, %v364_v7  ;;  %v11298_v42 = vpack.c.bf16 %v482_v39, %v480_v38  ;;  %v484_v46 = vld [vmem:[#allocation2 + $0xc0] sm:$0xff]  ;;  %v491_v50 = vld [vmem:[#allocation2 + $0xf8] sm:$0xff]  ;;  %v490_v53 = vld [vmem:[#allocation2 + $0xf0] sm:$0xff] }
  0x92   :  { %11277 = vmatprep.subr.bf16.mxu0 %v11276_v8  ;;  %v11302_v48 = vpack.c.bf16 %v486_v47, %v484_v46  ;;  %v11304_v51 = vpack.c.bf16 %v491_v50, %v489_v49  ;;  %v488_v52 = vld [vmem:[#allocation2 + $0xe0] sm:$0xff]  ;;  %v11552_v58 = vld [vmem:[#allocation5 + $0x208] ss:$16 sps:$4 sm:$0xff]   ;;  %v11554_v59 = vld [vmem:[#allocation5 + $0x20c] ss:$16 sps:$4 sm:$0xff]  }
  0x93   :  { %v11306_v54 = vpack.c.bf16 %v490_v53, %v488_v52  ;;  %v11501_v55 = vld [vmem:[#allocation5 + $0x4] ss:$16 sps:$4 sm:$0xff]   ;;  %v9978_v56 = vld.sshfl [vmem:[%s13872_s6] sm:$0x33 pattern:$0x76325410] }
  0x94   :  { %11082 = vmatmul.mubr.msk.f32.vlgmr.msra.gmra.mrb[2].mxu0 %vm284_vm3, %v365_v13  ;;  %v283_v57 = vcombine.high %v9978_v56, %v9978_v56  ;;  %v261_v60 = vld [vmem:[%s13899_s17] sm:$0x3]  ;;  %v11559_v61 = vld [vmem:[#allocation5 + $0x228] ss:$16 sps:$4 sm:$0xff]   ;;  %v11561_v62 = vld [vmem:[#allocation5 + $0x22c] ss:$16 sps:$4 sm:$0xff]  }
  0x95   :  { %11279 = vmatpush1.bf16.msra.mxu0 %v11278_v14  ;;  %568 = vmatprep.mubr.f32.mxu0 %v12877_v0  ;;  %v11565_v63 = vld [vmem:[#allocation5 + $0x248] ss:$16 sps:$4 sm:$0xff]   ;;  %v11567_v1 = vld [vmem:[#allocation5 + $0x24c] ss:$16 sps:$4 sm:$0xff]   ;;  %v9982_v24 = vld [vmem:[%s13875_s9] ss:$0 sm:$0xff] }
  0x96   :  { %11281 = vmatprep.subr.bf16.mxu0 %v11280_v15  ;;  %9979 = vmatprep.subr.msk.mxu1 %vm288_vm2, %v283_v57  ;;  %v11571_v2 = vld [vmem:[#allocation5 + $0x268] ss:$16 sps:$4 sm:$0xff]   ;;  %v11573_v3 = vld [vmem:[#allocation5 + $0x26c] ss:$16 sps:$4 sm:$0xff]   ;;  %v11499_v27 = vld [vmem:[#allocation5] ss:$16 sps:$4 sm:$0xff]  }
  0x97   :  { %9980 = vmatpush1.msk.msra.mxu1 %vm288_vm2, %v9978_v56  ;;  %v11577_v4 = vld [vmem:[#allocation5 + $0x288] ss:$16 sps:$4 sm:$0xff]   ;;  %v11579_v5 = vld [vmem:[#allocation5 + $0x28c] ss:$16 sps:$4 sm:$0xff]   ;;  %v11504_v29 = vld [vmem:[#allocation5 + $0x24] ss:$16 sps:$4 sm:$0xff]  }
  0x98   :  { %1496 = vmatprep.subr.bf16.mxu1 %v11554_v59  ;;  %9981 = vmatmul.mubr.msk.f32.vlgmr.msra.gmra.mrb[0].mxu1 %vm284_vm3, %v261_v60  ;;  %v11583_v6 = vld [vmem:[#allocation5 + $0x2a8] ss:$16 sps:$4 sm:$0xff]   ;;  %v11585_v7 = vld [vmem:[#allocation5 + $0x2ac] ss:$16 sps:$4 sm:$0xff]   ;;  %v11502_v32 = vld [vmem:[#allocation5 + $0x20] ss:$16 sps:$4 sm:$0xff]  }
  0x99   :  { %11283 = vmatpush1.bf16.msra.mxu0 %v11282_v22  ;;  %1497 = vmatpush1.bf16.msra.mxu1 %v11552_v58  ;;  %v11589_v8 = vld [vmem:[#allocation5 + $0x2c8] ss:$16 sps:$4 sm:$0xff]   ;;  %v11591_v9 = vld [vmem:[#allocation5 + $0x2cc] ss:$16 sps:$4 sm:$0xff]   ;;  %v11505_v36 = vld [vmem:[#allocation5 + $0x40] ss:$16 sps:$4 sm:$0xff]  }
  0x9a   :  { %11285 = vmatprep.subr.bf16.mxu0 %v11284_v25  ;;  %1498 = vmatprep.subr.bf16.mxu1 %v11561_v62  ;;  %v11595_v10 = vld [vmem:[#allocation5 + $0x2e8] ss:$16 sps:$4 sm:$0xff]   ;;  %v11597_v11 = vld [vmem:[#allocation5 + $0x2ec] ss:$16 sps:$4 sm:$0xff]   ;;  %v11508_v38 = vld [vmem:[#allocation5 + $0x60] ss:$16 sps:$4 sm:$0xff]  }
  0x9b   :  { %v11601_v12 = vld [vmem:[#allocation5 + $0x308] ss:$16 sps:$4 sm:$0xff]   ;;  %v11603_v13 = vld [vmem:[#allocation5 + $0x30c] ss:$16 sps:$4 sm:$0xff]   ;;  %v11513_v39 = vld [vmem:[#allocation5 + $0x84] ss:$16 sps:$4 sm:$0xff]  }
  0x9c   :  { %v11607_v14 = vld [vmem:[#allocation5 + $0x328] ss:$16 sps:$4 sm:$0xff]   ;;  %v11609_v15 = vld [vmem:[#allocation5 + $0x32c] ss:$16 sps:$4 sm:$0xff]   ;;  %v11519_v43 = vld [vmem:[#allocation5 + $0xc4] ss:$16 sps:$4 sm:$0xff]  }
  0x9d   :  { %11287 = vmatpush1.bf16.msra.mxu0 %v11286_v28  ;;  %1499 = vmatpush1.bf16.msra.mxu1 %v11559_v61  ;;  %v11613_v16 = vld [vmem:[#allocation5 + $0x348] ss:$16 sps:$4 sm:$0xff]   ;;  %v11615_v17 = vld [vmem:[#allocation5 + $0x34c] ss:$16 sps:$4 sm:$0xff]   ;;  %v11517_v44 = vld [vmem:[#allocation5 + $0xc0] ss:$16 sps:$4 sm:$0xff]  }
  0x9e   :  { %11289 = vmatprep.subr.bf16.mxu0 %v11288_v31  ;;  %1500 = vmatprep.subr.bf16.mxu1 %v11567_v1  ;;  %v11619_v18 = vld [vmem:[#allocation5 + $0x368] ss:$16 sps:$4 sm:$0xff]   ;;  %v11621_v19 = vld [vmem:[#allocation5 + $0x36c] ss:$16 sps:$4 sm:$0xff]   ;;  %v11520_v46 = vld [vmem:[#allocation5 + $0xe0] ss:$16 sps:$4 sm:$0xff]  }
  0x9f   :  { %v11625_v20 = vld [vmem:[#allocation5 + $0x388] ss:$16 sps:$4 sm:$0xff]   ;;  %v11627_v21 = vld [vmem:[#allocation5 + $0x38c] ss:$16 sps:$4 sm:$0xff]   ;;  %v11525_v47 = vld [vmem:[#allocation5 + $0x104] ss:$16 sps:$4 sm:$0xff]  }
  0xa0   :  { %v13154_v33 = vld [vmem:[%s13900_s30 + $0x4] ss:$8 sps:$4 sm:$0xff]   ;;  %v11526_v50 = vld [vmem:[#allocation5 + $0x120] ss:$16 sps:$4 sm:$0xff]  }
  0xa1   :  { %11291 = vmatpush1.bf16.msra.mxu0 %v11290_v34  ;;  %1501 = vmatpush1.bf16.msra.mxu1 %v11565_v63  ;;  %v11507_v34 = vld [vmem:[#allocation5 + $0x44] ss:$16 sps:$4 sm:$0xff]   ;;  %v11529_v52 = vld [vmem:[#allocation5 + $0x140] ss:$16 sps:$4 sm:$0xff]  }
  0xa2   :  { %11293 = vmatprep.subr.bf16.mxu0 %v11292_v37  ;;  %1502 = vmatprep.subr.bf16.mxu1 %v11573_v3  ;;  %v11510_v37 = vld [vmem:[#allocation5 + $0x64] ss:$16 sps:$4 sm:$0xff]   ;;  %v11535_v56 = vld [vmem:[#allocation5 + $0x180] ss:$16 sps:$4 sm:$0xff]  }
  0xa3   :  { %v11528_v49 = vld [vmem:[#allocation5 + $0x124] ss:$16 sps:$4 sm:$0xff]   ;;  %v11538_v58 = vld [vmem:[#allocation5 + $0x1a0] ss:$16 sps:$4 sm:$0xff]  }
  0xa4   :  { %v11534_v53 = vld [vmem:[#allocation5 + $0x164] ss:$16 sps:$4 sm:$0xff]   ;;  %v11541_v60 = vld [vmem:[#allocation5 + $0x1c0] ss:$16 sps:$4 sm:$0xff]  }
  0xa5   :  { %11295 = vmatpush1.bf16.msra.mxu0 %v11294_v40  ;;  %1503 = vmatpush1.bf16.msra.mxu1 %v11571_v2  ;;  %v11511_v40 = vld [vmem:[#allocation5 + $0x80] ss:$16 sps:$4 sm:$0xff]   ;;  %v11540_v57 = vld [vmem:[#allocation5 + $0x1a4] ss:$16 sps:$4 sm:$0xff]  }
  0xa6   :  { %11297 = vmatprep.subr.bf16.mxu0 %v11296_v41  ;;  %1504 = vmatprep.subr.bf16.mxu1 %v11579_v5  ;;  %v11516_v41 = vld [vmem:[#allocation5 + $0xa4] ss:$16 sps:$4 sm:$0xff]   ;;  %v11544_v62 = vld [vmem:[#allocation5 + $0x1e0] ss:$16 sps:$4 sm:$0xff]  }
  0xa7   :  { %v11543_v59 = vld [vmem:[#allocation5 + $0x1c4] ss:$16 sps:$4 sm:$0xff]   ;;  %v13161_v1 = vld [vmem:[%s13900_s30] ss:$8 sps:$4 sm:$0xff]  }
  0xa8   :  { %v11546_v61 = vld [vmem:[#allocation5 + $0x1e4] ss:$16 sps:$4 sm:$0xff]   ;;  %v11549_v2 = vld [vmem:[#allocation5 + $0x200] ss:$16 sps:$4 sm:$0xff]  }
  0xa9   :  { %11299 = vmatpush1.bf16.msra.mxu0 %v11298_v42  ;;  %1505 = vmatpush1.bf16.msra.mxu1 %v11577_v4  ;;  %v11514_v42 = vld [vmem:[#allocation5 + $0xa0] ss:$16 sps:$4 sm:$0xff]   ;;  %v11551_v63 = vld [vmem:[#allocation5 + $0x204] ss:$16 sps:$4 sm:$0xff]  }
  0xaa   :  { %11301 = vmatprep.subr.bf16.mxu0 %v11300_v45  ;;  %1506 = vmatprep.subr.bf16.mxu1 %v11585_v7  ;;  %v11522_v45 = vld [vmem:[#allocation5 + $0xe4] ss:$16 sps:$4 sm:$0xff]   ;;  %v11556_v4 = vld [vmem:[#allocation5 + $0x220] ss:$16 sps:$4 sm:$0xff]  }
  0xab   :  { %v11558_v3 = vld [vmem:[#allocation5 + $0x224] ss:$16 sps:$4 sm:$0xff]  }
  0xac   :  { %v11564_v5 = vld [vmem:[#allocation5 + $0x244] ss:$16 sps:$4 sm:$0xff]  }
  0xad   :  { %11303 = vmatpush1.bf16.msra.mxu0 %v11302_v48  ;;  %1507 = vmatpush1.bf16.msra.mxu1 %v11583_v6  ;;  %v11523_v48 = vld [vmem:[#allocation5 + $0x100] ss:$16 sps:$4 sm:$0xff]   ;;  %v11570_v7 = vld [vmem:[#allocation5 + $0x264] ss:$16 sps:$4 sm:$0xff]  }
  0xae   :  { %11305 = vmatprep.subr.bf16.mxu0 %v11304_v51  ;;  %1508 = vmatprep.subr.bf16.mxu1 %v11591_v9  ;;  %v11531_v51 = vld [vmem:[#allocation5 + $0x144] ss:$16 sps:$4 sm:$0xff]   ;;  %v11562_v6 = vld [vmem:[#allocation5 + $0x240] ss:$16 sps:$4 sm:$0xff]  }
  0xaf   :  { %v11576_v9 = vld [vmem:[#allocation5 + $0x284] ss:$16 sps:$4 sm:$0xff]  }
  0xb1   :  { %11307 = vmatpush1.bf16.msra.mxu0 %v11306_v54  ;;  %1509 = vmatpush1.bf16.msra.mxu1 %v11589_v8  ;;  %v11532_v54 = vld [vmem:[#allocation5 + $0x160] ss:$16 sps:$4 sm:$0xff]  }
  0xb2   :  { %1367 = vmatprep.subr.bf16.mxu0 %v11501_v55  ;;  %1510 = vmatprep.subr.bf16.mxu1 %v11597_v11  ;;  %v11537_v55 = vld [vmem:[#allocation5 + $0x184] ss:$16 sps:$4 sm:$0xff]   ;;  %v11568_v8 = vld [vmem:[#allocation5 + $0x260] ss:$16 sps:$4 sm:$0xff]  }
  0xb3   :  { %v11582_v11 = vld [vmem:[#allocation5 + $0x2a4] ss:$16 sps:$4 sm:$0xff]  }
  0xb5   :  { %1511 = vmatpush1.bf16.msra.mxu1 %v11595_v10  ;;  %v11574_v10 = vld [vmem:[#allocation5 + $0x280] ss:$16 sps:$4 sm:$0xff]  }
  0xb6   :  { %1512 = vmatprep.subr.bf16.mxu1 %v11603_v13  ;;  %v11633_v13 = vld [vmem:[#allocation5 + $0x3ac] ss:$16 sps:$4 sm:$0xff]  }
  0xb9   :  { %1513 = vmatpush1.bf16.msra.mxu1 %v11601_v12  ;;  %v11580_v12 = vld [vmem:[#allocation5 + $0x2a0] ss:$16 sps:$4 sm:$0xff]  }
  0xba   :  { %1514 = vmatprep.subr.bf16.mxu1 %v11609_v15  ;;  %v11631_v15 = vld [vmem:[#allocation5 + $0x3a8] ss:$16 sps:$4 sm:$0xff]  }
  0xbd   :  { %1515 = vmatpush1.bf16.msra.mxu1 %v11607_v14  ;;  %v11588_v14 = vld [vmem:[#allocation5 + $0x2c4] ss:$16 sps:$4 sm:$0xff]  }
  0xbe   :  { %1516 = vmatprep.subr.bf16.mxu1 %v11615_v17  ;;  %v11639_v17 = vld [vmem:[#allocation5 + $0x3cc] ss:$16 sps:$4 sm:$0xff]  }
  0xc1   :  { %1517 = vmatpush1.bf16.msra.mxu1 %v11613_v16  ;;  %v11586_v16 = vld [vmem:[#allocation5 + $0x2c0] ss:$16 sps:$4 sm:$0xff]  }
  0xc2   :  { %1518 = vmatprep.subr.bf16.mxu1 %v11621_v19  ;;  %v11637_v19 = vld [vmem:[#allocation5 + $0x3c8] ss:$16 sps:$4 sm:$0xff]  }
  0xc5   :  { %1519 = vmatpush1.bf16.msra.mxu1 %v11619_v18  ;;  %v11594_v18 = vld [vmem:[#allocation5 + $0x2e4] ss:$16 sps:$4 sm:$0xff]  }
  0xc6   :  { %1520 = vmatprep.subr.bf16.mxu1 %v11627_v21  ;;  %v11645_v21 = vld [vmem:[#allocation5 + $0x3ec] ss:$16 sps:$4 sm:$0xff]  }
  0xc9   :  { %1521 = vmatpush1.bf16.msra.mxu1 %v11625_v20  ;;  %v11592_v20 = vld [vmem:[#allocation5 + $0x2e0] ss:$16 sps:$4 sm:$0xff]  }
  0xca   :  { %1522 = vmatprep.subr.bf16.mxu1 %v11633_v13  ;;  %v11666_v13 = vld [vmem:[#allocation5 + $0x6c] ss:$16 sps:$4 sm:$0xff]  }
  0xcd   :  { %1523 = vmatpush1.bf16.msra.mxu1 %v11631_v15  ;;  %v11664_v15 = vld [vmem:[#allocation5 + $0x68] ss:$16 sps:$4 sm:$0xff]  }
  0xce   :  { %1524 = vmatprep.subr.bf16.mxu1 %v11639_v17  ;;  %v11672_v17 = vld [vmem:[#allocation5 + $0x8c] ss:$16 sps:$4 sm:$0xff]  }
  0xd1   :  { %1525 = vmatpush1.bf16.msra.mxu1 %v11637_v19  ;;  %v11670_v19 = vld [vmem:[#allocation5 + $0x88] ss:$16 sps:$4 sm:$0xff]  }
  0xd2   :  { %1526 = vmatprep.subr.bf16.mxu1 %v11645_v21  ;;  %v11678_v21 = vld [vmem:[#allocation5 + $0xac] ss:$16 sps:$4 sm:$0xff]  }
 0x163   :  { %v13144_v22 = vpop.f32.mrb[0].mxu0 }
 0x164   :  { %v13146_v23 = vpop.f32.mrb[1].mxu0 }
 0x167   :  { %v11083_v25 = vpop.f32.mrb[2].mxu0 }
 0x168   :  { %v449_v26 = vpop.f32.mrb[3].mxu0  ;;  %v455_v30 = vadd.f32 %v11083_v25, %v9982_v24  ;;  %v11643_v25 = vld [vmem:[#allocation5 + $0x3e8] ss:$16 sps:$4 sm:$0xff]  }
 0x169   :  { %v450_v28 = vadd.f32 %v9982_v24, %v449_v26  ;;  %v11600_v24 = vld [vmem:[#allocation5 + $0x304] ss:$16 sps:$4 sm:$0xff]   ;;  %1527 = vmatpush1.bf16.msra.mxu1 %v11643_v25  ;;  %v11598_v26 = vld [vmem:[#allocation5 + $0x300] ss:$16 sps:$4 sm:$0xff]   ;;  %v11676_v25 = vld [vmem:[#allocation5 + $0xa8] ss:$16 sps:$4 sm:$0xff]  }
 0x16a   :  { %v459_v35 = vmax.f32 %v455_v30, 0.0  ;;  %v11612_v30 = vld [vmem:[#allocation5 + $0x344] ss:$16 sps:$4 sm:$0xff]  }
 0x16b   :  { %v458_v31 = vmax.f32 %v450_v28, 0.0  ;;  %v11606_v28 = vld [vmem:[#allocation5 + $0x324] ss:$16 sps:$4 sm:$0xff]  }
 0x16d   :  { %569 = vmatmul.mubr.f32.vlgmr.msra.gmra.mrb[4].mxu0 %v458_v31  ;;  %v11610_v31 = vld [vmem:[#allocation5 + $0x340] ss:$16 sps:$4 sm:$0xff]  }
 0x16e   :  { %574 = vmatprep.mubr.f32.mxu0 %v12877_v0  ;;  %1368 = vmatpush1.bf16.msra.mxu0 %v11499_v27  ;;  %v11651_v27 = vld [vmem:[#allocation7 + $0xc] ss:$16 sps:$4 sm:$0xff]  }
 0x16f   :  { %1369 = vmatprep.subr.bf16.mxu0 %v11504_v29  ;;  %2393 = vmatprep.subr.bf16.mxu1 %v11651_v27  ;;  %v11604_v29 = vld [vmem:[#allocation5 + $0x320] ss:$16 sps:$4 sm:$0xff]   ;;  %v11684_v27 = vld [vmem:[#allocation5 + $0xcc] ss:$16 sps:$4 sm:$0xff]  }
 0x171   :  { %575 = vmatmul.mubr.f32.gmra.mrb[6].mxu0 %v459_v35  ;;  %v11624_v35 = vld [vmem:[#allocation5 + $0x384] ss:$16 sps:$4 sm:$0xff]  }
 0x172   :  { %1370 = vmatpush1.bf16.msra.mxu0 %v11502_v32  ;;  %1399 = vmatprep.mubr.bf16.mxu0 %v13154_v33  ;;  %v11618_v32 = vld [vmem:[#allocation5 + $0x364] ss:$16 sps:$4 sm:$0xff]  }
 0x173   :  { %1371 = vmatprep.subr.bf16.mxu0 %v11507_v34  ;;  %v11616_v34 = vld [vmem:[#allocation5 + $0x360] ss:$16 sps:$4 sm:$0xff]  }
 0x176   :  { %1372 = vmatpush1.bf16.msra.mxu0 %v11505_v36  ;;  %v11622_v36 = vld [vmem:[#allocation5 + $0x380] ss:$16 sps:$4 sm:$0xff]  }
 0x177   :  { %1373 = vmatprep.subr.bf16.mxu0 %v11510_v37  ;;  %v11630_v37 = vld [vmem:[#allocation5 + $0x3a4] ss:$16 sps:$4 sm:$0xff]  }
 0x17a   :  { %1374 = vmatpush1.bf16.msra.mxu0 %v11508_v38  ;;  %v11628_v38 = vld [vmem:[#allocation5 + $0x3a0] ss:$16 sps:$4 sm:$0xff]  }
 0x17b   :  { %1375 = vmatprep.subr.bf16.mxu0 %v11513_v39  ;;  %v11636_v39 = vld [vmem:[#allocation5 + $0x3c4] ss:$16 sps:$4 sm:$0xff]  }
 0x17e   :  { %1376 = vmatpush1.bf16.msra.mxu0 %v11511_v40  ;;  %v11634_v40 = vld [vmem:[#allocation5 + $0x3c0] ss:$16 sps:$4 sm:$0xff]  }
 0x17f   :  { %1377 = vmatprep.subr.bf16.mxu0 %v11516_v41  ;;  %v11642_v41 = vld [vmem:[#allocation5 + $0x3e4] ss:$16 sps:$4 sm:$0xff]  }
 0x182   :  { %1378 = vmatpush1.bf16.msra.mxu0 %v11514_v42  ;;  %v11640_v42 = vld [vmem:[#allocation5 + $0x3e0] ss:$16 sps:$4 sm:$0xff]  }
 0x183   :  { %1379 = vmatprep.subr.bf16.mxu0 %v11519_v43  ;;  %v11648_v43 = vld [vmem:[#allocation5 + $0xc] ss:$16 sps:$4 sm:$0xff]  }
 0x186   :  { %1380 = vmatpush1.bf16.msra.mxu0 %v11517_v44  ;;  %v169_v44 = vlaneseq }
 0x187   :  { %1381 = vmatprep.subr.bf16.mxu0 %v11522_v45 }
 0x188   :  { %v13165_v45 = vshrl.u32 %v169_v44, 7 }
 0x18a   :  { %1382 = vmatpush1.bf16.msra.mxu0 %v11520_v46  ;;  %v492_v46 = vld [vmem:[%s13877_s11] sm:$0x3] }
 0x18b   :  { %1383 = vmatprep.subr.bf16.mxu0 %v11525_v47  ;;  %v13171_v47 = vsub.s32 0, %v13165_v45 }
 0x18e   :  { %1384 = vmatpush1.bf16.msra.mxu0 %v11523_v48  ;;  %v13174_v48 = vsub.s32 1, %v13165_v45 }
 0x18f   :  { %1385 = vmatprep.subr.bf16.mxu0 %v11528_v49  ;;  %v497_v49 = vrot.slane %v492_v46, %v13171_v47 }
 0x192   :  { %1386 = vmatpush1.bf16.msra.mxu0 %v11526_v50 }
 0x193   :  { %1387 = vmatprep.subr.bf16.mxu0 %v11531_v51  ;;  %v501_v51 = vrot.slane %v492_v46, %v13174_v48  ;;  %v11708_v46 = vld [vmem:[#allocation5 + $0x14c] ss:$16 sps:$4 sm:$0xff]  }
 0x196   :  { %1388 = vmatpush1.bf16.msra.mxu0 %v11529_v52 }
 0x197   :  { %1389 = vmatprep.subr.bf16.mxu0 %v11534_v53 }
 0x19a   :  { %1390 = vmatpush1.bf16.msra.mxu0 %v11532_v54 }
 0x19b   :  { %1391 = vmatprep.subr.bf16.mxu0 %v11537_v55 }
 0x19e   :  { %1392 = vmatpush1.bf16.msra.mxu0 %v11535_v56 }
 0x19f   :  { %1393 = vmatprep.subr.bf16.mxu0 %v11540_v57 }
 0x1a2   :  { %1394 = vmatpush1.bf16.msra.mxu0 %v11538_v58 }
 0x1a3   :  { %1395 = vmatprep.subr.bf16.mxu0 %v11543_v59 }
 0x1a6   :  { %1396 = vmatpush1.bf16.msra.mxu0 %v11541_v60 }
 0x1a7   :  { %1397 = vmatprep.subr.bf16.mxu0 %v11546_v61 }
 0x1aa   :  { %1398 = vmatpush1.bf16.msra.mxu0 %v11544_v62 }
 0x1ab   :  { %1410 = vmatprep.subr.bf16.mxu0 %v11551_v63 }
 0x1ad   :  { %1400 = vmatmul.mubr.bf16.vlgmr.msra.gmra.mrb[8].mxu0 %v13161_v1 }
 0x1ae   :  { %1411 = vmatpush1.bf16.msra.mxu0 %v11549_v2 }
 0x1af   :  { %1412 = vmatprep.subr.bf16.mxu0 %v11558_v3  ;;  %v11646_v3 = vld [vmem:[#allocation5 + $0x8] ss:$16 sps:$4 sm:$0xff]  }
 0x1b2   :  { %1413 = vmatpush1.bf16.msra.mxu0 %v11556_v4  ;;  %v11649_v4 = vld [vmem:[#allocation7 + $0x8] ss:$16 sps:$4 sm:$0xff]  }
 0x1b3   :  { %1414 = vmatprep.subr.bf16.mxu0 %v11564_v5  ;;  %v11654_v5 = vld [vmem:[#allocation5 + $0x2c] ss:$16 sps:$4 sm:$0xff]  }
 0x1b6   :  { %1415 = vmatpush1.bf16.msra.mxu0 %v11562_v6  ;;  %v11657_v6 = vld [vmem:[#allocation7 + $0x2c] ss:$16 sps:$4 sm:$0xff]  }
 0x1b7   :  { %1416 = vmatprep.subr.bf16.mxu0 %v11570_v7  ;;  %v11652_v7 = vld [vmem:[#allocation5 + $0x28] ss:$16 sps:$4 sm:$0xff]  }
 0x1ba   :  { %1417 = vmatpush1.bf16.msra.mxu0 %v11568_v8  ;;  %v11655_v8 = vld [vmem:[#allocation7 + $0x28] ss:$16 sps:$4 sm:$0xff]  }
 0x1bb   :  { %1418 = vmatprep.subr.bf16.mxu0 %v11576_v9  ;;  %v11660_v9 = vld [vmem:[#allocation5 + $0x4c] ss:$16 sps:$4 sm:$0xff]  }
 0x1be   :  { %1419 = vmatpush1.bf16.msra.mxu0 %v11574_v10  ;;  %v11663_v10 = vld [vmem:[#allocation7 + $0x4c] ss:$16 sps:$4 sm:$0xff]  }
 0x1bf   :  { %1420 = vmatprep.subr.bf16.mxu0 %v11582_v11  ;;  %v11658_v11 = vld [vmem:[#allocation5 + $0x48] ss:$16 sps:$4 sm:$0xff]  }
 0x1c2   :  { %1421 = vmatpush1.bf16.msra.mxu0 %v11580_v12  ;;  %v11661_v12 = vld [vmem:[#allocation7 + $0x48] ss:$16 sps:$4 sm:$0xff]  }
 0x1c3   :  { %1422 = vmatprep.subr.bf16.mxu0 %v11588_v14  ;;  %v11669_v14 = vld [vmem:[#allocation7 + $0x6c] ss:$16 sps:$4 sm:$0xff]  }
 0x1c6   :  { %1423 = vmatpush1.bf16.msra.mxu0 %v11586_v16  ;;  %v11667_v16 = vld [vmem:[#allocation7 + $0x68] ss:$16 sps:$4 sm:$0xff]  }
 0x1c7   :  { %1424 = vmatprep.subr.bf16.mxu0 %v11594_v18  ;;  %v11675_v18 = vld [vmem:[#allocation7 + $0x8c] ss:$16 sps:$4 sm:$0xff]  }
 0x1ca   :  { %1425 = vmatpush1.bf16.msra.mxu0 %v11592_v20  ;;  %v11673_v20 = vld [vmem:[#allocation7 + $0x88] ss:$16 sps:$4 sm:$0xff]  }
 0x1cb   :  { %1426 = vmatprep.subr.bf16.mxu0 %v11600_v24  ;;  %v11681_v24 = vld [vmem:[#allocation7 + $0xac] ss:$16 sps:$4 sm:$0xff]  }
 0x1ce   :  { %1427 = vmatpush1.bf16.msra.mxu0 %v11598_v26  ;;  %v11679_v26 = vld [vmem:[#allocation7 + $0xa8] ss:$16 sps:$4 sm:$0xff]  }
 0x1cf   :  { %1428 = vmatprep.subr.bf16.mxu0 %v11606_v28  ;;  %v11687_v28 = vld [vmem:[#allocation7 + $0xcc] ss:$16 sps:$4 sm:$0xff]  }
 0x1d2   :  { %1429 = vmatpush1.bf16.msra.mxu0 %v11604_v29  ;;  %v11682_v29 = vld [vmem:[#allocation5 + $0xc8] ss:$16 sps:$4 sm:$0xff]  }
 0x1d3   :  { %1430 = vmatprep.subr.bf16.mxu0 %v11612_v30  ;;  %v11685_v30 = vld [vmem:[#allocation7 + $0xc8] ss:$16 sps:$4 sm:$0xff]  }
 0x1d6   :  { %1431 = vmatpush1.bf16.msra.mxu0 %v11610_v31  ;;  %v11690_v31 = vld [vmem:[#allocation5 + $0xec] ss:$16 sps:$4 sm:$0xff]  }
 0x1d7   :  { %1432 = vmatprep.subr.bf16.mxu0 %v11618_v32  ;;  %v11693_v32 = vld [vmem:[#allocation7 + $0xec] ss:$16 sps:$4 sm:$0xff]  }
 0x1da   :  { %1433 = vmatpush1.bf16.msra.mxu0 %v11616_v34  ;;  %v11688_v34 = vld [vmem:[#allocation5 + $0xe8] ss:$16 sps:$4 sm:$0xff]  }
 0x1db   :  { %1434 = vmatprep.subr.bf16.mxu0 %v11624_v35  ;;  %v11691_v35 = vld [vmem:[#allocation7 + $0xe8] ss:$16 sps:$4 sm:$0xff]  }
 0x1de   :  { %1435 = vmatpush1.bf16.msra.mxu0 %v11622_v36  ;;  %v11696_v36 = vld [vmem:[#allocation5 + $0x10c] ss:$16 sps:$4 sm:$0xff]  }
 0x1df   :  { %1436 = vmatprep.subr.bf16.mxu0 %v11630_v37  ;;  %v11699_v37 = vld [vmem:[#allocation7 + $0x10c] ss:$16 sps:$4 sm:$0xff]  }
 0x1e2   :  { %1437 = vmatpush1.bf16.msra.mxu0 %v11628_v38  ;;  %v11694_v38 = vld [vmem:[#allocation5 + $0x108] ss:$16 sps:$4 sm:$0xff]  }
 0x1e3   :  { %1438 = vmatprep.subr.bf16.mxu0 %v11636_v39  ;;  %v11697_v39 = vld [vmem:[#allocation7 + $0x108] ss:$16 sps:$4 sm:$0xff]  }
 0x1e6   :  { %1439 = vmatpush1.bf16.msra.mxu0 %v11634_v40  ;;  %v11702_v40 = vld [vmem:[#allocation5 + $0x12c] ss:$16 sps:$4 sm:$0xff]  }
 0x1e7   :  { %1440 = vmatprep.subr.bf16.mxu0 %v11642_v41  ;;  %v11705_v41 = vld [vmem:[#allocation7 + $0x12c] ss:$16 sps:$4 sm:$0xff]  }
 0x1ea   :  { %1441 = vmatpush1.bf16.msra.mxu0 %v11640_v42  ;;  %v11700_v42 = vld [vmem:[#allocation5 + $0x128] ss:$16 sps:$4 sm:$0xff]  }
 0x1eb   :  { %1453 = vmatprep.subr.bf16.mxu0 %v11648_v43  ;;  %v11703_v43 = vld [vmem:[#allocation7 + $0x128] ss:$16 sps:$4 sm:$0xff]  }
 0x240   :  { %v570_v50 = vpop.f32.mrb[4].mxu0 }
 0x241   :  { %v572_v52 = vpop.f32.mrb[5].mxu0  ;;  %v571_v53 = vadd.f32 %v570_v50, %v497_v49  ;;  %v11706_v50 = vld [vmem:[#allocation5 + $0x148] ss:$16 sps:$4 sm:$0xff]  }
 0x242   :  { %v573_v54 = vadd.f32 %v572_v52, %v501_v51  ;;  %v11714_v52 = vld [vmem:[#allocation5 + $0x16c] ss:$16 sps:$4 sm:$0xff]  }
 0x243   :  { %v581_v59 = vmax.f32 %v571_v53, 0.0  ;;  %v11717_v53 = vld [vmem:[#allocation7 + $0x16c] ss:$16 sps:$4 sm:$0xff]  }
 0x244   :  { %v576_v55 = vpop.f32.mrb[6].mxu0  ;;  %v582_v61 = vmax.f32 %v573_v54, 0.0  ;;  %v11712_v54 = vld [vmem:[#allocation5 + $0x168] ss:$16 sps:$4 sm:$0xff]  }
 0x245   :  { %v577_v56 = vadd.f32 %v576_v55, %v497_v49  ;;  %v578_v57 = vpop.f32.mrb[7].mxu0  ;;  %v11711_v49 = vld [vmem:[#allocation7 + $0x14c] ss:$16 sps:$4 sm:$0xff]   ;;  %v11715_v55 = vld [vmem:[#allocation7 + $0x168] ss:$16 sps:$4 sm:$0xff]  }
 0x246   :  { %v579_v58 = vadd.f32 %v578_v57, %v501_v51  ;;  %v11709_v51 = vld [vmem:[#allocation7 + $0x148] ss:$16 sps:$4 sm:$0xff]   ;;  %v11723_v57 = vld [vmem:[#allocation7 + $0x18c] ss:$16 sps:$4 sm:$0xff]  }
 0x247   :  { %v583_v60 = vmax.f32 %v577_v56, 0.0  ;;  %v11720_v56 = vld [vmem:[#allocation5 + $0x18c] ss:$16 sps:$4 sm:$0xff]  }
 0x248   :  { %v584_v62 = vmax.f32 %v579_v58, 0.0  ;;  %v11718_v58 = vld [vmem:[#allocation5 + $0x188] ss:$16 sps:$4 sm:$0xff]  }
 0x249   :  { %v13178_v63 = vpack.c.bf16 %v583_v60, %v581_v59  ;;  %v11721_v59 = vld [vmem:[#allocation7 + $0x188] ss:$16 sps:$4 sm:$0xff]   ;;  %v11726_v60 = vld [vmem:[#allocation5 + $0x1ac] ss:$16 sps:$4 sm:$0xff]  }
 0x24a   :  { %v13180_v2 = vpack.c.bf16 %v584_v62, %v582_v61  ;;  %v11729_v61 = vld [vmem:[#allocation7 + $0x1ac] ss:$16 sps:$4 sm:$0xff]   ;;  %v11724_v62 = vld [vmem:[#allocation5 + $0x1a8] ss:$16 sps:$4 sm:$0xff]  }
 0x24c   :  { %1442 = vmatprep.mubr.bf16.mxu0 %v13180_v2  ;;  %1528 = vmatprep.mubr.bf16.mxu1 %v13180_v2 }
 0x24d   :  { %1443 = vmatmul.mubr.bf16.vlgmr.msra.gmra.mrb[8].mxu0 %v13178_v63  ;;  %1529 = vmatmul.mubr.bf16.vlgmr.msra.gmra.mrb[4].mxu1 %v13178_v63 }
 0x24e   :  { %1454 = vmatpush1.bf16.msra.mxu0 %v11646_v3  ;;  %2394 = vmatpush1.bf16.msra.mxu1 %v11649_v4  ;;  %v11727_v3 = vld [vmem:[#allocation7 + $0x1a8] ss:$16 sps:$4 sm:$0xff]   ;;  %v11732_v4 = vld [vmem:[#allocation5 + $0x1cc] ss:$16 sps:$4 sm:$0xff]  }
 0x24f   :  { %1455 = vmatprep.subr.bf16.mxu0 %v11654_v5  ;;  %2395 = vmatprep.subr.bf16.mxu1 %v11657_v6  ;;  %v11735_v5 = vld [vmem:[#allocation7 + $0x1cc] ss:$16 sps:$4 sm:$0xff]   ;;  %v11730_v6 = vld [vmem:[#allocation5 + $0x1c8] ss:$16 sps:$4 sm:$0xff]  }
 0x250   :  { %1485 = vmatprep.mubr.bf16.mxu0 %v13154_v33  ;;  %2425 = vmatprep.mubr.bf16.mxu1 %v13154_v33 }
 0x252   :  { %1456 = vmatpush1.bf16.msra.mxu0 %v11652_v7  ;;  %2396 = vmatpush1.bf16.msra.mxu1 %v11655_v8  ;;  %v11733_v7 = vld [vmem:[#allocation7 + $0x1c8] ss:$16 sps:$4 sm:$0xff]   ;;  %v11738_v8 = vld [vmem:[#allocation5 + $0x1ec] ss:$16 sps:$4 sm:$0xff]  }
 0x253   :  { %1457 = vmatprep.subr.bf16.mxu0 %v11660_v9  ;;  %2397 = vmatprep.subr.bf16.mxu1 %v11663_v10  ;;  %v11741_v9 = vld [vmem:[#allocation7 + $0x1ec] ss:$16 sps:$4 sm:$0xff]   ;;  %v11736_v10 = vld [vmem:[#allocation5 + $0x1e8] ss:$16 sps:$4 sm:$0xff]  }
 0x256   :  { %1458 = vmatpush1.bf16.msra.mxu0 %v11658_v11  ;;  %2398 = vmatpush1.bf16.msra.mxu1 %v11661_v12  ;;  %v11739_v11 = vld [vmem:[#allocation7 + $0x1e8] ss:$16 sps:$4 sm:$0xff]   ;;  %v11744_v12 = vld [vmem:[#allocation7 + $0x4] ss:$16 sps:$4 sm:$0xff]  }
 0x257   :  { %1459 = vmatprep.subr.bf16.mxu0 %v11666_v13  ;;  %2399 = vmatprep.subr.bf16.mxu1 %v11669_v14  ;;  %v11747_v13 = vld [vmem:[#allocation7 + $0x20c] ss:$16 sps:$4 sm:$0xff]   ;;  %v11742_v14 = vld [vmem:[#allocation7] ss:$16 sps:$4 sm:$0xff]  }
 0x25a   :  { %1460 = vmatpush1.bf16.msra.mxu0 %v11664_v15  ;;  %2400 = vmatpush1.bf16.msra.mxu1 %v11667_v16  ;;  %v11745_v15 = vld [vmem:[#allocation7 + $0x208] ss:$16 sps:$4 sm:$0xff]   ;;  %v11750_v16 = vld [vmem:[#allocation7 + $0x24] ss:$16 sps:$4 sm:$0xff]  }
 0x25b   :  { %1461 = vmatprep.subr.bf16.mxu0 %v11672_v17  ;;  %2401 = vmatprep.subr.bf16.mxu1 %v11675_v18  ;;  %v11753_v17 = vld [vmem:[#allocation7 + $0x22c] ss:$16 sps:$4 sm:$0xff]   ;;  %v11748_v18 = vld [vmem:[#allocation7 + $0x20] ss:$16 sps:$4 sm:$0xff]  }
 0x25e   :  { %1462 = vmatpush1.bf16.msra.mxu0 %v11670_v19  ;;  %2402 = vmatpush1.bf16.msra.mxu1 %v11673_v20  ;;  %v11751_v19 = vld [vmem:[#allocation7 + $0x228] ss:$16 sps:$4 sm:$0xff]   ;;  %v11756_v20 = vld [vmem:[#allocation7 + $0x44] ss:$16 sps:$4 sm:$0xff]  }
 0x25f   :  { %1463 = vmatprep.subr.bf16.mxu0 %v11678_v21  ;;  %2403 = vmatprep.subr.bf16.mxu1 %v11681_v24  ;;  %v11759_v21 = vld [vmem:[#allocation7 + $0x24c] ss:$16 sps:$4 sm:$0xff]   ;;  %v11754_v24 = vld [vmem:[#allocation7 + $0x40] ss:$16 sps:$4 sm:$0xff]  }
 0x262   :  { %1464 = vmatpush1.bf16.msra.mxu0 %v11676_v25  ;;  %2404 = vmatpush1.bf16.msra.mxu1 %v11679_v26  ;;  %v11757_v25 = vld [vmem:[#allocation7 + $0x248] ss:$16 sps:$4 sm:$0xff]   ;;  %v11762_v26 = vld [vmem:[#allocation7 + $0x64] ss:$16 sps:$4 sm:$0xff]  }
 0x263   :  { %1465 = vmatprep.subr.bf16.mxu0 %v11684_v27  ;;  %2405 = vmatprep.subr.bf16.mxu1 %v11687_v28  ;;  %v11765_v27 = vld [vmem:[#allocation7 + $0x26c] ss:$16 sps:$4 sm:$0xff]   ;;  %v11760_v28 = vld [vmem:[#allocation7 + $0x60] ss:$16 sps:$4 sm:$0xff]  }
 0x266   :  { %1466 = vmatpush1.bf16.msra.mxu0 %v11682_v29  ;;  %2406 = vmatpush1.bf16.msra.mxu1 %v11685_v30  ;;  %v11763_v29 = vld [vmem:[#allocation7 + $0x268] ss:$16 sps:$4 sm:$0xff]   ;;  %v11768_v30 = vld [vmem:[#allocation7 + $0x84] ss:$16 sps:$4 sm:$0xff]  }
 0x267   :  { %1467 = vmatprep.subr.bf16.mxu0 %v11690_v31  ;;  %2407 = vmatprep.subr.bf16.mxu1 %v11693_v32  ;;  %v11771_v31 = vld [vmem:[#allocation7 + $0x28c] ss:$16 sps:$4 sm:$0xff]   ;;  %v11766_v32 = vld [vmem:[#allocation7 + $0x80] ss:$16 sps:$4 sm:$0xff]  }
 0x26a   :  { %1468 = vmatpush1.bf16.msra.mxu0 %v11688_v34  ;;  %2408 = vmatpush1.bf16.msra.mxu1 %v11691_v35  ;;  %v11774_v34 = vld [vmem:[#allocation7 + $0xa4] ss:$16 sps:$4 sm:$0xff]   ;;  %v11777_v35 = vld [vmem:[#allocation7 + $0x2ac] ss:$16 sps:$4 sm:$0xff]  }
 0x26b   :  { %1469 = vmatprep.subr.bf16.mxu0 %v11696_v36  ;;  %2409 = vmatprep.subr.bf16.mxu1 %v11699_v37  ;;  %v11772_v36 = vld [vmem:[#allocation7 + $0xa0] ss:$16 sps:$4 sm:$0xff]   ;;  %v11775_v37 = vld [vmem:[#allocation7 + $0x2a8] ss:$16 sps:$4 sm:$0xff]  }
 0x26e   :  { %1470 = vmatpush1.bf16.msra.mxu0 %v11694_v38  ;;  %2410 = vmatpush1.bf16.msra.mxu1 %v11697_v39  ;;  %v11780_v38 = vld [vmem:[#allocation7 + $0xc4] ss:$16 sps:$4 sm:$0xff]   ;;  %v11783_v39 = vld [vmem:[#allocation7 + $0x2cc] ss:$16 sps:$4 sm:$0xff]  }
 0x26f   :  { %1471 = vmatprep.subr.bf16.mxu0 %v11702_v40  ;;  %2411 = vmatprep.subr.bf16.mxu1 %v11705_v41  ;;  %v13192_v40 = vpop.f32.mrb[0].mxu1 }
 0x270   :  { %v13194_v41 = vpop.f32.mrb[1].mxu1 }
 0x272   :  { %1472 = vmatpush1.bf16.msra.mxu0 %v11700_v42  ;;  %2412 = vmatpush1.bf16.msra.mxu1 %v11703_v43  ;;  %v11778_v42 = vld [vmem:[#allocation7 + $0xc0] ss:$16 sps:$4 sm:$0xff]   ;;  %v11781_v43 = vld [vmem:[#allocation7 + $0x2c8] ss:$16 sps:$4 sm:$0xff]  }
 0x273   :  { %1473 = vmatprep.subr.bf16.mxu0 %v11708_v46  ;;  %2413 = vmatprep.subr.bf16.mxu1 %v11711_v49  ;;  %v11786_v46 = vld [vmem:[#allocation7 + $0xe4] ss:$16 sps:$4 sm:$0xff]   ;;  %v11789_v49 = vld [vmem:[#allocation7 + $0x2ec] ss:$16 sps:$4 sm:$0xff]  }
 0x276   :  { %1474 = vmatpush1.bf16.msra.mxu0 %v11706_v50  ;;  %2414 = vmatpush1.bf16.msra.mxu1 %v11709_v51  ;;  %v11784_v50 = vld [vmem:[#allocation7 + $0xe0] ss:$16 sps:$4 sm:$0xff]   ;;  %v11787_v51 = vld [vmem:[#allocation7 + $0x2e8] ss:$16 sps:$4 sm:$0xff]  }
 0x277   :  { %1475 = vmatprep.subr.bf16.mxu0 %v11714_v52  ;;  %2415 = vmatprep.subr.bf16.mxu1 %v11717_v53  ;;  %v11792_v52 = vld [vmem:[#allocation7 + $0x104] ss:$16 sps:$4 sm:$0xff]   ;;  %v11795_v53 = vld [vmem:[#allocation7 + $0x30c] ss:$16 sps:$4 sm:$0xff]  }
 0x27a   :  { %1476 = vmatpush1.bf16.msra.mxu0 %v11712_v54  ;;  %2416 = vmatpush1.bf16.msra.mxu1 %v11715_v55  ;;  %v11790_v54 = vld [vmem:[#allocation7 + $0x100] ss:$16 sps:$4 sm:$0xff]   ;;  %v11793_v55 = vld [vmem:[#allocation7 + $0x308] ss:$16 sps:$4 sm:$0xff]  }
 0x27b   :  { %1477 = vmatprep.subr.bf16.mxu0 %v11720_v56  ;;  %2417 = vmatprep.subr.bf16.mxu1 %v11723_v57  ;;  %v11798_v56 = vld [vmem:[#allocation7 + $0x124] ss:$16 sps:$4 sm:$0xff]   ;;  %v11801_v57 = vld [vmem:[#allocation7 + $0x32c] ss:$16 sps:$4 sm:$0xff]  }
 0x27e   :  { %1478 = vmatpush1.bf16.msra.mxu0 %v11718_v58  ;;  %2418 = vmatpush1.bf16.msra.mxu1 %v11721_v59  ;;  %v11796_v58 = vld [vmem:[#allocation7 + $0x120] ss:$16 sps:$4 sm:$0xff]   ;;  %v11799_v59 = vld [vmem:[#allocation7 + $0x328] ss:$16 sps:$4 sm:$0xff]  }
 0x27f   :  { %1479 = vmatprep.subr.bf16.mxu0 %v11726_v60  ;;  %2419 = vmatprep.subr.bf16.mxu1 %v11729_v61  ;;  %v11804_v60 = vld [vmem:[#allocation7 + $0x144] ss:$16 sps:$4 sm:$0xff]   ;;  %v11807_v61 = vld [vmem:[#allocation7 + $0x34c] ss:$16 sps:$4 sm:$0xff]  }
 0x282   :  { %1480 = vmatpush1.bf16.msra.mxu0 %v11724_v62  ;;  %2420 = vmatpush1.bf16.msra.mxu1 %v11727_v3  ;;  %v11802_v62 = vld [vmem:[#allocation7 + $0x140] ss:$16 sps:$4 sm:$0xff]   ;;  %v11805_v3 = vld [vmem:[#allocation7 + $0x348] ss:$16 sps:$4 sm:$0xff]  }
 0x283   :  { %1481 = vmatprep.subr.bf16.mxu0 %v11732_v4  ;;  %2421 = vmatprep.subr.bf16.mxu1 %v11735_v5  ;;  %v11810_v4 = vld [vmem:[#allocation7 + $0x164] ss:$16 sps:$4 sm:$0xff]   ;;  %v11813_v5 = vld [vmem:[#allocation7 + $0x36c] ss:$16 sps:$4 sm:$0xff]  }
 0x286   :  { %1482 = vmatpush1.bf16.msra.mxu0 %v11730_v6  ;;  %2422 = vmatpush1.bf16.msra.mxu1 %v11733_v7  ;;  %v11808_v6 = vld [vmem:[#allocation7 + $0x160] ss:$16 sps:$4 sm:$0xff]   ;;  %v11811_v7 = vld [vmem:[#allocation7 + $0x368] ss:$16 sps:$4 sm:$0xff]  }
 0x287   :  { %1483 = vmatprep.subr.bf16.mxu0 %v11738_v8  ;;  %2423 = vmatprep.subr.bf16.mxu1 %v11741_v9  ;;  %v11816_v8 = vld [vmem:[#allocation7 + $0x184] ss:$16 sps:$4 sm:$0xff]   ;;  %v11819_v9 = vld [vmem:[#allocation7 + $0x38c] ss:$16 sps:$4 sm:$0xff]  }
 0x28a   :  { %1484 = vmatpush1.bf16.msra.mxu0 %v11736_v10  ;;  %2424 = vmatpush1.bf16.msra.mxu1 %v11739_v11  ;;  %v11814_v10 = vld [vmem:[#allocation7 + $0x180] ss:$16 sps:$4 sm:$0xff]   ;;  %v11817_v11 = vld [vmem:[#allocation7 + $0x388] ss:$16 sps:$4 sm:$0xff]  }
 0x28b   :  { %2307 = vmatprep.subr.bf16.mxu0 %v11744_v12  ;;  %2436 = vmatprep.subr.bf16.mxu1 %v11747_v13  ;;  %v11822_v12 = vld [vmem:[#allocation7 + $0x1a4] ss:$16 sps:$4 sm:$0xff]   ;;  %v11825_v13 = vld [vmem:[#allocation7 + $0x3ac] ss:$16 sps:$4 sm:$0xff]  }
 0x28d   :  { %1486 = vmatmul.mubr.bf16.vlgmr.msra.gmra.mrb[12].mxu0 %v13161_v1  ;;  %2426 = vmatmul.mubr.bf16.vlgmr.msra.gmra.mrb[8].mxu1 %v13161_v1 }
 0x28e   :  { %2308 = vmatpush1.bf16.msra.mxu0 %v11742_v14  ;;  %2437 = vmatpush1.bf16.msra.mxu1 %v11745_v15  ;;  %v11820_v14 = vld [vmem:[#allocation7 + $0x1a0] ss:$16 sps:$4 sm:$0xff]   ;;  %v11823_v15 = vld [vmem:[#allocation7 + $0x3a8] ss:$16 sps:$4 sm:$0xff]  }
 0x28f   :  { %2468 = vmatprep.mubr.bf16.mxu1 %v13180_v2  ;;  %2309 = vmatprep.subr.bf16.mxu0 %v11750_v16  ;;  %v11828_v16 = vld [vmem:[#allocation7 + $0x1c4] ss:$16 sps:$4 sm:$0xff]  }
 0x290   :  { %2438 = vmatprep.subr.bf16.mxu1 %v11753_v17  ;;  %2339 = vmatprep.mubr.bf16.mxu0 %v13154_v33  ;;  %v11769_v33 = vld [vmem:[#allocation7 + $0x288] ss:$16 sps:$4 sm:$0xff]   ;;  %v11831_v17 = vld [vmem:[#allocation7 + $0x3cc] ss:$16 sps:$4 sm:$0xff]  }
 0x292   :  { %2310 = vmatpush1.bf16.msra.mxu0 %v11748_v18  ;;  %2439 = vmatpush1.bf16.msra.mxu1 %v11751_v19  ;;  %v11826_v18 = vld [vmem:[#allocation7 + $0x1c0] ss:$16 sps:$4 sm:$0xff]   ;;  %v11829_v19 = vld [vmem:[#allocation7 + $0x3c8] ss:$16 sps:$4 sm:$0xff]  }
 0x293   :  { %2311 = vmatprep.subr.bf16.mxu0 %v11756_v20  ;;  %2440 = vmatprep.subr.bf16.mxu1 %v11759_v21  ;;  %v11834_v20 = vld [vmem:[#allocation7 + $0x1e4] ss:$16 sps:$4 sm:$0xff]   ;;  %v11837_v21 = vld [vmem:[#allocation7 + $0x3ec] ss:$16 sps:$4 sm:$0xff]  }
 0x296   :  { %2312 = vmatpush1.bf16.msra.mxu0 %v11754_v24  ;;  %2441 = vmatpush1.bf16.msra.mxu1 %v11757_v25  ;;  %v11832_v24 = vld [vmem:[#allocation7 + $0x1e0] ss:$16 sps:$4 sm:$0xff]   ;;  %v11835_v25 = vld [vmem:[#allocation7 + $0x3e8] ss:$16 sps:$4 sm:$0xff]  }
 0x297   :  { %2313 = vmatprep.subr.bf16.mxu0 %v11762_v26  ;;  %2442 = vmatprep.subr.bf16.mxu1 %v11765_v27  ;;  %v11840_v26 = vld [vmem:[#allocation7 + $0x204] ss:$16 sps:$4 sm:$0xff]   ;;  %v11843_v27 = vld [vmem:[#allocation8 + $0xc] ss:$16 sps:$4 sm:$0xff]  }
 0x29a   :  { %2314 = vmatpush1.bf16.msra.mxu0 %v11760_v28  ;;  %2443 = vmatpush1.bf16.msra.mxu1 %v11763_v29  ;;  %v11838_v28 = vld [vmem:[#allocation7 + $0x200] ss:$16 sps:$4 sm:$0xff]   ;;  %v11841_v29 = vld [vmem:[#allocation8 + $0x8] ss:$16 sps:$4 sm:$0xff]  }
 0x29b   :  { %2315 = vmatprep.subr.bf16.mxu0 %v11768_v30  ;;  %2444 = vmatprep.subr.bf16.mxu1 %v11771_v31  ;;  %v11846_v30 = vld [vmem:[#allocation7 + $0x224] ss:$16 sps:$4 sm:$0xff]   ;;  %v11849_v31 = vld [vmem:[#allocation8 + $0x2c] ss:$16 sps:$4 sm:$0xff]  }
 0x29e   :  { %2316 = vmatpush1.bf16.msra.mxu0 %v11766_v32  ;;  %2445 = vmatpush1.bf16.msra.mxu1 %v11769_v33  ;;  %v11844_v32 = vld [vmem:[#allocation7 + $0x220] ss:$16 sps:$4 sm:$0xff]   ;;  %v11847_v33 = vld [vmem:[#allocation8 + $0x28] ss:$16 sps:$4 sm:$0xff]  }
 0x29f   :  { %2317 = vmatprep.subr.bf16.mxu0 %v11774_v34  ;;  %2446 = vmatprep.subr.bf16.mxu1 %v11777_v35  ;;  %v11852_v34 = vld [vmem:[#allocation7 + $0x244] ss:$16 sps:$4 sm:$0xff]   ;;  %v11855_v35 = vld [vmem:[#allocation8 + $0x4c] ss:$16 sps:$4 sm:$0xff]  }
 0x2a2   :  { %2318 = vmatpush1.bf16.msra.mxu0 %v11772_v36  ;;  %2447 = vmatpush1.bf16.msra.mxu1 %v11775_v37  ;;  %v13202_v36 = vld [vmem:[%s13900_s30 + $0x4] ss:$8 sps:$4 sm:$0xff]   ;;  %v11853_v37 = vld [vmem:[#allocation8 + $0x48] ss:$16 sps:$4 sm:$0xff]  }
 0x2a3   :  { %2319 = vmatprep.subr.bf16.mxu0 %v11780_v38  ;;  %2448 = vmatprep.subr.bf16.mxu1 %v11783_v39  ;;  %v11858_v38 = vld [vmem:[#allocation7 + $0x264] ss:$16 sps:$4 sm:$0xff]   ;;  %v11861_v39 = vld [vmem:[#allocation8 + $0x6c] ss:$16 sps:$4 sm:$0xff]  }
 0x2a6   :  { %2320 = vmatpush1.bf16.msra.mxu0 %v11778_v42  ;;  %2449 = vmatpush1.bf16.msra.mxu1 %v11781_v43  ;;  %v11856_v42 = vld [vmem:[#allocation7 + $0x260] ss:$16 sps:$4 sm:$0xff]   ;;  %v11859_v43 = vld [vmem:[#allocation8 + $0x68] ss:$16 sps:$4 sm:$0xff]  }
 0x2a7   :  { %2321 = vmatprep.subr.bf16.mxu0 %v11786_v46  ;;  %2450 = vmatprep.subr.bf16.mxu1 %v11789_v49  ;;  %v11864_v46 = vld [vmem:[#allocation7 + $0x284] ss:$16 sps:$4 sm:$0xff]   ;;  %v11867_v49 = vld [vmem:[#allocation8 + $0x8c] ss:$16 sps:$4 sm:$0xff]  }
 0x2aa   :  { %2322 = vmatpush1.bf16.msra.mxu0 %v11784_v50  ;;  %2451 = vmatpush1.bf16.msra.mxu1 %v11787_v51  ;;  %v11862_v50 = vld [vmem:[#allocation7 + $0x280] ss:$16 sps:$4 sm:$0xff]   ;;  %v11865_v51 = vld [vmem:[#allocation8 + $0x88] ss:$16 sps:$4 sm:$0xff]  }
 0x2ab   :  { %2323 = vmatprep.subr.bf16.mxu0 %v11792_v52  ;;  %2452 = vmatprep.subr.bf16.mxu1 %v11795_v53  ;;  %v11870_v52 = vld [vmem:[#allocation7 + $0x2a4] ss:$16 sps:$4 sm:$0xff]   ;;  %v11873_v53 = vld [vmem:[#allocation8 + $0xac] ss:$16 sps:$4 sm:$0xff]  }
 0x2ae   :  { %2324 = vmatpush1.bf16.msra.mxu0 %v11790_v54  ;;  %2453 = vmatpush1.bf16.msra.mxu1 %v11793_v55  ;;  %v11868_v54 = vld [vmem:[#allocation7 + $0x2a0] ss:$16 sps:$4 sm:$0xff]   ;;  %v11871_v55 = vld [vmem:[#allocation8 + $0xa8] ss:$16 sps:$4 sm:$0xff]  }
 0x2af   :  { %2325 = vmatprep.subr.bf16.mxu0 %v11798_v56  ;;  %2454 = vmatprep.subr.bf16.mxu1 %v11801_v57  ;;  %v11876_v56 = vld [vmem:[#allocation7 + $0x2c4] ss:$16 sps:$4 sm:$0xff]   ;;  %v11879_v57 = vld [vmem:[#allocation8 + $0xcc] ss:$16 sps:$4 sm:$0xff]  }
 0x2b2   :  { %2326 = vmatpush1.bf16.msra.mxu0 %v11796_v58  ;;  %2455 = vmatpush1.bf16.msra.mxu1 %v11799_v59  ;;  %v11874_v58 = vld [vmem:[#allocation7 + $0x2c0] ss:$16 sps:$4 sm:$0xff]   ;;  %v11877_v59 = vld [vmem:[#allocation8 + $0xc8] ss:$16 sps:$4 sm:$0xff]  }
 0x2b3   :  { %2327 = vmatprep.subr.bf16.mxu0 %v11804_v60  ;;  %2456 = vmatprep.subr.bf16.mxu1 %v11807_v61  ;;  %v11882_v60 = vld [vmem:[#allocation7 + $0x2e4] ss:$16 sps:$4 sm:$0xff]   ;;  %v11885_v61 = vld [vmem:[#allocation8 + $0xec] ss:$16 sps:$4 sm:$0xff]  }
 0x2b6   :  { %2328 = vmatpush1.bf16.msra.mxu0 %v11802_v62  ;;  %2457 = vmatpush1.bf16.msra.mxu1 %v11805_v3  ;;  %v11880_v62 = vld [vmem:[#allocation7 + $0x2e0] ss:$16 sps:$4 sm:$0xff]   ;;  %v11883_v3 = vld [vmem:[#allocation8 + $0xe8] ss:$16 sps:$4 sm:$0xff]  }
 0x2b7   :  { %2329 = vmatprep.subr.bf16.mxu0 %v11810_v4  ;;  %2458 = vmatprep.subr.bf16.mxu1 %v11813_v5  ;;  %v11888_v4 = vld [vmem:[#allocation7 + $0x304] ss:$16 sps:$4 sm:$0xff]   ;;  %v11891_v5 = vld [vmem:[#allocation8 + $0x10c] ss:$16 sps:$4 sm:$0xff]  }
 0x2ba   :  { %2330 = vmatpush1.bf16.msra.mxu0 %v11808_v6  ;;  %2459 = vmatpush1.bf16.msra.mxu1 %v11811_v7  ;;  %v11886_v6 = vld [vmem:[#allocation7 + $0x300] ss:$16 sps:$4 sm:$0xff]   ;;  %v11889_v7 = vld [vmem:[#allocation8 + $0x108] ss:$16 sps:$4 sm:$0xff]  }
 0x2bb   :  { %2331 = vmatprep.subr.bf16.mxu0 %v11816_v8  ;;  %2460 = vmatprep.subr.bf16.mxu1 %v11819_v9  ;;  %v11894_v8 = vld [vmem:[#allocation7 + $0x324] ss:$16 sps:$4 sm:$0xff]   ;;  %v11897_v9 = vld [vmem:[#allocation8 + $0x12c] ss:$16 sps:$4 sm:$0xff]  }
 0x2be   :  { %2332 = vmatpush1.bf16.msra.mxu0 %v11814_v10  ;;  %2461 = vmatpush1.bf16.msra.mxu1 %v11817_v11  ;;  %v11892_v10 = vld [vmem:[#allocation7 + $0x320] ss:$16 sps:$4 sm:$0xff]   ;;  %v11895_v11 = vld [vmem:[#allocation8 + $0x128] ss:$16 sps:$4 sm:$0xff]  }
 0x2bf   :  { %2333 = vmatprep.subr.bf16.mxu0 %v11822_v12  ;;  %2462 = vmatprep.subr.bf16.mxu1 %v11825_v13  ;;  %v11900_v12 = vld [vmem:[#allocation7 + $0x344] ss:$16 sps:$4 sm:$0xff]   ;;  %v11903_v13 = vld [vmem:[#allocation8 + $0x14c] ss:$16 sps:$4 sm:$0xff]  }
 0x2c2   :  { %2334 = vmatpush1.bf16.msra.mxu0 %v11820_v14  ;;  %2463 = vmatpush1.bf16.msra.mxu1 %v11823_v15  ;;  %v11898_v14 = vld [vmem:[#allocation7 + $0x340] ss:$16 sps:$4 sm:$0xff]   ;;  %v11901_v15 = vld [vmem:[#allocation8 + $0x148] ss:$16 sps:$4 sm:$0xff]  }
 0x2c3   :  { %2335 = vmatprep.subr.bf16.mxu0 %v11828_v16  ;;  %2464 = vmatprep.subr.bf16.mxu1 %v11831_v17  ;;  %v11906_v16 = vld [vmem:[#allocation7 + $0x364] ss:$16 sps:$4 sm:$0xff]   ;;  %v11909_v17 = vld [vmem:[#allocation8 + $0x16c] ss:$16 sps:$4 sm:$0xff]  }
 0x2c6   :  { %2336 = vmatpush1.bf16.msra.mxu0 %v11826_v18  ;;  %2465 = vmatpush1.bf16.msra.mxu1 %v11829_v19  ;;  %v11904_v18 = vld [vmem:[#allocation7 + $0x360] ss:$16 sps:$4 sm:$0xff]   ;;  %v11907_v19 = vld [vmem:[#allocation8 + $0x168] ss:$16 sps:$4 sm:$0xff]  }
 0x2c7   :  { %2337 = vmatprep.subr.bf16.mxu0 %v11834_v20  ;;  %2466 = vmatprep.subr.bf16.mxu1 %v11837_v21  ;;  %v11912_v20 = vld [vmem:[#allocation7 + $0x384] ss:$16 sps:$4 sm:$0xff]   ;;  %v11915_v21 = vld [vmem:[#allocation8 + $0x18c] ss:$16 sps:$4 sm:$0xff]  }
 0x2ca   :  { %2338 = vmatpush1.bf16.msra.mxu0 %v11832_v24  ;;  %2467 = vmatpush1.bf16.msra.mxu1 %v11835_v25  ;;  %v11910_v24 = vld [vmem:[#allocation7 + $0x380] ss:$16 sps:$4 sm:$0xff]   ;;  %v11913_v25 = vld [vmem:[#allocation8 + $0x188] ss:$16 sps:$4 sm:$0xff]  }
 0x2cb   :  { %2350 = vmatprep.subr.bf16.mxu0 %v11840_v26  ;;  %3333 = vmatprep.subr.bf16.mxu1 %v11843_v27  ;;  %v11918_v26 = vld [vmem:[#allocation7 + $0x3a4] ss:$16 sps:$4 sm:$0xff]   ;;  %v11921_v27 = vld [vmem:[#allocation8 + $0x1ac] ss:$16 sps:$4 sm:$0xff]  }
 0x2cd   :  { %2340 = vmatmul.mubr.bf16.vlgmr.msra.gmra.mrb[16].mxu0 %v13161_v1  ;;  %2469 = vmatmul.mubr.bf16.vlgmr.msra.gmra.mrb[8].mxu1 %v13178_v63  ;;  %v11850_v1 = vld [vmem:[#allocation7 + $0x240] ss:$16 sps:$4 sm:$0xff]  }
 0x2ce   :  { %2351 = vmatpush1.bf16.msra.mxu0 %v11838_v28  ;;  %2382 = vmatprep.mubr.bf16.mxu0 %v13180_v2  ;;  %v11916_v28 = vld [vmem:[#allocation7 + $0x3a0] ss:$16 sps:$4 sm:$0xff]  }
 0x2cf   :  { %3334 = vmatpush1.bf16.msra.mxu1 %v11841_v29  ;;  %2352 = vmatprep.subr.bf16.mxu0 %v11846_v30  ;;  %v11919_v29 = vld [vmem:[#allocation8 + $0x1a8] ss:$16 sps:$4 sm:$0xff]   ;;  %v11924_v30 = vld [vmem:[#allocation7 + $0x3c4] ss:$16 sps:$4 sm:$0xff]  }
 0x2d0   :  { %3335 = vmatprep.subr.bf16.mxu1 %v11849_v31  ;;  %3365 = vmatprep.mubr.bf16.mxu1 %v13202_v36  ;;  %v11927_v31 = vld [vmem:[#allocation8 + $0x1cc] ss:$16 sps:$4 sm:$0xff]  }
 0x2d2   :  { %2353 = vmatpush1.bf16.msra.mxu0 %v11844_v32  ;;  %v11922_v32 = vld [vmem:[#allocation7 + $0x3c0] ss:$16 sps:$4 sm:$0xff]  }
 0x2d3   :  { %3336 = vmatpush1.bf16.msra.mxu1 %v11847_v33  ;;  %2354 = vmatprep.subr.bf16.mxu0 %v11852_v34  ;;  %v11925_v33 = vld [vmem:[#allocation8 + $0x1c8] ss:$16 sps:$4 sm:$0xff]   ;;  %v11930_v34 = vld [vmem:[#allocation7 + $0x3e4] ss:$16 sps:$4 sm:$0xff]  }
 0x2d4   :  { %3337 = vmatprep.subr.bf16.mxu1 %v11855_v35  ;;  %v11933_v35 = vld [vmem:[#allocation8 + $0x1ec] ss:$16 sps:$4 sm:$0xff]  }
 0x2d6   :  { %2355 = vmatpush1.bf16.msra.mxu0 %v11850_v1  ;;  %v11928_v1 = vld [vmem:[#allocation7 + $0x3e0] ss:$16 sps:$4 sm:$0xff]  }
 0x2d7   :  { %3338 = vmatpush1.bf16.msra.mxu1 %v11853_v37  ;;  %2356 = vmatprep.subr.bf16.mxu0 %v11858_v38  ;;  %v11931_v37 = vld [vmem:[#allocation8 + $0x1e8] ss:$16 sps:$4 sm:$0xff]   ;;  %v11936_v38 = vld [vmem:[#allocation8 + $0x4] ss:$16 sps:$4 sm:$0xff]  }
 0x2d8   :  { %3339 = vmatprep.subr.bf16.mxu1 %v11861_v39  ;;  %v11939_v39 = vld [vmem:[#allocation8 + $0x20c] ss:$16 sps:$4 sm:$0xff]  }
 0x2da   :  { %2357 = vmatpush1.bf16.msra.mxu0 %v11856_v42  ;;  %v11934_v42 = vld [vmem:[#allocation8] ss:$16 sps:$4 sm:$0xff]  }
 0x2db   :  { %3340 = vmatpush1.bf16.msra.mxu1 %v11859_v43  ;;  %2358 = vmatprep.subr.bf16.mxu0 %v11864_v46  ;;  %v11937_v43 = vld [vmem:[#allocation8 + $0x208] ss:$16 sps:$4 sm:$0xff]   ;;  %v11942_v46 = vld [vmem:[#allocation8 + $0x24] ss:$16 sps:$4 sm:$0xff]  }
 0x2dc   :  { %3341 = vmatprep.subr.bf16.mxu1 %v11867_v49  ;;  %v11945_v49 = vld [vmem:[#allocation8 + $0x22c] ss:$16 sps:$4 sm:$0xff]  }
 0x2de   :  { %2359 = vmatpush1.bf16.msra.mxu0 %v11862_v50  ;;  %v13209_v50 = vld [vmem:[%s13900_s30] ss:$8 sps:$4 sm:$0xff]  }
 0x2df   :  { %3342 = vmatpush1.bf16.msra.mxu1 %v11865_v51  ;;  %2360 = vmatprep.subr.bf16.mxu0 %v11870_v52  ;;  %v11940_v51 = vld [vmem:[#allocation8 + $0x20] ss:$16 sps:$4 sm:$0xff]   ;;  %v11943_v52 = vld [vmem:[#allocation8 + $0x228] ss:$16 sps:$4 sm:$0xff]  }
 0x2e0   :  { %3343 = vmatprep.subr.bf16.mxu1 %v11873_v53  ;;  %v11948_v53 = vld [vmem:[#allocation8 + $0x44] ss:$16 sps:$4 sm:$0xff]  }
 0x2e2   :  { %2361 = vmatpush1.bf16.msra.mxu0 %v11868_v54  ;;  %v11951_v54 = vld [vmem:[#allocation8 + $0x24c] ss:$16 sps:$4 sm:$0xff]  }
 0x2e3   :  { %3344 = vmatpush1.bf16.msra.mxu1 %v11871_v55  ;;  %2362 = vmatprep.subr.bf16.mxu0 %v11876_v56  ;;  %v11946_v55 = vld [vmem:[#allocation8 + $0x40] ss:$16 sps:$4 sm:$0xff]   ;;  %v11949_v56 = vld [vmem:[#allocation8 + $0x248] ss:$16 sps:$4 sm:$0xff]  }
 0x2e4   :  { %3345 = vmatprep.subr.bf16.mxu1 %v11879_v57  ;;  %v11954_v57 = vld [vmem:[#allocation8 + $0x64] ss:$16 sps:$4 sm:$0xff]  }
 0x2e6   :  { %2363 = vmatpush1.bf16.msra.mxu0 %v11874_v58  ;;  %v11957_v58 = vld [vmem:[#allocation8 + $0x26c] ss:$16 sps:$4 sm:$0xff]  }
 0x2e7   :  { %3346 = vmatpush1.bf16.msra.mxu1 %v11877_v59  ;;  %2364 = vmatprep.subr.bf16.mxu0 %v11882_v60  ;;  %v11952_v59 = vld [vmem:[#allocation8 + $0x60] ss:$16 sps:$4 sm:$0xff]   ;;  %v11955_v60 = vld [vmem:[#allocation8 + $0x268] ss:$16 sps:$4 sm:$0xff]  }
 0x2e8   :  { %3347 = vmatprep.subr.bf16.mxu1 %v11885_v61  ;;  %v11960_v61 = vld [vmem:[#allocation8 + $0x84] ss:$16 sps:$4 sm:$0xff]  }
 0x2ea   :  { %2365 = vmatpush1.bf16.msra.mxu0 %v11880_v62  ;;  %v11963_v62 = vld [vmem:[#allocation8 + $0x28c] ss:$16 sps:$4 sm:$0xff]  }
 0x2eb   :  { %3348 = vmatpush1.bf16.msra.mxu1 %v11883_v3  ;;  %2366 = vmatprep.subr.bf16.mxu0 %v11888_v4  ;;  %v11958_v3 = vld [vmem:[#allocation8 + $0x80] ss:$16 sps:$4 sm:$0xff]   ;;  %v11966_v4 = vld [vmem:[#allocation8 + $0xa4] ss:$16 sps:$4 sm:$0xff]  }
 0x2ec   :  { %3349 = vmatprep.subr.bf16.mxu1 %v11891_v5  ;;  %v11969_v5 = vld [vmem:[#allocation8 + $0x2ac] ss:$16 sps:$4 sm:$0xff]  }
 0x2ee   :  { %2367 = vmatpush1.bf16.msra.mxu0 %v11886_v6  ;;  %v11964_v6 = vld [vmem:[#allocation8 + $0xa0] ss:$16 sps:$4 sm:$0xff]  }
 0x2ef   :  { %3350 = vmatpush1.bf16.msra.mxu1 %v11889_v7  ;;  %2368 = vmatprep.subr.bf16.mxu0 %v11894_v8  ;;  %v11967_v7 = vld [vmem:[#allocation8 + $0x2a8] ss:$16 sps:$4 sm:$0xff]  }
 0x2f0   :  { %3351 = vmatprep.subr.bf16.mxu1 %v11897_v9 }
 0x2f2   :  { %2369 = vmatpush1.bf16.msra.mxu0 %v11892_v10  ;;  %v11972_v10 = vld [vmem:[#allocation8 + $0xc4] ss:$16 sps:$4 sm:$0xff]  }
 0x2f3   :  { %3352 = vmatpush1.bf16.msra.mxu1 %v11895_v11  ;;  %2370 = vmatprep.subr.bf16.mxu0 %v11900_v12  ;;  %v11975_v11 = vld [vmem:[#allocation8 + $0x2cc] ss:$16 sps:$4 sm:$0xff]  }
 0x2f4   :  { %3353 = vmatprep.subr.bf16.mxu1 %v11903_v13 }
 0x2f6   :  { %2371 = vmatpush1.bf16.msra.mxu0 %v11898_v14 }
 0x2f7   :  { %3354 = vmatpush1.bf16.msra.mxu1 %v11901_v15  ;;  %2372 = vmatprep.subr.bf16.mxu0 %v11906_v16  ;;  %v11970_v16 = vld [vmem:[#allocation8 + $0xc0] ss:$16 sps:$4 sm:$0xff]  }
 0x2f8   :  { %3355 = vmatprep.subr.bf16.mxu1 %v11909_v17 }
 0x2fa   :  { %2373 = vmatpush1.bf16.msra.mxu0 %v11904_v18 }
 0x2fb   :  { %3356 = vmatpush1.bf16.msra.mxu1 %v11907_v19  ;;  %2374 = vmatprep.subr.bf16.mxu0 %v11912_v20  ;;  %v11973_v19 = vld [vmem:[#allocation8 + $0x2c8] ss:$16 sps:$4 sm:$0xff]   ;;  %v11978_v20 = vld [vmem:[#allocation8 + $0xe4] ss:$16 sps:$4 sm:$0xff]  }
 0x2fc   :  { %3357 = vmatprep.subr.bf16.mxu1 %v11915_v21 }
 0x2fe   :  { %2375 = vmatpush1.bf16.msra.mxu0 %v11910_v24  ;;  %v11981_v24 = vld [vmem:[#allocation8 + $0x2ec] ss:$16 sps:$4 sm:$0xff]  }
 0x2ff   :  { %3358 = vmatpush1.bf16.msra.mxu1 %v11913_v25  ;;  %2376 = vmatprep.subr.bf16.mxu0 %v11918_v26  ;;  %v11976_v25 = vld [vmem:[#allocation8 + $0xe0] ss:$16 sps:$4 sm:$0xff]   ;;  %v11979_v26 = vld [vmem:[#allocation8 + $0x2e8] ss:$16 sps:$4 sm:$0xff]  }
 0x300   :  { %3359 = vmatprep.subr.bf16.mxu1 %v11921_v27  ;;  %v11984_v27 = vld [vmem:[#allocation8 + $0x104] ss:$16 sps:$4 sm:$0xff]  }
 0x302   :  { %2377 = vmatpush1.bf16.msra.mxu0 %v11916_v28  ;;  %v11987_v28 = vld [vmem:[#allocation8 + $0x30c] ss:$16 sps:$4 sm:$0xff]  }
 0x303   :  { %3360 = vmatpush1.bf16.msra.mxu1 %v11919_v29  ;;  %2378 = vmatprep.subr.bf16.mxu0 %v11924_v30  ;;  %v11982_v29 = vld [vmem:[#allocation8 + $0x100] ss:$16 sps:$4 sm:$0xff]   ;;  %v11985_v30 = vld [vmem:[#allocation8 + $0x308] ss:$16 sps:$4 sm:$0xff]  }
 0x304   :  { %3361 = vmatprep.subr.bf16.mxu1 %v11927_v31  ;;  %v11990_v31 = vld [vmem:[#allocation8 + $0x124] ss:$16 sps:$4 sm:$0xff]  }
 0x306   :  { %2379 = vmatpush1.bf16.msra.mxu0 %v11922_v32  ;;  %v11993_v32 = vld [vmem:[#allocation8 + $0x32c] ss:$16 sps:$4 sm:$0xff]  }
 0x307   :  { %3362 = vmatpush1.bf16.msra.mxu1 %v11925_v33  ;;  %2380 = vmatprep.subr.bf16.mxu0 %v11930_v34  ;;  %v11988_v33 = vld [vmem:[#allocation8 + $0x120] ss:$16 sps:$4 sm:$0xff]   ;;  %v11991_v34 = vld [vmem:[#allocation8 + $0x328] ss:$16 sps:$4 sm:$0xff]  }
 0x308   :  { %3363 = vmatprep.subr.bf16.mxu1 %v11933_v35  ;;  %v11996_v35 = vld [vmem:[#allocation8 + $0x144] ss:$16 sps:$4 sm:$0xff]  }
 0x30a   :  { %2381 = vmatpush1.bf16.msra.mxu0 %v11928_v1  ;;  %v11999_v1 = vld [vmem:[#allocation8 + $0x34c] ss:$16 sps:$4 sm:$0xff]  }
 0x30b   :  { %3364 = vmatpush1.bf16.msra.mxu1 %v11931_v37  ;;  %3247 = vmatprep.subr.bf16.mxu0 %v11936_v38  ;;  %v11994_v37 = vld [vmem:[#allocation8 + $0x140] ss:$16 sps:$4 sm:$0xff]   ;;  %v11997_v38 = vld [vmem:[#allocation8 + $0x348] ss:$16 sps:$4 sm:$0xff]  }
 0x30c   :  { %3376 = vmatprep.subr.bf16.mxu1 %v11939_v39  ;;  %v12002_v39 = vld [vmem:[#allocation8 + $0x164] ss:$16 sps:$4 sm:$0xff]  }
 0x30d   :  { %2383 = vmatmul.mubr.bf16.vlgmr.msra.gmra.mrb[16].mxu0 %v13178_v63 }
 0x30e   :  { %3366 = vmatmul.mubr.bf16.vlgmr.msra.gmra.mrb[12].mxu1 %v13209_v50  ;;  %3248 = vmatpush1.bf16.msra.mxu0 %v11934_v42  ;;  %v12005_v42 = vld [vmem:[#allocation8 + $0x36c] ss:$16 sps:$4 sm:$0xff]  }
 0x30f   :  { %3377 = vmatpush1.bf16.msra.mxu1 %v11937_v43  ;;  %3408 = vmatprep.mubr.bf16.mxu1 %v13180_v2  ;;  %v12000_v43 = vld [vmem:[#allocation8 + $0x160] ss:$16 sps:$4 sm:$0xff]  }
 0x310   :  { %3249 = vmatprep.subr.bf16.mxu0 %v11942_v46  ;;  %3378 = vmatprep.subr.bf16.mxu1 %v11945_v49  ;;  %v12003_v46 = vld [vmem:[#allocation8 + $0x368] ss:$16 sps:$4 sm:$0xff]   ;;  %v12008_v49 = vld [vmem:[#allocation8 + $0x184] ss:$16 sps:$4 sm:$0xff]  }
 0x311   :  { %3279 = vmatprep.mubr.bf16.mxu0 %v13202_v36  ;;  %v11961_v36 = vld [vmem:[#allocation8 + $0x288] ss:$16 sps:$4 sm:$0xff]  }
 0x312   :  { %3250 = vmatpush1.bf16.msra.mxu0 %v11940_v51  ;;  %v12011_v51 = vld [vmem:[#allocation8 + $0x38c] ss:$16 sps:$4 sm:$0xff]  }
 0x313   :  { %3379 = vmatpush1.bf16.msra.mxu1 %v11943_v52  ;;  %3251 = vmatprep.subr.bf16.mxu0 %v11948_v53  ;;  %v12006_v52 = vld [vmem:[#allocation8 + $0x180] ss:$16 sps:$4 sm:$0xff]   ;;  %v12009_v53 = vld [vmem:[#allocation8 + $0x388] ss:$16 sps:$4 sm:$0xff]  }
 0x314   :  { %3380 = vmatprep.subr.bf16.mxu1 %v11951_v54  ;;  %v12014_v54 = vld [vmem:[#allocation8 + $0x1a4] ss:$16 sps:$4 sm:$0xff]  }
 0x316   :  { %3252 = vmatpush1.bf16.msra.mxu0 %v11946_v55  ;;  %v12017_v55 = vld [vmem:[#allocation8 + $0x3ac] ss:$16 sps:$4 sm:$0xff]  }
 0x317   :  { %3381 = vmatpush1.bf16.msra.mxu1 %v11949_v56  ;;  %3253 = vmatprep.subr.bf16.mxu0 %v11954_v57  ;;  %v12012_v56 = vld [vmem:[#allocation8 + $0x1a0] ss:$16 sps:$4 sm:$0xff]   ;;  %v12015_v57 = vld [vmem:[#allocation8 + $0x3a8] ss:$16 sps:$4 sm:$0xff]  }
 0x318   :  { %3382 = vmatprep.subr.bf16.mxu1 %v11957_v58  ;;  %v12020_v58 = vld [vmem:[#allocation8 + $0x1c4] ss:$16 sps:$4 sm:$0xff]  }
 0x31a   :  { %3254 = vmatpush1.bf16.msra.mxu0 %v11952_v59  ;;  %v12023_v59 = vld [vmem:[#allocation8 + $0x3cc] ss:$16 sps:$4 sm:$0xff]  }
 0x31b   :  { %3383 = vmatpush1.bf16.msra.mxu1 %v11955_v60  ;;  %3255 = vmatprep.subr.bf16.mxu0 %v11960_v61  ;;  %v12018_v60 = vld [vmem:[#allocation8 + $0x1c0] ss:$16 sps:$4 sm:$0xff]   ;;  %v12021_v61 = vld [vmem:[#allocation8 + $0x3c8] ss:$16 sps:$4 sm:$0xff]  }
 0x31c   :  { %3384 = vmatprep.subr.bf16.mxu1 %v11963_v62  ;;  %v12026_v62 = vld [vmem:[#allocation8 + $0x1e4] ss:$16 sps:$4 sm:$0xff]  }
 0x31e   :  { %3256 = vmatpush1.bf16.msra.mxu0 %v11958_v3  ;;  %v12029_v3 = vld [vmem:[#allocation8 + $0x3ec] ss:$16 sps:$4 sm:$0xff]  }
 0x31f   :  { %3385 = vmatpush1.bf16.msra.mxu1 %v11961_v36  ;;  %3257 = vmatprep.subr.bf16.mxu0 %v11966_v4  ;;  %v12024_v36 = vld [vmem:[#allocation8 + $0x1e0] ss:$16 sps:$4 sm:$0xff]   ;;  %v12027_v4 = vld [vmem:[#allocation8 + $0x3e8] ss:$16 sps:$4 sm:$0xff]  }
 0x320   :  { %v13214_v8 = vpop.f32.mrb[8].mxu0  ;;  %v13216_v9 = vpop.f32.mrb[4].mxu1  ;;  %3386 = vmatprep.subr.bf16.mxu1 %v11969_v5  ;;  %v12032_v5 = vld [vmem:[#allocation8 + $0x204] ss:$16 sps:$4 sm:$0xff]  }
 0x321   :  { %v13218_v12 = vpop.f32.mrb[9].mxu0  ;;  %v13220_v13 = vpop.f32.mrb[5].mxu1 }
 0x322   :  { %3258 = vmatpush1.bf16.msra.mxu0 %v11964_v6  ;;  %v13222_v14 = vpop.f32.mrb[10].mxu0  ;;  %v13224_v15 = vpop.f32.mrb[6].mxu1  ;;  %v12030_v6 = vld [vmem:[#allocation8 + $0x200] ss:$16 sps:$4 sm:$0xff]  }
 0x323   :  { %3387 = vmatpush1.bf16.msra.mxu1 %v11967_v7  ;;  %v13226_v17 = vpop.f32.mrb[7].mxu1  ;;  %3423 = vrot.lane.b32.xlu1 %v13222_v14, %s12878_s23  ;;  %v13230_v18 = vpop.f32.mrb[11].mxu0  ;;  %v12035_v7 = vld [vmem:[#allocation8 + $0x224] ss:$16 sps:$4 sm:$0xff]  }
 0x324   :  { %v11433_v21 = vpack.i.bf16 %v13230_v18, %v13218_v12  ;;  %3259 = vmatprep.subr.bf16.mxu0 %v11972_v10  ;;  %3388 = vmatprep.subr.bf16.mxu1 %v11975_v11  ;;  %v12033_v10 = vld [vmem:[#allocation8 + $0x220] ss:$16 sps:$4 sm:$0xff]   ;;  %v12038_v11 = vld [vmem:[#allocation8 + $0x244] ss:$16 sps:$4 sm:$0xff]  }
 0x326   :  { %3260 = vmatpush1.bf16.msra.mxu0 %v11970_v16  ;;  %v12036_v16 = vld [vmem:[#allocation8 + $0x240] ss:$16 sps:$4 sm:$0xff]  }
 0x327   :  { %3389 = vmatpush1.bf16.msra.mxu1 %v11973_v19  ;;  %3261 = vmatprep.subr.bf16.mxu0 %v11978_v20  ;;  %v12041_v19 = vld [vmem:[#allocation8 + $0x264] ss:$16 sps:$4 sm:$0xff]   ;;  %v12039_v20 = vld [vmem:[#allocation8 + $0x260] ss:$16 sps:$4 sm:$0xff]  }
 0x328   :  { %3390 = vmatprep.subr.bf16.mxu1 %v11981_v24  ;;  %v12044_v24 = vld [vmem:[#allocation8 + $0x284] ss:$16 sps:$4 sm:$0xff]  }
 0x32a   :  { %3262 = vmatpush1.bf16.msra.mxu0 %v11976_v25  ;;  %v12042_v25 = vld [vmem:[#allocation8 + $0x280] ss:$16 sps:$4 sm:$0xff]  }
 0x32b   :  { %3391 = vmatpush1.bf16.msra.mxu1 %v11979_v26  ;;  %3263 = vmatprep.subr.bf16.mxu0 %v11984_v27  ;;  %v12045_v26 = vld [vmem:[#allocation8 + $0x2a0] ss:$16 sps:$4 sm:$0xff]   ;;  %v12050_v27 = vld [vmem:[#allocation8 + $0x2c4] ss:$16 sps:$4 sm:$0xff]  }
 0x32c   :  { %3392 = vmatprep.subr.bf16.mxu1 %v11987_v28 }
 0x32e   :  { %3264 = vmatpush1.bf16.msra.mxu0 %v11982_v29 }
 0x32f   :  { %3393 = vmatpush1.bf16.msra.mxu1 %v11985_v30  ;;  %3265 = vmatprep.subr.bf16.mxu0 %v11990_v31 }
 0x330   :  { %3394 = vmatprep.subr.bf16.mxu1 %v11993_v32  ;;  %v12048_v32 = vld [vmem:[#allocation8 + $0x2c0] ss:$16 sps:$4 sm:$0xff]  }
 0x332   :  { %3266 = vmatpush1.bf16.msra.mxu0 %v11988_v33 }
 0x333   :  { %3395 = vmatpush1.bf16.msra.mxu1 %v11991_v34  ;;  %3267 = vmatprep.subr.bf16.mxu0 %v11996_v35  ;;  %v12053_v35 = vld [vmem:[#allocation8 + $0x2e4] ss:$16 sps:$4 sm:$0xff]  }
 0x334   :  { %3396 = vmatprep.subr.bf16.mxu1 %v11999_v1 }
 0x336   :  { %3268 = vmatpush1.bf16.msra.mxu0 %v11994_v37 }
 0x337   :  { %3397 = vmatpush1.bf16.msra.mxu1 %v11997_v38  ;;  %3269 = vmatprep.subr.bf16.mxu0 %v12002_v39  ;;  %v12056_v38 = vld [vmem:[#allocation8 + $0x304] ss:$16 sps:$4 sm:$0xff]   ;;  %v12054_v39 = vld [vmem:[#allocation8 + $0x300] ss:$16 sps:$4 sm:$0xff]  }
 0x338   :  { %3398 = vmatprep.subr.bf16.mxu1 %v12005_v42  ;;  %v12062_v42 = vld [vmem:[#allocation8 + $0x344] ss:$16 sps:$4 sm:$0xff]  }
 0x33a   :  { %3270 = vmatpush1.bf16.msra.mxu0 %v12000_v43  ;;  %v12060_v43 = vld [vmem:[#allocation8 + $0x340] ss:$16 sps:$4 sm:$0xff]  }
 0x33b   :  { %3399 = vmatpush1.bf16.msra.mxu1 %v12003_v46  ;;  %3271 = vmatprep.subr.bf16.mxu0 %v12008_v49  ;;  %v12065_v46 = vld [vmem:[#allocation8 + $0x364] ss:$16 sps:$4 sm:$0xff]   ;;  %v12063_v49 = vld [vmem:[#allocation8 + $0x360] ss:$16 sps:$4 sm:$0xff]  }
 0x33c   :  { %3400 = vmatprep.subr.bf16.mxu1 %v12011_v51  ;;  %v12068_v51 = vld [vmem:[#allocation8 + $0x384] ss:$16 sps:$4 sm:$0xff]  }
 0x33e   :  { %3272 = vmatpush1.bf16.msra.mxu0 %v12006_v52  ;;  %v12066_v52 = vld [vmem:[#allocation8 + $0x380] ss:$16 sps:$4 sm:$0xff]  }
 0x33f   :  { %3401 = vmatpush1.bf16.msra.mxu1 %v12009_v53  ;;  %3273 = vmatprep.subr.bf16.mxu0 %v12014_v54  ;;  %v12071_v53 = vld [vmem:[#allocation8 + $0x3a4] ss:$16 sps:$4 sm:$0xff]   ;;  %v12069_v54 = vld [vmem:[#allocation8 + $0x3a0] ss:$16 sps:$4 sm:$0xff]  }
 0x340   :  { %3402 = vmatprep.subr.bf16.mxu1 %v12017_v55  ;;  %v12074_v55 = vld [vmem:[#allocation8 + $0x3c4] ss:$16 sps:$4 sm:$0xff]  }
 0x342   :  { %3274 = vmatpush1.bf16.msra.mxu0 %v12012_v56  ;;  %v12072_v56 = vld [vmem:[#allocation8 + $0x3c0] ss:$16 sps:$4 sm:$0xff]  }
 0x343   :  { %3403 = vmatpush1.bf16.msra.mxu1 %v12015_v57  ;;  %3275 = vmatprep.subr.bf16.mxu0 %v12020_v58  ;;  %v12077_v57 = vld [vmem:[#allocation8 + $0x3e4] ss:$16 sps:$4 sm:$0xff]   ;;  %v12075_v58 = vld [vmem:[#allocation8 + $0x3e0] ss:$16 sps:$4 sm:$0xff]  }
 0x344   :  { %3404 = vmatprep.subr.bf16.mxu1 %v12023_v59 }
 0x346   :  { %3276 = vmatpush1.bf16.msra.mxu0 %v12018_v60 }
 0x347   :  { %3405 = vmatpush1.bf16.msra.mxu1 %v12021_v61  ;;  %3277 = vmatprep.subr.bf16.mxu0 %v12026_v62 }
 0x348   :  { %3406 = vmatprep.subr.bf16.mxu1 %v12029_v3 }
 0x34a   :  { %3278 = vmatpush1.bf16.msra.mxu0 %v12024_v36 }
 0x34b   :  { %3407 = vmatpush1.bf16.msra.mxu1 %v12027_v4  ;;  %3290 = vmatprep.subr.bf16.mxu0 %v12032_v5 }
 0x34c   :  { %11108 = vmatprep.subr.bf16.mxu1 %v12877_v0 }
 0x34d   :  { %3280 = vmatmul.mubr.bf16.vlgmr.msra.gmra.mrb[20].mxu0 %v13209_v50  ;;  %v12047_v50 = vld [vmem:[#allocation8 + $0x2a4] ss:$16 sps:$4 sm:$0xff]  }
 0x34e   :  { %3409 = vmatmul.mubr.bf16.vlgmr.msra.gmra.mrb[12].mxu1 %v13178_v63  ;;  %3291 = vmatpush1.bf16.msra.mxu0 %v12030_v6 }
 0x34f   :  { %3322 = vmatprep.mubr.bf16.mxu0 %v13180_v2  ;;  %3292 = vmatprep.subr.bf16.mxu0 %v12035_v7 }
 0x350   :  { %11110 = vmatprep.mubr.msk.bf16.mxu1 %vm12879_vm4, %v12877_v0 }
 0x352   :  { %3293 = vmatpush1.bf16.msra.mxu0 %v12033_v10 }
 0x353   :  { %3294 = vmatprep.subr.bf16.mxu0 %v12038_v11 }
 0x356   :  { %3295 = vmatpush1.bf16.msra.mxu0 %v12036_v16 }
 0x357   :  { %3296 = vmatprep.subr.bf16.mxu0 %v12041_v19 }
 0x35a   :  { %3297 = vmatpush1.bf16.msra.mxu0 %v12039_v20 }
 0x35b   :  { %3298 = vmatprep.subr.bf16.mxu0 %v12044_v24 }
 0x35e   :  { %3299 = vmatpush1.bf16.msra.mxu0 %v12042_v25  ;;  %v3451_v25 = vpack.c.bf16 %v13214_v8, %v13214_v8 }
 0x35f   :  { %3300 = vmatprep.subr.bf16.mxu0 %v12047_v50  ;;  %v3455_v50 = vpack.c.bf16 %v13218_v12, %v13218_v12 }
 0x360   :  { %v1487_v28 = vpop.f32.mrb[12].mxu0 }
 0x361   :  { %v13239_v2 = vadd.f32 %v13216_v9, %v1487_v28  ;;  %v1489_v29 = vpop.f32.mrb[13].mxu0 }
 0x362   :  { %v13242_v30 = vadd.f32 %v13220_v13, %v1489_v29  ;;  %v1491_v31 = vpop.f32.mrb[14].mxu0  ;;  %3301 = vmatpush1.bf16.msra.mxu0 %v12045_v26  ;;  %v12051_v13 = vld [vmem:[#allocation8 + $0x2e0] ss:$16 sps:$4 sm:$0xff]  }
 0x363   :  { %v13245_v33 = vadd.f32 %v13224_v15, %v1491_v31  ;;  %v1493_v34 = vpop.f32.mrb[15].mxu0  ;;  %3302 = vmatprep.subr.bf16.mxu0 %v12050_v27  ;;  %v12059_v15 = vld [vmem:[#allocation8 + $0x324] ss:$16 sps:$4 sm:$0xff]  }
 0x364   :  { %v13248_v1 = vadd.f32 %v13226_v17, %v1493_v34  ;;  %v12057_v17 = vld [vmem:[#allocation8 + $0x320] ss:$16 sps:$4 sm:$0xff]  }
 0x365   :  { %v11443_v9 = vpack.i.bf16 %v13245_v33, %v13239_v2 }
 0x366   :  { %v11453_v37 = vpack.i.bf16 %v13248_v1, %v13242_v30  ;;  %3303 = vmatpush1.bf16.msra.mxu0 %v12048_v32 }
 0x367   :  { %3304 = vmatprep.subr.bf16.mxu0 %v12053_v35 }
 0x36a   :  { %3305 = vmatpush1.bf16.msra.mxu0 %v12051_v13 }
 0x36b   :  { %3306 = vmatprep.subr.bf16.mxu0 %v12056_v38 }
 0x36e   :  { %3307 = vmatpush1.bf16.msra.mxu0 %v12054_v39 }
 0x36f   :  { %3308 = vmatprep.subr.bf16.mxu0 %v12059_v15 }
 0x372   :  { %3309 = vmatpush1.bf16.msra.mxu0 %v12057_v17 }
 0x373   :  { %3310 = vmatprep.subr.bf16.mxu0 %v12062_v42 }
 0x376   :  { %3311 = vmatpush1.bf16.msra.mxu0 %v12060_v43 }
 0x377   :  { %3312 = vmatprep.subr.bf16.mxu0 %v12065_v46 }
 0x37a   :  { %3313 = vmatpush1.bf16.msra.mxu0 %v12063_v49 }
 0x37b   :  { %3314 = vmatprep.subr.bf16.mxu0 %v12068_v51 }
 0x37e   :  { %3315 = vmatpush1.bf16.msra.mxu0 %v12066_v52 }
 0x37f   :  { %3316 = vmatprep.subr.bf16.mxu0 %v12071_v53 }
 0x382   :  { %3317 = vmatpush1.bf16.msra.mxu0 %v12069_v54 }
 0x383   :  { %3318 = vmatprep.subr.bf16.mxu0 %v12074_v55 }
 0x386   :  { %3319 = vmatpush1.bf16.msra.mxu0 %v12072_v56 }
 0x387   :  { %3320 = vmatprep.subr.bf16.mxu0 %v12077_v57 }
 0x38a   :  { %3321 = vmatpush1.bf16.msra.mxu0 %v12075_v58 }
 0x38b   :  { %11084 = vmatprep.subr.bf16.mxu0 %v12877_v0 }
 0x38d   :  { %3323 = vmatmul.mubr.bf16.vlgmr.msra.gmra.mrb[20].mxu0 %v13178_v63 }
 0x38e   :  { %11086 = vmatprep.mubr.msk.bf16.mxu0 %vm12879_vm4, %v12877_v0 }
 0x395   :  { %v3424_v32 = vpop.permute.xlu1 %3423 }
 0x3a0   :  { %v13260_v59 = vpop.f32.mrb[8].mxu1 }
 0x3a1   :  { %v13262_v60 = vpop.f32.mrb[9].mxu1  ;;  %v3507_v53 = vpack.c.bf16 %v13260_v59, %v13260_v59 }
 0x3a2   :  { %v13264_v61 = vpop.f32.mrb[10].mxu1 }
 0x3a3   :  { %v11438_v62 = vpack.i.bf16 %v13264_v61, %v13260_v59  ;;  %v13268_v3 = vpop.f32.mrb[11].mxu1  ;;  %v3936_v59 = vsel %vm3563_vm5, %v3507_v53, 0 }
 0x3a4   :  { %v11448_v36 = vpack.i.bf16 %v13268_v3, %v13262_v60 }
 0x3e0   :  { %v2384_v4 = vpop.f32.mrb[16].mxu0 }
 0x3e1   :  { %v3499_v5 = vpack.c.bf16 %v2384_v4, %v2384_v4  ;;  %3469 = vrot.lane.b32.xlu0 %v2384_v4, %s12878_s23  ;;  %v2386_v63 = vpop.f32.mrb[17].mxu0  ;;  %v3454_v4 = vpack.c.bf16 %v3424_v32, %v3424_v32 }
 0x3e2   :  { %v3503_v6 = vpack.c.bf16 %v2386_v63, %v2386_v63  ;;  %v2388_v7 = vpop.f32.mrb[18].mxu0 }
 0x3e3   :  { %v11423_v10 = vpack.i.bf16 %v2388_v7, %v13214_v8  ;;  %v13274_v11 = vpop.f32.mrb[19].mxu0  ;;  %v3568_v16 = vsel %vm3563_vm5, %v3499_v5, 0  ;;  %v3500_v24 = vpack.c.bf16 %v2388_v7, %v2388_v7  ;;  %v3452_v8 = vpack.c.bf16 %v13222_v14, %v13222_v14 }
 0x3e4   :  { %v11428_v19 = vpack.i.bf16 %v13274_v11, %v2386_v63  ;;  %11085 = vmatpush3.bf16.xpose.msra.mxu0 %v3568_v16  ;;  %v3752_v20 = vsel %vm3563_vm5, %v3503_v6, 0  ;;  %v3504_v55 = vpack.c.bf16 %v13274_v11, %v13274_v11  ;;  %v3459_v16 = vpack.c.bf16 %v13239_v2, %v13239_v2 }
 0x3e5   :  { %11109 = vmatpush3.bf16.xpose.msra.mxu1 %v3752_v20  ;;  %11424 = vrot.lane.b32.xlu0 %v11423_v10, %s12878_s23  ;;  %v3614_v26 = vsel %vm3563_vm5, %v3500_v24, 0  ;;  %v3508_v2 = vpack.c.bf16 %v13264_v61, %v13264_v61 }
 0x3e6   :  { %11429 = vrot.lane.b32.xlu1 %v11428_v19, %s12878_s23  ;;  %11090 = vmatprep.subr.bf16.mxu0 %v12877_v0  ;;  %v3798_v7 = vsel %vm3563_vm5, %v3504_v55, 0  ;;  %v3456_v19 = vpack.c.bf16 %v13230_v18, %v13230_v18  ;;  %v3511_v18 = vpack.c.bf16 %v13262_v60, %v13262_v60 }
 0x3e7   :  { %11120 = vmatprep.subr.bf16.mxu1 %v12877_v0 }
 0x3e9   :  { %11434 = vrot.lane.b32.xlu0 %v11433_v21, %s12878_s23 }
 0x3ea   :  { %11439 = vrot.lane.b32.xlu1 %v11438_v62, %s12878_s23 }
 0x3eb   :  { %11087 = vmatmul.mubr.msk.bf16.vlgmr.msra.gmra.mrb[24].mxu0 %vm3563_vm5, %v3451_v25 }
 0x3ec   :  { %11091 = vmatpush3.bf16.xpose.msra.mxu0 %v3614_v26  ;;  %11111 = vmatmul.mubr.msk.bf16.vlgmr.msra.gmra.mrb[16].mxu1 %vm3563_vm5, %v3455_v50 }
 0x3ed   :  { %11444 = vrot.lane.b32.xlu0 %v11443_v9, %s12878_s23  ;;  %11092 = vmatprep.mubr.msk.bf16.mxu0 %vm12879_vm4, %v12877_v0 }
 0x3ee   :  { %11449 = vrot.lane.b32.xlu1 %v11448_v36, %s12878_s23  ;;  %11096 = vmatprep.subr.bf16.mxu0 %v12877_v0 }
 0x3ef   :  { %11122 = vmatprep.mubr.msk.bf16.mxu1 %vm12879_vm4, %v12877_v0 }
 0x3f1   :  { %11454 = vrot.lane.b32.xlu0 %v11453_v37, %s12878_s23 }
 0x3f3   :  { %11093 = vmatmul.mubr.msk.bf16.vlgmr.msra.gmra.mrb[28].mxu0 %vm3563_vm5, %v3452_v8 }
 0x3f4   :  { %11098 = vmatprep.mubr.msk.bf16.mxu0 %vm12879_vm4, %v12877_v0 }
 0x421   :  { %v13314_v12 = vpop.f32.mrb[12].mxu1 }
 0x422   :  { %v13316_v21 = vpop.f32.mrb[13].mxu1 }
 0x423   :  { %v13318_v27 = vpop.f32.mrb[14].mxu1 }
 0x424   :  { %v11468_v28 = vpack.i.bf16 %v13318_v27, %v13314_v12  ;;  %v13322_v14 = vpop.f32.mrb[15].mxu1 }
 0x425   :  { %v11473_v29 = vpack.i.bf16 %v13322_v14, %v13316_v21 }
 0x453   :  { %v3470_v31 = vpop.permute.xlu0 %3469 }
 0x454   :  { %v3501_v34 = vpack.c.bf16 %v3470_v31, %v3470_v31 }
 0x456   :  { %v3660_v35 = vsel %vm3563_vm5, %v3501_v34, 0 }
 0x457   :  { %v11425_v9 = vpop.permute.xlu0 %11424  ;;  %11097 = vmatpush3.bf16.xpose.msra.mxu0 %v3660_v35  ;;  %v4120_v35 = vsel %vm3563_vm5, %v3511_v18, 0 }
 0x458   :  { %v11427_v37 = vunpack.i.h.bf16 %v11425_v9  ;;  %v11426_v13 = vunpack.i.l.bf16 %v11425_v9  ;;  %v11430_v38 = vpop.permute.xlu1 %11429  ;;  %11102 = vmatprep.subr.bf16.mxu0 %v12877_v0 }
 0x459   :  { %v11431_v39 = vunpack.i.l.bf16 %v11430_v38  ;;  %v11432_v6 = vunpack.i.h.bf16 %v11430_v38  ;;  %v3460_v38 = vpack.c.bf16 %v13245_v33, %v13245_v33  ;;  %v3512_v33 = vpack.c.bf16 %v13268_v3, %v13268_v3 }
 0x45a   :  { %v3502_v15 = vpack.c.bf16 %v11427_v37, %v11427_v37  ;;  %v3453_v42 = vpack.c.bf16 %v11426_v13, %v11426_v13  ;;  %v3982_v37 = vsel %vm3563_vm5, %v3508_v2, 0  ;;  %v3463_v13 = vpack.c.bf16 %v13242_v30, %v13242_v30 }
 0x45b   :  { %v3505_v17 = vpack.c.bf16 %v11431_v39, %v11431_v39  ;;  %v11435_v43 = vpop.permute.xlu0 %11434  ;;  %v3506_v11 = vpack.c.bf16 %v11432_v6, %v11432_v6  ;;  %v4166_v55 = vsel %vm3563_vm5, %v3512_v33, 0 }
 0x45c   :  { %v3706_v49 = vsel %vm3563_vm5, %v3502_v15, 0  ;;  %v11436_v51 = vunpack.i.l.bf16 %v11435_v43  ;;  %v11440_v56 = vpop.permute.xlu1 %11439  ;;  %v11437_v26 = vunpack.i.h.bf16 %v11435_v43 }
 0x45d   :  { %v3844_v46 = vsel %vm3563_vm5, %v3505_v17, 0  ;;  %v11441_v63 = vunpack.i.l.bf16 %v11440_v56  ;;  %v3890_v25 = vsel %vm3563_vm5, %v3506_v11, 0  ;;  %v11442_v9 = vunpack.i.h.bf16 %v11440_v56 }
 0x45e   :  { %11099 = vmatmul.mubr.msk.bf16.vlgmr.msra.gmra.mrb[32].mxu0 %vm3563_vm5, %v3453_v42  ;;  %11121 = vmatpush3.bf16.xpose.msra.mxu1 %v3844_v46  ;;  %v3457_v58 = vpack.c.bf16 %v11436_v51, %v11436_v51  ;;  %v3458_v32 = vpack.c.bf16 %v11437_v26, %v11437_v26  ;;  %v3464_v56 = vpack.c.bf16 %v13248_v1, %v13248_v1 }
 0x45f   :  { %11103 = vmatpush3.bf16.xpose.msra.mxu0 %v3706_v49  ;;  %11104 = vmatprep.mubr.msk.bf16.mxu0 %vm12879_vm4, %v12877_v0  ;;  %v3509_v10 = vpack.c.bf16 %v11441_v63, %v11441_v63  ;;  %v11445_v20 = vpop.permute.xlu0 %11444  ;;  %v3510_v61 = vpack.c.bf16 %v11442_v9, %v11442_v9 }
 0x460   :  { %v13333_v52 = vpop.f32.mrb[20].mxu0  ;;  %11132 = vmatprep.subr.bf16.mxu1 %v12877_v0  ;;  %11114 = vmatprep.subr.bf16.mxu0 %v12877_v0  ;;  %v11446_v50 = vunpack.i.l.bf16 %v11445_v20  ;;  %v11450_v8 = vpop.permute.xlu1 %11449  ;;  %v11447_v43 = vunpack.i.h.bf16 %v11445_v20 }
 0x461   :  { %v13339_v54 = vpop.f32.mrb[21].mxu0  ;;  %v4028_v24 = vsel %vm3563_vm5, %v3509_v10, 0  ;;  %v11451_v34 = vunpack.i.l.bf16 %v11450_v8  ;;  %v4074_v17 = vsel %vm3563_vm5, %v3510_v61, 0  ;;  %v3547_v30 = vpack.c.bf16 %v13333_v52, %v13333_v52 }
 0x462   :  { %v13343_v57 = vpop.f32.mrb[22].mxu0  ;;  %v3461_v31 = vpack.c.bf16 %v11446_v50, %v11446_v50  ;;  %v3462_v49 = vpack.c.bf16 %v11447_v43, %v11447_v43  ;;  %v11452_v53 = vunpack.i.h.bf16 %v11450_v8 }
 0x463   :  { %v11458_v62 = vpack.i.bf16 %v13343_v57, %v13333_v52  ;;  %v13347_v36 = vpop.f32.mrb[23].mxu0  ;;  %v3513_v60 = vpack.c.bf16 %v11451_v34, %v11451_v34  ;;  %v11455_v39 = vpop.permute.xlu0 %11454  ;;  %v4497_v51 = vsel %vm185_vm0, %v3547_v30, 0  ;;  %v3548_v63 = vpack.c.bf16 %v13343_v57, %v13343_v57 }
 0x464   :  { %v11463_v5 = vpack.i.bf16 %v13347_v36, %v13339_v54  ;;  %v11456_v42 = vunpack.i.l.bf16 %v11455_v39  ;;  %v3514_v3 = vpack.c.bf16 %v11452_v53, %v11452_v53 }
 0x465   :  { %11123 = vmatmul.mubr.msk.bf16.vlgmr.msra.gmra.mrb[20].mxu1 %vm3563_vm5, %v3457_v58  ;;  %v4212_v15 = vsel %vm3563_vm5, %v3513_v60, 0  ;;  %v4543_v6 = vsel %vm185_vm0, %v3548_v63, 0 }
 0x466   :  { %11105 = vmatmul.mubr.msk.bf16.vlgmr.msra.gmra.mrb[36].mxu0 %vm3563_vm5, %v3454_v4  ;;  %11133 = vmatpush3.bf16.xpose.msra.mxu1 %v3936_v59  ;;  %v3465_v46 = vpack.c.bf16 %v11456_v42, %v11456_v42  ;;  %v4258_v58 = vsel %vm3563_vm5, %v3514_v3, 0  ;;  %v11457_v4 = vunpack.i.h.bf16 %v11455_v39 }
 0x467   :  { %11115 = vmatpush3.bf16.xpose.msra.mxu0 %v3798_v7  ;;  %11134 = vmatprep.mubr.msk.bf16.mxu1 %vm12879_vm4, %v12877_v0 }
 0x468   :  { %11116 = vmatprep.mubr.msk.bf16.mxu0 %vm12879_vm4, %v12877_v0  ;;  %11144 = vmatprep.subr.bf16.mxu1 %v12877_v0  ;;  %v3466_v59 = vpack.c.bf16 %v11457_v4, %v11457_v4 }
 0x469   :  { %11126 = vmatprep.subr.bf16.mxu0 %v12877_v0 }
 0x46d   :  { %11135 = vmatmul.mubr.msk.bf16.vlgmr.msra.gmra.mrb[24].mxu1 %vm3563_vm5, %v3459_v16 }
 0x46e   :  { %11117 = vmatmul.mubr.msk.bf16.vlgmr.msra.gmra.mrb[40].mxu0 %vm3563_vm5, %v3456_v19  ;;  %11145 = vmatpush3.bf16.xpose.msra.mxu1 %v4028_v24 }
 0x46f   :  { %11127 = vmatpush3.bf16.xpose.msra.mxu0 %v3890_v25  ;;  %11146 = vmatprep.mubr.msk.bf16.mxu1 %vm12879_vm4, %v12877_v0 }
 0x470   :  { %11128 = vmatprep.mubr.msk.bf16.mxu0 %vm12879_vm4, %v12877_v0  ;;  %11156 = vmatprep.subr.bf16.mxu1 %v12877_v0 }
 0x471   :  { %11138 = vmatprep.subr.bf16.mxu0 %v12877_v0 }
 0x475   :  { %11147 = vmatmul.mubr.msk.bf16.vlgmr.msra.gmra.mrb[28].mxu1 %vm3563_vm5, %v3461_v31 }
 0x476   :  { %11129 = vmatmul.mubr.msk.bf16.vlgmr.msra.gmra.mrb[44].mxu0 %vm3563_vm5, %v3458_v32  ;;  %11157 = vmatpush3.bf16.xpose.msra.mxu1 %v4120_v35 }
 0x477   :  { %11139 = vmatpush3.bf16.xpose.msra.mxu0 %v3982_v37  ;;  %11158 = vmatprep.mubr.msk.bf16.mxu1 %vm12879_vm4, %v12877_v0 }
 0x478   :  { %11140 = vmatprep.mubr.msk.bf16.mxu0 %vm12879_vm4, %v12877_v0  ;;  %11168 = vmatprep.subr.bf16.mxu1 %v12877_v0 }
 0x479   :  { %11150 = vmatprep.subr.bf16.mxu0 %v12877_v0 }
 0x47d   :  { %11159 = vmatmul.mubr.msk.bf16.vlgmr.msra.gmra.mrb[32].mxu1 %vm3563_vm5, %v3463_v13 }
 0x47e   :  { %11141 = vmatmul.mubr.msk.bf16.vlgmr.msra.gmra.mrb[48].mxu0 %vm3563_vm5, %v3460_v38  ;;  %11169 = vmatpush3.bf16.xpose.msra.mxu1 %v4212_v15 }
 0x47f   :  { %11151 = vmatpush3.bf16.xpose.msra.mxu0 %v4074_v17  ;;  %11170 = vmatprep.mubr.msk.bf16.mxu1 %vm12879_vm4, %v12877_v0 }
 0x480   :  { %11152 = vmatprep.mubr.msk.bf16.mxu0 %vm12879_vm4, %v12877_v0  ;;  %11180 = vmatprep.subr.bf16.mxu1 %v12877_v0 }
 0x481   :  { %11162 = vmatprep.subr.bf16.mxu0 %v12877_v0 }
 0x485   :  { %11171 = vmatmul.mubr.msk.bf16.vlgmr.msra.gmra.mrb[36].mxu1 %vm3563_vm5, %v3465_v46 }
 0x486   :  { %11153 = vmatmul.mubr.msk.bf16.vlgmr.msra.gmra.mrb[52].mxu0 %vm3563_vm5, %v3462_v49  ;;  %11181 = vmatpush3.bf16.msra.mxu1 %v4497_v51 }
 0x487   :  { %11163 = vmatpush3.bf16.xpose.msra.mxu0 %v4166_v55  ;;  %11164 = vmatprep.mubr.msk.bf16.mxu0 %vm12879_vm4, %v12877_v0 }
 0x488   :  { %11174 = vmatprep.subr.bf16.mxu0 %v12877_v0  ;;  %11182 = vmatprep.mubr.msk.bf16.mxu1 %vm12879_vm4, %v12877_v0 }
 0x489   :  { %11192 = vmatprep.subr.bf16.mxu1 %v12877_v0 }
 0x48e   :  { %11165 = vmatmul.mubr.msk.bf16.vlgmr.msra.gmra.mrb[56].mxu0 %vm3563_vm5, %v3464_v56 }
 0x48f   :  { %11175 = vmatpush3.bf16.xpose.msra.mxu0 %v4258_v58  ;;  %11176 = vmatprep.mubr.msk.bf16.mxu0 %vm12879_vm4, %v12877_v0 }
 0x490   :  { %11186 = vmatprep.subr.bf16.mxu0 %v12877_v0 }
 0x496   :  { %11177 = vmatmul.mubr.msk.bf16.vlgmr.msra.gmra.mrb[60].mxu0 %vm3563_vm5, %v3466_v59 }
 0x497   :  { %11187 = vmatpush3.bf16.msra.mxu0 %v4543_v6  ;;  %11188 = vmatprep.mubr.msk.bf16.mxu0 %vm12879_vm4, %v12877_v0 }
 0x498   :  { %11198 = vmatprep.subr.bf16.mxu0 %v12877_v0 }
 0x4be   :  { %v3604_v1 = vpop.f32.mrb[24].mxu0 }
 0x4bf   :  { %v11088_v7 = vpop.f32.mrb[25].mxu0  ;;  %v13431_v10 = vpop.f32.mrb[16].mxu1  ;;  %v4301_v11 = vsel %vm4300_vm6, %v3604_v1, -inf }
 0x4c0   :  { %v11112_v16 = vpop.f32.mrb[17].mxu1  ;;  %4302 = vmax.xlane.f32.xlu1 %v4301_v11  ;;  %v3607_v19 = vpop.f32.mrb[26].mxu0  ;;  %v4313_v37 = vsel %vm4300_vm6, %v13431_v10, -inf }
 0x4c1   :  { %v11089_v20 = vpop.f32.mrb[27].mxu0  ;;  %v3791_v24 = vpop.f32.mrb[18].mxu1 }
 0x4c2   :  { %v11113_v25 = vpop.f32.mrb[19].mxu1 }
 0x4c6   :  { %v13434_v50 = vpop.f32.mrb[28].mxu0 }
 0x4c7   :  { %v11094_v26 = vpop.f32.mrb[29].mxu0  ;;  %v4304_v18 = vsel %vm4300_vm6, %v13434_v50, -inf }
 0x4c8   :  { %v3653_v2 = vpop.f32.mrb[30].mxu0  ;;  %4305 = vmax.xlane.f32.xlu0 %v4304_v18 }
 0x4c9   :  { %v11095_v8 = vpop.f32.mrb[31].mxu0 }
 0x531   :  { %v13438_v31 = vpop.f32.mrb[32].mxu0 }
 0x532   :  { %v11100_v32 = vpop.f32.mrb[33].mxu0  ;;  %v4307_v34 = vsel %vm4300_vm6, %v13438_v31, -inf }
 0x533   :  { %v3699_v35 = vpop.f32.mrb[34].mxu0  ;;  %4308 = vmax.xlane.f32.xlu0 %v4307_v34 }
 0x534   :  { %v11101_v9 = vpop.f32.mrb[35].mxu0 }
 0x537   :  { %4314 = vmax.xlane.f32.xlu0 %v4313_v37 }
 0x538   :  { %v13444_v60 = vpop.f32.mrb[20].mxu1 }
 0x539   :  { %v13446_v61 = vpop.f32.mrb[36].mxu0  ;;  %v11124_v13 = vpop.f32.mrb[21].mxu1  ;;  %v4319_v38 = vsel %vm4300_vm6, %v13444_v60, -inf }
 0x53a   :  { %v11106_v39 = vpop.f32.mrb[37].mxu0  ;;  %v3883_v15 = vpop.f32.mrb[22].mxu1  ;;  %v4310_v17 = vsel %vm4300_vm6, %v13446_v61, -inf }
 0x53b   :  { %v11125_v42 = vpop.f32.mrb[23].mxu1  ;;  %4311 = vmax.xlane.f32.xlu1 %v4310_v17  ;;  %v3745_v43 = vpop.f32.mrb[38].mxu0  ;;  %4320 = vmax.xlane.f32.xlu0 %v4319_v38 }
 0x53c   :  { %v11107_v30 = vpop.f32.mrb[39].mxu0 }
 0x540   :  { %v13452_v33 = vpop.f32.mrb[24].mxu1 }
 0x541   :  { %v13454_v46 = vpop.f32.mrb[40].mxu0  ;;  %v11136_v49 = vpop.f32.mrb[25].mxu1  ;;  %v4325_v51 = vsel %vm4300_vm6, %v13452_v33, -inf }
 0x542   :  { %v11118_v53 = vpop.f32.mrb[41].mxu0  ;;  %v3975_v55 = vpop.f32.mrb[26].mxu1  ;;  %4326 = vmax.xlane.f32.xlu0 %v4325_v51  ;;  %v4316_v3 = vsel %vm4300_vm6, %v13454_v46, -inf }
 0x543   :  { %v11137_v56 = vpop.f32.mrb[27].mxu1  ;;  %4317 = vmax.xlane.f32.xlu1 %v4316_v3  ;;  %v3837_v58 = vpop.f32.mrb[42].mxu0 }
 0x544   :  { %v11119_v4 = vpop.f32.mrb[43].mxu0 }
 0x548   :  { %v13460_v63 = vpop.f32.mrb[28].mxu1 }
 0x549   :  { %v13462_v59 = vpop.f32.mrb[44].mxu0  ;;  %v11148_v6 = vpop.f32.mrb[29].mxu1  ;;  %v4331_v7 = vsel %vm4300_vm6, %v13460_v63, -inf }
 0x54a   :  { %v11130_v11 = vpop.f32.mrb[45].mxu0  ;;  %v4067_v16 = vpop.f32.mrb[30].mxu1  ;;  %4332 = vmax.xlane.f32.xlu0 %v4331_v7  ;;  %v4322_v19 = vsel %vm4300_vm6, %v13462_v59, -inf }
 0x54b   :  { %v11149_v20 = vpop.f32.mrb[31].mxu1  ;;  %4323 = vmax.xlane.f32.xlu1 %v4322_v19  ;;  %v3929_v24 = vpop.f32.mrb[46].mxu0 }
 0x54c   :  { %v11131_v25 = vpop.f32.mrb[47].mxu0 }
 0x54d   :  { %v4303_v26 = vpop.xlane.xlu1 %4302 }
 0x54e   :  { %v4349_v18 = vsub.f32 %v3604_v1, %v4303_v26 }
 0x550   :  { %v4365_v2 = vmul.f32 1.442695, %v4349_v18  ;;  %v13468_v8 = vpop.f32.mrb[32].mxu1 }
 0x551   :  { %v13470_v32 = vpop.f32.mrb[48].mxu0  ;;  %v11160_v34 = vpop.f32.mrb[33].mxu1  ;;  %v4337_v35 = vsel %vm4300_vm6, %v13468_v8, -inf }
 0x552   :  { %12606 = vpow2.f32 %v4365_v2  ;;  %v11142_v9 = vpop.f32.mrb[49].mxu0  ;;  %v4159_v37 = vpop.f32.mrb[34].mxu1  ;;  %4338 = vmax.xlane.f32.xlu0 %v4337_v35  ;;  %v4328_v13 = vsel %vm4300_vm6, %v13470_v32, -inf }
 0x553   :  { %v11161_v38 = vpop.f32.mrb[35].mxu1  ;;  %4329 = vmax.xlane.f32.xlu1 %v4328_v13  ;;  %v4021_v39 = vpop.f32.mrb[50].mxu0 }
 0x554   :  { %v11143_v1 = vpop.f32.mrb[51].mxu0 }
 0x555   :  { %v4306_v15 = vpop.xlane.xlu0 %4305 }
 0x556   :  { %v4350_v17 = vsub.f32 %v13434_v50, %v4306_v15 }
 0x558   :  { %v4367_v42 = vmul.f32 1.442695, %v4350_v17  ;;  %v13477_v43 = vpop.f32.mrb[36].mxu1 }
 0x559   :  { %v13479_v30 = vpop.f32.mrb[52].mxu0  ;;  %v11172_v49 = vpop.f32.mrb[37].mxu1  ;;  %v4343_v51 = vsel %vm4300_vm6, %v13477_v43, -inf }
 0x55a   :  { %12608 = vpow2.f32 %v4367_v42  ;;  %v11154_v53 = vpop.f32.mrb[53].mxu0  ;;  %4344 = vmax.xlane.f32.xlu0 %v4343_v51  ;;  %v4251_v55 = vpop.f32.mrb[38].mxu1  ;;  %v4334_v3 = vsel %vm4300_vm6, %v13479_v30, -inf }
 0x55b   :  { %4335 = vmax.xlane.f32.xlu1 %v4334_v3  ;;  %v4113_v56 = vpop.f32.mrb[54].mxu0  ;;  %v11173_v58 = vpop.f32.mrb[39].mxu1 }
 0x55c   :  { %v13485_v50 = vpop.eup %12606  ;;  %v11155_v4 = vpop.f32.mrb[55].mxu0 }
 0x55d   :  { %v4397_v6 = vsel %vm4300_vm6, %v13485_v50, 0.0 }
 0x55e   :  { %4398 = vadd.xlane.f32.xlu0 %v4397_v6 }
 0x561   :  { %v13489_v7 = vpop.f32.mrb[56].mxu0 }
 0x562   :  { %v11166_v11 = vpop.f32.mrb[57].mxu0  ;;  %v4340_v16 = vsel %vm4300_vm6, %v13489_v7, -inf }
 0x563   :  { %4341 = vmax.xlane.f32.xlu1 %v4340_v16  ;;  %v4205_v19 = vpop.f32.mrb[58].mxu0 }
 0x564   :  { %v13493_v20 = vpop.eup %12608  ;;  %v11167_v24 = vpop.f32.mrb[59].mxu0 }
 0x565   :  { %v4400_v25 = vsel %vm4300_vm6, %v13493_v20, 0.0 }
 0x567   :  { %4401 = vadd.xlane.f32.xlu1 %v4400_v25 }
 0x569   :  { %v13497_v26 = vpop.f32.mrb[60].mxu0 }
 0x56a   :  { %v11178_v18 = vpop.f32.mrb[61].mxu0  ;;  %v4346_v2 = vsel %vm4300_vm6, %v13497_v26, -inf }
 0x56b   :  { %4347 = vmax.xlane.f32.xlu1 %v4346_v2  ;;  %v4297_v34 = vpop.f32.mrb[62].mxu0 }
 0x56c   :  { %v11179_v35 = vpop.f32.mrb[63].mxu0 }
 0x5c0   :  { %v4309_v9 = vpop.xlane.xlu0 %4308 }
 0x5c1   :  { %v4351_v37 = vsub.f32 %v13438_v31, %v4309_v9 }
 0x5c3   :  { %v4369_v39 = vmul.f32 1.442695, %v4351_v37 }
 0x5c4   :  { %v4315_v13 = vpop.xlane.xlu0 %4314 }
 0x5c5   :  { %v4353_v38 = vsub.f32 %v13431_v10, %v4315_v13 }
 0x5c7   :  { %v4373_v1 = vmul.f32 1.442695, %v4353_v38 }
 0x5c8   :  { %v4312_v15 = vpop.xlane.xlu1 %4311  ;;  %v4321_v17 = vpop.xlane.xlu0 %4320 }
 0x5c9   :  { %12610 = vpow2.f32 %v4373_v1  ;;  %v4352_v42 = vsub.f32 %v13446_v61, %v4312_v15  ;;  %v4355_v49 = vsub.f32 %v13444_v60, %v4321_v17 }
 0x5ca   :  { %12612 = vpow2.f32 %v4369_v39 }
 0x5cb   :  { %v4371_v51 = vmul.f32 1.442695, %v4352_v42  ;;  %v4377_v53 = vmul.f32 1.442695, %v4355_v49 }
 0x5cd   :  { %12614 = vpow2.f32 %v4371_v51 }
 0x5ce   :  { %12616 = vpow2.f32 %v4377_v53 }
 0x5cf   :  { %v4327_v16 = vpop.xlane.xlu0 %4326 }
 0x5d0   :  { %v4318_v55 = vpop.xlane.xlu1 %4317 }
 0x5d1   :  { %v4354_v31 = vsub.f32 %v13454_v46, %v4318_v55 }
 0x5d3   :  { %v13506_v3 = vpop.eup %12610  ;;  %v4375_v10 = vmul.f32 1.442695, %v4354_v31 }
 0x5d4   :  { %v4409_v56 = vsel %vm4300_vm6, %v13506_v3, 0.0  ;;  %v13510_v58 = vpop.eup %12612 }
 0x5d5   :  { %12618 = vpow2.f32 %v4375_v10  ;;  %4410 = vadd.xlane.f32.xlu0 %v4409_v56  ;;  %v4403_v4 = vsel %vm4300_vm6, %v13510_v58, 0.0 }
 0x5d7   :  { %v13512_v61 = vpop.eup %12614  ;;  %v4333_v18 = vpop.xlane.xlu0 %4332 }
 0x5d8   :  { %v4324_v60 = vpop.xlane.xlu1 %4323  ;;  %v4406_v6 = vsel %vm4300_vm6, %v13512_v61, 0.0  ;;  %v13518_v46 = vpop.eup %12616  ;;  %v4359_v49 = vsub.f32 %v13460_v63, %v4333_v18 }
 0x5d9   :  { %v4356_v11 = vsub.f32 %v13462_v59, %v4324_v60  ;;  %4404 = vadd.xlane.f32.xlu0 %v4403_v4  ;;  %4407 = vadd.xlane.f32.xlu1 %v4406_v6  ;;  %v4415_v24 = vsel %vm4300_vm6, %v13518_v46, 0.0 }
 0x5da   :  { %v4385_v57 = vmul.f32 1.442695, %v4359_v49 }
 0x5db   :  { %v4379_v19 = vmul.f32 1.442695, %v4356_v11 }
 0x5dd   :  { %12620 = vpow2.f32 %v4379_v19  ;;  %4416 = vadd.xlane.f32.xlu0 %v4415_v24 }
 0x5df   :  { %v13523_v25 = vpop.eup %12618  ;;  %v4339_v34 = vpop.xlane.xlu0 %4338 }
 0x5e0   :  { %v4412_v2 = vsel %vm4300_vm6, %v13523_v25, 0.0  ;;  %v4330_v9 = vpop.xlane.xlu1 %4329 }
 0x5e1   :  { %4413 = vadd.xlane.f32.xlu1 %v4412_v2  ;;  %v4358_v55 = vsub.f32 %v13470_v32, %v4330_v9 }
 0x5e3   :  { %v4383_v63 = vmul.f32 1.442695, %v4358_v55  ;;  %v3552_v55 = vpack.c.bf16 %v13347_v36, %v13347_v36 }
 0x5e7   :  { %v13527_v35 = vpop.eup %12620  ;;  %v4345_v59 = vpop.xlane.xlu0 %4344 }
 0x5e8   :  { %v4418_v37 = vsel %vm4300_vm6, %v13527_v35, 0.0  ;;  %v4336_v38 = vpop.xlane.xlu1 %4335  ;;  %v4363_v31 = vsub.f32 %v13477_v43, %v4345_v59 }
 0x5e9   :  { %4419 = vadd.xlane.f32.xlu1 %v4418_v37 }
 0x5eb   :  { %v4399_v13 = vpop.xlane.xlu0 %4398 }
 0x5ec   :  { %12622 = vrcp.f32 %v4399_v13 }
 0x5f0   :  { %v4342_v39 = vpop.xlane.xlu1 %4341 }
 0x5f1   :  { %v4362_v60 = vsub.f32 %v13489_v7, %v4342_v39 }
 0x5f3   :  { %11459 = vrot.lane.b32.xlu0 %v11458_v62, %s12878_s23  ;;  %v4361_v62 = vsub.f32 %v13468_v8, %v4339_v34  ;;  %v4393_v8 = vmul.f32 1.442695, %v4363_v31  ;;  %v4391_v43 = vmul.f32 1.442695, %v4362_v60 }
 0x5f4   :  { %v4402_v1 = vpop.xlane.xlu1 %4401 }
 0x5f5   :  { %12624 = vrcp.f32 %v4402_v1  ;;  %v4389_v53 = vmul.f32 1.442695, %v4361_v62 }
 0x5f6   :  { %v12623_v15 = vpop.eup %12622  ;;  %12626 = vpow2.f32 %v4385_v57 }
 0x5f7   :  { %v4461_v17 = vmul.f32 %v12623_v15, %v13485_v50  ;;  %12628 = vpow2.f32 %v4389_v53  ;;  %v3551_v53 = vpack.c.bf16 %v13339_v54, %v13339_v54 }
 0x5f8   :  { %12630 = vpow2.f32 %v4383_v63  ;;  %v4348_v4 = vpop.xlane.xlu1 %4347 }
 0x5f9   :  { %v4477_v42 = vpack.c.bf16 %v4461_v17, %v4461_v17  ;;  %v4364_v11 = vsub.f32 %v13497_v26, %v4348_v4  ;;  %v4681_v36 = vsel %vm185_vm0, %v3551_v53, 0 }
 0x5fa   :  { %11464 = vrot.lane.b32.xlu1 %v11463_v5, %s12878_s23  ;;  %v4357_v5 = vsub.f32 %v13452_v33, %v4327_v16 }
 0x5fb   :  { %11183 = vmatmul.mubr.msk.bf16.vlgmr.msra.gmra.mrb[40].mxu1 %vm4300_vm6, %v4477_v42  ;;  %v4395_v19 = vmul.f32 1.442695, %v4364_v11 }
 0x5fc   :  { %11194 = vmatprep.mubr.msk.bf16.mxu1 %vm12879_vm4, %v12877_v0  ;;  %v4381_v10 = vmul.f32 1.442695, %v4357_v5 }
 0x5fe   :  { %12632 = vpow2.f32 %v4381_v10 }
 0x5ff   :  { %v12625_v52 = vpop.eup %12624  ;;  %12634 = vpow2.f32 %v4393_v8 }
 0x600   :  { %v4462_v51 = vmul.f32 %v12625_v52, %v13493_v20  ;;  %v4360_v20 = vsub.f32 %v13479_v30, %v4336_v38  ;;  %v13553_v56 = vpop.eup %12626 }
 0x601   :  { %v4427_v33 = vsel %vm4300_vm6, %v13553_v56, 0.0  ;;  %v13558_v6 = vpop.eup %12628 }
 0x602   :  { %v4478_v50 = vpack.c.bf16 %v4462_v51, %v4462_v51  ;;  %v4387_v32 = vmul.f32 1.442695, %v4360_v20  ;;  %v4433_v30 = vsel %vm4300_vm6, %v13558_v6, 0.0  ;;  %v13563_v16 = vpop.eup %12630 }
 0x603   :  { %v4424_v24 = vsel %vm4300_vm6, %v13563_v16, 0.0 }
 0x604   :  { %11189 = vmatmul.mubr.msk.bf16.vlgmr.msra.gmra.mrb[64].mxu0 %vm4300_vm6, %v4478_v50  ;;  %12636 = vpow2.f32 %v4387_v32 }
 0x605   :  { %11200 = vmatprep.mubr.msk.bf16.mxu0 %vm12879_vm4, %v12877_v0  ;;  %12638 = vpow2.f32 %v4391_v43 }
 0x606   :  { %12640 = vpow2.f32 %v4395_v19 }
 0x608   :  { %v13565_v7 = vpop.eup %12632 }
 0x609   :  { %v13569_v18 = vpop.eup %12634  ;;  %v4421_v2 = vsel %vm4300_vm6, %v13565_v7, 0.0 }
 0x60a   :  { %v4439_v26 = vsel %vm4300_vm6, %v13569_v18, 0.0 }
 0x60e   :  { %v13575_v34 = vpop.eup %12636 }
 0x60f   :  { %v4430_v59 = vsel %vm4300_vm6, %v13575_v34, 0.0  ;;  %v13579_v9 = vpop.eup %12638 }
 0x610   :  { %v4436_v37 = vsel %vm4300_vm6, %v13579_v9, 0.0  ;;  %v13583_v13 = vpop.eup %12640 }
 0x611   :  { %v4442_v38 = vsel %vm4300_vm6, %v13583_v13, 0.0 }
 0x612   :  { %4428 = vadd.xlane.f32.xlu0 %v4427_v33 }
 0x616   :  { %4434 = vadd.xlane.f32.xlu0 %v4433_v30 }
 0x61a   :  { %4425 = vadd.xlane.f32.xlu0 %v4424_v24 }
 0x61e   :  { %4440 = vadd.xlane.f32.xlu0 %v4439_v26  ;;  %4422 = vadd.xlane.f32.xlu1 %v4421_v2 }
 0x622   :  { %4431 = vadd.xlane.f32.xlu1 %v4430_v59 }
 0x626   :  { %4437 = vadd.xlane.f32.xlu1 %v4436_v37 }
 0x62a   :  { %4443 = vadd.xlane.f32.xlu1 %v4442_v38  ;;  %v3555_v38 = vpack.c.bf16 %v13314_v12, %v13314_v12 }
 0x634   :  { %11469 = vrot.lane.b32.xlu0 %v11468_v28, %s12878_s23 }
 0x63b   :  { %11474 = vrot.lane.b32.xlu1 %v11473_v29, %s12878_s23 }
 0x662   :  { %v4411_v39 = vpop.xlane.xlu0 %4410 }
 0x666   :  { %v4405_v1 = vpop.xlane.xlu0 %4404  ;;  %v4408_v15 = vpop.xlane.xlu1 %4407 }
 0x667   :  { %12642 = vrcp.f32 %v4405_v1 }
 0x668   :  { %12644 = vrcp.f32 %v4408_v15  ;;  %v4865_v15 = vsel %vm185_vm0, %v3555_v38, 0 }
 0x669   :  { %12646 = vrcp.f32 %v4411_v39  ;;  %v3556_v39 = vpack.c.bf16 %v13318_v27, %v13318_v27 }
 0x66a   :  { %v4417_v17 = vpop.xlane.xlu0 %4416 }
 0x66e   :  { %v11460_v42 = vpop.permute.xlu0 %11459  ;;  %v4414_v49 = vpop.xlane.xlu1 %4413 }
 0x66f   :  { %v11462_v52 = vunpack.i.h.bf16 %v11460_v42  ;;  %v11461_v57 = vunpack.i.l.bf16 %v11460_v42  ;;  %12648 = vrcp.f32 %v4414_v49 }
 0x670   :  { %12650 = vrcp.f32 %v4417_v17 }
 0x671   :  { %v12643_v62 = vpop.eup %12642  ;;  %v3550_v51 = vpack.c.bf16 %v11462_v52, %v11462_v52  ;;  %v3549_v28 = vpack.c.bf16 %v11461_v57, %v11461_v57 }
 0x672   :  { %v12645_v50 = vpop.eup %12644  ;;  %v4463_v29 = vmul.f32 %v12643_v62, %v13510_v58 }
 0x673   :  { %v4464_v5 = vmul.f32 %v12645_v50, %v13512_v61  ;;  %v4589_v63 = vsel %vm185_vm0, %v3549_v28, 0  ;;  %v4635_v31 = vsel %vm185_vm0, %v3550_v51, 0  ;;  %v12647_v54 = vpop.eup %12646  ;;  %v4727_v61 = vsel %vm185_vm0, %v3552_v55, 0 }
 0x674   :  { %11193 = vmatpush3.bf16.msra.mxu1 %v4589_v63  ;;  %11199 = vmatpush3.bf16.msra.mxu0 %v4635_v31  ;;  %v4479_v10 = vpack.c.bf16 %v4463_v29, %v4463_v29  ;;  %v4465_v32 = vmul.f32 %v12647_v54, %v13506_v3 }
 0x675   :  { %v4480_v8 = vpack.c.bf16 %v4464_v5, %v4464_v5  ;;  %11204 = vmatprep.subr.bf16.mxu1 %v12877_v0  ;;  %11210 = vmatprep.subr.bf16.mxu0 %v12877_v0 }
 0x676   :  { %v4420_v58 = vpop.xlane.xlu1 %4419  ;;  %v4481_v24 = vpack.c.bf16 %v4465_v32, %v4465_v32 }
 0x677   :  { %12652 = vrcp.f32 %v4420_v58  ;;  %11195 = vmatmul.mubr.msk.bf16.vlgmr.msra.gmra.mrb[44].mxu1 %vm4300_vm6, %v4479_v10  ;;  %11201 = vmatmul.mubr.msk.bf16.vlgmr.msra.gmra.mrb[68].mxu0 %vm4300_vm6, %v4480_v8 }
 0x678   :  { %11205 = vmatpush3.bf16.msra.mxu1 %v4681_v36  ;;  %11211 = vmatpush3.bf16.msra.mxu0 %v4727_v61  ;;  %v3560_v36 = vpack.c.bf16 %v13322_v14, %v13322_v14 }
 0x679   :  { %v12649_v20 = vpop.eup %12648  ;;  %11206 = vmatprep.mubr.msk.bf16.mxu1 %vm12879_vm4, %v12877_v0  ;;  %11212 = vmatprep.mubr.msk.bf16.mxu0 %vm12879_vm4, %v12877_v0 }
 0x67a   :  { %v4466_v60 = vmul.f32 %v12649_v20, %v13523_v25  ;;  %v11465_v4 = vpop.permute.xlu1 %11464  ;;  %11216 = vmatprep.subr.bf16.mxu1 %v12877_v0  ;;  %11222 = vmatprep.subr.bf16.mxu0 %v12877_v0  ;;  %v12651_v3 = vpop.eup %12650  ;;  %v5095_v14 = vsel %vm185_vm0, %v3560_v36, 0  ;;  %v5294_v36 = vld [vmem:[#allocation10 + $0xa8] sm:$0xff] }
 0x67b   :  { %v11467_v33 = vunpack.i.h.bf16 %v11465_v4  ;;  %v11466_v43 = vunpack.i.l.bf16 %v11465_v4  ;;  %v4467_v59 = vmul.f32 %v12651_v3, %v13518_v46 }
 0x67c   :  { %v4482_v11 = vpack.c.bf16 %v4466_v60, %v4466_v60 }
 0x67d   :  { %v3554_v30 = vpack.c.bf16 %v11467_v33, %v11467_v33  ;;  %v3553_v19 = vpack.c.bf16 %v11466_v43, %v11466_v43  ;;  %v4483_v46 = vpack.c.bf16 %v4467_v59, %v4467_v59 }
 0x67f   :  { %11207 = vmatmul.mubr.msk.bf16.vlgmr.msra.gmra.mrb[48].mxu1 %vm4300_vm6, %v4481_v24  ;;  %11213 = vmatmul.mubr.msk.bf16.vlgmr.msra.gmra.mrb[72].mxu0 %vm4300_vm6, %v4482_v11  ;;  %v4773_v26 = vsel %vm185_vm0, %v3553_v19, 0  ;;  %v4819_v25 = vsel %vm185_vm0, %v3554_v30, 0 }
 0x680   :  { %11217 = vmatpush3.bf16.msra.mxu1 %v4773_v26  ;;  %11223 = vmatpush3.bf16.msra.mxu0 %v4819_v25 }
 0x681   :  { %v12653_v2 = vpop.eup %12652  ;;  %11218 = vmatprep.mubr.msk.bf16.mxu1 %vm12879_vm4, %v12877_v0  ;;  %11224 = vmatprep.mubr.msk.bf16.mxu0 %vm12879_vm4, %v12877_v0 }
 0x682   :  { %v4468_v37 = vmul.f32 %v12653_v2, %v13527_v35  ;;  %11228 = vmatprep.subr.bf16.mxu1 %v12877_v0  ;;  %11234 = vmatprep.subr.bf16.mxu0 %v12877_v0  ;;  %v4911_v35 = vsel %vm185_vm0, %v3556_v39, 0 }
 0x684   :  { %v4484_v1 = vpack.c.bf16 %v4468_v37, %v4468_v37 }
 0x687   :  { %11219 = vmatmul.mubr.msk.bf16.vlgmr.msra.gmra.mrb[52].mxu1 %vm4300_vm6, %v4483_v46  ;;  %11225 = vmatmul.mubr.msk.bf16.vlgmr.msra.gmra.mrb[76].mxu0 %vm4300_vm6, %v4484_v1 }
 0x688   :  { %11229 = vmatpush3.bf16.msra.mxu1 %v4865_v15  ;;  %11235 = vmatpush3.bf16.msra.mxu0 %v4911_v35 }
 0x689   :  { %11236 = vmatprep.mubr.msk.bf16.mxu0 %vm12879_vm4, %v12877_v0  ;;  %11246 = vmatprep.subr.bf16.mxu0 %v12877_v0 }
 0x68a   :  { %11230 = vmatprep.mubr.msk.bf16.mxu1 %vm12879_vm4, %v12877_v0  ;;  %11240 = vmatprep.subr.bf16.mxu1 %v12877_v0 }
 0x69f   :  { %v4429_v12 = vpop.xlane.xlu0 %4428 }
 0x6a3   :  { %v4435_v27 = vpop.xlane.xlu0 %4434 }
 0x6a7   :  { %v4426_v17 = vpop.xlane.xlu0 %4425 }
 0x6a8   :  { %12654 = vrcp.f32 %v4426_v17 }
 0x6ab   :  { %v4441_v42 = vpop.xlane.xlu0 %4440  ;;  %v4423_v49 = vpop.xlane.xlu1 %4422 }
 0x6ac   :  { %12656 = vrcp.f32 %v4423_v49  ;;  %v5273_v49 = vld [vmem:[#allocation10] sm:$0xff] }
 0x6af   :  { %v11470_v52 = vpop.permute.xlu0 %11469  ;;  %v4432_v57 = vpop.xlane.xlu1 %4431 }
 0x6b0   :  { %v11472_v62 = vunpack.i.h.bf16 %v11470_v52  ;;  %12658 = vrcp.f32 %v4432_v57  ;;  %v11471_v29 = vunpack.i.l.bf16 %v11470_v52  ;;  %v5277_v52 = vld [vmem:[#allocation10 + $0x20] sm:$0xff] }
 0x6b1   :  { %12660 = vrcp.f32 %v4429_v12  ;;  %v10405_v57 = vcombine.high %v5273_v49, %v5277_v52 }
 0x6b2   :  { %v12655_v51 = vpop.eup %12654  ;;  %v3558_v50 = vpack.c.bf16 %v11472_v62, %v11472_v62  ;;  %v3557_v8 = vpack.c.bf16 %v11471_v29, %v11471_v29  ;;  %v10404_v62 = vcombine.low %v5273_v49, %v5277_v52  ;;  %v5282_v29 = vld [vmem:[#allocation10 + $0x48] sm:$0xff]  ;;  %v5333_v52 = vld [vmem:[#allocation10 + $0x1e0] sm:$0xff] }
 0x6b3   :  { %v4470_v28 = vmul.f32 %v12655_v51, %v13563_v16  ;;  %v4438_v53 = vpop.xlane.xlu1 %4437 }
 0x6b4   :  { %12662 = vrcp.f32 %v4438_v53  ;;  %v5003_v31 = vsel %vm185_vm0, %v3558_v50, 0  ;;  %v5281_v50 = vld [vmem:[#allocation10 + $0x40] sm:$0xff] }
 0x6b5   :  { %v4486_v55 = vpack.c.bf16 %v4470_v28, %v4470_v28  ;;  %12664 = vrcp.f32 %v4435_v27  ;;  %v5285_v53 = vld [vmem:[#allocation10 + $0x60] sm:$0xff] }
 0x6b6   :  { %v12657_v5 = vpop.eup %12656 }
 0x6b7   :  { %v4444_v63 = vpop.xlane.xlu1 %4443  ;;  %11237 = vmatmul.mubr.msk.bf16.vlgmr.msra.gmra.mrb[80].mxu0 %vm4300_vm6, %v4486_v55  ;;  %v4469_v10 = vmul.f32 %v12657_v5, %v13565_v7  ;;  %v4957_v7 = vsel %vm185_vm0, %v3557_v8, 0  ;;  %v10412_v55 = vcombine.low %v5281_v50, %v5285_v53  ;;  %v10413_v5 = vcombine.high %v5281_v50, %v5285_v53  ;;  %v5289_v8 = vld [vmem:[#allocation10 + $0x80] sm:$0xff] }
 0x6b8   :  { %11247 = vmatpush3.bf16.msra.mxu0 %v5003_v31  ;;  %11248 = vmatprep.mubr.msk.bf16.mxu0 %vm12879_vm4, %v12877_v0  ;;  %12666 = vrcp.f32 %v4444_v63  ;;  %v5286_v63 = vld [vmem:[#allocation10 + $0x68] sm:$0xff]  ;;  %v5337_v50 = vld [vmem:[#allocation10 + $0x200] sm:$0xff] }
 0x6b9   :  { %11258 = vmatprep.subr.bf16.mxu0 %v12877_v0  ;;  %v4485_v54 = vpack.c.bf16 %v4469_v10, %v4469_v10  ;;  %12668 = vrcp.f32 %v4441_v42  ;;  %v10414_v31 = vcombine.low %v5282_v29, %v5286_v63  ;;  %v10415_v10 = vcombine.high %v5282_v29, %v5286_v63  ;;  %v5341_v53 = vld [vmem:[#allocation10 + $0x220] sm:$0xff]  ;;  %v5338_v29 = vld [vmem:[#allocation10 + $0x208] sm:$0xff] }
 0x6ba   :  { %v12659_v16 = vpop.eup %12658 }
 0x6bb   :  { %v12661_v58 = vpop.eup %12660  ;;  %v4472_v61 = vmul.f32 %v12659_v16, %v13575_v34  ;;  %v11475_v20 = vpop.permute.xlu1 %11474  ;;  %11231 = vmatmul.mubr.msk.bf16.vlgmr.msra.gmra.mrb[56].mxu1 %vm4300_vm6, %v4485_v54  ;;  %v3559_v34 = vpack.c.bf16 %v13316_v21, %v13316_v21  ;;  %v5293_v16 = vld [vmem:[#allocation10 + $0xa0] sm:$0xff]  ;;  %v5290_v54 = vld [vmem:[#allocation10 + $0x88] sm:$0xff] }
 0x6bc   :  { %11241 = vmatpush3.bf16.msra.mxu1 %v4957_v7  ;;  %11242 = vmatprep.mubr.msk.bf16.mxu1 %vm12879_vm4, %v12877_v0  ;;  %v4471_v4 = vmul.f32 %v12661_v58, %v13553_v56  ;;  %v11477_v33 = vunpack.i.h.bf16 %v11475_v20  ;;  %v11476_v19 = vunpack.i.l.bf16 %v11475_v20  ;;  %v10421_v58 = vcombine.high %v5289_v8, %v5293_v16 }
 0x6bd   :  { %v4488_v32 = vpack.c.bf16 %v4472_v61, %v4472_v61  ;;  %11252 = vmatprep.subr.bf16.mxu1 %v12877_v0  ;;  %v5049_v24 = vsel %vm185_vm0, %v3559_v34, 0  ;;  %v10420_v61 = vcombine.low %v5289_v8, %v5293_v16  ;;  %v10422_v20 = vcombine.low %v5290_v54, %v5294_v36  ;;  %v5302_v34 = vld [vmem:[#allocation10 + $0xe8] sm:$0xff]  ;;  %v5345_v8 = vld [vmem:[#allocation10 + $0x240] sm:$0xff] }
 0x6be   :  { %v12663_v60 = vpop.eup %12662  ;;  %v4487_v56 = vpack.c.bf16 %v4471_v4, %v4471_v4  ;;  %v3562_v30 = vpack.c.bf16 %v11477_v33, %v11477_v33  ;;  %v3561_v25 = vpack.c.bf16 %v11476_v19, %v11476_v19  ;;  %v10423_v7 = vcombine.high %v5290_v54, %v5294_v36  ;;  %v5298_v4 = vld [vmem:[#allocation10 + $0xc8] sm:$0xff]  ;;  %v5349_v16 = vld [vmem:[#allocation10 + $0x260] sm:$0xff] }
 0x6bf   :  { %11249 = vmatmul.mubr.msk.bf16.vlgmr.msra.gmra.mrb[84].mxu0 %vm4300_vm6, %v4488_v32  ;;  %v4474_v43 = vmul.f32 %v12663_v60, %v13579_v9  ;;  %v12665_v11 = vpop.eup %12664  ;;  %v5297_v32 = vld [vmem:[#allocation10 + $0xc0] sm:$0xff]  ;;  %v5306_v19 = vld [vmem:[#allocation10 + $0x108] sm:$0xff]  ;;  %v10468_v36 = vcombine.low %v5337_v50, %v5341_v53 }
 0x6c0   :  { %11259 = vmatpush3.bf16.msra.mxu0 %v5095_v14  ;;  %11260 = vmatprep.mubr.msk.bf16.mxu0 %vm12879_vm4, %v12877_v0  ;;  %v4473_v26 = vmul.f32 %v12665_v11, %v13558_v6  ;;  %v5187_v9 = vsel %vm185_vm0, %v3562_v30, 0  ;;  %v5141_v38 = vsel %vm185_vm0, %v3561_v25, 0  ;;  %v5301_v60 = vld [vmem:[#allocation10 + $0xe0] sm:$0xff]  ;;  %v5346_v54 = vld [vmem:[#allocation10 + $0x248] sm:$0xff] }
 0x6c1   :  { %11270 = vmatprep.subr.bf16.mxu0 %v12877_v0  ;;  %v4490_v3 = vpack.c.bf16 %v4474_v43, %v4474_v43  ;;  %v10428_v33 = vcombine.low %v5297_v32, %v5301_v60  ;;  %v10429_v14 = vcombine.high %v5297_v32, %v5301_v60  ;;  %v10430_v43 = vcombine.low %v5298_v4, %v5302_v34  ;;  %v5305_v11 = vld [vmem:[#allocation10 + $0x100] sm:$0xff] }
 0x6c2   :  { %v12667_v21 = vpop.eup %12666  ;;  %v4489_v59 = vpack.c.bf16 %v4473_v26, %v4473_v26  ;;  %v5309_v30 = vld [vmem:[#allocation10 + $0x120] sm:$0xff] }
 0x6c3   :  { %11243 = vmatmul.mubr.msk.bf16.vlgmr.msra.gmra.mrb[60].mxu1 %vm4300_vm6, %v4487_v56  ;;  %v4476_v2 = vmul.f32 %v12667_v21, %v13583_v13  ;;  %v12669_v37 = vpop.eup %12668  ;;  %v10431_v56 = vcombine.high %v5298_v4, %v5302_v34  ;;  %v10436_v21 = vcombine.low %v5305_v11, %v5309_v30  ;;  %v5313_v25 = vld [vmem:[#allocation10 + $0x140] sm:$0xff]  ;;  %v5354_v4 = vld [vmem:[#allocation10 + $0x288] sm:$0xff] }
 0x6c4   :  { %11253 = vmatpush3.bf16.msra.mxu1 %v5049_v24  ;;  %11254 = vmatprep.mubr.msk.bf16.mxu1 %vm12879_vm4, %v12877_v0  ;;  %v4475_v39 = vmul.f32 %v12669_v37, %v13569_v18  ;;  %v5278_v18 = vld [vmem:[#allocation10 + $0x28] sm:$0xff]  ;;  %v10437_v24 = vcombine.high %v5305_v11, %v5309_v30  ;;  %v5353_v32 = vld [vmem:[#allocation10 + $0x280] sm:$0xff] }
 0x6c5   :  { %11264 = vmatprep.subr.bf16.mxu1 %v12877_v0  ;;  %v4492_v6 = vpack.c.bf16 %v4476_v2, %v4476_v2  ;;  %v5317_v2 = vld [vmem:[#allocation10 + $0x160] sm:$0xff] }
 0x6c6   :  { %v4491_v13 = vpack.c.bf16 %v4475_v39, %v4475_v39  ;;  %v10444_v37 = vcombine.low %v5313_v25, %v5317_v2  ;;  %v5321_v39 = vld [vmem:[#allocation10 + $0x180] sm:$0xff] }
 0x6c7   :  { %11261 = vmatmul.mubr.msk.bf16.vlgmr.msra.gmra.mrb[88].mxu0 %vm4300_vm6, %v4490_v3  ;;  %v5310_v3 = vld [vmem:[#allocation10 + $0x128] sm:$0xff]  ;;  %v5357_v60 = vld [vmem:[#allocation10 + $0x2a0] sm:$0xff] }
 0x6c8   :  { %11271 = vmatpush3.bf16.msra.mxu0 %v5187_v9  ;;  %11272 = vmatprep.mubr.msk.bf16.mxu0 %vm12879_vm4, %v12877_v0  ;;  %v10438_v26 = vcombine.low %v5306_v19, %v5310_v3  ;;  %v10439_v9 = vcombine.high %v5306_v19, %v5310_v3  ;;  %v10484_v11 = vcombine.low %v5353_v32, %v5357_v60  ;;  %v5361_v19 = vld [vmem:[#allocation10 + $0x2c0] sm:$0xff]  ;;  %v5362_v3 = vld [vmem:[#allocation10 + $0x2c8] sm:$0xff] }
 0x6cb   :  { %11255 = vmatmul.mubr.msk.bf16.vlgmr.msra.gmra.mrb[64].mxu1 %vm4300_vm6, %v4489_v59  ;;  %v5314_v59 = vld [vmem:[#allocation10 + $0x148] sm:$0xff] }
 0x6cc   :  { %11265 = vmatpush3.bf16.msra.mxu1 %v5141_v38  ;;  %11266 = vmatprep.mubr.msk.bf16.mxu1 %vm12879_vm4, %v12877_v0  ;;  %v5274_v0 = vld [vmem:[#allocation10 + $0x8] sm:$0xff]  ;;  %v10445_v38 = vcombine.high %v5313_v25, %v5317_v2 }
 0x6cd   :  { %v10406_v51 = vcombine.low %v5274_v0, %v5278_v18  ;;  %v10407_v28 = vcombine.high %v5274_v0, %v5278_v18  ;;  %6851 = vmatprep.subr.bf16.mxu1 %v10405_v57  ;;  %v5330_v0 = vld [vmem:[#allocation10 + $0x1c8] sm:$0xff] }
 0x6ce   :  { %v13684_v1 = vpop.f32.mrb[40].mxu1  ;;  %v5334_v57 = vld [vmem:[#allocation10 + $0x1e8] sm:$0xff] }
 0x6cf   :  { %11273 = vmatmul.mubr.msk.bf16.vlgmr.msra.gmra.mrb[92].mxu0 %vm4300_vm6, %v4492_v6  ;;  %v11184_v46 = vpop.f32.mrb[41].mxu1  ;;  %6937 = vmatprep.subr.bf16.mxu0 %v10407_v28  ;;  %v5318_v6 = vld [vmem:[#allocation10 + $0x168] sm:$0xff]  ;;  %v10463_v28 = vcombine.high %v5330_v0, %v5334_v57  ;;  %v10462_v63 = vcombine.low %v5330_v0, %v5334_v57 }
 0x6d0   :  { %v4536_v15 = vpop.f32.mrb[42].mxu1  ;;  %6938 = vmatpush1.bf16.msra.mxu0 %v10406_v51  ;;  %v5325_v46 = vld [vmem:[#allocation10 + $0x1a0] sm:$0xff] }
 0x6d1   :  { %v11185_v35 = vpop.f32.mrb[43].mxu1  ;;  %6939 = vmatprep.subr.bf16.mxu0 %v10415_v10  ;;  %v10446_v15 = vcombine.low %v5314_v59, %v5318_v6  ;;  %v10452_v18 = vcombine.low %v5321_v39, %v5325_v46 }
 0x6d2   :  { %v10453_v35 = vcombine.high %v5321_v39, %v5325_v46  ;;  %v5374_v39 = vld [vmem:[#allocation10 + $0x328] sm:$0xff]  ;;  %v5377_v46 = vld [vmem:[#allocation10 + $0x340] sm:$0xff] }
 0x6d3   :  { %11267 = vmatmul.mubr.msk.bf16.vlgmr.msra.gmra.mrb[68].mxu1 %vm4300_vm6, %v4491_v13  ;;  %v10447_v13 = vcombine.high %v5314_v59, %v5318_v6  ;;  %v5369_v59 = vld [vmem:[#allocation10 + $0x300] sm:$0xff] }
 0x6d4   :  { %6852 = vmatpush1.bf16.msra.mxu1 %v10404_v62  ;;  %6940 = vmatpush1.bf16.msra.mxu0 %v10414_v31  ;;  %v10469_v31 = vcombine.high %v5337_v50, %v5341_v53 }
 0x6d5   :  { %6853 = vmatprep.subr.bf16.mxu1 %v10413_v5  ;;  %6941 = vmatprep.subr.bf16.mxu0 %v10423_v7 }
 0x6d7   :  { %v13687_v12 = vpop.f32.mrb[64].mxu0 }
 0x6d8   :  { %v11190_v27 = vpop.f32.mrb[65].mxu0  ;;  %6854 = vmatpush1.bf16.msra.mxu1 %v10412_v55  ;;  %6942 = vmatpush1.bf16.msra.mxu0 %v10422_v20  ;;  %v5342_v55 = vld [vmem:[#allocation10 + $0x228] sm:$0xff]  ;;  %v10477_v20 = vcombine.high %v5345_v8, %v5349_v16 }
 0x6d9   :  { %v4582_v17 = vpop.f32.mrb[66].mxu0  ;;  %6855 = vmatprep.subr.bf16.mxu1 %v10421_v58  ;;  %6943 = vmatprep.subr.bf16.mxu0 %v10431_v56  ;;  %v5322_v27 = vld [vmem:[#allocation10 + $0x188] sm:$0xff]  ;;  %v10471_v10 = vcombine.high %v5338_v29, %v5342_v55 }
 0x6da   :  { %v11191_v42 = vpop.f32.mrb[67].mxu0  ;;  %v5326_v17 = vld [vmem:[#allocation10 + $0x1a8] sm:$0xff] }
 0x6db   :  { %v5329_v42 = vld [vmem:[#allocation10 + $0x1c0] sm:$0xff]  ;;  %v10455_v49 = vcombine.high %v5322_v27, %v5326_v17  ;;  %v10454_v62 = vcombine.low %v5322_v27, %v5326_v17  ;;  %v5350_v58 = vld [vmem:[#allocation10 + $0x268] sm:$0xff] }
 0x6dc   :  { %6856 = vmatpush1.bf16.msra.mxu1 %v10420_v61  ;;  %6944 = vmatpush1.bf16.msra.mxu0 %v10430_v43  ;;  %v10461_v51 = vcombine.high %v5329_v42, %v5333_v52  ;;  %v10460_v5 = vcombine.low %v5329_v42, %v5333_v52  ;;  %v10470_v61 = vcombine.low %v5338_v29, %v5342_v55  ;;  %v5378_v27 = vld [vmem:[#allocation10 + $0x348] sm:$0xff] }
 0x6dd   :  { %6857 = vmatprep.subr.bf16.mxu1 %v10429_v14  ;;  %6945 = vmatprep.subr.bf16.mxu0 %v10439_v9  ;;  %v10479_v7 = vcombine.high %v5346_v54, %v5350_v58  ;;  %v10476_v14 = vcombine.low %v5345_v8, %v5349_v16  ;;  %v10478_v34 = vcombine.low %v5346_v54, %v5350_v58  ;;  %v5382_v17 = vld [vmem:[#allocation10 + $0x368] sm:$0xff] }
 0x6de   :  { %v10485_v43 = vcombine.high %v5353_v32, %v5357_v60  ;;  %v10511_v52 = vcombine.high %v5378_v27, %v5382_v17  ;;  %v5390_v54 = vld [vmem:[#allocation10 + $0x3a8] sm:$0xff] }
 0x6e0   :  { %6858 = vmatpush1.bf16.msra.mxu1 %v10428_v33  ;;  %6946 = vmatpush1.bf16.msra.mxu0 %v10438_v26  ;;  %v5358_v33 = vld [vmem:[#allocation10 + $0x2a8] sm:$0xff] }
 0x6e1   :  { %6859 = vmatprep.subr.bf16.mxu1 %v10437_v24  ;;  %6947 = vmatprep.subr.bf16.mxu0 %v10447_v13  ;;  %v10487_v56 = vcombine.high %v5354_v4, %v5358_v33  ;;  %v10486_v30 = vcombine.low %v5354_v4, %v5358_v33  ;;  %v5365_v24 = vld [vmem:[#allocation10 + $0x2e0] sm:$0xff]  ;;  %v5366_v26 = vld [vmem:[#allocation10 + $0x2e8] sm:$0xff] }
 0x6e2   :  { %v10492_v9 = vcombine.low %v5361_v19, %v5365_v24  ;;  %v10494_v25 = vcombine.low %v5362_v3, %v5366_v26  ;;  %v10495_v2 = vcombine.high %v5362_v3, %v5366_v26  ;;  %v5398_v33 = vld [vmem:[#allocation10 + $0x3e8] sm:$0xff]  ;;  %v13696_v26 = vld [vmem:[#allocation10 + $0x420] sm:$0xff] }
 0x6e4   :  { %6860 = vmatpush1.bf16.msra.mxu1 %v10436_v21  ;;  %6948 = vmatpush1.bf16.msra.mxu0 %v10446_v15  ;;  %v10493_v21 = vcombine.high %v5361_v19, %v5365_v24  ;;  %v5381_v15 = vld [vmem:[#allocation10 + $0x360] sm:$0xff] }
 0x6e5   :  { %6861 = vmatprep.subr.bf16.mxu1 %v10445_v38  ;;  %6949 = vmatprep.subr.bf16.mxu0 %v10455_v49  ;;  %v5370_v38 = vld [vmem:[#allocation10 + $0x308] sm:$0xff]  ;;  %v10509_v49 = vcombine.high %v5377_v46, %v5381_v15  ;;  %v10508_v0 = vcombine.low %v5377_v46, %v5381_v15 }
 0x6e6   :  { %v10502_v42 = vcombine.low %v5370_v38, %v5374_v39 }
 0x6e8   :  { %6862 = vmatpush1.bf16.msra.mxu1 %v10444_v37  ;;  %6950 = vmatpush1.bf16.msra.mxu0 %v10454_v62  ;;  %v5373_v37 = vld [vmem:[#allocation10 + $0x320] sm:$0xff]  ;;  %v10510_v62 = vcombine.low %v5378_v27, %v5382_v17 }
 0x6e9   :  { %6863 = vmatprep.subr.bf16.mxu1 %v10453_v35  ;;  %6951 = vmatprep.subr.bf16.mxu0 %v10463_v28  ;;  %v10501_v6 = vcombine.high %v5369_v59, %v5373_v37  ;;  %v10500_v13 = vcombine.low %v5369_v59, %v5373_v37  ;;  %v10503_v35 = vcombine.high %v5370_v38, %v5374_v39  ;;  %v13704_v59 = vld [vmem:[#allocation10 + $0x428] sm:$0xff] }
 0x6ec   :  { %6864 = vmatpush1.bf16.msra.mxu1 %v10452_v18  ;;  %6952 = vmatpush1.bf16.msra.mxu0 %v10462_v63  ;;  %v5385_v63 = vld [vmem:[#allocation10 + $0x380] sm:$0xff] }
 0x6ed   :  { %6865 = vmatprep.subr.bf16.mxu1 %v10461_v51  ;;  %6953 = vmatprep.subr.bf16.mxu0 %v10471_v10  ;;  %v5386_v10 = vld [vmem:[#allocation10 + $0x388] sm:$0xff] }
 0x6ee   :  { %v10518_v58 = vcombine.low %v5386_v10, %v5390_v54 }
 0x6f0   :  { %6866 = vmatpush1.bf16.msra.mxu1 %v10460_v5  ;;  %6954 = vmatpush1.bf16.msra.mxu0 %v10470_v61  ;;  %v5393_v61 = vld [vmem:[#allocation10 + $0x3c0] sm:$0xff] }
 0x6f1   :  { %6867 = vmatprep.subr.bf16.mxu1 %v10469_v31  ;;  %6955 = vmatprep.subr.bf16.mxu0 %v10479_v7  ;;  %v5389_v31 = vld [vmem:[#allocation10 + $0x3a0] sm:$0xff]  ;;  %v5394_v7 = vld [vmem:[#allocation10 + $0x3c8] sm:$0xff] }
 0x6f2   :  { %v10516_v8 = vcombine.low %v5385_v63, %v5389_v31  ;;  %v10517_v16 = vcombine.high %v5385_v63, %v5389_v31 }
 0x6f4   :  { %6868 = vmatpush1.bf16.msra.mxu1 %v10468_v36  ;;  %6956 = vmatpush1.bf16.msra.mxu0 %v10478_v34  ;;  %v10519_v36 = vcombine.high %v5386_v10, %v5390_v54 }
 0x6f5   :  { %6869 = vmatprep.subr.bf16.mxu1 %v10477_v20  ;;  %6957 = vmatprep.subr.bf16.mxu0 %v10487_v56  ;;  %v5397_v20 = vld [vmem:[#allocation10 + $0x3e0] sm:$0xff]  ;;  %v10526_v56 = vcombine.low %v5394_v7, %v5398_v33 }
 0x6f6   :  { %v10525_v4 = vcombine.high %v5393_v61, %v5397_v20 }
 0x6f8   :  { %6870 = vmatpush1.bf16.msra.mxu1 %v10476_v14  ;;  %6958 = vmatpush1.bf16.msra.mxu0 %v10486_v30 }
 0x6f9   :  { %6871 = vmatprep.subr.bf16.mxu1 %v10485_v43  ;;  %6959 = vmatprep.subr.bf16.mxu0 %v10495_v2  ;;  %v10524_v43 = vcombine.low %v5393_v61, %v5397_v20 }
 0x6fc   :  { %6872 = vmatpush1.bf16.msra.mxu1 %v10484_v11  ;;  %6960 = vmatpush1.bf16.msra.mxu0 %v10494_v25  ;;  %v10527_v11 = vcombine.high %v5394_v7, %v5398_v33 }
 0x6fd   :  { %6873 = vmatprep.subr.bf16.mxu1 %v10493_v21  ;;  %6961 = vmatprep.subr.bf16.mxu0 %v10503_v35  ;;  %v13694_v21 = vld [vmem:[#allocation10 + $0x400] sm:$0xff] }
 0x6fe   :  { %v10532_v25 = vcombine.low %v13694_v21, %v13696_v26  ;;  %v10533_v2 = vcombine.high %v13694_v21, %v13696_v26 }
 0x700   :  { %6874 = vmatpush1.bf16.msra.mxu1 %v10492_v9  ;;  %6962 = vmatpush1.bf16.msra.mxu0 %v10502_v42  ;;  %v13698_v9 = vld [vmem:[#allocation10 + $0x408] sm:$0xff] }
 0x701   :  { %6875 = vmatprep.subr.bf16.mxu1 %v10501_v6  ;;  %6963 = vmatprep.subr.bf16.mxu0 %v10511_v52  ;;  %v10534_v37 = vcombine.low %v13698_v9, %v13704_v59  ;;  %v10535_v38 = vcombine.high %v13698_v9, %v13704_v59  ;;  %v5433_v9 = vld [vmem:[#allocation10 + $0x500] sm:$0xff]  ;;  %v5434_v59 = vld [vmem:[#allocation10 + $0x508] sm:$0xff] }
 0x704   :  { %6876 = vmatpush1.bf16.msra.mxu1 %v10500_v13  ;;  %6964 = vmatpush1.bf16.msra.mxu0 %v10510_v62 }
 0x705   :  { %6877 = vmatprep.subr.bf16.mxu1 %v10509_v49  ;;  %6965 = vmatprep.subr.bf16.mxu0 %v10519_v36 }
 0x708   :  { %6878 = vmatpush1.bf16.msra.mxu1 %v10508_v0  ;;  %6966 = vmatpush1.bf16.msra.mxu0 %v10518_v58 }
 0x709   :  { %6879 = vmatprep.subr.bf16.mxu1 %v10517_v16  ;;  %6967 = vmatprep.subr.bf16.mxu0 %v10527_v11 }
 0x70c   :  { %6880 = vmatpush1.bf16.msra.mxu1 %v10516_v8  ;;  %6968 = vmatpush1.bf16.msra.mxu0 %v10526_v56 }
 0x70d   :  { %6881 = vmatprep.subr.bf16.mxu1 %v10525_v4  ;;  %6980 = vmatprep.subr.bf16.mxu0 %v10535_v38 }
 0x710   :  { %6882 = vmatpush1.bf16.msra.mxu1 %v10524_v43 }
 0x711   :  { %6894 = vmatprep.subr.bf16.mxu1 %v10533_v2 }
 0x74a   :  { %v4625_v57 = vpop.f32.mrb[44].mxu1  ;;  %v4671_v18 = vpop.f32.mrb[68].mxu0 }
 0x74b   :  { %v11483_v51 = vpack.i.bf16 %v4671_v18, %v4625_v57  ;;  %v11196_v28 = vpop.f32.mrb[45].mxu1  ;;  %v11202_v50 = vpop.f32.mrb[69].mxu0 }
 0x74c   :  { %v4628_v53 = vpop.f32.mrb[46].mxu1  ;;  %v4674_v29 = vpop.f32.mrb[70].mxu0 }
 0x74d   :  { %v11197_v55 = vpop.f32.mrb[47].mxu1  ;;  %11484 = vrot.lane.b32.xlu0 %v11483_v51, %s12878_s23  ;;  %v11203_v5 = vpop.f32.mrb[71].mxu0 }
 0x752   :  { %v13690_v32 = vpop.f32.mrb[48].mxu1  ;;  %v13692_v60 = vpop.f32.mrb[72].mxu0 }
 0x753   :  { %v11208_v14 = vpop.f32.mrb[49].mxu1  ;;  %v11214_v34 = vpop.f32.mrb[73].mxu0 }
 0x754   :  { %v4720_v30 = vpop.f32.mrb[50].mxu1  ;;  %v4766_v19 = vpop.f32.mrb[74].mxu0 }
 0x755   :  { %v11209_v24 = vpop.f32.mrb[51].mxu1  ;;  %v11215_v3 = vpop.f32.mrb[75].mxu0 }
 0x756   :  { %v167_v3 = vld [vmem:[%s13901_s2] sm:$0x3] }
 0x757   :  { %v172_v2 = vrot.slane %v167_v3, %v13171_v47  ;;  %v176_v38 = vrot.slane %v167_v3, %v13174_v48  ;;  %v5442_v3 = vld [vmem:[#allocation10 + $0x548] sm:$0xff] }
 0x75a   :  { %v4809_v6 = vpop.f32.mrb[52].mxu1  ;;  %v4855_v39 = vpop.f32.mrb[76].mxu0 }
 0x75b   :  { %v11478_v46 = vpack.i.bf16 %v4855_v39, %v4809_v6  ;;  %v11220_v15 = vpop.f32.mrb[53].mxu1  ;;  %v11226_v13 = vpop.f32.mrb[77].mxu0 }
 0x75c   :  { %v4812_v35 = vpop.f32.mrb[54].mxu1  ;;  %v4858_v27 = vpop.f32.mrb[78].mxu0  ;;  %v13727_v15 = vadd.f32 %v13144_v22, %v172_v2  ;;  %v13730_v13 = vadd.f32 %v13146_v23, %v176_v38  ;;  %v5446_v2 = vld [vmem:[#allocation10 + $0x568] sm:$0xff] }
 0x75d   :  { %v11221_v17 = vpop.f32.mrb[55].mxu1  ;;  %11479 = vrot.lane.b32.xlu1 %v11478_v46, %s12878_s23  ;;  %v11227_v42 = vpop.f32.mrb[79].mxu0 }
 0x75e   :  { %v9912_v42 = vmul.f32 %v13727_v15, %v13727_v15 }
 0x760   :  { %v9914_v22 = vsel %vm288_vm2, %v9912_v42, 0.0  ;;  %v5450_v42 = vld [vmem:[#allocation10 + $0x588] sm:$0xff] }
 0x78a   :  { %v13711_v49 = vpop.f32.mrb[80].mxu0 }
 0x78b   :  { %v11238_v52 = vpop.f32.mrb[81].mxu0 }
 0x78c   :  { %v4950_v0 = vpop.f32.mrb[82].mxu0  ;;  %v9913_v52 = vmul.f32 %v13730_v13, %v13730_v13 }
 0x78d   :  { %v11239_v57 = vpop.f32.mrb[83].mxu0 }
 0x78e   :  { %v13713_v18 = vpop.f32.mrb[56].mxu1  ;;  %v9915_v0 = vsel %vm288_vm2, %v9913_v52, 0.0  ;;  %v5454_v52 = vld [vmem:[#allocation10 + $0x5a8] sm:$0xff] }
 0x78f   :  { %v11232_v62 = vpop.f32.mrb[57].mxu1  ;;  %v9916_v23 = vadd.f32 %v9915_v0, %v9914_v22  ;;  %v10574_v0 = vcombine.low %v5442_v3, %v5446_v2 }
 0x790   :  { %v4904_v51 = vpop.f32.mrb[58].mxu1 }
 0x791   :  { %v11233_v28 = vpop.f32.mrb[59].mxu1  ;;  %v5409_v51 = vld [vmem:[#allocation10 + $0x440] sm:$0xff] }
 0x792   :  { %v5039_v50 = vpop.f32.mrb[84].mxu0  ;;  %v5413_v28 = vld [vmem:[#allocation10 + $0x460] sm:$0xff] }
 0x793   :  { %v11250_v53 = vpop.f32.mrb[85].mxu0 }
 0x794   :  { %v5042_v29 = vpop.f32.mrb[86].mxu0 }
 0x795   :  { %v11251_v55 = vpop.f32.mrb[87].mxu0 }
 0x796   :  { %v4993_v5 = vpop.f32.mrb[60].mxu1 }
 0x797   :  { %v11493_v63 = vpack.i.bf16 %v5039_v50, %v4993_v5  ;;  %v11244_v31 = vpop.f32.mrb[61].mxu1  ;;  %v5414_v50 = vld [vmem:[#allocation10 + $0x468] sm:$0xff]  ;;  %v10541_v5 = vcombine.high %v5409_v51, %v5413_v28 }
 0x798   :  { %v4996_v10 = vpop.f32.mrb[62].mxu1  ;;  %v5417_v31 = vld [vmem:[#allocation10 + $0x480] sm:$0xff] }
 0x799   :  { %v11245_v8 = vpop.f32.mrb[63].mxu1  ;;  %11494 = vrot.lane.b32.xlu0 %v11493_v63, %s12878_s23  ;;  %v5421_v10 = vld [vmem:[#allocation10 + $0x4a0] sm:$0xff] }
 0x79a   :  { %v13716_v16 = vpop.f32.mrb[88].mxu0  ;;  %v5418_v8 = vld [vmem:[#allocation10 + $0x488] sm:$0xff] }
 0x79b   :  { %v11262_v54 = vpop.f32.mrb[89].mxu0 }
 0x79c   :  { %v5134_v58 = vpop.f32.mrb[90].mxu0  ;;  %v5422_v54 = vld [vmem:[#allocation10 + $0x4a8] sm:$0xff] }
 0x79d   :  { %v11263_v36 = vpop.f32.mrb[91].mxu0  ;;  %v10549_v58 = vcombine.high %v5417_v31, %v5421_v10 }
 0x79e   :  { %v13718_v61 = vpop.f32.mrb[64].mxu1  ;;  %v10551_v36 = vcombine.high %v5418_v8, %v5422_v54 }
 0x79f   :  { %v11256_v20 = vpop.f32.mrb[65].mxu1 }
 0x7a0   :  { %v5088_v7 = vpop.f32.mrb[66].mxu1  ;;  %v5425_v20 = vld [vmem:[#allocation10 + $0x4c0] sm:$0xff] }
 0x7a1   :  { %v11257_v4 = vpop.f32.mrb[67].mxu1  ;;  %v5429_v7 = vld [vmem:[#allocation10 + $0x4e0] sm:$0xff] }
 0x7a2   :  { %v5223_v33 = vpop.f32.mrb[92].mxu0  ;;  %v5426_v4 = vld [vmem:[#allocation10 + $0x4c8] sm:$0xff]  ;;  %v10557_v21 = vcombine.high %v5425_v20, %v5429_v7 }
 0x7a3   :  { %v11274_v14 = vpop.f32.mrb[93].mxu0 }
 0x7a4   :  { %v5226_v34 = vpop.f32.mrb[94].mxu0  ;;  %v10548_v14 = vcombine.low %v5417_v31, %v5421_v10  ;;  %v5466_v31 = vld [vmem:[#allocation10 + $0x608] sm:$0xff] }
 0x7a5   :  { %v11275_v43 = vpop.f32.mrb[95].mxu0  ;;  %v10550_v34 = vcombine.low %v5418_v8, %v5422_v54  ;;  %v5470_v10 = vld [vmem:[#allocation10 + $0x628] sm:$0xff] }
 0x7a6   :  { %v5177_v56 = vpop.f32.mrb[68].mxu1  ;;  %v10556_v43 = vcombine.low %v5425_v20, %v5429_v7  ;;  %v5474_v20 = vld [vmem:[#allocation10 + $0x648] sm:$0xff] }
 0x7a7   :  { %v11488_v11 = vpack.i.bf16 %v5223_v33, %v5177_v56  ;;  %v11268_v30 = vpop.f32.mrb[69].mxu1  ;;  %v5430_v33 = vld [vmem:[#allocation10 + $0x4e8] sm:$0xff] }
 0x7a8   :  { %v5180_v19 = vpop.f32.mrb[70].mxu1  ;;  %v10559_v26 = vcombine.high %v5426_v4, %v5430_v33  ;;  %v10558_v56 = vcombine.low %v5426_v4, %v5430_v33  ;;  %v5478_v7 = vld [vmem:[#allocation10 + $0x668] sm:$0xff]  ;;  %v10598_v33 = vcombine.low %v5466_v31, %v5470_v10 }
 0x7a9   :  { %v11269_v24 = vpop.f32.mrb[71].mxu1  ;;  %11489 = vrot.lane.b32.xlu1 %v11488_v11, %s12878_s23  ;;  %v5441_v19 = vld [vmem:[#allocation10 + $0x540] sm:$0xff] }
 0x7aa   :  { %v5445_v24 = vld [vmem:[#allocation10 + $0x560] sm:$0xff] }
 0x7ab   :  { %v10572_v22 = vcombine.low %v5441_v19, %v5445_v24 }
 0x7bf   :  { %v11485_v6 = vpop.permute.xlu0 %11484 }
 0x7c0   :  { %v11487_v39 = vunpack.i.h.bf16 %v11485_v6  ;;  %v11486_v46 = vunpack.i.l.bf16 %v11485_v6 }
 0x7c2   :  { %v5262_v35 = vsel %vm3563_vm5, %v13687_v12, %v11487_v39  ;;  %v5261_v27 = vsel %vm3563_vm5, %v13684_v1, %v11486_v46  ;;  %v5410_v1 = vld [vmem:[#allocation10 + $0x448] sm:$0xff]  ;;  %v10573_v39 = vcombine.high %v5441_v19, %v5445_v24  ;;  %v10575_v46 = vcombine.high %v5442_v3, %v5446_v2 }
 0x7c3   :  { %v13736_v17 = vpack.c.bf16 %v5262_v35, %v5261_v27  ;;  %v10543_v63 = vcombine.high %v5410_v1, %v5414_v50  ;;  %v5449_v35 = vld [vmem:[#allocation10 + $0x580] sm:$0xff]  ;;  %v5490_v19 = vld [vmem:[#allocation10 + $0x6c8] sm:$0xff] }
 0x7c4   :  { %v5453_v27 = vld [vmem:[#allocation10 + $0x5a0] sm:$0xff]  ;;  %v5494_v24 = vld [vmem:[#allocation10 + $0x6e8] sm:$0xff] }
 0x7cd   :  { %9917 = vadd.xlane.f32.xlu1 %v9916_v23  ;;  %v10581_v23 = vcombine.high %v5449_v35, %v5453_v27 }
 0x7cf   :  { %v11480_v57 = vpop.permute.xlu1 %11479 }
 0x7d0   :  { %v11482_v62 = vunpack.i.h.bf16 %v11480_v57  ;;  %v11481_v12 = vunpack.i.l.bf16 %v11480_v57  ;;  %v10583_v57 = vcombine.high %v5450_v42, %v5454_v52 }
 0x7d2   :  { %v5264_v53 = vsel %vm3563_vm5, %v13692_v60, %v11482_v62  ;;  %v5263_v29 = vsel %vm3563_vm5, %v13690_v32, %v11481_v12  ;;  %v10540_v32 = vcombine.low %v5409_v51, %v5413_v28  ;;  %v10542_v60 = vcombine.low %v5410_v1, %v5414_v50  ;;  %v5457_v62 = vld [vmem:[#allocation10 + $0x5c0] sm:$0xff]  ;;  %v5458_v51 = vld [vmem:[#allocation10 + $0x5c8] sm:$0xff] }
 0x7d3   :  { %v13748_v55 = vpack.c.bf16 %v5264_v53, %v5263_v29  ;;  %v5461_v12 = vld [vmem:[#allocation10 + $0x5e0] sm:$0xff]  ;;  %v5462_v28 = vld [vmem:[#allocation10 + $0x5e8] sm:$0xff]  ;;  %v10580_v1 = vcombine.low %v5449_v35, %v5453_v27  ;;  %v10582_v50 = vcombine.low %v5450_v42, %v5454_v52  ;;  %v10622_v52 = vcombine.low %v5490_v19, %v5494_v24 }
 0x7d4   :  { %v10589_v53 = vcombine.high %v5457_v62, %v5461_v12  ;;  %v10591_v29 = vcombine.high %v5458_v51, %v5462_v28  ;;  %v10588_v8 = vcombine.low %v5457_v62, %v5461_v12  ;;  %v10590_v54 = vcombine.low %v5458_v51, %v5462_v28  ;;  %v5498_v35 = vld [vmem:[#allocation10 + $0x708] sm:$0xff] }
 0x7d5   :  { %6883 = vmatprep.mubr.bf16.mxu1 %v13748_v55  ;;  %6969 = vmatprep.mubr.bf16.mxu0 %v13748_v55  ;;  %v5502_v27 = vld [vmem:[#allocation10 + $0x728] sm:$0xff] }
 0x7d6   :  { %6884 = vmatmul.mubr.bf16.vlgmr.msra.gmra.mrb[72].mxu1 %v13736_v17  ;;  %6970 = vmatmul.mubr.bf16.vlgmr.msra.gmra.mrb[96].mxu0 %v13736_v17  ;;  %v5506_v62 = vld [vmem:[#allocation10 + $0x748] sm:$0xff]  ;;  %v10630_v28 = vcombine.low %v5498_v35, %v5502_v27 }
 0x7d7   :  { %6895 = vmatpush1.bf16.msra.mxu1 %v10532_v25  ;;  %6981 = vmatpush1.bf16.msra.mxu0 %v10534_v37  ;;  %v5437_v25 = vld [vmem:[#allocation10 + $0x520] sm:$0xff]  ;;  %v5438_v37 = vld [vmem:[#allocation10 + $0x528] sm:$0xff] }
 0x7d8   :  { %6896 = vmatprep.subr.bf16.mxu1 %v10541_v5  ;;  %6982 = vmatprep.subr.bf16.mxu0 %v10543_v63  ;;  %v10565_v11 = vcombine.high %v5433_v9, %v5437_v25  ;;  %v10567_v30 = vcombine.high %v5434_v59, %v5438_v37  ;;  %v10564_v38 = vcombine.low %v5433_v9, %v5437_v25  ;;  %v5465_v5 = vld [vmem:[#allocation10 + $0x600] sm:$0xff]  ;;  %v5482_v9 = vld [vmem:[#allocation10 + $0x688] sm:$0xff] }
 0x7d9   :  { %v10566_v6 = vcombine.low %v5434_v59, %v5438_v37  ;;  %v5469_v63 = vld [vmem:[#allocation10 + $0x620] sm:$0xff]  ;;  %v5486_v25 = vld [vmem:[#allocation10 + $0x6a8] sm:$0xff]  ;;  %v10606_v37 = vcombine.low %v5474_v20, %v5478_v7 }
 0x7da   :  { %v10596_v4 = vcombine.low %v5465_v5, %v5469_v63  ;;  %v10614_v2 = vcombine.low %v5482_v9, %v5486_v25  ;;  %v5510_v12 = vld [vmem:[#allocation10 + $0x768] sm:$0xff] }
 0x7db   :  { %6897 = vmatpush1.bf16.msra.mxu1 %v10540_v32  ;;  %6983 = vmatpush1.bf16.msra.mxu0 %v10542_v60  ;;  %v10597_v32 = vcombine.high %v5465_v5, %v5469_v63  ;;  %v10599_v60 = vcombine.high %v5466_v31, %v5470_v10  ;;  %v5514_v5 = vld [vmem:[#allocation10 + $0x788] sm:$0xff]  ;;  %v10638_v10 = vcombine.low %v5506_v62, %v5510_v12 }
 0x7dc   :  { %6898 = vmatprep.subr.bf16.mxu1 %v10549_v58  ;;  %6984 = vmatprep.subr.bf16.mxu0 %v10551_v36  ;;  %v5473_v58 = vld [vmem:[#allocation10 + $0x640] sm:$0xff]  ;;  %v5518_v63 = vld [vmem:[#allocation10 + $0x7a8] sm:$0xff] }
 0x7dd   :  { %v5477_v36 = vld [vmem:[#allocation10 + $0x660] sm:$0xff] }
 0x7de   :  { %v10604_v59 = vcombine.low %v5473_v58, %v5477_v36 }
 0x7df   :  { %6899 = vmatpush1.bf16.msra.mxu1 %v10548_v14  ;;  %6985 = vmatpush1.bf16.msra.mxu0 %v10550_v34  ;;  %v10605_v14 = vcombine.high %v5473_v58, %v5477_v36  ;;  %v10607_v34 = vcombine.high %v5474_v20, %v5478_v7  ;;  %v5522_v58 = vld [vmem:[#allocation10 + $0x7c8] sm:$0xff]  ;;  %v10646_v7 = vcombine.low %v5514_v5, %v5518_v63 }
 0x7e0   :  { %6900 = vmatprep.subr.bf16.mxu1 %v10557_v21  ;;  %6986 = vmatprep.subr.bf16.mxu0 %v10559_v26  ;;  %v5481_v21 = vld [vmem:[#allocation10 + $0x680] sm:$0xff]  ;;  %v5526_v36 = vld [vmem:[#allocation10 + $0x7e8] sm:$0xff] }
 0x7e1   :  { %v5485_v26 = vld [vmem:[#allocation10 + $0x6a0] sm:$0xff] }
 0x7e2   :  { %v10612_v3 = vcombine.low %v5481_v21, %v5485_v26 }
 0x7e3   :  { %6901 = vmatpush1.bf16.msra.mxu1 %v10556_v43  ;;  %6987 = vmatpush1.bf16.msra.mxu0 %v10558_v56  ;;  %v10613_v43 = vcombine.high %v5481_v21, %v5485_v26  ;;  %v10615_v56 = vcombine.high %v5482_v9, %v5486_v25  ;;  %v5279_v9 = vld [vmem:[#allocation10 + $0x30] sm:$0xff]  ;;  %v5276_v25 = vld [vmem:[#allocation10 + $0x18] sm:$0xff] }
 0x7e4   :  { %6902 = vmatprep.subr.bf16.mxu1 %v10565_v11  ;;  %6988 = vmatprep.subr.bf16.mxu0 %v10567_v30  ;;  %v5489_v11 = vld [vmem:[#allocation10 + $0x6c0] sm:$0xff] }
 0x7e5   :  { %v5493_v30 = vld [vmem:[#allocation10 + $0x6e0] sm:$0xff] }
 0x7e6   :  { %v10620_v42 = vcombine.low %v5489_v11, %v5493_v30 }
 0x7e7   :  { %6903 = vmatpush1.bf16.msra.mxu1 %v10564_v38  ;;  %6989 = vmatpush1.bf16.msra.mxu0 %v10566_v6  ;;  %v10621_v38 = vcombine.high %v5489_v11, %v5493_v30  ;;  %v10623_v6 = vcombine.high %v5490_v19, %v5494_v24  ;;  %v10654_v11 = vcombine.low %v5522_v58, %v5526_v36 }
 0x7e8   :  { %6904 = vmatprep.subr.bf16.mxu1 %v10573_v39  ;;  %6990 = vmatprep.subr.bf16.mxu0 %v10575_v46  ;;  %v5497_v39 = vld [vmem:[#allocation10 + $0x700] sm:$0xff] }
 0x7e9   :  { %v5501_v46 = vld [vmem:[#allocation10 + $0x720] sm:$0xff] }
 0x7ea   :  { %v10628_v51 = vcombine.low %v5497_v39, %v5501_v46 }
 0x7eb   :  { %6905 = vmatpush1.bf16.msra.mxu1 %v10572_v22  ;;  %6991 = vmatpush1.bf16.msra.mxu0 %v10574_v0  ;;  %v10629_v22 = vcombine.high %v5497_v39, %v5501_v46  ;;  %v10631_v0 = vcombine.high %v5498_v35, %v5502_v27  ;;  %v5287_v39 = vld [vmem:[#allocation10 + $0x70] sm:$0xff]  ;;  %v5284_v46 = vld [vmem:[#allocation10 + $0x58] sm:$0xff] }
 0x7ec   :  { %6906 = vmatprep.subr.bf16.mxu1 %v10581_v23  ;;  %6992 = vmatprep.subr.bf16.mxu0 %v10583_v57  ;;  %v5505_v23 = vld [vmem:[#allocation10 + $0x740] sm:$0xff]  ;;  %v5288_v35 = vld [vmem:[#allocation10 + $0x78] sm:$0xff] }
 0x7ed   :  { %v5509_v57 = vld [vmem:[#allocation10 + $0x760] sm:$0xff] }
 0x7ee   :  { %v10636_v31 = vcombine.low %v5505_v23, %v5509_v57 }
 0x7ef   :  { %6907 = vmatpush1.bf16.msra.mxu1 %v10580_v1  ;;  %6993 = vmatpush1.bf16.msra.mxu0 %v10582_v50  ;;  %v10637_v1 = vcombine.high %v5505_v23, %v5509_v57  ;;  %v10639_v50 = vcombine.high %v5506_v62, %v5510_v12  ;;  %v10419_v23 = vcombine.high %v5284_v46, %v5288_v35  ;;  %v5295_v57 = vld [vmem:[#allocation10 + $0xb0] sm:$0xff]  ;;  %v5292_v62 = vld [vmem:[#allocation10 + $0x98] sm:$0xff] }
 0x7f0   :  { %6908 = vmatprep.subr.bf16.mxu1 %v10589_v53  ;;  %6994 = vmatprep.subr.bf16.mxu0 %v10591_v29  ;;  %v5513_v53 = vld [vmem:[#allocation10 + $0x780] sm:$0xff]  ;;  %v10418_v12 = vcombine.low %v5284_v46, %v5288_v35  ;;  %v5339_v35 = vld [vmem:[#allocation10 + $0x210] sm:$0xff] }
 0x7f1   :  { %v5517_v29 = vld [vmem:[#allocation10 + $0x7a0] sm:$0xff] }
 0x7f2   :  { %v10644_v20 = vcombine.low %v5513_v53, %v5517_v29 }
 0x7f3   :  { %6909 = vmatpush1.bf16.msra.mxu1 %v10588_v8  ;;  %6995 = vmatpush1.bf16.msra.mxu0 %v10590_v54  ;;  %v10645_v8 = vcombine.high %v5513_v53, %v5517_v29  ;;  %v10647_v54 = vcombine.high %v5514_v5, %v5518_v63  ;;  %v5300_v53 = vld [vmem:[#allocation10 + $0xd8] sm:$0xff] }
 0x7f4   :  { %6910 = vmatprep.subr.bf16.mxu1 %v10597_v32  ;;  %6996 = vmatprep.subr.bf16.mxu0 %v10599_v60  ;;  %v5521_v32 = vld [vmem:[#allocation10 + $0x7c0] sm:$0xff]  ;;  %v5304_v29 = vld [vmem:[#allocation10 + $0xf8] sm:$0xff] }
 0x7f5   :  { %v5525_v60 = vld [vmem:[#allocation10 + $0x7e0] sm:$0xff] }
 0x7f7   :  { %6911 = vmatpush1.bf16.msra.mxu1 %v10596_v4  ;;  %6997 = vmatpush1.bf16.msra.mxu0 %v10598_v33  ;;  %v10653_v33 = vcombine.high %v5521_v32, %v5525_v60 }
 0x7f8   :  { %6912 = vmatprep.subr.bf16.mxu1 %v10605_v14  ;;  %6998 = vmatprep.subr.bf16.mxu0 %v10607_v34  ;;  %v10655_v14 = vcombine.high %v5522_v58, %v5526_v36  ;;  %v5275_v34 = vld [vmem:[#allocation10 + $0x10] sm:$0xff]  ;;  %v10434_v58 = vcombine.low %v5300_v53, %v5304_v29 }
 0x7f9   :  { %v10409_v19 = vcombine.high %v5275_v34, %v5279_v9 }
 0x7fb   :  { %6913 = vmatpush1.bf16.msra.mxu1 %v10604_v59  ;;  %6999 = vmatpush1.bf16.msra.mxu0 %v10606_v37  ;;  %v5280_v59 = vld [vmem:[#allocation10 + $0x38] sm:$0xff]  ;;  %v10652_v37 = vcombine.low %v5521_v32, %v5525_v60 }
 0x7fc   :  { %6914 = vmatprep.subr.bf16.mxu1 %v10613_v43  ;;  %7000 = vmatprep.subr.bf16.mxu0 %v10615_v56  ;;  %v10411_v24 = vcombine.high %v5276_v25, %v5280_v59  ;;  %v5308_v32 = vld [vmem:[#allocation10 + $0x118] sm:$0xff] }
 0x7ff   :  { %6915 = vmatpush1.bf16.msra.mxu1 %v10612_v3  ;;  %7001 = vmatpush1.bf16.msra.mxu0 %v10614_v2 }
 0x800   :  { %6916 = vmatprep.subr.bf16.mxu1 %v10621_v38  ;;  %7002 = vmatprep.subr.bf16.mxu0 %v10623_v6 }
 0x803   :  { %6917 = vmatpush1.bf16.msra.mxu1 %v10620_v42  ;;  %7003 = vmatpush1.bf16.msra.mxu0 %v10622_v52  ;;  %v10408_v42 = vcombine.low %v5275_v34, %v5279_v9  ;;  %v10410_v52 = vcombine.low %v5276_v25, %v5280_v59  ;;  %v5323_v25 = vld [vmem:[#allocation10 + $0x190] sm:$0xff] }
 0x804   :  { %6918 = vmatprep.subr.bf16.mxu1 %v10629_v22  ;;  %7004 = vmatprep.subr.bf16.mxu0 %v10631_v0  ;;  %v5291_v22 = vld [vmem:[#allocation10 + $0x90] sm:$0xff] }
 0x805   :  { %v10424_v5 = vcombine.low %v5291_v22, %v5295_v57  ;;  %v5327_v59 = vld [vmem:[#allocation10 + $0x1b0] sm:$0xff] }
 0x807   :  { %6919 = vmatpush1.bf16.msra.mxu1 %v10628_v51  ;;  %7005 = vmatpush1.bf16.msra.mxu0 %v10630_v28  ;;  %v10425_v51 = vcombine.high %v5291_v22, %v5295_v57  ;;  %v5344_v22 = vld [vmem:[#allocation10 + $0x238] sm:$0xff] }
 0x808   :  { %6920 = vmatprep.subr.bf16.mxu1 %v10637_v1  ;;  %7006 = vmatprep.subr.bf16.mxu0 %v10639_v50  ;;  %v5299_v1 = vld [vmem:[#allocation10 + $0xd0] sm:$0xff] }
 0x809   :  { %v5303_v50 = vld [vmem:[#allocation10 + $0xf0] sm:$0xff] }
 0x80a   :  { %v10432_v60 = vcombine.low %v5299_v1, %v5303_v50 }
 0x80b   :  { %6921 = vmatpush1.bf16.msra.mxu1 %v10636_v31  ;;  %7007 = vmatpush1.bf16.msra.mxu0 %v10638_v10  ;;  %v11495_v4 = vpop.permute.xlu0 %11494  ;;  %v10433_v31 = vcombine.high %v5299_v1, %v5303_v50  ;;  %v10435_v10 = vcombine.high %v5300_v53, %v5304_v29  ;;  %v5355_v29 = vld [vmem:[#allocation10 + $0x290] sm:$0xff] }
 0x80c   :  { %6922 = vmatprep.subr.bf16.mxu1 %v10645_v8  ;;  %7008 = vmatprep.subr.bf16.mxu0 %v10647_v54  ;;  %v11497_v21 = vunpack.i.h.bf16 %v11495_v4  ;;  %v11496_v26 = vunpack.i.l.bf16 %v11495_v4  ;;  %v5307_v8 = vld [vmem:[#allocation10 + $0x110] sm:$0xff] }
 0x80d   :  { %v5311_v54 = vld [vmem:[#allocation10 + $0x130] sm:$0xff] }
 0x80e   :  { %v5266_v43 = vsel %vm3563_vm5, %v13711_v49, %v11497_v21  ;;  %v5265_v56 = vsel %vm3563_vm5, %v13713_v18, %v11496_v26  ;;  %v5283_v49 = vld [vmem:[#allocation10 + $0x50] sm:$0xff]  ;;  %v10441_v36 = vcombine.high %v5307_v8, %v5311_v54  ;;  %v10440_v34 = vcombine.low %v5307_v8, %v5311_v54 }
 0x80f   :  { %6923 = vmatpush1.bf16.msra.mxu1 %v10644_v20  ;;  %7009 = vmatpush1.bf16.msra.mxu0 %v10646_v7  ;;  %v13764_v30 = vpack.c.bf16 %v5266_v43, %v5265_v56  ;;  %v10417_v0 = vcombine.high %v5283_v49, %v5287_v39  ;;  %v5315_v7 = vld [vmem:[#allocation10 + $0x150] sm:$0xff]  ;;  %v5328_v43 = vld [vmem:[#allocation10 + $0x1b8] sm:$0xff] }
 0x810   :  { %6924 = vmatprep.subr.bf16.mxu1 %v10653_v33  ;;  %7010 = vmatprep.subr.bf16.mxu0 %v10655_v14  ;;  %v5319_v4 = vld [vmem:[#allocation10 + $0x170] sm:$0xff]  ;;  %v5316_v33 = vld [vmem:[#allocation10 + $0x158] sm:$0xff] }
 0x811   :  { %v5320_v14 = vld [vmem:[#allocation10 + $0x178] sm:$0xff]  ;;  %v10449_v26 = vcombine.high %v5315_v7, %v5319_v4  ;;  %v10448_v56 = vcombine.low %v5315_v7, %v5319_v4 }
 0x812   :  { %v10451_v9 = vcombine.high %v5316_v33, %v5320_v14 }
 0x813   :  { %6925 = vmatpush1.bf16.msra.mxu1 %v10652_v37  ;;  %7011 = vmatpush1.bf16.msra.mxu0 %v10654_v11  ;;  %v5324_v37 = vld [vmem:[#allocation10 + $0x198] sm:$0xff]  ;;  %v10450_v11 = vcombine.low %v5316_v33, %v5320_v14  ;;  %v5371_v14 = vld [vmem:[#allocation10 + $0x310] sm:$0xff] }
 0x814   :  { %7023 = vmatprep.subr.bf16.mxu1 %v10409_v19  ;;  %7109 = vmatprep.subr.bf16.mxu0 %v10411_v24  ;;  %v10457_v19 = vcombine.high %v5323_v25, %v5327_v59  ;;  %v10459_v24 = vcombine.high %v5324_v37, %v5328_v43 }
 0x81b   :  { %v11490_v3 = vpop.permute.xlu1 %11489 }
 0x81c   :  { %v11492_v2 = vunpack.i.h.bf16 %v11490_v3  ;;  %v11491_v38 = vunpack.i.l.bf16 %v11490_v3  ;;  %v5331_v3 = vld [vmem:[#allocation10 + $0x1d0] sm:$0xff] }
 0x81e   :  { %v5268_v18 = vsel %vm3563_vm5, %v13716_v16, %v11492_v2  ;;  %v5267_v6 = vsel %vm3563_vm5, %v13718_v61, %v11491_v38  ;;  %v5296_v16 = vld [vmem:[#allocation10 + $0xb8] sm:$0xff]  ;;  %v10416_v61 = vcombine.low %v5283_v49, %v5287_v39  ;;  %v5335_v2 = vld [vmem:[#allocation10 + $0x1f0] sm:$0xff] }
 0x81f   :  { %v13770_v27 = vpack.c.bf16 %v5268_v18, %v5267_v6  ;;  %v10427_v28 = vcombine.high %v5292_v62, %v5296_v16  ;;  %v10426_v63 = vcombine.low %v5292_v62, %v5296_v16  ;;  %v5332_v38 = vld [vmem:[#allocation10 + $0x1d8] sm:$0xff]  ;;  %v10456_v18 = vcombine.low %v5323_v25, %v5327_v59  ;;  %v5347_v16 = vld [vmem:[#allocation10 + $0x250] sm:$0xff] }
 0x820   :  { %v5336_v49 = vld [vmem:[#allocation10 + $0x1f8] sm:$0xff]  ;;  %v10458_v6 = vcombine.low %v5324_v37, %v5328_v43  ;;  %v10465_v39 = vcombine.high %v5331_v3, %v5335_v2  ;;  %v5379_v43 = vld [vmem:[#allocation10 + $0x350] sm:$0xff] }
 0x821   :  { %6926 = vmatprep.mubr.bf16.mxu1 %v13770_v27  ;;  %7012 = vmatprep.mubr.bf16.mxu0 %v13770_v27  ;;  %v10467_v46 = vcombine.high %v5332_v38, %v5336_v49 }
 0x822   :  { %6927 = vmatmul.mubr.bf16.vlgmr.msra.gmra.mrb[72].mxu1 %v13764_v30  ;;  %7013 = vmatmul.mubr.bf16.vlgmr.msra.gmra.mrb[96].mxu0 %v13764_v30 }
 0x823   :  { %7024 = vmatpush1.bf16.msra.mxu1 %v10408_v42  ;;  %7110 = vmatpush1.bf16.msra.mxu0 %v10410_v52  ;;  %v5343_v42 = vld [vmem:[#allocation10 + $0x230] sm:$0xff]  ;;  %v5340_v52 = vld [vmem:[#allocation10 + $0x218] sm:$0xff] }
 0x824   :  { %7055 = vmatprep.mubr.bf16.mxu1 %v13748_v55  ;;  %7141 = vmatprep.mubr.bf16.mxu0 %v13748_v55  ;;  %v5312_v55 = vld [vmem:[#allocation10 + $0x138] sm:$0xff]  ;;  %v10473_v57 = vcombine.high %v5339_v35, %v5343_v42  ;;  %v10475_v62 = vcombine.high %v5340_v52, %v5344_v22  ;;  %v10474_v1 = vcombine.low %v5340_v52, %v5344_v22  ;;  %v5395_v22 = vld [vmem:[#allocation10 + $0x3d0] sm:$0xff] }
 0x825   :  { %7025 = vmatprep.subr.bf16.mxu1 %v10417_v0  ;;  %7111 = vmatprep.subr.bf16.mxu0 %v10419_v23  ;;  %v10443_v20 = vcombine.high %v5308_v32, %v5312_v55  ;;  %v10442_v21 = vcombine.low %v5308_v32, %v5312_v55  ;;  %v10464_v0 = vcombine.low %v5331_v3, %v5335_v2  ;;  %v5363_v55 = vld [vmem:[#allocation10 + $0x2d0] sm:$0xff] }
 0x826   :  { %v10466_v23 = vcombine.low %v5332_v38, %v5336_v49  ;;  %v5387_v49 = vld [vmem:[#allocation10 + $0x390] sm:$0xff] }
 0x827   :  { %7026 = vmatpush1.bf16.msra.mxu1 %v10416_v61  ;;  %7112 = vmatpush1.bf16.msra.mxu0 %v10418_v12  ;;  %v5351_v61 = vld [vmem:[#allocation10 + $0x270] sm:$0xff]  ;;  %v5348_v12 = vld [vmem:[#allocation10 + $0x258] sm:$0xff] }
 0x828   :  { %7027 = vmatprep.subr.bf16.mxu1 %v10425_v51  ;;  %7113 = vmatprep.subr.bf16.mxu0 %v10427_v28  ;;  %v5352_v51 = vld [vmem:[#allocation10 + $0x278] sm:$0xff]  ;;  %v10472_v28 = vcombine.low %v5339_v35, %v5343_v42  ;;  %v10481_v50 = vcombine.high %v5347_v16, %v5351_v61 }
 0x829   :  { %v10483_v53 = vcombine.high %v5348_v12, %v5352_v51  ;;  %v10482_v8 = vcombine.low %v5348_v12, %v5352_v51  ;;  %v5403_v51 = vld [vmem:[#allocation10 + $0x410] sm:$0xff] }
 0x82b   :  { %7028 = vmatpush1.bf16.msra.mxu1 %v10424_v5  ;;  %7114 = vmatpush1.bf16.msra.mxu0 %v10426_v63  ;;  %v5359_v5 = vld [vmem:[#allocation10 + $0x2b0] sm:$0xff]  ;;  %v5356_v63 = vld [vmem:[#allocation10 + $0x298] sm:$0xff] }
 0x82c   :  { %7029 = vmatprep.subr.bf16.mxu1 %v10433_v31  ;;  %7115 = vmatprep.subr.bf16.mxu0 %v10435_v10  ;;  %v5360_v31 = vld [vmem:[#allocation10 + $0x2b8] sm:$0xff]  ;;  %v10480_v10 = vcombine.low %v5347_v16, %v5351_v61  ;;  %v10489_v54 = vcombine.high %v5355_v29, %v5359_v5 }
 0x82d   :  { %v10491_v32 = vcombine.high %v5356_v63, %v5360_v31  ;;  %v10490_v7 = vcombine.low %v5356_v63, %v5360_v31  ;;  %v5411_v31 = vld [vmem:[#allocation10 + $0x450] sm:$0xff] }
 0x82f   :  { %7030 = vmatpush1.bf16.msra.mxu1 %v10432_v60  ;;  %7116 = vmatpush1.bf16.msra.mxu0 %v10434_v58  ;;  %v5367_v60 = vld [vmem:[#allocation10 + $0x2f0] sm:$0xff]  ;;  %v5364_v58 = vld [vmem:[#allocation10 + $0x2d8] sm:$0xff] }
 0x830   :  { %7031 = vmatprep.subr.bf16.mxu1 %v10441_v36  ;;  %7117 = vmatprep.subr.bf16.mxu0 %v10443_v20  ;;  %v5368_v36 = vld [vmem:[#allocation10 + $0x2f8] sm:$0xff]  ;;  %v10488_v20 = vcombine.low %v5355_v29, %v5359_v5  ;;  %v10497_v4 = vcombine.high %v5363_v55, %v5367_v60 }
 0x831   :  { %v10499_v33 = vcombine.high %v5364_v58, %v5368_v36  ;;  %v10498_v25 = vcombine.low %v5364_v58, %v5368_v36  ;;  %v5419_v36 = vld [vmem:[#allocation10 + $0x490] sm:$0xff] }
 0x833   :  { %7032 = vmatpush1.bf16.msra.mxu1 %v10440_v34  ;;  %7118 = vmatpush1.bf16.msra.mxu0 %v10442_v21  ;;  %v5375_v34 = vld [vmem:[#allocation10 + $0x330] sm:$0xff]  ;;  %v5372_v21 = vld [vmem:[#allocation10 + $0x318] sm:$0xff] }
 0x834   :  { %7033 = vmatprep.subr.bf16.mxu1 %v10449_v26  ;;  %7119 = vmatprep.subr.bf16.mxu0 %v10451_v9  ;;  %v5376_v26 = vld [vmem:[#allocation10 + $0x338] sm:$0xff]  ;;  %v10496_v9 = vcombine.low %v5363_v55, %v5367_v60  ;;  %v10505_v59 = vcombine.high %v5371_v14, %v5375_v34 }
 0x835   :  { %v10507_v37 = vcombine.high %v5372_v21, %v5376_v26  ;;  %v10506_v3 = vcombine.low %v5372_v21, %v5376_v26  ;;  %v5427_v26 = vld [vmem:[#allocation10 + $0x4d0] sm:$0xff] }
 0x837   :  { %7034 = vmatpush1.bf16.msra.mxu1 %v10448_v56  ;;  %7120 = vmatpush1.bf16.msra.mxu0 %v10450_v11  ;;  %v5383_v56 = vld [vmem:[#allocation10 + $0x370] sm:$0xff]  ;;  %v5380_v11 = vld [vmem:[#allocation10 + $0x358] sm:$0xff] }
 0x838   :  { %7035 = vmatprep.subr.bf16.mxu1 %v10457_v19  ;;  %7121 = vmatprep.subr.bf16.mxu0 %v10459_v24  ;;  %v5384_v19 = vld [vmem:[#allocation10 + $0x378] sm:$0xff]  ;;  %v10504_v24 = vcombine.low %v5371_v14, %v5375_v34  ;;  %v10513_v2 = vcombine.high %v5379_v43, %v5383_v56 }
 0x839   :  { %v10515_v38 = vcombine.high %v5380_v11, %v5384_v19  ;;  %v10514_v35 = vcombine.low %v5380_v11, %v5384_v19  ;;  %v5435_v11 = vld [vmem:[#allocation10 + $0x510] sm:$0xff] }
 0x83a   :  { %v5439_v19 = vld [vmem:[#allocation10 + $0x530] sm:$0xff] }
 0x83b   :  { %7036 = vmatpush1.bf16.msra.mxu1 %v10456_v18  ;;  %7122 = vmatpush1.bf16.msra.mxu0 %v10458_v6  ;;  %v5391_v18 = vld [vmem:[#allocation10 + $0x3b0] sm:$0xff]  ;;  %v5388_v6 = vld [vmem:[#allocation10 + $0x398] sm:$0xff] }
 0x83c   :  { %7037 = vmatprep.subr.bf16.mxu1 %v10465_v39  ;;  %7123 = vmatprep.subr.bf16.mxu0 %v10467_v46  ;;  %v5392_v39 = vld [vmem:[#allocation10 + $0x3b8] sm:$0xff]  ;;  %v10512_v46 = vcombine.low %v5379_v43, %v5383_v56  ;;  %v10521_v42 = vcombine.high %v5387_v49, %v5391_v18 }
 0x83d   :  { %v10523_v52 = vcombine.high %v5388_v6, %v5392_v39  ;;  %v10522_v16 = vcombine.low %v5388_v6, %v5392_v39  ;;  %v5447_v6 = vld [vmem:[#allocation10 + $0x570] sm:$0xff]  ;;  %v5444_v39 = vld [vmem:[#allocation10 + $0x558] sm:$0xff] }
 0x83f   :  { %7038 = vmatpush1.bf16.msra.mxu1 %v10464_v0  ;;  %7124 = vmatpush1.bf16.msra.mxu0 %v10466_v23  ;;  %v5399_v0 = vld [vmem:[#allocation10 + $0x3f0] sm:$0xff]  ;;  %v5396_v23 = vld [vmem:[#allocation10 + $0x3d8] sm:$0xff] }
 0x840   :  { %7039 = vmatprep.subr.bf16.mxu1 %v10473_v57  ;;  %7125 = vmatprep.subr.bf16.mxu0 %v10475_v62  ;;  %v5400_v57 = vld [vmem:[#allocation10 + $0x3f8] sm:$0xff]  ;;  %v10520_v62 = vcombine.low %v5387_v49, %v5391_v18  ;;  %v10529_v61 = vcombine.high %v5395_v22, %v5399_v0  ;;  %v5443_v18 = vld [vmem:[#allocation10 + $0x550] sm:$0xff] }
 0x841   :  { %v10531_v12 = vcombine.high %v5396_v23, %v5400_v57  ;;  %v10530_v29 = vcombine.low %v5396_v23, %v5400_v57  ;;  %v5455_v23 = vld [vmem:[#allocation10 + $0x5b0] sm:$0xff]  ;;  %v5452_v57 = vld [vmem:[#allocation10 + $0x598] sm:$0xff] }
 0x843   :  { %7040 = vmatpush1.bf16.msra.mxu1 %v10472_v28  ;;  %7126 = vmatpush1.bf16.msra.mxu0 %v10474_v1  ;;  %v5407_v28 = vld [vmem:[#allocation10 + $0x430] sm:$0xff]  ;;  %v5404_v1 = vld [vmem:[#allocation10 + $0x418] sm:$0xff] }
 0x844   :  { %7041 = vmatprep.subr.bf16.mxu1 %v10481_v50  ;;  %7127 = vmatprep.subr.bf16.mxu0 %v10483_v53  ;;  %v5408_v50 = vld [vmem:[#allocation10 + $0x438] sm:$0xff]  ;;  %v10528_v53 = vcombine.low %v5395_v22, %v5399_v0  ;;  %v10537_v5 = vcombine.high %v5403_v51, %v5407_v28  ;;  %v5451_v0 = vld [vmem:[#allocation10 + $0x590] sm:$0xff] }
 0x845   :  { %v10539_v63 = vcombine.high %v5404_v1, %v5408_v50  ;;  %v10538_v55 = vcombine.low %v5404_v1, %v5408_v50  ;;  %v5463_v1 = vld [vmem:[#allocation10 + $0x5f0] sm:$0xff]  ;;  %v5460_v50 = vld [vmem:[#allocation10 + $0x5d8] sm:$0xff] }
 0x847   :  { %7042 = vmatpush1.bf16.msra.mxu1 %v10480_v10  ;;  %7128 = vmatpush1.bf16.msra.mxu0 %v10482_v8  ;;  %v5415_v10 = vld [vmem:[#allocation10 + $0x470] sm:$0xff]  ;;  %v5412_v8 = vld [vmem:[#allocation10 + $0x458] sm:$0xff] }
 0x848   :  { %7043 = vmatprep.subr.bf16.mxu1 %v10489_v54  ;;  %7129 = vmatprep.subr.bf16.mxu0 %v10491_v32  ;;  %v5416_v54 = vld [vmem:[#allocation10 + $0x478] sm:$0xff]  ;;  %v10536_v32 = vcombine.low %v5403_v51, %v5407_v28  ;;  %v10545_v60 = vcombine.high %v5411_v31, %v5415_v10  ;;  %v5459_v28 = vld [vmem:[#allocation10 + $0x5d0] sm:$0xff] }
 0x849   :  { %v10547_v58 = vcombine.high %v5412_v8, %v5416_v54  ;;  %v10546_v14 = vcombine.low %v5412_v8, %v5416_v54  ;;  %v5471_v8 = vld [vmem:[#allocation10 + $0x630] sm:$0xff]  ;;  %v5468_v54 = vld [vmem:[#allocation10 + $0x618] sm:$0xff] }
 0x84b   :  { %7044 = vmatpush1.bf16.msra.mxu1 %v10488_v20  ;;  %7130 = vmatpush1.bf16.msra.mxu0 %v10490_v7  ;;  %v5423_v20 = vld [vmem:[#allocation10 + $0x4b0] sm:$0xff]  ;;  %v5420_v7 = vld [vmem:[#allocation10 + $0x498] sm:$0xff] }
 0x84c   :  { %7045 = vmatprep.subr.bf16.mxu1 %v10497_v4  ;;  %7131 = vmatprep.subr.bf16.mxu0 %v10499_v33  ;;  %v5424_v4 = vld [vmem:[#allocation10 + $0x4b8] sm:$0xff]  ;;  %v10544_v33 = vcombine.low %v5411_v31, %v5415_v10  ;;  %v10553_v34 = vcombine.high %v5419_v36, %v5423_v20  ;;  %v5467_v10 = vld [vmem:[#allocation10 + $0x610] sm:$0xff] }
 0x84d   :  { %v10555_v21 = vcombine.high %v5420_v7, %v5424_v4 }
 0x84f   :  { %7046 = vmatpush1.bf16.msra.mxu1 %v10496_v9  ;;  %7132 = vmatpush1.bf16.msra.mxu0 %v10498_v25  ;;  %v5431_v9 = vld [vmem:[#allocation10 + $0x4f0] sm:$0xff]  ;;  %v5428_v25 = vld [vmem:[#allocation10 + $0x4d8] sm:$0xff] }
 0x850   :  { %7047 = vmatprep.subr.bf16.mxu1 %v10505_v59  ;;  %7133 = vmatprep.subr.bf16.mxu0 %v10507_v37  ;;  %v5432_v59 = vld [vmem:[#allocation10 + $0x4f8] sm:$0xff]  ;;  %v10554_v37 = vcombine.low %v5420_v7, %v5424_v4  ;;  %v10561_v43 = vcombine.high %v5427_v26, %v5431_v9  ;;  %v5479_v7 = vld [vmem:[#allocation10 + $0x670] sm:$0xff] }
 0x851   :  { %v10563_v56 = vcombine.high %v5428_v25, %v5432_v59  ;;  %v5476_v4 = vld [vmem:[#allocation10 + $0x658] sm:$0xff] }
 0x853   :  { %7048 = vmatpush1.bf16.msra.mxu1 %v10504_v24  ;;  %7134 = vmatpush1.bf16.msra.mxu0 %v10506_v3  ;;  %v5440_v24 = vld [vmem:[#allocation10 + $0x538] sm:$0xff]  ;;  %v10560_v3 = vcombine.low %v5427_v26, %v5431_v9  ;;  %v5483_v9 = vld [vmem:[#allocation10 + $0x690] sm:$0xff] }
 0x854   :  { %7049 = vmatprep.subr.bf16.mxu1 %v10513_v2  ;;  %7135 = vmatprep.subr.bf16.mxu0 %v10515_v38  ;;  %v10562_v2 = vcombine.low %v5428_v25, %v5432_v59  ;;  %v10569_v38 = vcombine.high %v5435_v11, %v5439_v19  ;;  %v5487_v25 = vld [vmem:[#allocation10 + $0x6b0] sm:$0xff]  ;;  %v5484_v59 = vld [vmem:[#allocation10 + $0x698] sm:$0xff] }
 0x857   :  { %7050 = vmatpush1.bf16.msra.mxu1 %v10512_v46  ;;  %7136 = vmatpush1.bf16.msra.mxu0 %v10514_v35  ;;  %v5448_v46 = vld [vmem:[#allocation10 + $0x578] sm:$0xff]  ;;  %v10568_v35 = vcombine.low %v5435_v11, %v5439_v19  ;;  %v5491_v19 = vld [vmem:[#allocation10 + $0x6d0] sm:$0xff] }
 0x858   :  { %7051 = vmatprep.subr.bf16.mxu1 %v10521_v42  ;;  %7137 = vmatprep.subr.bf16.mxu0 %v10523_v52  ;;  %v10577_v52 = vcombine.high %v5443_v18, %v5447_v6  ;;  %v10579_v22 = vcombine.high %v5444_v39, %v5448_v46 }
 0x85b   :  { %7052 = vmatpush1.bf16.msra.mxu1 %v10520_v62  ;;  %7138 = vmatpush1.bf16.msra.mxu0 %v10522_v16  ;;  %v5456_v62 = vld [vmem:[#allocation10 + $0x5b8] sm:$0xff]  ;;  %v10576_v16 = vcombine.low %v5443_v18, %v5447_v6  ;;  %v5499_v6 = vld [vmem:[#allocation10 + $0x710] sm:$0xff] }
 0x85c   :  { %7053 = vmatprep.subr.bf16.mxu1 %v10529_v61  ;;  %7139 = vmatprep.subr.bf16.mxu0 %v10531_v12  ;;  %v10578_v61 = vcombine.low %v5444_v39, %v5448_v46  ;;  %v10585_v12 = vcombine.high %v5451_v0, %v5455_v23  ;;  %v10587_v51 = vcombine.high %v5452_v57, %v5456_v62  ;;  %v5503_v39 = vld [vmem:[#allocation10 + $0x730] sm:$0xff]  ;;  %v5500_v46 = vld [vmem:[#allocation10 + $0x718] sm:$0xff] }
 0x85f   :  { %7054 = vmatpush1.bf16.msra.mxu1 %v10528_v53  ;;  %7140 = vmatpush1.bf16.msra.mxu0 %v10530_v29  ;;  %v5464_v53 = vld [vmem:[#allocation10 + $0x5f8] sm:$0xff]  ;;  %v10584_v29 = vcombine.low %v5451_v0, %v5455_v23  ;;  %v5507_v23 = vld [vmem:[#allocation10 + $0x750] sm:$0xff] }
 0x860   :  { %7066 = vmatprep.subr.bf16.mxu1 %v10537_v5  ;;  %7152 = vmatprep.subr.bf16.mxu0 %v10539_v63  ;;  %v10586_v5 = vcombine.low %v5452_v57, %v5456_v62  ;;  %v10593_v63 = vcombine.high %v5459_v28, %v5463_v1  ;;  %v10595_v31 = vcombine.high %v5460_v50, %v5464_v53  ;;  %v5511_v57 = vld [vmem:[#allocation10 + $0x770] sm:$0xff]  ;;  %v5508_v62 = vld [vmem:[#allocation10 + $0x758] sm:$0xff] }
 0x862   :  { %7056 = vmatmul.mubr.bf16.vlgmr.msra.gmra.mrb[76].mxu1 %v13736_v17  ;;  %7142 = vmatmul.mubr.bf16.vlgmr.msra.gmra.mrb[100].mxu0 %v13736_v17  ;;  %v10552_v17 = vcombine.low %v5419_v36, %v5423_v20  ;;  %v5475_v20 = vld [vmem:[#allocation10 + $0x650] sm:$0xff] }
 0x863   :  { %7067 = vmatpush1.bf16.msra.mxu1 %v10536_v32  ;;  %7098 = vmatprep.mubr.bf16.mxu1 %v13770_v27  ;;  %v5472_v32 = vld [vmem:[#allocation10 + $0x638] sm:$0xff] }
 0x864   :  { %7153 = vmatpush1.bf16.msra.mxu0 %v10538_v55  ;;  %7184 = vmatprep.mubr.bf16.mxu0 %v13770_v27  ;;  %v5436_v27 = vld [vmem:[#allocation10 + $0x518] sm:$0xff]  ;;  %v10592_v55 = vcombine.low %v5459_v28, %v5463_v1  ;;  %v10603_v36 = vcombine.high %v5468_v54, %v5472_v32  ;;  %v5515_v1 = vld [vmem:[#allocation10 + $0x790] sm:$0xff] }
 0x865   :  { %7068 = vmatprep.subr.bf16.mxu1 %v10545_v60  ;;  %7154 = vmatprep.subr.bf16.mxu0 %v10547_v58  ;;  %v10571_v49 = vcombine.high %v5436_v27, %v5440_v24  ;;  %v10570_v42 = vcombine.low %v5436_v27, %v5440_v24  ;;  %v10594_v60 = vcombine.low %v5460_v50, %v5464_v53  ;;  %v5495_v27 = vld [vmem:[#allocation10 + $0x6f0] sm:$0xff]  ;;  %v5492_v24 = vld [vmem:[#allocation10 + $0x6d8] sm:$0xff] }
 0x866   :  { %v10601_v58 = vcombine.high %v5467_v10, %v5471_v8  ;;  %v5519_v50 = vld [vmem:[#allocation10 + $0x7b0] sm:$0xff]  ;;  %v5516_v53 = vld [vmem:[#allocation10 + $0x798] sm:$0xff] }
 0x867   :  { %7069 = vmatpush1.bf16.msra.mxu1 %v10544_v33  ;;  %v5480_v33 = vld [vmem:[#allocation10 + $0x678] sm:$0xff] }
 0x868   :  { %7155 = vmatpush1.bf16.msra.mxu0 %v10546_v14  ;;  %7070 = vmatprep.subr.bf16.mxu1 %v10553_v34  ;;  %v10600_v14 = vcombine.low %v5467_v10, %v5471_v8  ;;  %v10602_v34 = vcombine.low %v5468_v54, %v5472_v32  ;;  %v10611_v26 = vcombine.high %v5476_v4, %v5480_v33  ;;  %v5523_v8 = vld [vmem:[#allocation10 + $0x7d0] sm:$0xff]  ;;  %v5524_v32 = vld [vmem:[#allocation10 + $0x7d8] sm:$0xff] }
 0x869   :  { %7156 = vmatprep.subr.bf16.mxu0 %v10555_v21  ;;  %v10609_v21 = vcombine.high %v5475_v20, %v5479_v7  ;;  %v5527_v54 = vld [vmem:[#allocation10 + $0x7f0] sm:$0xff] }
 0x86b   :  { %7071 = vmatpush1.bf16.msra.mxu1 %v10552_v17  ;;  %v5488_v17 = vld [vmem:[#allocation10 + $0x6b8] sm:$0xff] }
 0x86c   :  { %7157 = vmatpush1.bf16.msra.mxu0 %v10554_v37  ;;  %7072 = vmatprep.subr.bf16.mxu1 %v10561_v43  ;;  %v10608_v37 = vcombine.low %v5475_v20, %v5479_v7  ;;  %v10610_v43 = vcombine.low %v5476_v4, %v5480_v33  ;;  %v10619_v11 = vcombine.high %v5484_v59, %v5488_v17  ;;  %v12080_v33 = vld [vmem:[#allocation11 + $0x4] ss:$16 sps:$4 sm:$0xff]  }
 0x86d   :  { %7158 = vmatprep.subr.bf16.mxu0 %v10563_v56  ;;  %v10617_v56 = vcombine.high %v5483_v9, %v5487_v25  ;;  %v10656_v7 = vcombine.low %v5523_v8, %v5527_v54 }
 0x86f   :  { %7073 = vmatpush1.bf16.msra.mxu1 %v10560_v3  ;;  %v5496_v3 = vld [vmem:[#allocation10 + $0x6f8] sm:$0xff] }
 0x870   :  { %7159 = vmatpush1.bf16.msra.mxu0 %v10562_v2  ;;  %7074 = vmatprep.subr.bf16.mxu1 %v10569_v38  ;;  %v10616_v2 = vcombine.low %v5483_v9, %v5487_v25  ;;  %v10618_v38 = vcombine.low %v5484_v59, %v5488_v17  ;;  %v10627_v18 = vcombine.high %v5492_v24, %v5496_v3  ;;  %v12089_v9 = vld [vmem:[#allocation11 + $0x2c] ss:$16 sps:$4 sm:$0xff]   ;;  %v12084_v25 = vld [vmem:[#allocation11 + $0x20] ss:$16 sps:$4 sm:$0xff]   ;;  %v12087_v59 = vld [vmem:[#allocation11 + $0x28] ss:$16 sps:$4 sm:$0xff]  }
 0x871   :  { %7160 = vmatprep.subr.bf16.mxu0 %v10571_v49  ;;  %v10625_v49 = vcombine.high %v5491_v19, %v5495_v27  ;;  %v12092_v17 = vld [vmem:[#allocation11 + $0x44] ss:$16 sps:$4 sm:$0xff]  }
 0x873   :  { %7075 = vmatpush1.bf16.msra.mxu1 %v10568_v35  ;;  %v5504_v35 = vld [vmem:[#allocation10 + $0x738] sm:$0xff] }
 0x874   :  { %7161 = vmatpush1.bf16.msra.mxu0 %v10570_v42  ;;  %7076 = vmatprep.subr.bf16.mxu1 %v10577_v52  ;;  %v10624_v42 = vcombine.low %v5491_v19, %v5495_v27  ;;  %v10626_v52 = vcombine.low %v5492_v24, %v5496_v3  ;;  %v10635_v0 = vcombine.high %v5500_v46, %v5504_v35  ;;  %v12101_v19 = vld [vmem:[#allocation11 + $0x6c] ss:$16 sps:$4 sm:$0xff]   ;;  %v12096_v27 = vld [vmem:[#allocation11 + $0x60] ss:$16 sps:$4 sm:$0xff]   ;;  %v12104_v24 = vld [vmem:[#allocation11 + $0x84] ss:$16 sps:$4 sm:$0xff]  }
 0x875   :  { %7162 = vmatprep.subr.bf16.mxu0 %v10579_v22  ;;  %v10633_v22 = vcombine.high %v5499_v6, %v5503_v39  ;;  %v12107_v3 = vld [vmem:[#allocation11 + $0x8c] ss:$16 sps:$4 sm:$0xff]  }
 0x877   :  { %7077 = vmatpush1.bf16.msra.mxu1 %v10576_v16  ;;  %v5512_v16 = vld [vmem:[#allocation10 + $0x778] sm:$0xff] }
 0x878   :  { %7163 = vmatpush1.bf16.msra.mxu0 %v10578_v61  ;;  %7078 = vmatprep.subr.bf16.mxu1 %v10585_v12  ;;  %v10632_v61 = vcombine.low %v5499_v6, %v5503_v39  ;;  %v10634_v12 = vcombine.low %v5500_v46, %v5504_v35  ;;  %v10643_v28 = vcombine.high %v5508_v62, %v5512_v16  ;;  %v12108_v6 = vld [vmem:[#allocation11 + $0xa0] ss:$16 sps:$4 sm:$0xff]   ;;  %v12111_v39 = vld [vmem:[#allocation11 + $0xa8] ss:$16 sps:$4 sm:$0xff]   ;;  %v12116_v46 = vld [vmem:[#allocation11 + $0xc4] ss:$16 sps:$4 sm:$0xff]  }
 0x879   :  { %7164 = vmatprep.subr.bf16.mxu0 %v10587_v51  ;;  %v10641_v51 = vcombine.high %v5507_v23, %v5511_v57  ;;  %v12119_v35 = vld [vmem:[#allocation11 + $0xcc] ss:$16 sps:$4 sm:$0xff]  }
 0x87b   :  { %7079 = vmatpush1.bf16.msra.mxu1 %v10584_v29  ;;  %v5520_v29 = vld [vmem:[#allocation10 + $0x7b8] sm:$0xff] }
 0x87c   :  { %7165 = vmatpush1.bf16.msra.mxu0 %v10586_v5  ;;  %7080 = vmatprep.subr.bf16.mxu1 %v10593_v63  ;;  %v10640_v5 = vcombine.low %v5507_v23, %v5511_v57  ;;  %v10642_v63 = vcombine.low %v5508_v62, %v5512_v16  ;;  %v10651_v10 = vcombine.high %v5516_v53, %v5520_v29  ;;  %v12120_v23 = vld [vmem:[#allocation11 + $0xe0] ss:$16 sps:$4 sm:$0xff]   ;;  %v12123_v57 = vld [vmem:[#allocation11 + $0xe8] ss:$16 sps:$4 sm:$0xff]   ;;  %v12128_v62 = vld [vmem:[#allocation11 + $0x104] ss:$16 sps:$4 sm:$0xff]  }
 0x87d   :  { %7166 = vmatprep.subr.bf16.mxu0 %v10595_v31  ;;  %v10649_v31 = vcombine.high %v5515_v1, %v5519_v50  ;;  %v12131_v16 = vld [vmem:[#allocation11 + $0x10c] ss:$16 sps:$4 sm:$0xff]  }
 0x87f   :  { %7081 = vmatpush1.bf16.msra.mxu1 %v10592_v55  ;;  %v5528_v55 = vld [vmem:[#allocation10 + $0x7f8] sm:$0xff] }
 0x880   :  { %7167 = vmatpush1.bf16.msra.mxu0 %v10594_v60  ;;  %7082 = vmatprep.subr.bf16.mxu1 %v10601_v58  ;;  %v10648_v60 = vcombine.low %v5515_v1, %v5519_v50  ;;  %v10650_v58 = vcombine.low %v5516_v53, %v5520_v29  ;;  %v10659_v20 = vcombine.high %v5524_v32, %v5528_v55  ;;  %v12132_v1 = vld [vmem:[#allocation11 + $0x120] ss:$16 sps:$4 sm:$0xff]   ;;  %v12135_v50 = vld [vmem:[#allocation11 + $0x128] ss:$16 sps:$4 sm:$0xff]   ;;  %v12140_v53 = vld [vmem:[#allocation11 + $0x144] ss:$16 sps:$4 sm:$0xff]  }
 0x881   :  { %7168 = vmatprep.subr.bf16.mxu0 %v10603_v36  ;;  %v10657_v36 = vcombine.high %v5523_v8, %v5527_v54  ;;  %v10658_v4 = vcombine.low %v5524_v32, %v5528_v55  ;;  %v12143_v29 = vld [vmem:[#allocation11 + $0x14c] ss:$16 sps:$4 sm:$0xff]   ;;  %v12144_v8 = vld [vmem:[#allocation11 + $0x160] ss:$16 sps:$4 sm:$0xff]   ;;  %v12147_v54 = vld [vmem:[#allocation11 + $0x168] ss:$16 sps:$4 sm:$0xff]  }
 0x882   :  { %v12152_v32 = vld [vmem:[#allocation11 + $0x184] ss:$16 sps:$4 sm:$0xff]   ;;  %v12155_v55 = vld [vmem:[#allocation11 + $0x18c] ss:$16 sps:$4 sm:$0xff]  }
 0x883   :  { %7083 = vmatpush1.bf16.msra.mxu1 %v10600_v14  ;;  %v12083_v14 = vld [vmem:[#allocation11 + $0xc] ss:$16 sps:$4 sm:$0xff]  }
 0x884   :  { %7169 = vmatpush1.bf16.msra.mxu0 %v10602_v34  ;;  %7084 = vmatprep.subr.bf16.mxu1 %v10609_v21  ;;  %v12078_v34 = vld [vmem:[#allocation11] ss:$16 sps:$4 sm:$0xff]   ;;  %v12081_v21 = vld [vmem:[#allocation11 + $0x8] ss:$16 sps:$4 sm:$0xff]  }
 0x885   :  { %7170 = vmatprep.subr.bf16.mxu0 %v10611_v26  ;;  %v12086_v26 = vld [vmem:[#allocation11 + $0x24] ss:$16 sps:$4 sm:$0xff]  }
 0x887   :  { %7085 = vmatpush1.bf16.msra.mxu1 %v10608_v37  ;;  %v12095_v37 = vld [vmem:[#allocation11 + $0x4c] ss:$16 sps:$4 sm:$0xff]  }
 0x888   :  { %7171 = vmatpush1.bf16.msra.mxu0 %v10610_v43  ;;  %7086 = vmatprep.subr.bf16.mxu1 %v10617_v56  ;;  %v12090_v43 = vld [vmem:[#allocation11 + $0x40] ss:$16 sps:$4 sm:$0xff]   ;;  %v12093_v56 = vld [vmem:[#allocation11 + $0x48] ss:$16 sps:$4 sm:$0xff]  }
 0x889   :  { %7172 = vmatprep.subr.bf16.mxu0 %v10619_v11  ;;  %v12098_v11 = vld [vmem:[#allocation11 + $0x64] ss:$16 sps:$4 sm:$0xff]  }
 0x88b   :  { %7087 = vmatpush1.bf16.msra.mxu1 %v10616_v2  ;;  %v12102_v2 = vld [vmem:[#allocation11 + $0x80] ss:$16 sps:$4 sm:$0xff]  }
 0x88c   :  { %7173 = vmatpush1.bf16.msra.mxu0 %v10618_v38  ;;  %7088 = vmatprep.subr.bf16.mxu1 %v10625_v49  ;;  %v12105_v38 = vld [vmem:[#allocation11 + $0x88] ss:$16 sps:$4 sm:$0xff]   ;;  %v12110_v49 = vld [vmem:[#allocation11 + $0xa4] ss:$16 sps:$4 sm:$0xff]  }
 0x88d   :  { %7174 = vmatprep.subr.bf16.mxu0 %v10627_v18  ;;  %v12113_v18 = vld [vmem:[#allocation11 + $0xac] ss:$16 sps:$4 sm:$0xff]  }
 0x88f   :  { %7089 = vmatpush1.bf16.msra.mxu1 %v10624_v42  ;;  %v12114_v42 = vld [vmem:[#allocation11 + $0xc0] ss:$16 sps:$4 sm:$0xff]  }
 0x890   :  { %7175 = vmatpush1.bf16.msra.mxu0 %v10626_v52  ;;  %7090 = vmatprep.subr.bf16.mxu1 %v10633_v22  ;;  %v12117_v52 = vld [vmem:[#allocation11 + $0xc8] ss:$16 sps:$4 sm:$0xff]   ;;  %v12122_v22 = vld [vmem:[#allocation11 + $0xe4] ss:$16 sps:$4 sm:$0xff]  }
 0x891   :  { %7176 = vmatprep.subr.bf16.mxu0 %v10635_v0  ;;  %v12125_v0 = vld [vmem:[#allocation11 + $0xec] ss:$16 sps:$4 sm:$0xff]  }
 0x893   :  { %7091 = vmatpush1.bf16.msra.mxu1 %v10632_v61  ;;  %v12126_v61 = vld [vmem:[#allocation11 + $0x100] ss:$16 sps:$4 sm:$0xff]  }
 0x894   :  { %7177 = vmatpush1.bf16.msra.mxu0 %v10634_v12  ;;  %7092 = vmatprep.subr.bf16.mxu1 %v10641_v51  ;;  %v12129_v12 = vld [vmem:[#allocation11 + $0x108] ss:$16 sps:$4 sm:$0xff]   ;;  %v12134_v51 = vld [vmem:[#allocation11 + $0x124] ss:$16 sps:$4 sm:$0xff]  }
 0x895   :  { %7178 = vmatprep.subr.bf16.mxu0 %v10643_v28  ;;  %v12137_v28 = vld [vmem:[#allocation11 + $0x12c] ss:$16 sps:$4 sm:$0xff]  }
 0x897   :  { %7093 = vmatpush1.bf16.msra.mxu1 %v10640_v5  ;;  %v12138_v5 = vld [vmem:[#allocation11 + $0x140] ss:$16 sps:$4 sm:$0xff]  }
 0x898   :  { %7179 = vmatpush1.bf16.msra.mxu0 %v10642_v63  ;;  %7094 = vmatprep.subr.bf16.mxu1 %v10649_v31  ;;  %v12141_v63 = vld [vmem:[#allocation11 + $0x148] ss:$16 sps:$4 sm:$0xff]   ;;  %v12146_v31 = vld [vmem:[#allocation11 + $0x164] ss:$16 sps:$4 sm:$0xff]  }
 0x899   :  { %7180 = vmatprep.subr.bf16.mxu0 %v10651_v10  ;;  %v12149_v10 = vld [vmem:[#allocation11 + $0x16c] ss:$16 sps:$4 sm:$0xff]  }
 0x89b   :  { %7095 = vmatpush1.bf16.msra.mxu1 %v10648_v60  ;;  %v12150_v60 = vld [vmem:[#allocation11 + $0x180] ss:$16 sps:$4 sm:$0xff]  }
 0x89c   :  { %7181 = vmatpush1.bf16.msra.mxu0 %v10650_v58  ;;  %7096 = vmatprep.subr.bf16.mxu1 %v10657_v36  ;;  %v12153_v58 = vld [vmem:[#allocation11 + $0x188] ss:$16 sps:$4 sm:$0xff]   ;;  %v12158_v36 = vld [vmem:[#allocation11 + $0x1a4] ss:$16 sps:$4 sm:$0xff]  }
 0x89d   :  { %7182 = vmatprep.subr.bf16.mxu0 %v10659_v20  ;;  %v12161_v20 = vld [vmem:[#allocation11 + $0x1ac] ss:$16 sps:$4 sm:$0xff]  }
 0x89f   :  { %7097 = vmatpush1.bf16.msra.mxu1 %v10656_v7  ;;  %v12156_v7 = vld [vmem:[#allocation11 + $0x1a0] ss:$16 sps:$4 sm:$0xff]  }
 0x8a0   :  { %7183 = vmatpush1.bf16.msra.mxu0 %v10658_v4  ;;  %8777 = vmatprep.subr.bf16.mxu1 %v12080_v33  ;;  %v12159_v4 = vld [vmem:[#allocation11 + $0x1a8] ss:$16 sps:$4 sm:$0xff]   ;;  %v12164_v33 = vld [vmem:[#allocation11 + $0x1c4] ss:$16 sps:$4 sm:$0xff]  }
 0x8a1   :  { %8949 = vmatprep.subr.bf16.mxu0 %v12083_v14  ;;  %v12167_v14 = vld [vmem:[#allocation11 + $0x1cc] ss:$16 sps:$4 sm:$0xff]  }
 0x8a2   :  { %7099 = vmatmul.mubr.bf16.vlgmr.msra.gmra.mrb[76].mxu1 %v13764_v30 }
 0x8a3   :  { %7185 = vmatmul.mubr.bf16.vlgmr.msra.gmra.mrb[100].mxu0 %v13764_v30  ;;  %8778 = vmatpush1.bf16.msra.mxu1 %v12078_v34  ;;  %v12099_v30 = vld [vmem:[#allocation11 + $0x68] ss:$16 sps:$4 sm:$0xff]   ;;  %v12162_v34 = vld [vmem:[#allocation11 + $0x1c0] ss:$16 sps:$4 sm:$0xff]  }
 0x8a4   :  { %8950 = vmatpush1.bf16.msra.mxu0 %v12081_v21  ;;  %8779 = vmatprep.subr.bf16.mxu1 %v12086_v26  ;;  %v12165_v21 = vld [vmem:[#allocation11 + $0x1c8] ss:$16 sps:$4 sm:$0xff]   ;;  %v12170_v26 = vld [vmem:[#allocation11 + $0x1e4] ss:$16 sps:$4 sm:$0xff]  }
 0x8a5   :  { %8951 = vmatprep.subr.bf16.mxu0 %v12089_v9  ;;  %v12173_v9 = vld [vmem:[#allocation11 + $0x1ec] ss:$16 sps:$4 sm:$0xff]  }
 0x8a7   :  { %8780 = vmatpush1.bf16.msra.mxu1 %v12084_v25  ;;  %v12168_v25 = vld [vmem:[#allocation11 + $0x1e0] ss:$16 sps:$4 sm:$0xff]  }
 0x8a8   :  { %8952 = vmatpush1.bf16.msra.mxu0 %v12087_v59  ;;  %8781 = vmatprep.subr.bf16.mxu1 %v12092_v17  ;;  %v12171_v59 = vld [vmem:[#allocation11 + $0x1e8] ss:$16 sps:$4 sm:$0xff]   ;;  %v12176_v17 = vld [vmem:[#allocation11 + $0x204] ss:$16 sps:$4 sm:$0xff]  }
 0x8a9   :  { %8953 = vmatprep.subr.bf16.mxu0 %v12095_v37  ;;  %v12179_v37 = vld [vmem:[#allocation11 + $0x20c] ss:$16 sps:$4 sm:$0xff]  }
 0x8ab   :  { %8782 = vmatpush1.bf16.msra.mxu1 %v12090_v43  ;;  %v5541_v43 = vsub.s32 2, %v13165_v45 }
 0x8ac   :  { %8954 = vmatpush1.bf16.msra.mxu0 %v12093_v56  ;;  %8783 = vmatprep.subr.bf16.mxu1 %v12098_v11  ;;  %v13788_v56 = vld [vmem:[%s13882_s16] sm:$0xff]  ;;  %v5545_v11 = vsub.s32 3, %v13165_v45 }
 0x8ad   :  { %8955 = vmatprep.subr.bf16.mxu0 %v12101_v19  ;;  %v5534_v19 = vrot.slane %v13788_v56, %v13171_v47 }
 0x8af   :  { %8784 = vmatpush1.bf16.msra.mxu1 %v12096_v27  ;;  %v5542_v27 = vrot.slane %v13788_v56, %v5541_v43 }
 0x8b0   :  { %8956 = vmatpush1.bf16.msra.mxu0 %v12099_v30  ;;  %8785 = vmatprep.subr.bf16.mxu1 %v12104_v24  ;;  %v5538_v30 = vrot.slane %v13788_v56, %v13174_v48  ;;  %v5546_v24 = vrot.slane %v13788_v56, %v5545_v11 }
 0x8b1   :  { %8957 = vmatprep.subr.bf16.mxu0 %v12107_v3 }
 0x8b3   :  { %8786 = vmatpush1.bf16.msra.mxu1 %v12102_v2 }
 0x8b4   :  { %8958 = vmatpush1.bf16.msra.mxu0 %v12105_v38  ;;  %8787 = vmatprep.subr.bf16.mxu1 %v12110_v49 }
 0x8b5   :  { %8959 = vmatprep.subr.bf16.mxu0 %v12113_v18 }
 0x8b7   :  { %8788 = vmatpush1.bf16.msra.mxu1 %v12108_v6 }
 0x8b8   :  { %8960 = vmatpush1.bf16.msra.mxu0 %v12111_v39  ;;  %8789 = vmatprep.subr.bf16.mxu1 %v12116_v46 }
 0x8b9   :  { %8961 = vmatprep.subr.bf16.mxu0 %v12119_v35 }
 0x8bb   :  { %8790 = vmatpush1.bf16.msra.mxu1 %v12114_v42 }
 0x8bc   :  { %8962 = vmatpush1.bf16.msra.mxu0 %v12117_v52  ;;  %8791 = vmatprep.subr.bf16.mxu1 %v12122_v22 }
 0x8bd   :  { %8963 = vmatprep.subr.bf16.mxu0 %v12125_v0 }
 0x8bf   :  { %8792 = vmatpush1.bf16.msra.mxu1 %v12120_v23 }
 0x8c0   :  { %8964 = vmatpush1.bf16.msra.mxu0 %v12123_v57  ;;  %8793 = vmatprep.subr.bf16.mxu1 %v12128_v62 }
 0x8c1   :  { %8965 = vmatprep.subr.bf16.mxu0 %v12131_v16 }
 0x8c3   :  { %8794 = vmatpush1.bf16.msra.mxu1 %v12126_v61 }
 0x8c4   :  { %8966 = vmatpush1.bf16.msra.mxu0 %v12129_v12  ;;  %8795 = vmatprep.subr.bf16.mxu1 %v12134_v51 }
 0x8c5   :  { %8967 = vmatprep.subr.bf16.mxu0 %v12137_v28 }
 0x8c7   :  { %8796 = vmatpush1.bf16.msra.mxu1 %v12132_v1 }
 0x8c8   :  { %8968 = vmatpush1.bf16.msra.mxu0 %v12135_v50  ;;  %8797 = vmatprep.subr.bf16.mxu1 %v12140_v53 }
 0x8c9   :  { %8969 = vmatprep.subr.bf16.mxu0 %v12143_v29 }
 0x8cb   :  { %8798 = vmatpush1.bf16.msra.mxu1 %v12138_v5 }
 0x8cc   :  { %8970 = vmatpush1.bf16.msra.mxu0 %v12141_v63  ;;  %8799 = vmatprep.subr.bf16.mxu1 %v12146_v31 }
 0x8cd   :  { %8971 = vmatprep.subr.bf16.mxu0 %v12149_v10  ;;  %v12174_v10 = vld [vmem:[#allocation11 + $0x200] ss:$16 sps:$4 sm:$0xff]  }
 0x8cf   :  { %8800 = vmatpush1.bf16.msra.mxu1 %v12144_v8  ;;  %v12177_v8 = vld [vmem:[#allocation11 + $0x208] ss:$16 sps:$4 sm:$0xff]  }
 0x8d0   :  { %8972 = vmatpush1.bf16.msra.mxu0 %v12147_v54  ;;  %8801 = vmatprep.subr.bf16.mxu1 %v12152_v32  ;;  %v12182_v54 = vld [vmem:[#allocation11 + $0x224] ss:$16 sps:$4 sm:$0xff]   ;;  %v12185_v32 = vld [vmem:[#allocation11 + $0x22c] ss:$16 sps:$4 sm:$0xff]  }
 0x8d1   :  { %8973 = vmatprep.subr.bf16.mxu0 %v12155_v55  ;;  %v12180_v55 = vld [vmem:[#allocation11 + $0x220] ss:$16 sps:$4 sm:$0xff]  }
 0x8d3   :  { %8802 = vmatpush1.bf16.msra.mxu1 %v12150_v60  ;;  %v12183_v60 = vld [vmem:[#allocation11 + $0x228] ss:$16 sps:$4 sm:$0xff]  }
 0x8d4   :  { %8974 = vmatpush1.bf16.msra.mxu0 %v12153_v58  ;;  %8803 = vmatprep.subr.bf16.mxu1 %v12158_v36  ;;  %v12188_v58 = vld [vmem:[#allocation11 + $0x244] ss:$16 sps:$4 sm:$0xff]   ;;  %v12191_v36 = vld [vmem:[#allocation11 + $0x24c] ss:$16 sps:$4 sm:$0xff]  }
 0x8d5   :  { %8975 = vmatprep.subr.bf16.mxu0 %v12161_v20  ;;  %v12186_v20 = vld [vmem:[#allocation11 + $0x240] ss:$16 sps:$4 sm:$0xff]  }
 0x8d7   :  { %8804 = vmatpush1.bf16.msra.mxu1 %v12156_v7  ;;  %v12189_v7 = vld [vmem:[#allocation11 + $0x248] ss:$16 sps:$4 sm:$0xff]  }
 0x8d8   :  { %8976 = vmatpush1.bf16.msra.mxu0 %v12159_v4  ;;  %8805 = vmatprep.subr.bf16.mxu1 %v12164_v33  ;;  %v12194_v4 = vld [vmem:[#allocation11 + $0x264] ss:$16 sps:$4 sm:$0xff]   ;;  %v12197_v33 = vld [vmem:[#allocation11 + $0x26c] ss:$16 sps:$4 sm:$0xff]  }
 0x8d9   :  { %8977 = vmatprep.subr.bf16.mxu0 %v12167_v14  ;;  %v12192_v14 = vld [vmem:[#allocation11 + $0x260] ss:$16 sps:$4 sm:$0xff]  }
 0x8db   :  { %8806 = vmatpush1.bf16.msra.mxu1 %v12162_v34  ;;  %v12195_v34 = vld [vmem:[#allocation11 + $0x268] ss:$16 sps:$4 sm:$0xff]  }
 0x8dc   :  { %8978 = vmatpush1.bf16.msra.mxu0 %v12165_v21  ;;  %8807 = vmatprep.subr.bf16.mxu1 %v12170_v26  ;;  %v12200_v21 = vld [vmem:[#allocation11 + $0x284] ss:$16 sps:$4 sm:$0xff]   ;;  %v12203_v26 = vld [vmem:[#allocation11 + $0x28c] ss:$16 sps:$4 sm:$0xff]  }
 0x8dd   :  { %8979 = vmatprep.subr.bf16.mxu0 %v12173_v9  ;;  %v12198_v9 = vld [vmem:[#allocation11 + $0x280] ss:$16 sps:$4 sm:$0xff]  }
 0x8df   :  { %8808 = vmatpush1.bf16.msra.mxu1 %v12168_v25  ;;  %v12201_v25 = vld [vmem:[#allocation11 + $0x288] ss:$16 sps:$4 sm:$0xff]  }
 0x8e0   :  { %8980 = vmatpush1.bf16.msra.mxu0 %v12171_v59  ;;  %8820 = vmatprep.subr.bf16.mxu1 %v12176_v17  ;;  %v12206_v59 = vld [vmem:[#allocation11 + $0x2a4] ss:$16 sps:$4 sm:$0xff]   ;;  %v12209_v17 = vld [vmem:[#allocation11 + $0x2ac] ss:$16 sps:$4 sm:$0xff]  }
 0x8e1   :  { %8992 = vmatprep.subr.bf16.mxu0 %v12179_v37  ;;  %v12204_v37 = vld [vmem:[#allocation11 + $0x2a0] ss:$16 sps:$4 sm:$0xff]  }
 0x8f5   :  { %v6928_v3 = vpop.f32.mrb[72].mxu1  ;;  %v7014_v2 = vpop.f32.mrb[96].mxu0 }
 0x8f6   :  { %v11312_v38 = vadd.f32 %v6928_v3, %v5534_v19  ;;  %v11316_v49 = vadd.f32 %v7014_v2, %v5542_v27  ;;  %v6930_v18 = vpop.f32.mrb[73].mxu1  ;;  %v7016_v6 = vpop.f32.mrb[97].mxu0  ;;  %v12213_v3 = vld [vmem:[#allocation11 + $0x2c8] ss:$16 sps:$4 sm:$0xff]   ;;  %v12218_v2 = vld [vmem:[#allocation11 + $0x2e4] ss:$16 sps:$4 sm:$0xff]  }
 0x8f7   :  { %v11313_v39 = vadd.f32 %v6930_v18, %v5538_v30  ;;  %v11317_v46 = vadd.f32 %v7016_v6, %v5546_v24  ;;  %v6932_v35 = vpop.f32.mrb[74].mxu1  ;;  %v7018_v42 = vpop.f32.mrb[98].mxu0  ;;  %v12219_v18 = vld [vmem:[#allocation11 + $0x2e8] ss:$16 sps:$4 sm:$0xff]   ;;  %v12224_v6 = vld [vmem:[#allocation11 + $0x304] ss:$16 sps:$4 sm:$0xff]  }
 0x8f8   :  { %v11314_v52 = vadd.f32 %v6932_v35, %v5534_v19  ;;  %v11318_v22 = vadd.f32 %v7018_v42, %v5542_v27  ;;  %v6934_v0 = vpop.f32.mrb[75].mxu1  ;;  %v7020_v23 = vpop.f32.mrb[99].mxu0  ;;  %v7195_v16 = vmax.f32 %v11312_v38, 0.0  ;;  %v7197_v61 = vmax.f32 %v11316_v49, 0.0  ;;  %v12207_v19 = vld [vmem:[#allocation11 + $0x2a8] ss:$16 sps:$4 sm:$0xff]  }
 0x8f9   :  { %v11315_v57 = vadd.f32 %v6934_v0, %v5538_v30  ;;  %v11319_v62 = vadd.f32 %v7020_v23, %v5546_v24  ;;  %v7196_v28 = vmax.f32 %v11313_v39, 0.0  ;;  %v7198_v1 = vmax.f32 %v11317_v46, 0.0  ;;  %v12212_v27 = vld [vmem:[#allocation11 + $0x2c4] ss:$16 sps:$4 sm:$0xff]   ;;  %v12215_v30 = vld [vmem:[#allocation11 + $0x2cc] ss:$16 sps:$4 sm:$0xff]  }
 0x8fa   :  { %v7203_v12 = vmax.f32 %v11314_v52, 0.0  ;;  %v7205_v51 = vmax.f32 %v11318_v22, 0.0  ;;  %v12210_v24 = vld [vmem:[#allocation11 + $0x2c0] ss:$16 sps:$4 sm:$0xff]   ;;  %v12221_v38 = vld [vmem:[#allocation11 + $0x2ec] ss:$16 sps:$4 sm:$0xff]  }
 0x8fb   :  { %v7204_v50 = vmax.f32 %v11315_v57, 0.0  ;;  %v7206_v53 = vmax.f32 %v11319_v62, 0.0  ;;  %v12216_v49 = vld [vmem:[#allocation11 + $0x2e0] ss:$16 sps:$4 sm:$0xff]   ;;  %v12227_v39 = vld [vmem:[#allocation11 + $0x30c] ss:$16 sps:$4 sm:$0xff]  }
 0x8fc   :  { %v7211_v29 = vpack.c.bf16 %v7203_v12, %v7195_v16  ;;  %v13801_v5 = vpack.c.bf16 %v7205_v51, %v7197_v61  ;;  %v12222_v46 = vld [vmem:[#allocation11 + $0x300] ss:$16 sps:$4 sm:$0xff]   ;;  %v12225_v35 = vld [vmem:[#allocation11 + $0x308] ss:$16 sps:$4 sm:$0xff]   ;;  %v12230_v42 = vld [vmem:[#allocation11 + $0x324] ss:$16 sps:$4 sm:$0xff]  }
 0x8fd   :  { %v7212_v63 = vpack.c.bf16 %v7204_v50, %v7196_v28  ;;  %v7214_v31 = vpack.c.bf16 %v7206_v53, %v7198_v1  ;;  %v12233_v52 = vld [vmem:[#allocation11 + $0x32c] ss:$16 sps:$4 sm:$0xff]   ;;  %v12228_v22 = vld [vmem:[#allocation11 + $0x320] ss:$16 sps:$4 sm:$0xff]   ;;  %v12231_v0 = vld [vmem:[#allocation11 + $0x328] ss:$16 sps:$4 sm:$0xff]  }
 0x8fe   :  { %v12236_v23 = vld [vmem:[#allocation11 + $0x344] ss:$16 sps:$4 sm:$0xff]   ;;  %v12239_v57 = vld [vmem:[#allocation11 + $0x34c] ss:$16 sps:$4 sm:$0xff]   ;;  %v12234_v62 = vld [vmem:[#allocation11 + $0x340] ss:$16 sps:$4 sm:$0xff]  }
 0x8ff   :  { %8809 = vmatprep.mubr.bf16.mxu1 %v7212_v63  ;;  %8981 = vmatprep.mubr.bf16.mxu0 %v7212_v63  ;;  %v12237_v16 = vld [vmem:[#allocation11 + $0x348] ss:$16 sps:$4 sm:$0xff]   ;;  %v12242_v61 = vld [vmem:[#allocation11 + $0x364] ss:$16 sps:$4 sm:$0xff]   ;;  %v12245_v12 = vld [vmem:[#allocation11 + $0x36c] ss:$16 sps:$4 sm:$0xff]  }
 0x900   :  { %8810 = vmatmul.mubr.bf16.vlgmr.msra.gmra.mrb[80].mxu1 %v7211_v29  ;;  %8982 = vmatmul.mubr.bf16.vlgmr.msra.gmra.mrb[104].mxu0 %v7211_v29  ;;  %v12240_v51 = vld [vmem:[#allocation11 + $0x360] ss:$16 sps:$4 sm:$0xff]   ;;  %v12243_v28 = vld [vmem:[#allocation11 + $0x368] ss:$16 sps:$4 sm:$0xff]   ;;  %v12248_v1 = vld [vmem:[#allocation11 + $0x384] ss:$16 sps:$4 sm:$0xff]  }
 0x901   :  { %8821 = vmatpush1.bf16.msra.mxu1 %v12174_v10  ;;  %8993 = vmatpush1.bf16.msra.mxu0 %v12177_v8  ;;  %v12251_v50 = vld [vmem:[#allocation11 + $0x38c] ss:$16 sps:$4 sm:$0xff]   ;;  %v12246_v53 = vld [vmem:[#allocation11 + $0x380] ss:$16 sps:$4 sm:$0xff]   ;;  %v12249_v29 = vld [vmem:[#allocation11 + $0x388] ss:$16 sps:$4 sm:$0xff]  }
 0x902   :  { %8852 = vmatprep.mubr.bf16.mxu1 %v7214_v31  ;;  %9024 = vmatprep.mubr.bf16.mxu0 %v7214_v31  ;;  %v12254_v63 = vld [vmem:[#allocation11 + $0x3a4] ss:$16 sps:$4 sm:$0xff]   ;;  %v12257_v31 = vld [vmem:[#allocation11 + $0x3ac] ss:$16 sps:$4 sm:$0xff]   ;;  %v12252_v10 = vld [vmem:[#allocation11 + $0x3a0] ss:$16 sps:$4 sm:$0xff]  }
 0x903   :  { %8822 = vmatprep.subr.bf16.mxu1 %v12182_v54  ;;  %8994 = vmatprep.subr.bf16.mxu0 %v12185_v32  ;;  %v12255_v8 = vld [vmem:[#allocation11 + $0x3a8] ss:$16 sps:$4 sm:$0xff]   ;;  %v12260_v54 = vld [vmem:[#allocation11 + $0x3c4] ss:$16 sps:$4 sm:$0xff]   ;;  %v12263_v32 = vld [vmem:[#allocation11 + $0x3cc] ss:$16 sps:$4 sm:$0xff]  }
 0x905   :  { %8823 = vmatpush1.bf16.msra.mxu1 %v12180_v55  ;;  %8995 = vmatpush1.bf16.msra.mxu0 %v12183_v60  ;;  %v12258_v55 = vld [vmem:[#allocation11 + $0x3c0] ss:$16 sps:$4 sm:$0xff]   ;;  %v12261_v60 = vld [vmem:[#allocation11 + $0x3c8] ss:$16 sps:$4 sm:$0xff]  }
 0x906   :  { %8824 = vmatprep.subr.bf16.mxu1 %v12188_v58  ;;  %8996 = vmatprep.subr.bf16.mxu0 %v12191_v36  ;;  %v12266_v58 = vld [vmem:[#allocation11 + $0x3e4] ss:$16 sps:$4 sm:$0xff]   ;;  %v12269_v36 = vld [vmem:[#allocation11 + $0x3ec] ss:$16 sps:$4 sm:$0xff]  }
 0x909   :  { %8825 = vmatpush1.bf16.msra.mxu1 %v12186_v20  ;;  %8997 = vmatpush1.bf16.msra.mxu0 %v12189_v7  ;;  %v12264_v20 = vld [vmem:[#allocation11 + $0x3e0] ss:$16 sps:$4 sm:$0xff]   ;;  %v12267_v7 = vld [vmem:[#allocation11 + $0x3e8] ss:$16 sps:$4 sm:$0xff]  }
 0x90a   :  { %8826 = vmatprep.subr.bf16.mxu1 %v12194_v4  ;;  %8998 = vmatprep.subr.bf16.mxu0 %v12197_v33  ;;  %v12272_v4 = vld [vmem:[#allocation11 + $0x404] ss:$16 sps:$4 sm:$0xff]   ;;  %v12275_v33 = vld [vmem:[#allocation11 + $0x40c] ss:$16 sps:$4 sm:$0xff]  }
 0x90d   :  { %8827 = vmatpush1.bf16.msra.mxu1 %v12192_v14  ;;  %8999 = vmatpush1.bf16.msra.mxu0 %v12195_v34  ;;  %v12270_v14 = vld [vmem:[#allocation11 + $0x400] ss:$16 sps:$4 sm:$0xff]   ;;  %v12273_v34 = vld [vmem:[#allocation11 + $0x408] ss:$16 sps:$4 sm:$0xff]  }
 0x90e   :  { %8828 = vmatprep.subr.bf16.mxu1 %v12200_v21  ;;  %9000 = vmatprep.subr.bf16.mxu0 %v12203_v26  ;;  %v12278_v21 = vld [vmem:[#allocation11 + $0x424] ss:$16 sps:$4 sm:$0xff]   ;;  %v12281_v26 = vld [vmem:[#allocation11 + $0x42c] ss:$16 sps:$4 sm:$0xff]  }
 0x911   :  { %8829 = vmatpush1.bf16.msra.mxu1 %v12198_v9  ;;  %9001 = vmatpush1.bf16.msra.mxu0 %v12201_v25  ;;  %v12276_v9 = vld [vmem:[#allocation11 + $0x420] ss:$16 sps:$4 sm:$0xff]   ;;  %v12279_v25 = vld [vmem:[#allocation11 + $0x428] ss:$16 sps:$4 sm:$0xff]  }
 0x912   :  { %8830 = vmatprep.subr.bf16.mxu1 %v12206_v59  ;;  %9002 = vmatprep.subr.bf16.mxu0 %v12209_v17  ;;  %v12284_v59 = vld [vmem:[#allocation11 + $0x444] ss:$16 sps:$4 sm:$0xff]   ;;  %v12287_v17 = vld [vmem:[#allocation11 + $0x44c] ss:$16 sps:$4 sm:$0xff]  }
 0x915   :  { %8831 = vmatpush1.bf16.msra.mxu1 %v12204_v37  ;;  %9003 = vmatpush1.bf16.msra.mxu0 %v12207_v19  ;;  %v12282_v37 = vld [vmem:[#allocation11 + $0x440] ss:$16 sps:$4 sm:$0xff]   ;;  %v12285_v19 = vld [vmem:[#allocation11 + $0x448] ss:$16 sps:$4 sm:$0xff]  }
 0x916   :  { %8832 = vmatprep.subr.bf16.mxu1 %v12212_v27  ;;  %9004 = vmatprep.subr.bf16.mxu0 %v12215_v30  ;;  %v12290_v27 = vld [vmem:[#allocation11 + $0x464] ss:$16 sps:$4 sm:$0xff]   ;;  %v12293_v30 = vld [vmem:[#allocation11 + $0x46c] ss:$16 sps:$4 sm:$0xff]  }
 0x919   :  { %8833 = vmatpush1.bf16.msra.mxu1 %v12210_v24  ;;  %9005 = vmatpush1.bf16.msra.mxu0 %v12213_v3  ;;  %v12288_v24 = vld [vmem:[#allocation11 + $0x460] ss:$16 sps:$4 sm:$0xff]   ;;  %v12296_v3 = vld [vmem:[#allocation11 + $0x484] ss:$16 sps:$4 sm:$0xff]  }
 0x91a   :  { %8834 = vmatprep.subr.bf16.mxu1 %v12218_v2  ;;  %9006 = vmatprep.subr.bf16.mxu0 %v12221_v38  ;;  %v12299_v2 = vld [vmem:[#allocation11 + $0x48c] ss:$16 sps:$4 sm:$0xff]   ;;  %v12294_v38 = vld [vmem:[#allocation11 + $0x480] ss:$16 sps:$4 sm:$0xff]  }
 0x91d   :  { %8835 = vmatpush1.bf16.msra.mxu1 %v12216_v49  ;;  %9007 = vmatpush1.bf16.msra.mxu0 %v12219_v18  ;;  %v12297_v49 = vld [vmem:[#allocation11 + $0x488] ss:$16 sps:$4 sm:$0xff]   ;;  %v12302_v18 = vld [vmem:[#allocation11 + $0x4a4] ss:$16 sps:$4 sm:$0xff]  }
 0x91e   :  { %8836 = vmatprep.subr.bf16.mxu1 %v12224_v6  ;;  %9008 = vmatprep.subr.bf16.mxu0 %v12227_v39  ;;  %v12305_v6 = vld [vmem:[#allocation11 + $0x4ac] ss:$16 sps:$4 sm:$0xff]   ;;  %v12300_v39 = vld [vmem:[#allocation11 + $0x4a0] ss:$16 sps:$4 sm:$0xff]  }
 0x921   :  { %8837 = vmatpush1.bf16.msra.mxu1 %v12222_v46  ;;  %9009 = vmatpush1.bf16.msra.mxu0 %v12225_v35  ;;  %v12303_v46 = vld [vmem:[#allocation11 + $0x4a8] ss:$16 sps:$4 sm:$0xff]   ;;  %v12308_v35 = vld [vmem:[#allocation11 + $0x4c4] ss:$16 sps:$4 sm:$0xff]  }
 0x922   :  { %8838 = vmatprep.subr.bf16.mxu1 %v12230_v42  ;;  %9010 = vmatprep.subr.bf16.mxu0 %v12233_v52  ;;  %v12311_v42 = vld [vmem:[#allocation11 + $0x4cc] ss:$16 sps:$4 sm:$0xff]   ;;  %v12306_v52 = vld [vmem:[#allocation11 + $0x4c0] ss:$16 sps:$4 sm:$0xff]  }
 0x925   :  { %8839 = vmatpush1.bf16.msra.mxu1 %v12228_v22  ;;  %9011 = vmatpush1.bf16.msra.mxu0 %v12231_v0  ;;  %v12309_v22 = vld [vmem:[#allocation11 + $0x4c8] ss:$16 sps:$4 sm:$0xff]   ;;  %v12314_v0 = vld [vmem:[#allocation11 + $0x4e4] ss:$16 sps:$4 sm:$0xff]  }
 0x926   :  { %8840 = vmatprep.subr.bf16.mxu1 %v12236_v23  ;;  %9012 = vmatprep.subr.bf16.mxu0 %v12239_v57  ;;  %v12317_v23 = vld [vmem:[#allocation11 + $0x4ec] ss:$16 sps:$4 sm:$0xff]   ;;  %v12312_v57 = vld [vmem:[#allocation11 + $0x4e0] ss:$16 sps:$4 sm:$0xff]  }
 0x929   :  { %8841 = vmatpush1.bf16.msra.mxu1 %v12234_v62  ;;  %9013 = vmatpush1.bf16.msra.mxu0 %v12237_v16  ;;  %v12315_v62 = vld [vmem:[#allocation11 + $0x4e8] ss:$16 sps:$4 sm:$0xff]   ;;  %v12320_v16 = vld [vmem:[#allocation11 + $0x504] ss:$16 sps:$4 sm:$0xff]  }
 0x92a   :  { %8842 = vmatprep.subr.bf16.mxu1 %v12242_v61  ;;  %9014 = vmatprep.subr.bf16.mxu0 %v12245_v12  ;;  %v12323_v61 = vld [vmem:[#allocation11 + $0x50c] ss:$16 sps:$4 sm:$0xff]   ;;  %v12318_v12 = vld [vmem:[#allocation11 + $0x500] ss:$16 sps:$4 sm:$0xff]  }
 0x92d   :  { %8843 = vmatpush1.bf16.msra.mxu1 %v12240_v51  ;;  %9015 = vmatpush1.bf16.msra.mxu0 %v12243_v28  ;;  %v12321_v51 = vld [vmem:[#allocation11 + $0x508] ss:$16 sps:$4 sm:$0xff]   ;;  %v12326_v28 = vld [vmem:[#allocation11 + $0x524] ss:$16 sps:$4 sm:$0xff]  }
 0x92e   :  { %8844 = vmatprep.subr.bf16.mxu1 %v12248_v1  ;;  %9016 = vmatprep.subr.bf16.mxu0 %v12251_v50  ;;  %v12329_v1 = vld [vmem:[#allocation11 + $0x52c] ss:$16 sps:$4 sm:$0xff]   ;;  %v12324_v50 = vld [vmem:[#allocation11 + $0x520] ss:$16 sps:$4 sm:$0xff]  }
 0x931   :  { %8845 = vmatpush1.bf16.msra.mxu1 %v12246_v53  ;;  %9017 = vmatpush1.bf16.msra.mxu0 %v12249_v29  ;;  %v12327_v53 = vld [vmem:[#allocation11 + $0x528] ss:$16 sps:$4 sm:$0xff]   ;;  %v12332_v29 = vld [vmem:[#allocation11 + $0x544] ss:$16 sps:$4 sm:$0xff]  }
 0x932   :  { %8846 = vmatprep.subr.bf16.mxu1 %v12254_v63  ;;  %9018 = vmatprep.subr.bf16.mxu0 %v12257_v31  ;;  %v12335_v63 = vld [vmem:[#allocation11 + $0x54c] ss:$16 sps:$4 sm:$0xff]   ;;  %v12330_v31 = vld [vmem:[#allocation11 + $0x540] ss:$16 sps:$4 sm:$0xff]  }
 0x935   :  { %8847 = vmatpush1.bf16.msra.mxu1 %v12252_v10  ;;  %9019 = vmatpush1.bf16.msra.mxu0 %v12255_v8  ;;  %v12333_v10 = vld [vmem:[#allocation11 + $0x548] ss:$16 sps:$4 sm:$0xff]   ;;  %v12338_v8 = vld [vmem:[#allocation11 + $0x564] ss:$16 sps:$4 sm:$0xff]  }
 0x936   :  { %8848 = vmatprep.subr.bf16.mxu1 %v12260_v54  ;;  %9020 = vmatprep.subr.bf16.mxu0 %v12263_v32  ;;  %v12341_v54 = vld [vmem:[#allocation11 + $0x56c] ss:$16 sps:$4 sm:$0xff]   ;;  %v12336_v32 = vld [vmem:[#allocation11 + $0x560] ss:$16 sps:$4 sm:$0xff]  }
 0x939   :  { %8849 = vmatpush1.bf16.msra.mxu1 %v12258_v55  ;;  %9021 = vmatpush1.bf16.msra.mxu0 %v12261_v60  ;;  %v12339_v55 = vld [vmem:[#allocation11 + $0x568] ss:$16 sps:$4 sm:$0xff]   ;;  %v12344_v60 = vld [vmem:[#allocation11 + $0x584] ss:$16 sps:$4 sm:$0xff]  }
 0x93a   :  { %8850 = vmatprep.subr.bf16.mxu1 %v12266_v58  ;;  %9022 = vmatprep.subr.bf16.mxu0 %v12269_v36  ;;  %v12347_v58 = vld [vmem:[#allocation11 + $0x58c] ss:$16 sps:$4 sm:$0xff]   ;;  %v12342_v36 = vld [vmem:[#allocation11 + $0x580] ss:$16 sps:$4 sm:$0xff]  }
 0x93d   :  { %8851 = vmatpush1.bf16.msra.mxu1 %v12264_v20  ;;  %9023 = vmatpush1.bf16.msra.mxu0 %v12267_v7  ;;  %v12345_v20 = vld [vmem:[#allocation11 + $0x588] ss:$16 sps:$4 sm:$0xff]   ;;  %v12350_v7 = vld [vmem:[#allocation11 + $0x5a4] ss:$16 sps:$4 sm:$0xff]  }
 0x93e   :  { %8863 = vmatprep.subr.bf16.mxu1 %v12272_v4  ;;  %9035 = vmatprep.subr.bf16.mxu0 %v12275_v33  ;;  %v12353_v4 = vld [vmem:[#allocation11 + $0x5ac] ss:$16 sps:$4 sm:$0xff]   ;;  %v5549_v33 = vsub.s32 4, %v13165_v45 }
 0x940   :  { %8853 = vmatmul.mubr.bf16.vlgmr.msra.gmra.mrb[80].mxu1 %v13801_v5  ;;  %9025 = vmatmul.mubr.bf16.vlgmr.msra.gmra.mrb[104].mxu0 %v13801_v5  ;;  %v12291_v5 = vld [vmem:[#allocation11 + $0x468] ss:$16 sps:$4 sm:$0xff]  }
 0x941   :  { %8864 = vmatpush1.bf16.msra.mxu1 %v12270_v14  ;;  %9036 = vmatpush1.bf16.msra.mxu0 %v12273_v34  ;;  %v5557_v14 = vsub.s32 6, %v13165_v45  ;;  %v5553_v34 = vsub.s32 5, %v13165_v45 }
 0x942   :  { %8865 = vmatprep.subr.bf16.mxu1 %v12278_v21  ;;  %9037 = vmatprep.subr.bf16.mxu0 %v12281_v26  ;;  %v5561_v21 = vsub.s32 7, %v13165_v45  ;;  %v12348_v26 = vld [vmem:[#allocation11 + $0x5a0] ss:$16 sps:$4 sm:$0xff]  }
 0x945   :  { %8866 = vmatpush1.bf16.msra.mxu1 %v12276_v9  ;;  %9038 = vmatpush1.bf16.msra.mxu0 %v12279_v25  ;;  %v12351_v9 = vld [vmem:[#allocation11 + $0x5a8] ss:$16 sps:$4 sm:$0xff]   ;;  %v5550_v25 = vrot.slane %v13788_v56, %v5549_v33  ;;  %v12380_v33 = vld [vmem:[#allocation11 + $0x644] ss:$16 sps:$4 sm:$0xff]  }
 0x946   :  { %8867 = vmatprep.subr.bf16.mxu1 %v12284_v59  ;;  %9039 = vmatprep.subr.bf16.mxu0 %v12287_v17  ;;  %v12356_v59 = vld [vmem:[#allocation11 + $0x5c4] ss:$16 sps:$4 sm:$0xff]   ;;  %v12359_v17 = vld [vmem:[#allocation11 + $0x5cc] ss:$16 sps:$4 sm:$0xff]  }
 0x949   :  { %8868 = vmatpush1.bf16.msra.mxu1 %v12282_v37  ;;  %9040 = vmatpush1.bf16.msra.mxu0 %v12285_v19  ;;  %v5558_v37 = vrot.slane %v13788_v56, %v5557_v14  ;;  %v5554_v19 = vrot.slane %v13788_v56, %v5553_v34  ;;  %v12383_v14 = vld [vmem:[#allocation11 + $0x64c] ss:$16 sps:$4 sm:$0xff]   ;;  %v12378_v34 = vld [vmem:[#allocation11 + $0x640] ss:$16 sps:$4 sm:$0xff]  }
 0x94a   :  { %8869 = vmatprep.subr.bf16.mxu1 %v12290_v27  ;;  %9041 = vmatprep.subr.bf16.mxu0 %v12293_v30  ;;  %v5562_v27 = vrot.slane %v13788_v56, %v5561_v21  ;;  %v12381_v21 = vld [vmem:[#allocation11 + $0x648] ss:$16 sps:$4 sm:$0xff]  }
 0x94d   :  { %8870 = vmatpush1.bf16.msra.mxu1 %v12288_v24  ;;  %9042 = vmatpush1.bf16.msra.mxu0 %v12291_v5  ;;  %v12354_v24 = vld [vmem:[#allocation11 + $0x5c0] ss:$16 sps:$4 sm:$0xff]   ;;  %v12357_v5 = vld [vmem:[#allocation11 + $0x5c8] ss:$16 sps:$4 sm:$0xff]  }
 0x94e   :  { %8871 = vmatprep.subr.bf16.mxu1 %v12296_v3  ;;  %9043 = vmatprep.subr.bf16.mxu0 %v12299_v2 }
 0x951   :  { %8872 = vmatpush1.bf16.msra.mxu1 %v12294_v38  ;;  %9044 = vmatpush1.bf16.msra.mxu0 %v12297_v49  ;;  %v12362_v49 = vld [vmem:[#allocation11 + $0x5e4] ss:$16 sps:$4 sm:$0xff]  }
 0x952   :  { %8873 = vmatprep.subr.bf16.mxu1 %v12302_v18  ;;  %9045 = vmatprep.subr.bf16.mxu0 %v12305_v6  ;;  %v12365_v18 = vld [vmem:[#allocation11 + $0x5ec] ss:$16 sps:$4 sm:$0xff]  }
 0x955   :  { %8874 = vmatpush1.bf16.msra.mxu1 %v12300_v39  ;;  %9046 = vmatpush1.bf16.msra.mxu0 %v12303_v46 }
 0x956   :  { %8875 = vmatprep.subr.bf16.mxu1 %v12308_v35  ;;  %9047 = vmatprep.subr.bf16.mxu0 %v12311_v42 }
 0x959   :  { %8876 = vmatpush1.bf16.msra.mxu1 %v12306_v52  ;;  %9048 = vmatpush1.bf16.msra.mxu0 %v12309_v22 }
 0x95a   :  { %8877 = vmatprep.subr.bf16.mxu1 %v12314_v0  ;;  %9049 = vmatprep.subr.bf16.mxu0 %v12317_v23 }
 0x95d   :  { %8878 = vmatpush1.bf16.msra.mxu1 %v12312_v57  ;;  %9050 = vmatpush1.bf16.msra.mxu0 %v12315_v62  ;;  %v12360_v62 = vld [vmem:[#allocation11 + $0x5e0] ss:$16 sps:$4 sm:$0xff]  }
 0x95e   :  { %8879 = vmatprep.subr.bf16.mxu1 %v12320_v16  ;;  %9051 = vmatprep.subr.bf16.mxu0 %v12323_v61  ;;  %v12363_v16 = vld [vmem:[#allocation11 + $0x5e8] ss:$16 sps:$4 sm:$0xff]  }
 0x961   :  { %8880 = vmatpush1.bf16.msra.mxu1 %v12318_v12  ;;  %9052 = vmatpush1.bf16.msra.mxu0 %v12321_v51 }
 0x962   :  { %8881 = vmatprep.subr.bf16.mxu1 %v12326_v28  ;;  %9053 = vmatprep.subr.bf16.mxu0 %v12329_v1  ;;  %v12368_v28 = vld [vmem:[#allocation11 + $0x604] ss:$16 sps:$4 sm:$0xff]   ;;  %v12371_v1 = vld [vmem:[#allocation11 + $0x60c] ss:$16 sps:$4 sm:$0xff]  }
 0x965   :  { %8882 = vmatpush1.bf16.msra.mxu1 %v12324_v50  ;;  %9054 = vmatpush1.bf16.msra.mxu0 %v12327_v53 }
 0x966   :  { %8883 = vmatprep.subr.bf16.mxu1 %v12332_v29  ;;  %9055 = vmatprep.subr.bf16.mxu0 %v12335_v63 }
 0x969   :  { %8884 = vmatpush1.bf16.msra.mxu1 %v12330_v31  ;;  %9056 = vmatpush1.bf16.msra.mxu0 %v12333_v10 }
 0x96a   :  { %8885 = vmatprep.subr.bf16.mxu1 %v12338_v8  ;;  %9057 = vmatprep.subr.bf16.mxu0 %v12341_v54 }
 0x96d   :  { %8886 = vmatpush1.bf16.msra.mxu1 %v12336_v32  ;;  %9058 = vmatpush1.bf16.msra.mxu0 %v12339_v55  ;;  %v12366_v55 = vld [vmem:[#allocation11 + $0x600] ss:$16 sps:$4 sm:$0xff]  }
 0x96e   :  { %8887 = vmatprep.subr.bf16.mxu1 %v12344_v60  ;;  %9059 = vmatprep.subr.bf16.mxu0 %v12347_v58  ;;  %v12369_v58 = vld [vmem:[#allocation11 + $0x608] ss:$16 sps:$4 sm:$0xff]  }
 0x971   :  { %8888 = vmatpush1.bf16.msra.mxu1 %v12342_v36  ;;  %9060 = vmatpush1.bf16.msra.mxu0 %v12345_v20  ;;  %v12374_v36 = vld [vmem:[#allocation11 + $0x624] ss:$16 sps:$4 sm:$0xff]   ;;  %v12377_v20 = vld [vmem:[#allocation11 + $0x62c] ss:$16 sps:$4 sm:$0xff]  }
 0x972   :  { %8889 = vmatprep.subr.bf16.mxu1 %v12350_v7  ;;  %9061 = vmatprep.subr.bf16.mxu0 %v12353_v4  ;;  %v12372_v7 = vld [vmem:[#allocation11 + $0x620] ss:$16 sps:$4 sm:$0xff]   ;;  %v12375_v4 = vld [vmem:[#allocation11 + $0x628] ss:$16 sps:$4 sm:$0xff]  }
 0x975   :  { %v7100_v30 = vpop.f32.mrb[76].mxu1  ;;  %8890 = vmatpush1.bf16.msra.mxu1 %v12348_v26  ;;  %9062 = vmatpush1.bf16.msra.mxu0 %v12351_v9  ;;  %v12386_v26 = vld [vmem:[#allocation11 + $0x664] ss:$16 sps:$4 sm:$0xff]   ;;  %v12389_v9 = vld [vmem:[#allocation11 + $0x66c] ss:$16 sps:$4 sm:$0xff]  }
 0x976   :  { %v11320_v3 = vadd.f32 %v7100_v30, %v5550_v25  ;;  %v7186_v2 = vpop.f32.mrb[100].mxu0  ;;  %v7102_v38 = vpop.f32.mrb[77].mxu1  ;;  %8891 = vmatprep.subr.bf16.mxu1 %v12356_v59  ;;  %9063 = vmatprep.subr.bf16.mxu0 %v12359_v17  ;;  %v12387_v59 = vld [vmem:[#allocation11 + $0x668] ss:$16 sps:$4 sm:$0xff]   ;;  %v12392_v17 = vld [vmem:[#allocation11 + $0x684] ss:$16 sps:$4 sm:$0xff]  }
 0x977   :  { %v11324_v6 = vadd.f32 %v7186_v2, %v5558_v37  ;;  %v11321_v39 = vadd.f32 %v7102_v38, %v5554_v19  ;;  %v7188_v46 = vpop.f32.mrb[101].mxu0  ;;  %v7104_v35 = vpop.f32.mrb[78].mxu1  ;;  %v12398_v30 = vld [vmem:[#allocation11 + $0x6a4] ss:$16 sps:$4 sm:$0xff]   ;;  %v12407_v38 = vld [vmem:[#allocation11 + $0x6cc] ss:$16 sps:$4 sm:$0xff]  }
 0x978   :  { %v11325_v42 = vadd.f32 %v7188_v46, %v5562_v27  ;;  %v11322_v52 = vadd.f32 %v7104_v35, %v5550_v25  ;;  %v7190_v22 = vpop.f32.mrb[102].mxu0  ;;  %v7106_v56 = vpop.f32.mrb[79].mxu1  ;;  %v7199_v61 = vmax.f32 %v11320_v3, 0.0  ;;  %v12384_v25 = vld [vmem:[#allocation11 + $0x660] ss:$16 sps:$4 sm:$0xff]  }
 0x979   :  { %v11326_v0 = vadd.f32 %v7190_v22, %v5558_v37  ;;  %v11323_v23 = vadd.f32 %v7106_v56, %v5554_v19  ;;  %v7192_v57 = vpop.f32.mrb[103].mxu0  ;;  %8892 = vmatpush1.bf16.msra.mxu1 %v12354_v24  ;;  %9064 = vmatpush1.bf16.msra.mxu0 %v12357_v5  ;;  %v7201_v50 = vmax.f32 %v11324_v6, 0.0  ;;  %v7200_v53 = vmax.f32 %v11321_v39, 0.0  ;;  %v12395_v37 = vld [vmem:[#allocation11 + $0x68c] ss:$16 sps:$4 sm:$0xff]  }
 0x97a   :  { %v7207_v12 = vmax.f32 %v11322_v52, 0.0  ;;  %v11327_v51 = vadd.f32 %v7192_v57, %v5562_v27  ;;  %8893 = vmatprep.subr.bf16.mxu1 %v12362_v49  ;;  %9065 = vmatprep.subr.bf16.mxu0 %v12365_v18  ;;  %v7202_v31 = vmax.f32 %v11325_v42, 0.0  ;;  %v12390_v19 = vld [vmem:[#allocation11 + $0x680] ss:$16 sps:$4 sm:$0xff]   ;;  %v12393_v27 = vld [vmem:[#allocation11 + $0x688] ss:$16 sps:$4 sm:$0xff]  }
 0x97b   :  { %v7209_v29 = vmax.f32 %v11326_v0, 0.0  ;;  %v7208_v63 = vmax.f32 %v11323_v23, 0.0  ;;  %v12401_v24 = vld [vmem:[#allocation11 + $0x6ac] ss:$16 sps:$4 sm:$0xff]   ;;  %v12396_v5 = vld [vmem:[#allocation11 + $0x6a0] ss:$16 sps:$4 sm:$0xff]  }
 0x97c   :  { %v7215_v10 = vpack.c.bf16 %v7207_v12, %v7199_v61  ;;  %v7210_v8 = vmax.f32 %v11327_v51, 0.0  ;;  %v12399_v3 = vld [vmem:[#allocation11 + $0x6a8] ss:$16 sps:$4 sm:$0xff]   ;;  %v12404_v2 = vld [vmem:[#allocation11 + $0x6c4] ss:$16 sps:$4 sm:$0xff]  }
 0x97d   :  { %v13813_v54 = vpack.c.bf16 %v7209_v29, %v7201_v50  ;;  %v7216_v32 = vpack.c.bf16 %v7208_v63, %v7200_v53  ;;  %8894 = vmatpush1.bf16.msra.mxu1 %v12360_v62  ;;  %9066 = vmatpush1.bf16.msra.mxu0 %v12363_v16  ;;  %v12402_v49 = vld [vmem:[#allocation11 + $0x6c0] ss:$16 sps:$4 sm:$0xff]   ;;  %v12405_v18 = vld [vmem:[#allocation11 + $0x6c8] ss:$16 sps:$4 sm:$0xff]   ;;  %v12410_v6 = vld [vmem:[#allocation11 + $0x6e4] ss:$16 sps:$4 sm:$0xff]  }
 0x97e   :  { %v7218_v60 = vpack.c.bf16 %v7210_v8, %v7202_v31  ;;  %8906 = vmatprep.subr.bf16.mxu1 %v12368_v28  ;;  %9078 = vmatprep.subr.bf16.mxu0 %v12371_v1  ;;  %v12413_v39 = vld [vmem:[#allocation11 + $0x6ec] ss:$16 sps:$4 sm:$0xff]   ;;  %v12408_v46 = vld [vmem:[#allocation11 + $0x6e0] ss:$16 sps:$4 sm:$0xff]   ;;  %v12411_v35 = vld [vmem:[#allocation11 + $0x6e8] ss:$16 sps:$4 sm:$0xff]  }
 0x97f   :  { %8895 = vmatprep.mubr.bf16.mxu1 %v7216_v32  ;;  %9067 = vmatprep.mubr.bf16.mxu0 %v7216_v32  ;;  %v12416_v42 = vld [vmem:[#allocation11 + $0x704] ss:$16 sps:$4 sm:$0xff]   ;;  %v12419_v52 = vld [vmem:[#allocation11 + $0x70c] ss:$16 sps:$4 sm:$0xff]   ;;  %v12414_v22 = vld [vmem:[#allocation11 + $0x700] ss:$16 sps:$4 sm:$0xff]  }
 0x980   :  { %8896 = vmatmul.mubr.bf16.vlgmr.msra.gmra.mrb[80].mxu1 %v7215_v10  ;;  %9068 = vmatmul.mubr.bf16.vlgmr.msra.gmra.mrb[104].mxu0 %v7215_v10  ;;  %v12417_v56 = vld [vmem:[#allocation11 + $0x708] ss:$16 sps:$4 sm:$0xff]   ;;  %v12422_v0 = vld [vmem:[#allocation11 + $0x724] ss:$16 sps:$4 sm:$0xff]   ;;  %v12425_v23 = vld [vmem:[#allocation11 + $0x72c] ss:$16 sps:$4 sm:$0xff]  }
 0x981   :  { %8907 = vmatpush1.bf16.msra.mxu1 %v12366_v55  ;;  %8938 = vmatprep.mubr.bf16.mxu1 %v7218_v60  ;;  %v12420_v57 = vld [vmem:[#allocation11 + $0x720] ss:$16 sps:$4 sm:$0xff]   ;;  %v12423_v62 = vld [vmem:[#allocation11 + $0x728] ss:$16 sps:$4 sm:$0xff]   ;;  %v12428_v16 = vld [vmem:[#allocation11 + $0x744] ss:$16 sps:$4 sm:$0xff]  }
 0x982   :  { %9079 = vmatpush1.bf16.msra.mxu0 %v12369_v58  ;;  %9110 = vmatprep.mubr.bf16.mxu0 %v7218_v60  ;;  %v12431_v61 = vld [vmem:[#allocation11 + $0x74c] ss:$16 sps:$4 sm:$0xff]   ;;  %v12426_v12 = vld [vmem:[#allocation11 + $0x740] ss:$16 sps:$4 sm:$0xff]   ;;  %v12429_v51 = vld [vmem:[#allocation11 + $0x748] ss:$16 sps:$4 sm:$0xff]  }
 0x983   :  { %8908 = vmatprep.subr.bf16.mxu1 %v12374_v36  ;;  %9080 = vmatprep.subr.bf16.mxu0 %v12377_v20  ;;  %v12434_v28 = vld [vmem:[#allocation11 + $0x764] ss:$16 sps:$4 sm:$0xff]   ;;  %v12437_v1 = vld [vmem:[#allocation11 + $0x76c] ss:$16 sps:$4 sm:$0xff]   ;;  %v12432_v50 = vld [vmem:[#allocation11 + $0x760] ss:$16 sps:$4 sm:$0xff]  }
 0x984   :  { %v12435_v53 = vld [vmem:[#allocation11 + $0x768] ss:$16 sps:$4 sm:$0xff]   ;;  %v12440_v29 = vld [vmem:[#allocation11 + $0x784] ss:$16 sps:$4 sm:$0xff]   ;;  %v12443_v63 = vld [vmem:[#allocation11 + $0x78c] ss:$16 sps:$4 sm:$0xff]  }
 0x985   :  { %8909 = vmatpush1.bf16.msra.mxu1 %v12372_v7  ;;  %v12438_v31 = vld [vmem:[#allocation11 + $0x780] ss:$16 sps:$4 sm:$0xff]   ;;  %v12441_v10 = vld [vmem:[#allocation11 + $0x788] ss:$16 sps:$4 sm:$0xff]   ;;  %v12446_v8 = vld [vmem:[#allocation11 + $0x7a4] ss:$16 sps:$4 sm:$0xff]  }
 0x986   :  { %9081 = vmatpush1.bf16.msra.mxu0 %v12375_v4  ;;  %8910 = vmatprep.subr.bf16.mxu1 %v12380_v33  ;;  %v12449_v32 = vld [vmem:[#allocation11 + $0x7ac] ss:$16 sps:$4 sm:$0xff]   ;;  %v12444_v55 = vld [vmem:[#allocation11 + $0x7a0] ss:$16 sps:$4 sm:$0xff]   ;;  %v12447_v60 = vld [vmem:[#allocation11 + $0x7a8] ss:$16 sps:$4 sm:$0xff]  }
 0x987   :  { %9082 = vmatprep.subr.bf16.mxu0 %v12383_v14  ;;  %v12452_v58 = vld [vmem:[#allocation11 + $0x7c4] ss:$16 sps:$4 sm:$0xff]   ;;  %v12455_v36 = vld [vmem:[#allocation11 + $0x7cc] ss:$16 sps:$4 sm:$0xff]   ;;  %v13818_v20 = vld [vmem:[%s13873_s7] sm:$0x3] }
 0x988   :  { %v12450_v7 = vld [vmem:[#allocation11 + $0x7c0] ss:$16 sps:$4 sm:$0xff]   ;;  %v12453_v4 = vld [vmem:[#allocation11 + $0x7c8] ss:$16 sps:$4 sm:$0xff]   ;;  %v12458_v33 = vld [vmem:[#allocation11 + $0x7e4] ss:$16 sps:$4 sm:$0xff]  }
 0x989   :  { %8911 = vmatpush1.bf16.msra.mxu1 %v12378_v34  ;;  %v12461_v14 = vld [vmem:[#allocation11 + $0x7ec] ss:$16 sps:$4 sm:$0xff]   ;;  %v272_v34 = vrot.slane %v13818_v20, %v13174_v48 }
 0x98a   :  { %9083 = vmatpush1.bf16.msra.mxu0 %v12381_v21  ;;  %8912 = vmatprep.subr.bf16.mxu1 %v12386_v26  ;;  %v12456_v21 = vld [vmem:[#allocation11 + $0x7e0] ss:$16 sps:$4 sm:$0xff]   ;;  %v12459_v26 = vld [vmem:[#allocation11 + $0x7e8] ss:$16 sps:$4 sm:$0xff]  }
 0x98b   :  { %9084 = vmatprep.subr.bf16.mxu0 %v12389_v9  ;;  %v12464_v9 = vld [vmem:[#allocation13 + $0x4] ss:$8 sps:$4 sm:$0xff]  }
 0x98d   :  { %8913 = vmatpush1.bf16.msra.mxu1 %v12384_v25  ;;  %v362_v25 = vadd.f32 %v13194_v41, %v272_v34  ;;  %v12471_v41 = vld [vmem:[#allocation13 + $0x30] ss:$8 sps:$4 sm:$0xff]   ;;  %v12536_v34 = vld [vmem:[#allocation13 + $0x184] ss:$8 sps:$4 sm:$0xff]  }
 0x98e   :  { %9085 = vmatpush1.bf16.msra.mxu0 %v12387_v59  ;;  %8914 = vmatprep.subr.bf16.mxu1 %v12392_v17  ;;  %v12462_v59 = vld [vmem:[#allocation13] ss:$8 sps:$4 sm:$0xff]   ;;  %v12467_v17 = vld [vmem:[#allocation13 + $0x14] ss:$8 sps:$4 sm:$0xff]  }
 0x98f   :  { %9086 = vmatprep.subr.bf16.mxu0 %v12395_v37  ;;  %v9187_v37 = vpack.c.bf16 %v362_v25, %v362_v25  ;;  %v12542_v25 = vld [vmem:[#allocation13 + $0x1a4] ss:$8 sps:$4 sm:$0xff]  }
 0x991   :  { %8915 = vmatpush1.bf16.msra.mxu1 %v12390_v19  ;;  %v12465_v19 = vld [vmem:[#allocation13 + $0x10] ss:$8 sps:$4 sm:$0xff]  }
 0x992   :  { %9087 = vmatpush1.bf16.msra.mxu0 %v12393_v27  ;;  %8916 = vmatprep.subr.bf16.mxu1 %v12398_v30  ;;  %v12470_v27 = vld [vmem:[#allocation13 + $0x24] ss:$8 sps:$4 sm:$0xff]   ;;  %v12468_v30 = vld [vmem:[#allocation13 + $0x20] ss:$8 sps:$4 sm:$0xff]  }
 0x993   :  { %9088 = vmatprep.subr.bf16.mxu0 %v12401_v24  ;;  %v12473_v24 = vld [vmem:[#allocation13 + $0x34] ss:$8 sps:$4 sm:$0xff]  }
 0x995   :  { %8917 = vmatpush1.bf16.msra.mxu1 %v12396_v5  ;;  %v12476_v5 = vld [vmem:[#allocation13 + $0x44] ss:$8 sps:$4 sm:$0xff]  }
 0x996   :  { %9089 = vmatpush1.bf16.msra.mxu0 %v12399_v3  ;;  %8918 = vmatprep.subr.bf16.mxu1 %v12404_v2  ;;  %v12474_v3 = vld [vmem:[#allocation13 + $0x40] ss:$8 sps:$4 sm:$0xff]   ;;  %v12479_v2 = vld [vmem:[#allocation13 + $0x54] ss:$8 sps:$4 sm:$0xff]  }
 0x997   :  { %9090 = vmatprep.subr.bf16.mxu0 %v12407_v38  ;;  %v12477_v38 = vld [vmem:[#allocation13 + $0x50] ss:$8 sps:$4 sm:$0xff]  }
 0x999   :  { %8919 = vmatpush1.bf16.msra.mxu1 %v12402_v49  ;;  %v12480_v49 = vld [vmem:[#allocation13 + $0x60] ss:$8 sps:$4 sm:$0xff]  }
 0x99a   :  { %9091 = vmatpush1.bf16.msra.mxu0 %v12405_v18  ;;  %8920 = vmatprep.subr.bf16.mxu1 %v12410_v6  ;;  %v12485_v18 = vld [vmem:[#allocation13 + $0x74] ss:$8 sps:$4 sm:$0xff]   ;;  %v12483_v6 = vld [vmem:[#allocation13 + $0x70] ss:$8 sps:$4 sm:$0xff]  }
 0x99b   :  { %9092 = vmatprep.subr.bf16.mxu0 %v12413_v39  ;;  %v12488_v39 = vld [vmem:[#allocation13 + $0x84] ss:$8 sps:$4 sm:$0xff]  }
 0x99d   :  { %8921 = vmatpush1.bf16.msra.mxu1 %v12408_v46  ;;  %v12486_v46 = vld [vmem:[#allocation13 + $0x80] ss:$8 sps:$4 sm:$0xff]  }
 0x99e   :  { %9093 = vmatpush1.bf16.msra.mxu0 %v12411_v35  ;;  %8922 = vmatprep.subr.bf16.mxu1 %v12416_v42  ;;  %v12491_v35 = vld [vmem:[#allocation13 + $0x94] ss:$8 sps:$4 sm:$0xff]   ;;  %v12489_v42 = vld [vmem:[#allocation13 + $0x90] ss:$8 sps:$4 sm:$0xff]  }
 0x99f   :  { %9094 = vmatprep.subr.bf16.mxu0 %v12419_v52  ;;  %v12494_v52 = vld [vmem:[#allocation13 + $0xa4] ss:$8 sps:$4 sm:$0xff]  }
 0x9a1   :  { %8923 = vmatpush1.bf16.msra.mxu1 %v12414_v22  ;;  %v12492_v22 = vld [vmem:[#allocation13 + $0xa0] ss:$8 sps:$4 sm:$0xff]  }
 0x9a2   :  { %9095 = vmatpush1.bf16.msra.mxu0 %v12417_v56  ;;  %8924 = vmatprep.subr.bf16.mxu1 %v12422_v0  ;;  %v12497_v56 = vld [vmem:[#allocation13 + $0xb4] ss:$8 sps:$4 sm:$0xff]   ;;  %v12495_v0 = vld [vmem:[#allocation13 + $0xb0] ss:$8 sps:$4 sm:$0xff]  }
 0x9a3   :  { %9096 = vmatprep.subr.bf16.mxu0 %v12425_v23  ;;  %v12500_v23 = vld [vmem:[#allocation13 + $0xc4] ss:$8 sps:$4 sm:$0xff]  }
 0x9a5   :  { %8925 = vmatpush1.bf16.msra.mxu1 %v12420_v57  ;;  %v12498_v57 = vld [vmem:[#allocation13 + $0xc0] ss:$8 sps:$4 sm:$0xff]  }
 0x9a6   :  { %9097 = vmatpush1.bf16.msra.mxu0 %v12423_v62  ;;  %8926 = vmatprep.subr.bf16.mxu1 %v12428_v16  ;;  %v12503_v62 = vld [vmem:[#allocation13 + $0xd4] ss:$8 sps:$4 sm:$0xff]   ;;  %v12501_v16 = vld [vmem:[#allocation13 + $0xd0] ss:$8 sps:$4 sm:$0xff]  }
 0x9a7   :  { %9098 = vmatprep.subr.bf16.mxu0 %v12431_v61  ;;  %v12506_v61 = vld [vmem:[#allocation13 + $0xe4] ss:$8 sps:$4 sm:$0xff]  }
 0x9a9   :  { %8927 = vmatpush1.bf16.msra.mxu1 %v12426_v12  ;;  %v12504_v12 = vld [vmem:[#allocation13 + $0xe0] ss:$8 sps:$4 sm:$0xff]  }
 0x9aa   :  { %9099 = vmatpush1.bf16.msra.mxu0 %v12429_v51  ;;  %8928 = vmatprep.subr.bf16.mxu1 %v12434_v28  ;;  %v268_v51 = vrot.slane %v13818_v20, %v13171_v47  ;;  %v12509_v28 = vld [vmem:[#allocation13 + $0xf4] ss:$8 sps:$4 sm:$0xff]   ;;  %v12525_v20 = vld [vmem:[#allocation13 + $0x150] ss:$8 sps:$4 sm:$0xff]  }
 0x9ab   :  { %9100 = vmatprep.subr.bf16.mxu0 %v12437_v1  ;;  %v12507_v1 = vld [vmem:[#allocation13 + $0xf0] ss:$8 sps:$4 sm:$0xff]  }
 0x9ad   :  { %8929 = vmatpush1.bf16.msra.mxu1 %v12432_v50  ;;  %v360_v50 = vadd.f32 %v13192_v40, %v268_v51  ;;  %v12524_v40 = vld [vmem:[#allocation13 + $0x144] ss:$8 sps:$4 sm:$0xff]  }
 0x9ae   :  { %9101 = vmatpush1.bf16.msra.mxu0 %v12435_v53  ;;  %8930 = vmatprep.subr.bf16.mxu1 %v12440_v29  ;;  %v12512_v53 = vld [vmem:[#allocation13 + $0x104] ss:$8 sps:$4 sm:$0xff]   ;;  %v12510_v29 = vld [vmem:[#allocation13 + $0x100] ss:$8 sps:$4 sm:$0xff]  }
 0x9af   :  { %9102 = vmatprep.subr.bf16.mxu0 %v12443_v63  ;;  %v9186_v63 = vpack.c.bf16 %v360_v50, %v360_v50 }
 0x9b1   :  { %8931 = vmatpush1.bf16.msra.mxu1 %v12438_v31  ;;  %v12515_v31 = vld [vmem:[#allocation13 + $0x114] ss:$8 sps:$4 sm:$0xff]  }
 0x9b2   :  { %9103 = vmatpush1.bf16.msra.mxu0 %v12441_v10  ;;  %8932 = vmatprep.subr.bf16.mxu1 %v12446_v8  ;;  %v12513_v10 = vld [vmem:[#allocation13 + $0x110] ss:$8 sps:$4 sm:$0xff]   ;;  %v12518_v8 = vld [vmem:[#allocation13 + $0x124] ss:$8 sps:$4 sm:$0xff]  }
 0x9b3   :  { %9104 = vmatprep.subr.bf16.mxu0 %v12449_v32  ;;  %v12516_v32 = vld [vmem:[#allocation13 + $0x120] ss:$8 sps:$4 sm:$0xff]  }
 0x9b5   :  { %8933 = vmatpush1.bf16.msra.mxu1 %v12444_v55  ;;  %v12521_v55 = vld [vmem:[#allocation13 + $0x134] ss:$8 sps:$4 sm:$0xff]  }
 0x9b6   :  { %9105 = vmatpush1.bf16.msra.mxu0 %v12447_v60  ;;  %8934 = vmatprep.subr.bf16.mxu1 %v12452_v58  ;;  %v12519_v60 = vld [vmem:[#allocation13 + $0x130] ss:$8 sps:$4 sm:$0xff]   ;;  %v12522_v58 = vld [vmem:[#allocation13 + $0x140] ss:$8 sps:$4 sm:$0xff]  }
 0x9b7   :  { %9106 = vmatprep.subr.bf16.mxu0 %v12455_v36  ;;  %v12527_v36 = vld [vmem:[#allocation13 + $0x154] ss:$8 sps:$4 sm:$0xff]  }
 0x9b9   :  { %8935 = vmatpush1.bf16.msra.mxu1 %v12450_v7  ;;  %v12530_v7 = vld [vmem:[#allocation13 + $0x164] ss:$8 sps:$4 sm:$0xff]  }
 0x9ba   :  { %9107 = vmatpush1.bf16.msra.mxu0 %v12453_v4  ;;  %8936 = vmatprep.subr.bf16.mxu1 %v12458_v33  ;;  %v12528_v4 = vld [vmem:[#allocation13 + $0x160] ss:$8 sps:$4 sm:$0xff]   ;;  %v12533_v33 = vld [vmem:[#allocation13 + $0x174] ss:$8 sps:$4 sm:$0xff]  }
 0x9bb   :  { %9108 = vmatprep.subr.bf16.mxu0 %v12461_v14  ;;  %v12531_v14 = vld [vmem:[#allocation13 + $0x170] ss:$8 sps:$4 sm:$0xff]  }
 0x9bd   :  { %8937 = vmatpush1.bf16.msra.mxu1 %v12456_v21  ;;  %v12534_v21 = vld [vmem:[#allocation13 + $0x180] ss:$8 sps:$4 sm:$0xff]  }
 0x9be   :  { %9109 = vmatpush1.bf16.msra.mxu0 %v12459_v26  ;;  %9780 = vmatprep.subr.bf16.mxu1 %v12464_v9  ;;  %v12539_v26 = vld [vmem:[#allocation13 + $0x194] ss:$8 sps:$4 sm:$0xff]   ;;  %v12537_v9 = vld [vmem:[#allocation13 + $0x190] ss:$8 sps:$4 sm:$0xff]  }
 0x9c0   :  { %8939 = vmatmul.mubr.bf16.vlgmr.msra.gmra.mrb[80].mxu1 %v13813_v54 }
 0x9c1   :  { %9111 = vmatmul.mubr.bf16.vlgmr.msra.gmra.mrb[104].mxu0 %v13813_v54  ;;  %9781 = vmatpush1.bf16.msra.mxu1 %v12462_v59  ;;  %v12482_v54 = vld [vmem:[#allocation13 + $0x64] ss:$8 sps:$4 sm:$0xff]   ;;  %v12540_v59 = vld [vmem:[#allocation13 + $0x1a0] ss:$8 sps:$4 sm:$0xff]  }
 0x9c2   :  { %9812 = vmatprep.mubr.bf16.mxu1 %v9187_v37  ;;  %9782 = vmatprep.subr.bf16.mxu1 %v12467_v17  ;;  %v12545_v17 = vld [vmem:[#allocation13 + $0x1b4] ss:$8 sps:$4 sm:$0xff]   ;;  %v12543_v37 = vld [vmem:[#allocation13 + $0x1b0] ss:$8 sps:$4 sm:$0xff]  }
 0x9c5   :  { %9783 = vmatpush1.bf16.msra.mxu1 %v12465_v19  ;;  %v12548_v19 = vld [vmem:[#allocation13 + $0x1c4] ss:$8 sps:$4 sm:$0xff]  }
 0x9c6   :  { %9784 = vmatprep.subr.bf16.mxu1 %v12470_v27  ;;  %v12546_v27 = vld [vmem:[#allocation13 + $0x1c0] ss:$8 sps:$4 sm:$0xff]  }
 0x9c9   :  { %9785 = vmatpush1.bf16.msra.mxu1 %v12468_v30  ;;  %v12551_v30 = vld [vmem:[#allocation13 + $0x1d4] ss:$8 sps:$4 sm:$0xff]  }
 0x9ca   :  { %9786 = vmatprep.subr.bf16.mxu1 %v12473_v24  ;;  %v12549_v24 = vld [vmem:[#allocation13 + $0x1d0] ss:$8 sps:$4 sm:$0xff]  }
 0x9cd   :  { %9787 = vmatpush1.bf16.msra.mxu1 %v12471_v41  ;;  %v12554_v41 = vld [vmem:[#allocation13 + $0x1e4] ss:$8 sps:$4 sm:$0xff]  }
 0x9ce   :  { %9788 = vmatprep.subr.bf16.mxu1 %v12476_v5  ;;  %v12552_v5 = vld [vmem:[#allocation13 + $0x1e0] ss:$8 sps:$4 sm:$0xff]  }
 0x9d1   :  { %9789 = vmatpush1.bf16.msra.mxu1 %v12474_v3  ;;  %v12557_v3 = vld [vmem:[#allocation13 + $0x1f4] ss:$8 sps:$4 sm:$0xff]  }
 0x9d2   :  { %9790 = vmatprep.subr.bf16.mxu1 %v12479_v2  ;;  %v12555_v2 = vld [vmem:[#allocation13 + $0x1f0] ss:$8 sps:$4 sm:$0xff]  }
 0x9d5   :  { %9791 = vmatpush1.bf16.msra.mxu1 %v12477_v38  ;;  %v12560_v38 = vld [vmem:[#allocation13 + $0x204] ss:$8 sps:$4 sm:$0xff]  }
 0x9d6   :  { %9792 = vmatprep.subr.bf16.mxu1 %v12482_v54  ;;  %v7475_v54 = vld [vmem:[%s13884_s18] sm:$0xf] }
 0x9d9   :  { %9793 = vmatpush1.bf16.msra.mxu1 %v12480_v49  ;;  %v7480_v49 = vrot.slane %v7475_v54, %v13171_v47 }
 0x9da   :  { %9794 = vmatprep.subr.bf16.mxu1 %v12485_v18  ;;  %v7488_v18 = vrot.slane %v7475_v54, %v5541_v43 }
 0x9dd   :  { %9795 = vmatpush1.bf16.msra.mxu1 %v12483_v6  ;;  %v7484_v6 = vrot.slane %v7475_v54, %v13174_v48 }
 0x9de   :  { %9796 = vmatprep.subr.bf16.mxu1 %v12488_v39  ;;  %v7492_v39 = vrot.slane %v7475_v54, %v5545_v11 }
 0x9e1   :  { %9797 = vmatpush1.bf16.msra.mxu1 %v12486_v46 }
 0x9e2   :  { %9798 = vmatprep.subr.bf16.mxu1 %v12491_v35 }
 0x9e5   :  { %9799 = vmatpush1.bf16.msra.mxu1 %v12489_v42 }
 0x9e6   :  { %9800 = vmatprep.subr.bf16.mxu1 %v12494_v52 }
 0x9e9   :  { %9801 = vmatpush1.bf16.msra.mxu1 %v12492_v22 }
 0x9ea   :  { %9802 = vmatprep.subr.bf16.mxu1 %v12497_v56 }
 0x9ed   :  { %9803 = vmatpush1.bf16.msra.mxu1 %v12495_v0 }
 0x9ee   :  { %9804 = vmatprep.subr.bf16.mxu1 %v12500_v23 }
 0x9f1   :  { %9805 = vmatpush1.bf16.msra.mxu1 %v12498_v57 }
 0x9f2   :  { %9806 = vmatprep.subr.bf16.mxu1 %v12503_v62 }
 0x9f5   :  { %9807 = vmatpush1.bf16.msra.mxu1 %v12501_v16 }
 0x9f6   :  { %9808 = vmatprep.subr.bf16.mxu1 %v12506_v61 }
 0x9f9   :  { %9809 = vmatpush1.bf16.msra.mxu1 %v12504_v12 }
 0x9fa   :  { %9810 = vmatprep.subr.bf16.mxu1 %v12509_v28 }
 0x9fd   :  { %9811 = vmatpush1.bf16.msra.mxu1 %v12507_v1 }
 0x9fe   :  { %9821 = vmatprep.subr.bf16.mxu1 %v12512_v53 }
 0xa00   :  { %9813 = vmatmul.mubr.bf16.vlgmr.msra.gmra.mrb[84].mxu1 %v9186_v63 }
 0xa01   :  { %9822 = vmatpush1.bf16.msra.mxu1 %v12510_v29 }
 0xa02   :  { %9823 = vmatprep.subr.bf16.mxu1 %v12515_v31 }
 0xa05   :  { %9824 = vmatpush1.bf16.msra.mxu1 %v12513_v10 }
 0xa06   :  { %9825 = vmatprep.subr.bf16.mxu1 %v12518_v8 }
 0xa09   :  { %9826 = vmatpush1.bf16.msra.mxu1 %v12516_v32 }
 0xa0a   :  { %9827 = vmatprep.subr.bf16.mxu1 %v12521_v55 }
 0xa0d   :  { %9828 = vmatpush1.bf16.msra.mxu1 %v12519_v60 }
 0xa0e   :  { %9829 = vmatprep.subr.bf16.mxu1 %v12524_v40 }
 0xa11   :  { %9830 = vmatpush1.bf16.msra.mxu1 %v12522_v58 }
 0xa12   :  { %9831 = vmatprep.subr.bf16.mxu1 %v12527_v36 }
 0xa15   :  { %9832 = vmatpush1.bf16.msra.mxu1 %v12525_v20 }
 0xa16   :  { %9833 = vmatprep.subr.bf16.mxu1 %v12530_v7 }
 0xa19   :  { %9834 = vmatpush1.bf16.msra.mxu1 %v12528_v4 }
 0xa1a   :  { %9835 = vmatprep.subr.bf16.mxu1 %v12533_v33 }
 0xa1d   :  { %9836 = vmatpush1.bf16.msra.mxu1 %v12531_v14 }
 0xa1e   :  { %9837 = vmatprep.subr.bf16.mxu1 %v12536_v34 }
 0xa21   :  { %9838 = vmatpush1.bf16.msra.mxu1 %v12534_v21 }
 0xa22   :  { %9839 = vmatprep.subr.bf16.mxu1 %v12539_v26 }
 0xa25   :  { %9840 = vmatpush1.bf16.msra.mxu1 %v12537_v9 }
 0xa26   :  { %9841 = vmatprep.subr.bf16.mxu1 %v12542_v25 }
 0xa29   :  { %9842 = vmatpush1.bf16.msra.mxu1 %v12540_v59 }
 0xa2a   :  { %9843 = vmatprep.subr.bf16.mxu1 %v12545_v17 }
 0xa2d   :  { %9844 = vmatpush1.bf16.msra.mxu1 %v12543_v37 }
 0xa2e   :  { %9845 = vmatprep.subr.bf16.mxu1 %v12548_v19 }
 0xa31   :  { %9846 = vmatpush1.bf16.msra.mxu1 %v12546_v27 }
 0xa32   :  { %9847 = vmatprep.subr.bf16.mxu1 %v12551_v30 }
 0xa35   :  { %9848 = vmatpush1.bf16.msra.mxu1 %v12549_v24 }
 0xa36   :  { %9849 = vmatprep.subr.bf16.mxu1 %v12554_v41 }
 0xa39   :  { %9850 = vmatpush1.bf16.msra.mxu1 %v12552_v5 }
 0xa3a   :  { %9851 = vmatprep.subr.bf16.mxu1 %v12557_v3 }
 0xa3d   :  { %9852 = vmatpush1.bf16.msra.mxu1 %v12555_v2 }
 0xa3e   :  { %9862 = vmatprep.subr.bf16.mxu1 %v12560_v38 }
 0xa93   :  { %v8940_v46 = vpop.f32.mrb[80].mxu1 }
 0xa94   :  { %v11328_v35 = vadd.f32 %v8940_v46, %v7480_v49  ;;  %v9112_v42 = vpop.f32.mrb[104].mxu0  ;;  %v8942_v52 = vpop.f32.mrb[81].mxu1 }
 0xa95   :  { %v11332_v22 = vadd.f32 %v9112_v42, %v7488_v18  ;;  %v11329_v56 = vadd.f32 %v8942_v52, %v7484_v6  ;;  %v9114_v0 = vpop.f32.mrb[105].mxu0  ;;  %v8944_v23 = vpop.f32.mrb[82].mxu1 }
 0xa96   :  { %v9121_v57 = vrot.slane %v11328_v35, 4  ;;  %v11333_v62 = vadd.f32 %v9114_v0, %v7492_v39  ;;  %v11330_v16 = vadd.f32 %v8944_v23, %v7480_v49  ;;  %v9116_v61 = vpop.f32.mrb[106].mxu0  ;;  %v8946_v12 = vpop.f32.mrb[83].mxu1 }
 0xa97   :  { %v9133_v51 = vrot.slane %v11332_v22, 4  ;;  %v9127_v43 = vrot.slane %v11329_v56, 4  ;;  %v11334_v28 = vadd.f32 %v9116_v61, %v7488_v18  ;;  %v11331_v1 = vadd.f32 %v8946_v12, %v7484_v6  ;;  %v9118_v50 = vpop.f32.mrb[107].mxu0 }
 0xa98   :  { %v9122_v53 = vmax.f32 %v11328_v35, %v9121_v57  ;;  %v9139_v11 = vrot.slane %v11333_v62, 4  ;;  %v9145_v29 = vrot.slane %v11330_v16, 4  ;;  %v11335_v63 = vadd.f32 %v9118_v50, %v7492_v39  ;;  %v12564_v50 = vld [vmem:[#allocation13 + $0x220] ss:$8 sps:$4 sm:$0xff]  }
 0xa99   :  { %v9134_v31 = vmax.f32 %v11332_v22, %v9133_v51  ;;  %v9128_v10 = vmax.f32 %v11329_v56, %v9127_v43  ;;  %v9157_v8 = vrot.slane %v11334_v28, 4  ;;  %v9151_v32 = vrot.slane %v11331_v1, 4  ;;  %v12563_v51 = vld [vmem:[#allocation13 + $0x214] ss:$8 sps:$4 sm:$0xff]  }
 0xa9a   :  { %v9123_v55 = vrot.slane %v9122_v53, 2  ;;  %v9140_v60 = vmax.f32 %v11333_v62, %v9139_v11  ;;  %v9146_v40 = vmax.f32 %v11330_v16, %v9145_v29  ;;  %v9163_v58 = vrot.slane %v11335_v63, 4  ;;  %v12558_v16 = vld [vmem:[#allocation13 + $0x200] ss:$8 sps:$4 sm:$0xff]   ;;  %v12567_v11 = vld [vmem:[#allocation13 + $0x230] ss:$8 sps:$4 sm:$0xff]  }
 0xa9b   :  { %v9135_v36 = vrot.slane %v9134_v31, 2  ;;  %v9129_v20 = vrot.slane %v9128_v10, 2  ;;  %v9158_v7 = vmax.f32 %v11334_v28, %v9157_v8  ;;  %v9152_v4 = vmax.f32 %v11331_v1, %v9151_v32  ;;  %v12561_v28 = vld [vmem:[#allocation13 + $0x210] ss:$8 sps:$4 sm:$0xff]   ;;  %v12566_v1 = vld [vmem:[#allocation13 + $0x224] ss:$8 sps:$4 sm:$0xff]  }
 0xa9c   :  { %v9124_v33 = vmax.f32 %v9122_v53, %v9123_v55  ;;  %v9141_v14 = vrot.slane %v9140_v60, 2  ;;  %v9147_v34 = vrot.slane %v9146_v40, 2  ;;  %v9164_v21 = vmax.f32 %v11335_v63, %v9163_v58  ;;  %v12569_v53 = vld [vmem:[#allocation13 + $0x234] ss:$8 sps:$4 sm:$0xff]   ;;  %v12572_v29 = vld [vmem:[#allocation13 + $0x244] ss:$8 sps:$4 sm:$0xff]  }
 0xa9d   :  { %v9136_v26 = vmax.f32 %v9134_v31, %v9135_v36  ;;  %v9130_v9 = vmax.f32 %v9128_v10, %v9129_v20  ;;  %v9159_v25 = vrot.slane %v9158_v7, 2  ;;  %v9153_v59 = vrot.slane %v9152_v4, 2  ;;  %v12570_v63 = vld [vmem:[#allocation13 + $0x240] ss:$8 sps:$4 sm:$0xff]   ;;  %v12575_v31 = vld [vmem:[#allocation13 + $0x254] ss:$8 sps:$4 sm:$0xff]  }
 0xa9e   :  { %v9125_v17 = vrot.slane %v9124_v33, 1  ;;  %v9142_v37 = vmax.f32 %v9140_v60, %v9141_v14  ;;  %v9148_v19 = vmax.f32 %v9146_v40, %v9147_v34  ;;  %v9165_v27 = vrot.slane %v9164_v21, 2  ;;  %v12573_v10 = vld [vmem:[#allocation13 + $0x250] ss:$8 sps:$4 sm:$0xff]   ;;  %v12578_v8 = vld [vmem:[#allocation13 + $0x264] ss:$8 sps:$4 sm:$0xff]  }
 0xa9f   :  { %v9137_v30 = vrot.slane %v9136_v26, 1  ;;  %v9131_v24 = vrot.slane %v9130_v9, 1  ;;  %v9160_v41 = vmax.f32 %v9158_v7, %v9159_v25  ;;  %v9154_v5 = vmax.f32 %v9152_v4, %v9153_v59  ;;  %v12576_v32 = vld [vmem:[#allocation13 + $0x260] ss:$8 sps:$4 sm:$0xff]   ;;  %v12581_v55 = vld [vmem:[#allocation13 + $0x274] ss:$8 sps:$4 sm:$0xff]  }
 0xaa0   :  { %v9143_v3 = vrot.slane %v9142_v37, 1  ;;  %v9149_v2 = vrot.slane %v9148_v19, 1  ;;  %v9166_v38 = vmax.f32 %v9164_v21, %v9165_v27  ;;  %v9126_v18 = vmax.f32 %v9124_v33, %v9125_v17  ;;  %v12579_v60 = vld [vmem:[#allocation13 + $0x270] ss:$8 sps:$4 sm:$0xff]   ;;  %v12584_v40 = vld [vmem:[#allocation13 + $0x284] ss:$8 sps:$4 sm:$0xff]  }
 0xaa1   :  { %v9161_v54 = vrot.slane %v9160_v41, 1  ;;  %v9155_v49 = vrot.slane %v9154_v5, 1  ;;  %v9138_v46 = vmax.f32 %v9136_v26, %v9137_v30  ;;  %v9132_v35 = vmax.f32 %v9130_v9, %v9131_v24  ;;  %v12582_v58 = vld [vmem:[#allocation13 + $0x280] ss:$8 sps:$4 sm:$0xff]   ;;  %v12587_v36 = vld [vmem:[#allocation13 + $0x294] ss:$8 sps:$4 sm:$0xff]  }
 0xaa2   :  { %v9150_v6 = vmax.f32 %v9148_v19, %v9149_v2  ;;  %v9167_v39 = vrot.slane %v9166_v38, 1  ;;  %v9144_v22 = vmax.f32 %v9142_v37, %v9143_v3  ;;  %v12585_v20 = vld [vmem:[#allocation13 + $0x290] ss:$8 sps:$4 sm:$0xff]   ;;  %v12590_v7 = vld [vmem:[#allocation13 + $0x2a4] ss:$8 sps:$4 sm:$0xff]  }
 0xaa3   :  { %v9162_v42 = vmax.f32 %v9160_v41, %v9161_v54  ;;  %v9156_v52 = vmax.f32 %v9154_v5, %v9155_v49  ;;  %v12588_v4 = vld [vmem:[#allocation13 + $0x2a0] ss:$8 sps:$4 sm:$0xff]   ;;  %v12593_v33 = vld [vmem:[#allocation13 + $0x2b4] ss:$8 sps:$4 sm:$0xff]   ;;  %v12591_v14 = vld [vmem:[#allocation13 + $0x2b0] ss:$8 sps:$4 sm:$0xff]  }
 0xaa4   :  { %v9168_v56 = vmax.f32 %v9166_v38, %v9167_v39  ;;  %v9178_v0 = vsel %vm9177_vm7, %v9150_v6, %v9126_v18  ;;  %v12596_v34 = vld [vmem:[#allocation13 + $0x2c4] ss:$8 sps:$4 sm:$0xff]   ;;  %v12594_v21 = vld [vmem:[#allocation13 + $0x2c0] ss:$8 sps:$4 sm:$0xff]   ;;  %v12599_v26 = vld [vmem:[#allocation13 + $0x2d4] ss:$8 sps:$4 sm:$0xff]  }
 0xaa5   :  { %v9179_v23 = vsel %vm9177_vm7, %v9156_v52, %v9132_v35  ;;  %v13837_v57 = vsel %vm9177_vm7, %v9162_v42, %v9138_v46  ;;  %v9188_v12 = vpack.c.bf16 %v9178_v0, %v9178_v0  ;;  %v12597_v9 = vld [vmem:[#allocation13 + $0x2d0] ss:$8 sps:$4 sm:$0xff]   ;;  %v12602_v25 = vld [vmem:[#allocation13 + $0x2e4] ss:$8 sps:$4 sm:$0xff]   ;;  %v12600_v59 = vld [vmem:[#allocation13 + $0x2e0] ss:$8 sps:$4 sm:$0xff]   ;;  %v9918_v0 = vpop.xlane.xlu1 %9917 }
 0xaa6   :  { %v9189_v62 = vpack.c.bf16 %v9179_v23, %v9179_v23  ;;  %v9181_v61 = vsel %vm9177_vm7, %v9168_v56, %v9144_v22  ;;  %v12605_v17 = vld [vmem:[#allocation13 + $0x2f4] ss:$8 sps:$4 sm:$0xff]   ;;  %v12603_v37 = vld [vmem:[#allocation13 + $0x2f0] ss:$8 sps:$4 sm:$0xff]   ;;  %v9190_v19 = vpack.c.bf16 %v13837_v57, %v13837_v57  ;;  %v9288_v27 = vld [vmem:[%s13886_s20] sm:$0x3]  ;;  %12670 = vrsqrt.f32 %v9918_v0 }
 0xaa7   :  { %v9191_v43 = vpack.c.bf16 %v9181_v61, %v9181_v61  ;;  %v9293_v30 = vrot.slane %v9288_v27, %v13171_v47  ;;  %v9297_v24 = vrot.slane %v9288_v27, %v13174_v48  ;;  %vm9921_vm8 = vcmp.eq.f32.partialorder %v9918_v0, inf  ;;  %s12880_s20 = smov [#allocation14]  }
 0xaa8   :  { %9853 = vmatprep.mubr.bf16.mxu1 %v9189_v62  ;;  %vm9923_vm9 = vcmp.eq.f32.partialorder %v9918_v0, 0.0  ;;  %s9963_s26 = sshll.u32 %s12880_s20, 4  ;;  %s9964_s26 = int_to_ptr.vmem [resolvable:$true] %s9963_s26 }
 0xaa9   :  { %9854 = vmatmul.mubr.bf16.vlgmr.msra.gmra.mrb[84].mxu1 %v9188_v12  ;;  %s12832_s0 = scalar_lea.vmem %s9964_s26, 16  ;;  %s12836_s4 = scalar_lea.vmem %s9964_s26, 32 }
 0xaaa   :  { %9863 = vmatpush1.bf16.msra.mxu1 %v12558_v16  ;;  %9894 = vmatprep.mubr.bf16.mxu1 %v9191_v43  ;;  %v9924_v16 = vand.u32 2147483648, %v9918_v0  ;;  %p12833_p0 = scmp.ne.s32.totalorder %s9964_s26, %s12832_s0  ;;  %p12837_p1 = scmp.lt.s32.totalorder %s9964_s26, %s9964_s26 }
 0xaab   :  { %9864 = vmatprep.subr.bf16.mxu1 %v12563_v51  ;;  %p12838_p2 = scmp.lt.s32.totalorder %s12836_s4, %s12832_s0 }
 0xaad   :  { %p12839_p3 = por %p12838_p2, %p12837_p1 }
 0xaae   :  { %9865 = vmatpush1.bf16.msra.mxu1 %v12561_v28 }
 0xaaf   :  { %9866 = vmatprep.subr.bf16.mxu1 %v12566_v1  ;;  %p12840_p4 = pnand %p12839_p3, %p12833_p0 }
 0xab2   :  { %9867 = vmatpush1.bf16.msra.mxu1 %v12564_v50 }
 0xab3   :  { %9868 = vmatprep.subr.bf16.mxu1 %v12569_v53 }
 0xab6   :  { %9869 = vmatpush1.bf16.msra.mxu1 %v12567_v11  ;;  %v9949_v11 = vand.u32 127, %v169_v44 }
 0xab7   :  { %9870 = vmatprep.subr.bf16.mxu1 %v12572_v29 }
 0xaba   :  { %9871 = vmatpush1.bf16.msra.mxu1 %v12570_v63 }
 0xabb   :  { %9872 = vmatprep.subr.bf16.mxu1 %v12575_v31 }
 0xabe   :  { %9873 = vmatpush1.bf16.msra.mxu1 %v12573_v10  ;;  %v9952_v10 = vsub.s32 %v9949_v11, %v13165_v45 }
 0xabf   :  { %9874 = vmatprep.subr.bf16.mxu1 %v12578_v8 }
 0xac2   :  { %9875 = vmatpush1.bf16.msra.mxu1 %v12576_v32 }
 0xac3   :  { %9876 = vmatprep.subr.bf16.mxu1 %v12581_v55 }
 0xac6   :  { %9877 = vmatpush1.bf16.msra.mxu1 %v12579_v60 }
 0xac7   :  { %9878 = vmatprep.subr.bf16.mxu1 %v12584_v40 }
 0xaca   :  { %9879 = vmatpush1.bf16.msra.mxu1 %v12582_v58 }
 0xacb   :  { %9880 = vmatprep.subr.bf16.mxu1 %v12587_v36 }
 0xace   :  { %9881 = vmatpush1.bf16.msra.mxu1 %v12585_v20 }
 0xacf   :  { %9882 = vmatprep.subr.bf16.mxu1 %v12590_v7 }
 0xad2   :  { %9883 = vmatpush1.bf16.msra.mxu1 %v12588_v4 }
 0xad3   :  { %9884 = vmatprep.subr.bf16.mxu1 %v12593_v33 }
 0xad6   :  { %9885 = vmatpush1.bf16.msra.mxu1 %v12591_v14 }
 0xad7   :  { %9886 = vmatprep.subr.bf16.mxu1 %v12596_v34 }
 0xada   :  { %9887 = vmatpush1.bf16.msra.mxu1 %v12594_v21 }
 0xadb   :  { %9888 = vmatprep.subr.bf16.mxu1 %v12599_v26 }
 0xade   :  { %9889 = vmatpush1.bf16.msra.mxu1 %v12597_v9 }
 0xadf   :  { %9890 = vmatprep.subr.bf16.mxu1 %v12602_v25 }
 0xae2   :  { %9891 = vmatpush1.bf16.msra.mxu1 %v12600_v59 }
 0xae3   :  { %9892 = vmatprep.subr.bf16.mxu1 %v12605_v17 }
 0xae6   :  { %9893 = vmatpush1.bf16.msra.mxu1 %v12603_v37 }
 0xae9   :  { %9895 = vmatmul.mubr.bf16.vlgmr.msra.gmra.mrb[84].mxu1 %v9190_v19 }
 0xbbc   :  { %v9896_v41 = vpop.f32.mrb[84].mxu1 }
 0xbbd   :  { %v11336_v5 = vadd.f32 %v9896_v41, %v9293_v30  ;;  %v9898_v3 = vpop.f32.mrb[85].mxu1 }
 0xbbe   :  { %v11337_v2 = vadd.f32 %v9898_v3, %v9297_v24  ;;  %v9900_v38 = vpop.f32.mrb[86].mxu1 }
 0xbbf   :  { %v9903_v54 = vmax.f32 %v11336_v5, 0.0  ;;  %v9901_v49 = vpop.f32.mrb[87].mxu1 }
 0xbc0   :  { %v9904_v18 = vmax.f32 %v11337_v2, 0.0 }
 0xbc1   :  { %v9905_v6 = vmul.f32 %v9903_v54, %v13727_v15  ;;  %v9927_v39 = vmul.f32 %v9903_v54, %v9903_v54  ;;  %v12671_v15 = vpop.eup %12670 }
 0xbc2   :  { %v9906_v46 = vmul.f32 %v9904_v18, %v13730_v13  ;;  %v9928_v35 = vmul.f32 %v9904_v18, %v9904_v18  ;;  %v9920_v57 = vmul.f32 %v12671_v15, %v9918_v0 }
 0xbc3   :  { %v9929_v42 = vsel %vm288_vm2, %v9927_v39, 0.0  ;;  %v9907_v47 = vsel %vm288_vm2, %v9905_v6, 0.0 }
 0xbc4   :  { %v9930_v48 = vsel %vm288_vm2, %v9928_v35, 0.0  ;;  %v9908_v52 = vsel %vm288_vm2, %v9906_v46, 0.0  ;;  %v9922_v13 = vsel %vm9921_vm8, %v9918_v0, %v9920_v57 }
 0xbc5   :  { %v9931_v22 = vadd.f32 %v9930_v48, %v9929_v42  ;;  %v9909_v56 = vadd.f32 %v9908_v52, %v9907_v47  ;;  %v9925_v12 = vsel %vm9923_vm9, %v9924_v16, %v9922_v13 }
 0xbc6   :  { %v9926_v1 = vmax.f32 %v9925_v12, 1e-06 }
 0xbc7   :  { %9932 = vadd.xlane.f32.xlu0 %v9931_v22 }
 0xbcb   :  { %9910 = vadd.xlane.f32.xlu0 %v9909_v56 }
 0xc54   :  { %v9933_v23 = vpop.xlane.xlu0 %9932 }
 0xc55   :  { %12672 = vrsqrt.f32 %v9933_v23  ;;  %vm9936_vm10 = vcmp.eq.f32.partialorder %v9933_v23, inf  ;;  %v9939_v51 = vand.u32 2147483648, %v9933_v23  ;;  %vm9938_vm11 = vcmp.eq.f32.partialorder %v9933_v23, 0.0 }
 0xc58   :  { %v9911_v63 = vpop.xlane.xlu0 %9910 }
 0xc5f   :  { %v12673_v62 = vpop.eup %12672 }
 0xc60   :  { %v9935_v61 = vmul.f32 %v12673_v62, %v9933_v23 }
 0xc62   :  { %v9937_v43 = vsel %vm9936_vm10, %v9933_v23, %v9935_v61 }
 0xc63   :  { %v9940_v28 = vsel %vm9938_vm11, %v9939_v51, %v9937_v43 }
 0xc64   :  { %v9941_v50 = vmax.f32 %v9940_v28, 1e-06 }
 0xc66   :  { %v9942_v53 = vmul.f32 %v9941_v50, %v9926_v1 }
 0xc68   :  { %12674 = vrcp.f32 %v9942_v53 }
 0xc72   :  { %v12675_v29 = vpop.eup %12674 }
 0xc73   :  { %v9944_v31 = vmul.f32 %v12675_v29, %v9911_v63 }
 0xc75   :  { %v9945_v8 = vadd.f32 1.0, %v9944_v31 }
 0xc77   :  { %v9946_v32 = vmul.f32 0.5, %v9945_v8 }
 0xc79   :  { %v9953_v55 = vrot.slane %v9946_v32, %v9952_v10 }
 0xc7b   :  { %9956 = vst.msk [vmem:[#allocation14] sm:$0x1] %vm9955_vm12, %v9953_v55 }
 0xc7c   :  { %12843 = shalt.err (!%p12840_p4)
}
 0xc7d   :  { %s12844_s24 = scalar_lea.hbm %s13887_s21, 16 }
 0xc7e   :  { %p12845_p5 = scmp.ne.s32.totalorder %s13887_s21, %s12844_s24  ;;  %p12848_p6 = scmp.lt.u32.totalorder %s12844_s24, %s13887_s21 }
 0xc80   :  { %p12850_p7 = pnand %p12848_p6, %p12845_p5 }
 0xc82   :  { %12853 = shalt.err (!%p12850_p7)
}
 0xc83   :  { %9966 = dma.vmem_to_hbm [thread:$0]  %s9964_s26, 16, %s13887_s21, [#allocation4]  }
 0xc84   :  { %12862 = dma.done.wait [#allocation4], 16  }
 0xc85   :  { %12863 = vsyncadd [#allocation4], 4294967280 }
 0xc86   :  { %9970 = vsyncpa [#allocation3], 1 }
 0xc87   :  { %9971 = vsyncpa [#allocation6], 1 }
 0xc88   :  { %9972 = vsyncpa [#allocation9], 1 }
 0xc89   :  { %9973 = vsyncpa [#allocation12], 1 }
 0xc8a   :  { %9974 = vsyncpa [#allocation4], 1 }

</bundles_post_ra>
